<compile_context>
chip_gen: v5e
topology: v5e:2x2
jax: 0.10.0
libtpu: 0.0.40
codegen_flags: <defaults>
</compile_context>

<pallas_src>
import functools

import jax
import jax.numpy as jnp
from jax.experimental import pallas as pl
from jax.experimental.pallas import tpu as pltpu


Z_DIM = 10
LANE = 128          # TPU lane width: conv output channels are padded to this
TM_MAX = 2048       # max row-tile for the conv matmuls


def _round_up(x, m):
    return ((x + m - 1) // m) * m


# ----------------------------------------------------------------------------
# Pallas kernels
# ----------------------------------------------------------------------------
def _matmul_bias_act_kernel(a_ref, w_ref, b_ref, o_ref, *, apply_relu):
    """o = act(a @ w + b); bf16 operands, f32 accumulation, lane-dense store."""
    acc = jnp.dot(a_ref[...], w_ref[...], preferred_element_type=jnp.float32)
    acc = acc + b_ref[...]                      # b: [1, N] -> broadcast rows
    if apply_relu:
        acc = jnp.maximum(acc, 0.0)
    o_ref[...] = acc.astype(o_ref.dtype)


def _tail_kernel(x_ref, w5_ref, b5_ref, wfc_ref, bfc_ref, o_ref):
    """Fused tail: ReLU(conv5) (== matmul on flattened 4x4x128 map) + fc."""
    h = jnp.dot(x_ref[...], w5_ref[...], preferred_element_type=jnp.float32)
    h = jnp.maximum(h + b5_ref[...], 0.0)                       # [M, 256] f32
    out = jnp.dot(h.astype(jnp.bfloat16), wfc_ref[...],
                  preferred_element_type=jnp.float32)
    o_ref[...] = out + bfc_ref[...]


# ----------------------------------------------------------------------------
# Kernel wrappers
# ----------------------------------------------------------------------------
def matmul_bias_act(a, w, b, *, apply_relu=True, out_dtype=jnp.bfloat16,
                    tm_max=TM_MAX):
    """a: [M, K], w: [K, N] (N multiple of 128), b: [N] -> act(a @ w + b)."""
    M, K = a.shape
    K2, N = w.shape
    assert K == K2, (K, K2)

    tm = min(tm_max, _round_up(M, 8))     # row tile, multiple of 8, <= tm_max
    M_pad = _round_up(M, tm)              # always a multiple of tm
    if M_pad != M:
        a = jnp.pad(a, ((0, M_pad - M), (0, 0)))
    grid = (M_pad // tm,)
    b2 = b.reshape(1, N).astype(jnp.float32)

    flops = 2 * M_pad * K * N
    bytes_accessed = (M_pad * K + K * N) * 2 + M_pad * N * jnp.dtype(out_dtype).itemsize

    out = pl.pallas_call(
        functools.partial(_matmul_bias_act_kernel, apply_relu=apply_relu),
        out_shape=jax.ShapeDtypeStruct((M_pad, N), out_dtype),
        grid_spec=pltpu.PrefetchScalarGridSpec(
            num_scalar_prefetch=0,
            grid=grid,
            in_specs=[
                pl.BlockSpec((tm, K), lambda i: (i, 0)),   # patch rows (tiled)
                pl.BlockSpec((K, N), lambda i: (0, 0)),    # weight (VMEM-resident)
                pl.BlockSpec((1, N), lambda i: (0, 0)),    # bias   (VMEM-resident)
            ],
            out_specs=pl.BlockSpec((tm, N), lambda i: (i, 0)),
        ),
        compiler_params=pltpu.CompilerParams(
            dimension_semantics=("parallel",),      # M tiles split across TCs
            vmem_limit_bytes=32 * 1024 * 1024),
        cost_estimate=pl.CostEstimate(
            flops=int(flops), transcendentals=0,
            bytes_accessed=int(bytes_accessed)),
    )(a.astype(jnp.bfloat16), w.astype(jnp.bfloat16), b2)
    return out[:M] if M_pad != M else out


def _fused_tail(xf, w5, b5, wfc, bfc):
    """xf: [B, 2048] bf16 -> [B, 2*z_dim] f32  (ReLU(conv5) then fc, one kernel)."""
    B, K5 = xf.shape
    N5 = w5.shape[1]          # 256
    NF = wfc.shape[1]         # 2 * z_dim
    Mp = _round_up(B, 8)
    if Mp != B:
        xf = jnp.pad(xf, ((0, Mp - B), (0, 0)))

    flops = 2 * Mp * K5 * N5 + 2 * Mp * N5 * NF
    bytes_accessed = (Mp * K5 + K5 * N5 + N5 * NF) * 2 + Mp * NF * 4

    out = pl.pallas_call(
        _tail_kernel,
        out_shape=jax.ShapeDtypeStruct((Mp, NF), jnp.float32),
        grid_spec=pltpu.PrefetchScalarGridSpec(
            num_scalar_prefetch=0,
            grid=(1,),
            in_specs=[
                pl.BlockSpec((Mp, K5), lambda i: (0, 0)),
                pl.BlockSpec((K5, N5), lambda i: (0, 0)),
                pl.BlockSpec((1, N5), lambda i: (0, 0)),
                pl.BlockSpec((N5, NF), lambda i: (0, 0)),
                pl.BlockSpec((1, NF), lambda i: (0, 0)),
            ],
            out_specs=pl.BlockSpec((Mp, NF), lambda i: (0, 0)),
        ),
        compiler_params=pltpu.CompilerParams(
            dimension_semantics=("arbitrary",),
            vmem_limit_bytes=32 * 1024 * 1024),
        cost_estimate=pl.CostEstimate(
            flops=int(flops), transcendentals=0,
            bytes_accessed=int(bytes_accessed)),
    )(xf.astype(jnp.bfloat16), w5.astype(jnp.bfloat16),
      b5.reshape(1, N5).astype(jnp.float32),
      wfc.astype(jnp.bfloat16), bfc.reshape(1, NF).astype(jnp.float32))
    return out[:B] if Mp != B else out


# ----------------------------------------------------------------------------
# Conv layer = NHWC patch extraction (XLA-fused) + Pallas matmul kernel
# ----------------------------------------------------------------------------
def _extract_patches_nhwc(x, k, stride, padding):
    """x: [B, H, W, C] -> ([B*OH*OW, k*k*C], OH, OW), K ordered (kh, kw, c)."""
    if padding > 0:
        x = jnp.pad(x, ((0, 0), (padding, padding), (padding, padding), (0, 0)))
    B, Hp, Wp, C = x.shape
    OH = (Hp - k) // stride + 1
    OW = (Wp - k) // stride + 1
    slabs = []
    for kh in range(k):
        for kw in range(k):
            slabs.append(x[:, kh: kh + stride * (OH - 1) + 1: stride,
                           kw: kw + stride * (OW - 1) + 1: stride, :])
    cols = jnp.concatenate(slabs, axis=-1)          # [B, OH, OW, k*k*C]
    return cols.reshape(B * OH * OW, k * k * C), OH, OW


def conv_relu(x, wmat, bias, *, ic_real, k, stride, padding):
    """x: [B, H, W, Cp] bf16 (channel-padded); returns [B, OH, OW, OCp] bf16."""
    B = x.shape[0]
    x = x[..., :ic_real]      # drop carried lane padding (fuses into the gather)
    cols, OH, OW = _extract_patches_nhwc(x, k, stride, padding)
    out = matmul_bias_act(cols, wmat, bias, apply_relu=True,
                          out_dtype=jnp.bfloat16)
    return out.reshape(B, OH, OW, wmat.shape[1])    # free row-major reshape


# ----------------------------------------------------------------------------
# Encoder_3Dchairs parameters & forward
# ----------------------------------------------------------------------------
_CONV_CFG = (
    # (name, IC, OC, k, stride, padding)
    ("conv0", 1, 16, 4, 2, 1),
    ("conv1", 16, 32, 4, 2, 1),
    ("conv2", 32, 32, 4, 2, 1),
    ("conv3", 32, 64, 4, 2, 1),
    ("conv4", 64, 64, 4, 2, 1),
)

_PARAM_SPECS = (
    ("conv0_w", (16, 1, 4, 4)),  ("conv0_b", (16,)),
    ("conv1_w", (32, 16, 4, 4)), ("conv1_b", (32,)),
    ("conv2_w", (32, 32, 4, 4)), ("conv2_b", (32,)),
    ("conv3_w", (64, 32, 4, 4)), ("conv3_b", (64,)),
    ("conv4_w", (64, 64, 4, 4)), ("conv4_b", (64,)),
    ("conv5_w", (256, 64, 4, 4)), ("conv5_b", (256,)),
    ("fc_w", (2 * Z_DIM, 256)),  ("fc_b", (2 * Z_DIM,)),
)


def init_params(key):
    params = {}
    keys = jax.random.split(key, len(_PARAM_SPECS))
    for k_, (name, shape) in zip(keys, _PARAM_SPECS):
        params[name] = 0.05 * jax.random.normal(k_, shape, dtype=jnp.float32)
    return params


def prepare_params(params):
    """One-off re-layout of PyTorch-style weights into lane-padded bf16 matmul
    operands.  Done OUTSIDE the jitted forward -> zero per-step glue ops."""
    prep = {}
    for name, ic, oc, k, _, _ in _CONV_CFG:
        ocp = _round_up(oc, LANE)
        wt = jnp.transpose(params[f"{name}_w"], (2, 3, 1, 0))   # [k,k,ic,oc]
        wt = jnp.pad(wt, ((0, 0), (0, 0), (0, 0), (0, ocp - oc)))
        prep[f"{name}_w"] = wt.reshape(k * k * ic, ocp).astype(jnp.bfloat16)
        prep[f"{name}_b"] = jnp.pad(params[f"{name}_b"],
                                    (0, ocp - oc)).astype(jnp.float32)

    # conv5: 4x4 VALID conv on a 4x4 map == matmul on the flattened map.
    # conv4's carried output has 128 (lane-padded) channels -> pad ic rows too.
    icp = _round_up(64, LANE)
    w5 = jnp.transpose(params["conv5_w"], (2, 3, 1, 0))         # [4,4,64,256]
    w5 = jnp.pad(w5, ((0, 0), (0, 0), (0, icp - 64), (0, 0)))
    prep["w5"] = w5.reshape(4 * 4 * icp, 256).astype(jnp.bfloat16)
    prep["b5"] = params["conv5_b"].astype(jnp.float32)
    # nn.Linear: y = x @ W.T + b
    prep["wfc"] = params["fc_w"].T.astype(jnp.bfloat16)         # [256, 2*z_dim]
    prep["bfc"] = params["fc_b"].astype(jnp.float32)
    return prep


def encoder_forward(prep, x):
    """x: [B, 1, H, W] f32 (NCHW, PyTorch convention) -> [B, 2*z_dim] f32."""
    x = jnp.transpose(x, (0, 2, 3, 1)).astype(jnp.bfloat16)     # NHWC bf16
    for name, ic, _, k, stride, padding in _CONV_CFG:
        x = conv_relu(x, prep[f"{name}_w"], prep[f"{name}_b"],
                      ic_real=ic, k=k, stride=stride, padding=padding)
    # x: [B, 4, 4, 128] bf16 (real channels 0..63, rest exact zeros)
    B = x.shape[0]
    xf = x.reshape(B, -1)                                       # [B, 2048], free
    return _fused_tail(xf, prep["w5"], prep["b5"], prep["wfc"], prep["bfc"])


if __name__ == "__main__":
    key = jax.random.PRNGKey(0)
    kp, kx = jax.random.split(key)
    params = init_params(kp)
    prep = prepare_params(params)

    # 3D-chairs encoder expects 1x128x128 inputs (conv stack reduces to 1x1x256).
    x = jax.random.normal(kx, (2, 1, 128, 128), dtype=jnp.float32)

    fwd = jax.jit(encoder_forward)
    out = jax.block_until_ready(fwd(prep, x))
    assert out.shape == (2, 2 * Z_DIM), out.shape
    assert bool(jnp.all(jnp.isfinite(out)))
    print("KERNEL_OK")
</pallas_src>

<mosaic_0001>
module attributes {stable_mosaic.version = 11 : i64} {
  func.func @_matmul_bias_act_kernel(%arg0: i32, %arg1: memref<2048x16xbf16, #tpu.memory_space<vmem>>, %arg2: memref<16x128xbf16, #tpu.memory_space<vmem>>, %arg3: memref<1x128xf32, #tpu.memory_space<vmem>>, %arg4: memref<2048x128xbf16, #tpu.memory_space<vmem>>) attributes {dimension_semantics = [#tpu.dimension_semantics<parallel>], iteration_bounds = array<i64: 4>, scalar_prefetch = 0 : i64, scratch_operands = 0 : i64, tpu.core_type = #tpu.core_type<tc>, window_params = [{transform_indices = @transform_0, window_bounds = array<i64: 2048, 16>}, {pipeline_mode = #tpu.pipeline_mode<synchronous>, transform_indices = @transform_1, window_bounds = array<i64: 16, 128>}, {pipeline_mode = #tpu.pipeline_mode<synchronous>, transform_indices = @transform_2, window_bounds = array<i64: 1, 128>}, {transform_indices = @transform_3, window_bounds = array<i64: 2048, 128>}]} {
    %c0 = arith.constant 0 : index
    %c0_0 = arith.constant 0 : index
    %0 = vector.load %arg1[%c0, %c0_0] : memref<2048x16xbf16, #tpu.memory_space<vmem>>, vector<2048x16xbf16>
    %c0_1 = arith.constant 0 : index
    %c0_2 = arith.constant 0 : index
    %1 = vector.load %arg2[%c0_1, %c0_2] : memref<16x128xbf16, #tpu.memory_space<vmem>>, vector<16x128xbf16>
    %cst = arith.constant dense<0.000000e+00> : vector<2048x128xf32>
    %2 = tpu.matmul %0, %1, %cst {dimension_numbers = #tpu.dot_dimension_numbers<[1], [0], [0], [1], [0, 0, 1, 1], [], []>} : vector<2048x16xbf16>, vector<16x128xbf16>, vector<2048x128xf32> -> vector<2048x128xf32>
    %c0_3 = arith.constant 0 : index
    %c0_4 = arith.constant 0 : index
    %3 = vector.load %arg3[%c0_3, %c0_4] : memref<1x128xf32, #tpu.memory_space<vmem>>, vector<1x128xf32>
    %4 = vector.broadcast %3 : vector<1x128xf32> to vector<2048x128xf32>
    %5 = arith.addf %2, %4 : vector<2048x128xf32>
    %cst_5 = arith.constant 0.000000e+00 : f32
    %6 = vector.broadcast %cst_5 : f32 to vector<2048x128xf32>
    %7 = arith.maximumf %5, %6 : vector<2048x128xf32>
    %8 = arith.truncf %7 : vector<2048x128xf32> to vector<2048x128xbf16>
    %c0_6 = arith.constant 0 : index
    %c0_7 = arith.constant 0 : index
    %9 = vector.load %arg4[%c0_6, %c0_7] : memref<2048x128xbf16, #tpu.memory_space<vmem>>, vector<2048x128xbf16>
    tpu.vector_store %arg4[%c0_6, %c0_7], %8 {strides = array<i32>} : memref<2048x128xbf16, #tpu.memory_space<vmem>>, vector<2048x128xbf16>,
    return
  }
  func.func @transform_0(%arg0: i32) -> (i32, i32) {
    %c0_i32 = arith.constant 0 : i32
    %c0_i32_0 = arith.constant 0 : i32
    return %arg0, %c0_i32 : i32, i32
  }
  func.func @transform_1(%arg0: i32) -> (i32, i32) {
    %c0_i32 = arith.constant 0 : i32
    %c0_i32_0 = arith.constant 0 : i32
    %c0_i32_1 = arith.constant 0 : i32
    return %c0_i32, %c0_i32_0 : i32, i32
  }
  func.func @transform_2(%arg0: i32) -> (i32, i32) {
    %c0_i32 = arith.constant 0 : i32
    %c0_i32_0 = arith.constant 0 : i32
    %c0_i32_1 = arith.constant 0 : i32
    return %c0_i32, %c0_i32_0 : i32, i32
  }
  func.func @transform_3(%arg0: i32) -> (i32, i32) {
    %c0_i32 = arith.constant 0 : i32
    %c0_i32_0 = arith.constant 0 : i32
    return %arg0, %c0_i32 : i32, i32
  }
}

module attributes {stable_mosaic.version = 11 : i64} {
  func.func @_matmul_bias_act_kernel(%arg0: i32, %arg1: memref<2048x256xbf16, #tpu.memory_space<vmem>>, %arg2: memref<256x128xbf16, #tpu.memory_space<vmem>>, %arg3: memref<1x128xf32, #tpu.memory_space<vmem>>, %arg4: memref<2048x128xbf16, #tpu.memory_space<vmem>>) attributes {dimension_semantics = [#tpu.dimension_semantics<parallel>], iteration_bounds = array<i64: 1>, scalar_prefetch = 0 : i64, scratch_operands = 0 : i64, tpu.core_type = #tpu.core_type<tc>, window_params = [{transform_indices = @transform_0, window_bounds = array<i64: 2048, 256>}, {pipeline_mode = #tpu.pipeline_mode<synchronous>, transform_indices = @transform_1, window_bounds = array<i64: 256, 128>}, {pipeline_mode = #tpu.pipeline_mode<synchronous>, transform_indices = @transform_2, window_bounds = array<i64: 1, 128>}, {transform_indices = @transform_3, window_bounds = array<i64: 2048, 128>}]} {
    %c0 = arith.constant 0 : index
    %c0_0 = arith.constant 0 : index
    %0 = vector.load %arg1[%c0, %c0_0] : memref<2048x256xbf16, #tpu.memory_space<vmem>>, vector<2048x256xbf16>
    %c0_1 = arith.constant 0 : index
    %c0_2 = arith.constant 0 : index
    %1 = vector.load %arg2[%c0_1, %c0_2] : memref<256x128xbf16, #tpu.memory_space<vmem>>, vector<256x128xbf16>
    %cst = arith.constant dense<0.000000e+00> : vector<2048x128xf32>
    %2 = tpu.matmul %0, %1, %cst {dimension_numbers = #tpu.dot_dimension_numbers<[1], [0], [0], [1], [0, 0, 1, 1], [], []>} : vector<2048x256xbf16>, vector<256x128xbf16>, vector<2048x128xf32> -> vector<2048x128xf32>
    %c0_3 = arith.constant 0 : index
    %c0_4 = arith.constant 0 : index
    %3 = vector.load %arg3[%c0_3, %c0_4] : memref<1x128xf32, #tpu.memory_space<vmem>>, vector<1x128xf32>
    %4 = vector.broadcast %3 : vector<1x128xf32> to vector<2048x128xf32>
    %5 = arith.addf %2, %4 : vector<2048x128xf32>
    %cst_5 = arith.constant 0.000000e+00 : f32
    %6 = vector.broadcast %cst_5 : f32 to vector<2048x128xf32>
    %7 = arith.maximumf %5, %6 : vector<2048x128xf32>
    %8 = arith.truncf %7 : vector<2048x128xf32> to vector<2048x128xbf16>
    %c0_6 = arith.constant 0 : index
    %c0_7 = arith.constant 0 : index
    %9 = vector.load %arg4[%c0_6, %c0_7] : memref<2048x128xbf16, #tpu.memory_space<vmem>>, vector<2048x128xbf16>
    tpu.vector_store %arg4[%c0_6, %c0_7], %8 {strides = array<i32>} : memref<2048x128xbf16, #tpu.memory_space<vmem>>, vector<2048x128xbf16>,
    return
  }
  func.func @transform_0(%arg0: i32) -> (i32, i32) {
    %c0_i32 = arith.constant 0 : i32
    %c0_i32_0 = arith.constant 0 : i32
    return %arg0, %c0_i32 : i32, i32
  }
  func.func @transform_1(%arg0: i32) -> (i32, i32) {
    %c0_i32 = arith.constant 0 : i32
    %c0_i32_0 = arith.constant 0 : i32
    %c0_i32_1 = arith.constant 0 : i32
    return %c0_i32, %c0_i32_0 : i32, i32
  }
  func.func @transform_2(%arg0: i32) -> (i32, i32) {
    %c0_i32 = arith.constant 0 : i32
    %c0_i32_0 = arith.constant 0 : i32
    %c0_i32_1 = arith.constant 0 : i32
    return %c0_i32, %c0_i32_0 : i32, i32
  }
  func.func @transform_3(%arg0: i32) -> (i32, i32) {
    %c0_i32 = arith.constant 0 : i32
    %c0_i32_0 = arith.constant 0 : i32
    return %arg0, %c0_i32 : i32, i32
  }
}

module attributes {stable_mosaic.version = 11 : i64} {
  func.func @_matmul_bias_act_kernel(%arg0: i32, %arg1: memref<512x512xbf16, #tpu.memory_space<vmem>>, %arg2: memref<512x128xbf16, #tpu.memory_space<vmem>>, %arg3: memref<1x128xf32, #tpu.memory_space<vmem>>, %arg4: memref<512x128xbf16, #tpu.memory_space<vmem>>) attributes {dimension_semantics = [#tpu.dimension_semantics<parallel>], iteration_bounds = array<i64: 1>, scalar_prefetch = 0 : i64, scratch_operands = 0 : i64, tpu.core_type = #tpu.core_type<tc>, window_params = [{transform_indices = @transform_0, window_bounds = array<i64: 512, 512>}, {pipeline_mode = #tpu.pipeline_mode<synchronous>, transform_indices = @transform_1, window_bounds = array<i64: 512, 128>}, {pipeline_mode = #tpu.pipeline_mode<synchronous>, transform_indices = @transform_2, window_bounds = array<i64: 1, 128>}, {transform_indices = @transform_3, window_bounds = array<i64: 512, 128>}]} {
    %c0 = arith.constant 0 : index
    %c0_0 = arith.constant 0 : index
    %0 = vector.load %arg1[%c0, %c0_0] : memref<512x512xbf16, #tpu.memory_space<vmem>>, vector<512x512xbf16>
    %c0_1 = arith.constant 0 : index
    %c0_2 = arith.constant 0 : index
    %1 = vector.load %arg2[%c0_1, %c0_2] : memref<512x128xbf16, #tpu.memory_space<vmem>>, vector<512x128xbf16>
    %cst = arith.constant dense<0.000000e+00> : vector<512x128xf32>
    %2 = tpu.matmul %0, %1, %cst {dimension_numbers = #tpu.dot_dimension_numbers<[1], [0], [0], [1], [0, 0, 1, 1], [], []>} : vector<512x512xbf16>, vector<512x128xbf16>, vector<512x128xf32> -> vector<512x128xf32>
    %c0_3 = arith.constant 0 : index
    %c0_4 = arith.constant 0 : index
    %3 = vector.load %arg3[%c0_3, %c0_4] : memref<1x128xf32, #tpu.memory_space<vmem>>, vector<1x128xf32>
    %4 = vector.broadcast %3 : vector<1x128xf32> to vector<512x128xf32>
    %5 = arith.addf %2, %4 : vector<512x128xf32>
    %cst_5 = arith.constant 0.000000e+00 : f32
    %6 = vector.broadcast %cst_5 : f32 to vector<512x128xf32>
    %7 = arith.maximumf %5, %6 : vector<512x128xf32>
    %8 = arith.truncf %7 : vector<512x128xf32> to vector<512x128xbf16>
    %c0_6 = arith.constant 0 : index
    %c0_7 = arith.constant 0 : index
    %9 = vector.load %arg4[%c0_6, %c0_7] : memref<512x128xbf16, #tpu.memory_space<vmem>>, vector<512x128xbf16>
    tpu.vector_store %arg4[%c0_6, %c0_7], %8 {strides = array<i32>} : memref<512x128xbf16, #tpu.memory_space<vmem>>, vector<512x128xbf16>,
    return
  }
  func.func @transform_0(%arg0: i32) -> (i32, i32) {
    %c0_i32 = arith.constant 0 : i32
    %c0_i32_0 = arith.constant 0 : i32
    return %arg0, %c0_i32 : i32, i32
  }
  func.func @transform_1(%arg0: i32) -> (i32, i32) {
    %c0_i32 = arith.constant 0 : i32
    %c0_i32_0 = arith.constant 0 : i32
    %c0_i32_1 = arith.constant 0 : i32
    return %c0_i32, %c0_i32_0 : i32, i32
  }
  func.func @transform_2(%arg0: i32) -> (i32, i32) {
    %c0_i32 = arith.constant 0 : i32
    %c0_i32_0 = arith.constant 0 : i32
    %c0_i32_1 = arith.constant 0 : i32
    return %c0_i32, %c0_i32_0 : i32, i32
  }
  func.func @transform_3(%arg0: i32) -> (i32, i32) {
    %c0_i32 = arith.constant 0 : i32
    %c0_i32_0 = arith.constant 0 : i32
    return %arg0, %c0_i32 : i32, i32
  }
}

module attributes {stable_mosaic.version = 11 : i64} {
  func.func @_matmul_bias_act_kernel(%arg0: i32, %arg1: memref<128x512xbf16, #tpu.memory_space<vmem>>, %arg2: memref<512x128xbf16, #tpu.memory_space<vmem>>, %arg3: memref<1x128xf32, #tpu.memory_space<vmem>>, %arg4: memref<128x128xbf16, #tpu.memory_space<vmem>>) attributes {dimension_semantics = [#tpu.dimension_semantics<parallel>], iteration_bounds = array<i64: 1>, scalar_prefetch = 0 : i64, scratch_operands = 0 : i64, tpu.core_type = #tpu.core_type<tc>, window_params = [{transform_indices = @transform_0, window_bounds = array<i64: 128, 512>}, {pipeline_mode = #tpu.pipeline_mode<synchronous>, transform_indices = @transform_1, window_bounds = array<i64: 512, 128>}, {pipeline_mode = #tpu.pipeline_mode<synchronous>, transform_indices = @transform_2, window_bounds = array<i64: 1, 128>}, {transform_indices = @transform_3, window_bounds = array<i64: 128, 128>}]} {
    %c0 = arith.constant 0 : index
    %c0_0 = arith.constant 0 : index
    %0 = vector.load %arg1[%c0, %c0_0] : memref<128x512xbf16, #tpu.memory_space<vmem>>, vector<128x512xbf16>
    %c0_1 = arith.constant 0 : index
    %c0_2 = arith.constant 0 : index
    %1 = vector.load %arg2[%c0_1, %c0_2] : memref<512x128xbf16, #tpu.memory_space<vmem>>, vector<512x128xbf16>
    %cst = arith.constant dense<0.000000e+00> : vector<128x128xf32>
    %2 = tpu.matmul %0, %1, %cst {dimension_numbers = #tpu.dot_dimension_numbers<[1], [0], [0], [1], [0, 0, 1, 1], [], []>} : vector<128x512xbf16>, vector<512x128xbf16>, vector<128x128xf32> -> vector<128x128xf32>
    %c0_3 = arith.constant 0 : index
    %c0_4 = arith.constant 0 : index
    %3 = vector.load %arg3[%c0_3, %c0_4] : memref<1x128xf32, #tpu.memory_space<vmem>>, vector<1x128xf32>
    %4 = vector.broadcast %3 : vector<1x128xf32> to vector<128x128xf32>
    %5 = arith.addf %2, %4 : vector<128x128xf32>
    %cst_5 = arith.constant 0.000000e+00 : f32
    %6 = vector.broadcast %cst_5 : f32 to vector<128x128xf32>
    %7 = arith.maximumf %5, %6 : vector<128x128xf32>
    %8 = arith.truncf %7 : vector<128x128xf32> to vector<128x128xbf16>
    %c0_6 = arith.constant 0 : index
    %c0_7 = arith.constant 0 : index
    %9 = vector.load %arg4[%c0_6, %c0_7] : memref<128x128xbf16, #tpu.memory_space<vmem>>, vector<128x128xbf16>
    tpu.vector_store %arg4[%c0_6, %c0_7], %8 {strides = array<i32>} : memref<128x128xbf16, #tpu.memory_space<vmem>>, vector<128x128xbf16>,
    return
  }
  func.func @transform_0(%arg0: i32) -> (i32, i32) {
    %c0_i32 = arith.constant 0 : i32
    %c0_i32_0 = arith.constant 0 : i32
    return %arg0, %c0_i32 : i32, i32
  }
  func.func @transform_1(%arg0: i32) -> (i32, i32) {
    %c0_i32 = arith.constant 0 : i32
    %c0_i32_0 = arith.constant 0 : i32
    %c0_i32_1 = arith.constant 0 : i32
    return %c0_i32, %c0_i32_0 : i32, i32
  }
  func.func @transform_2(%arg0: i32) -> (i32, i32) {
    %c0_i32 = arith.constant 0 : i32
    %c0_i32_0 = arith.constant 0 : i32
    %c0_i32_1 = arith.constant 0 : i32
    return %c0_i32, %c0_i32_0 : i32, i32
  }
  func.func @transform_3(%arg0: i32) -> (i32, i32) {
    %c0_i32 = arith.constant 0 : i32
    %c0_i32_0 = arith.constant 0 : i32
    return %arg0, %c0_i32 : i32, i32
  }
}

module attributes {stable_mosaic.version = 11 : i64} {
  func.func @_matmul_bias_act_kernel(%arg0: i32, %arg1: memref<32x1024xbf16, #tpu.memory_space<vmem>>, %arg2: memref<1024x128xbf16, #tpu.memory_space<vmem>>, %arg3: memref<1x128xf32, #tpu.memory_space<vmem>>, %arg4: memref<32x128xbf16, #tpu.memory_space<vmem>>) attributes {dimension_semantics = [#tpu.dimension_semantics<parallel>], iteration_bounds = array<i64: 1>, scalar_prefetch = 0 : i64, scratch_operands = 0 : i64, tpu.core_type = #tpu.core_type<tc>, window_params = [{transform_indices = @transform_0, window_bounds = array<i64: 32, 1024>}, {pipeline_mode = #tpu.pipeline_mode<synchronous>, transform_indices = @transform_1, window_bounds = array<i64: 1024, 128>}, {pipeline_mode = #tpu.pipeline_mode<synchronous>, transform_indices = @transform_2, window_bounds = array<i64: 1, 128>}, {transform_indices = @transform_3, window_bounds = array<i64: 32, 128>}]} {
    %c0 = arith.constant 0 : index
    %c0_0 = arith.constant 0 : index
    %0 = vector.load %arg1[%c0, %c0_0] : memref<32x1024xbf16, #tpu.memory_space<vmem>>, vector<32x1024xbf16>
    %c0_1 = arith.constant 0 : index
    %c0_2 = arith.constant 0 : index
    %1 = vector.load %arg2[%c0_1, %c0_2] : memref<1024x128xbf16, #tpu.memory_space<vmem>>, vector<1024x128xbf16>
    %cst = arith.constant dense<0.000000e+00> : vector<32x128xf32>
    %2 = tpu.matmul %0, %1, %cst {dimension_numbers = #tpu.dot_dimension_numbers<[1], [0], [0], [1], [0, 0, 1, 1], [], []>} : vector<32x1024xbf16>, vector<1024x128xbf16>, vector<32x128xf32> -> vector<32x128xf32>
    %c0_3 = arith.constant 0 : index
    %c0_4 = arith.constant 0 : index
    %3 = vector.load %arg3[%c0_3, %c0_4] : memref<1x128xf32, #tpu.memory_space<vmem>>, vector<1x128xf32>
    %4 = vector.broadcast %3 : vector<1x128xf32> to vector<32x128xf32>
    %5 = arith.addf %2, %4 : vector<32x128xf32>
    %cst_5 = arith.constant 0.000000e+00 : f32
    %6 = vector.broadcast %cst_5 : f32 to vector<32x128xf32>
    %7 = arith.maximumf %5, %6 : vector<32x128xf32>
    %8 = arith.truncf %7 : vector<32x128xf32> to vector<32x128xbf16>
    %c0_6 = arith.constant 0 : index
    %c0_7 = arith.constant 0 : index
    %9 = vector.load %arg4[%c0_6, %c0_7] : memref<32x128xbf16, #tpu.memory_space<vmem>>, vector<32x128xbf16>
    tpu.vector_store %arg4[%c0_6, %c0_7], %8 {strides = array<i32>} : memref<32x128xbf16, #tpu.memory_space<vmem>>, vector<32x128xbf16>,
    return
  }
  func.func @transform_0(%arg0: i32) -> (i32, i32) {
    %c0_i32 = arith.constant 0 : i32
    %c0_i32_0 = arith.constant 0 : i32
    return %arg0, %c0_i32 : i32, i32
  }
  func.func @transform_1(%arg0: i32) -> (i32, i32) {
    %c0_i32 = arith.constant 0 : i32
    %c0_i32_0 = arith.constant 0 : i32
    %c0_i32_1 = arith.constant 0 : i32
    return %c0_i32, %c0_i32_0 : i32, i32
  }
  func.func @transform_2(%arg0: i32) -> (i32, i32) {
    %c0_i32 = arith.constant 0 : i32
    %c0_i32_0 = arith.constant 0 : i32
    %c0_i32_1 = arith.constant 0 : i32
    return %c0_i32, %c0_i32_0 : i32, i32
  }
  func.func @transform_3(%arg0: i32) -> (i32, i32) {
    %c0_i32 = arith.constant 0 : i32
    %c0_i32_0 = arith.constant 0 : i32
    return %arg0, %c0_i32 : i32, i32
  }
}

module attributes {stable_mosaic.version = 11 : i64} {
  func.func @_tail_kernel(%arg0: i32, %arg1: memref<8x2048xbf16, #tpu.memory_space<vmem>>, %arg2: memref<2048x256xbf16, #tpu.memory_space<vmem>>, %arg3: memref<1x256xf32, #tpu.memory_space<vmem>>, %arg4: memref<256x20xbf16, #tpu.memory_space<vmem>>, %arg5: memref<1x20xf32, #tpu.memory_space<vmem>>, %arg6: memref<8x20xf32, #tpu.memory_space<vmem>>) attributes {dimension_semantics = [#tpu.dimension_semantics<arbitrary>], iteration_bounds = array<i64: 1>, scalar_prefetch = 0 : i64, scratch_operands = 0 : i64, tpu.core_type = #tpu.core_type<tc>, window_params = [{pipeline_mode = #tpu.pipeline_mode<synchronous>, transform_indices = @transform_0, window_bounds = array<i64: 8, 2048>}, {pipeline_mode = #tpu.pipeline_mode<synchronous>, transform_indices = @transform_1, window_bounds = array<i64: 2048, 256>}, {pipeline_mode = #tpu.pipeline_mode<synchronous>, transform_indices = @transform_2, window_bounds = array<i64: 1, 256>}, {pipeline_mode = #tpu.pipeline_mode<synchronous>, transform_indices = @transform_3, window_bounds = array<i64: 256, 20>}, {pipeline_mode = #tpu.pipeline_mode<synchronous>, transform_indices = @transform_4, window_bounds = array<i64: 1, 20>}, {pipeline_mode = #tpu.pipeline_mode<synchronous>, transform_indices = @transform_5, window_bounds = array<i64: 8, 20>}]} {
    %c0 = arith.constant 0 : index
    %c0_0 = arith.constant 0 : index
    %0 = vector.load %arg1[%c0, %c0_0] : memref<8x2048xbf16, #tpu.memory_space<vmem>>, vector<8x2048xbf16>
    %c0_1 = arith.constant 0 : index
    %c0_2 = arith.constant 0 : index
    %1 = vector.load %arg2[%c0_1, %c0_2] : memref<2048x256xbf16, #tpu.memory_space<vmem>>, vector<2048x256xbf16>
    %cst = arith.constant dense<0.000000e+00> : vector<8x256xf32>
    %2 = tpu.matmul %0, %1, %cst {dimension_numbers = #tpu.dot_dimension_numbers<[1], [0], [0], [1], [0, 0, 1, 1], [], []>} : vector<8x2048xbf16>, vector<2048x256xbf16>, vector<8x256xf32> -> vector<8x256xf32>
    %c0_3 = arith.constant 0 : index
    %c0_4 = arith.constant 0 : index
    %3 = vector.load %arg3[%c0_3, %c0_4] : memref<1x256xf32, #tpu.memory_space<vmem>>, vector<1x256xf32>
    %4 = vector.broadcast %3 : vector<1x256xf32> to vector<8x256xf32>
    %5 = arith.addf %2, %4 : vector<8x256xf32>
    %cst_5 = arith.constant 0.000000e+00 : f32
    %6 = vector.broadcast %cst_5 : f32 to vector<8x256xf32>
    %7 = arith.maximumf %5, %6 : vector<8x256xf32>
    %8 = arith.truncf %7 : vector<8x256xf32> to vector<8x256xbf16>
    %c0_6 = arith.constant 0 : index
    %c0_7 = arith.constant 0 : index
    %9 = vector.load %arg4[%c0_6, %c0_7] : memref<256x20xbf16, #tpu.memory_space<vmem>>, vector<256x20xbf16>
    %cst_8 = arith.constant dense<0.000000e+00> : vector<8x20xf32>
    %10 = tpu.matmul %8, %9, %cst_8 {dimension_numbers = #tpu.dot_dimension_numbers<[1], [0], [0], [1], [0, 0, 1, 1], [], []>} : vector<8x256xbf16>, vector<256x20xbf16>, vector<8x20xf32> -> vector<8x20xf32>
    %c0_9 = arith.constant 0 : index
    %c0_10 = arith.constant 0 : index
    %11 = vector.load %arg5[%c0_9, %c0_10] : memref<1x20xf32, #tpu.memory_space<vmem>>, vector<1x20xf32>
    %12 = vector.broadcast %11 : vector<1x20xf32> to vector<8x20xf32>
    %13 = arith.addf %10, %12 : vector<8x20xf32>
    %c0_11 = arith.constant 0 : index
    %c0_12 = arith.constant 0 : index
    %14 = vector.load %arg6[%c0_11, %c0_12] : memref<8x20xf32, #tpu.memory_space<vmem>>, vector<8x20xf32>
    tpu.vector_store %arg6[%c0_11, %c0_12], %13 {strides = array<i32>} : memref<8x20xf32, #tpu.memory_space<vmem>>, vector<8x20xf32>,
    return
  }
  func.func @transform_0(%arg0: i32) -> (i32, i32) {
    %c0_i32 = arith.constant 0 : i32
    %c0_i32_0 = arith.constant 0 : i32
    %c0_i32_1 = arith.constant 0 : i32
    return %c0_i32, %c0_i32_0 : i32, i32
  }
  func.func @transform_1(%arg0: i32) -> (i32, i32) {
    %c0_i32 = arith.constant 0 : i32
    %c0_i32_0 = arith.constant 0 : i32
    %c0_i32_1 = arith.constant 0 : i32
    return %c0_i32, %c0_i32_0 : i32, i32
  }
  func.func @transform_2(%arg0: i32) -> (i32, i32) {
    %c0_i32 = arith.constant 0 : i32
    %c0_i32_0 = arith.constant 0 : i32
    %c0_i32_1 = arith.constant 0 : i32
    return %c0_i32, %c0_i32_0 : i32, i32
  }
  func.func @transform_3(%arg0: i32) -> (i32, i32) {
    %c0_i32 = arith.constant 0 : i32
    %c0_i32_0 = arith.constant 0 : i32
    %c0_i32_1 = arith.constant 0 : i32
    return %c0_i32, %c0_i32_0 : i32, i32
  }
  func.func @transform_4(%arg0: i32) -> (i32, i32) {
    %c0_i32 = arith.constant 0 : i32
    %c0_i32_0 = arith.constant 0 : i32
    %c0_i32_1 = arith.constant 0 : i32
    return %c0_i32, %c0_i32_0 : i32, i32
  }
  func.func @transform_5(%arg0: i32) -> (i32, i32) {
    %c0_i32 = arith.constant 0 : i32
    %c0_i32_0 = arith.constant 0 : i32
    %c0_i32_1 = arith.constant 0 : i32
    return %c0_i32, %c0_i32_0 : i32, i32
  }
}

</mosaic_0001>

<bundles_post_ra>
// kernel: encoder_forward.6
= control target key start
LH: loop header
LB: loop body
LE: loop exit
PB: predicated region body
PF: predicated region fallthrough
CT: control target
= control target key end

     0   :  { %s4534_s12 = smov 0   ;;  %s5220_s0 = inlined_call_operand.vmem [shape: bf16[8192,16], index: 0, kind: input, shape index: {}]   ;;  %s5221_s1 = inlined_call_operand.vmem [shape: bf16[16,128], index: 1, kind: input, shape index: {}]   ;;  %s5222_s2 = inlined_call_operand.vmem [shape: f32[1,128], index: 2, kind: input, shape index: {}]   ;;  %s5223_s3 = inlined_call_operand.vmem [shape: bf16[8192,128], index: 3, kind: output, shape index: {}]  }
   0x1 LB: > { %s2941_s13 = sadd.s32 4294967295, %s4512_s12   ;;  %p2945_p0 = scmp.ge.s32.totalorder %s4512_s12, 1  ;;  %s4512_s12 = sphi %s4534_s12, %s13_s12  }
   0x2   : > { %p138_p1 = scmp.lt.s32.totalorder %s4512_s12, 5 }
   0x4   : > { %p139_p2 = pnand %p2945_p0, %p138_p1 }
   0x5   : > { %s2946_s16 = sshll.u32 (!%p139_p2), %s2941_s13, 8 }
   0x6   : > { %142 = sbr.rel (%p139_p2) target bundleno = 661 (0x295), region = 32  ;;  %p163_p3 = scmp.lt.s32.totalorder (!%p139_p2), %s2946_s16, 1023 }
   0xb   : > { %v3724_v0 = vld [vmem:[%s5221_s1] sm:$0xff]  ;;  %s5225_s16 = smov (!%p163_p3, %s2946_s16), 1023  ;;  %vm1083_vm0 = vcmask 130048  }
   0xc   : > { %1475 = vmatpush.bf16.msra.mxu0 %v3724_v0  ;;  %4492 = vmatpush.bf16.msra.mxu1 %v3724_v0  ;;  %s2947_s17 = sshll.u32 %s5225_s16, 2  ;;  %v4626_v39 = vld [vmem:[%s5222_s2] ss:$0 sm:$0xff] }
   0xd   : > { %4493 = vmatpush.bf16.msra.mxu2 %v3724_v0  ;;  %4494 = vmatpush.bf16.msra.mxu3 %v3724_v0  ;;  %s4553_s20 = scalar_lea.vmem %s5220_s0, %s2947_s17  ;;  %s4641_s25 = scalar_lea.vmem %s5223_s3, %s2947_s17 }
   0xe   : > { %v3596_v1 = vld [vmem:[%s4553_s20] sm:$0xff]  ;;  %v3597_v5 = vld [vmem:[%s4553_s20 + $0x8] sm:$0xff]  ;;  %v3598_v9 = vld [vmem:[%s4553_s20 + $0x10] sm:$0xff] }
   0xf   : > { %v3628_v2 = vld [vmem:[%s4553_s20 + $0x100] sm:$0xff]  ;;  %3466 = vmatmul.msk.bf16.vlgmr.msra.gmra.mxu0 %vm1083_vm0, %v3596_v1  ;;  %v3629_v6 = vld [vmem:[%s4553_s20 + $0x108] sm:$0xff]  ;;  %v3630_v10 = vld [vmem:[%s4553_s20 + $0x110] sm:$0xff] }
  0x10   : > { %v3660_v3 = vld [vmem:[%s4553_s20 + $0x200] sm:$0xff]  ;;  %3498 = vmatmul.msk.bf16.vlgmr.msra.gmra.mxu1 %vm1083_vm0, %v3628_v2  ;;  %v3661_v7 = vld [vmem:[%s4553_s20 + $0x208] sm:$0xff]  ;;  %v3662_v11 = vld [vmem:[%s4553_s20 + $0x210] sm:$0xff] }
  0x11   : > { %v3692_v4 = vld [vmem:[%s4553_s20 + $0x300] sm:$0xff]  ;;  %3530 = vmatmul.msk.bf16.vlgmr.msra.gmra.mxu2 %vm1083_vm0, %v3660_v3  ;;  %v3693_v8 = vld [vmem:[%s4553_s20 + $0x308] sm:$0xff]  ;;  %v3694_v12 = vld [vmem:[%s4553_s20 + $0x310] sm:$0xff] }
  0x12   : > { %3562 = vmatmul.msk.bf16.vlgmr.msra.gmra.mxu3 %vm1083_vm0, %v3692_v4  ;;  %v3599_v13 = vld [vmem:[%s4553_s20 + $0x18] sm:$0xff]  ;;  %v3600_v17 = vld [vmem:[%s4553_s20 + $0x20] sm:$0xff]  ;;  %v3601_v21 = vld [vmem:[%s4553_s20 + $0x28] sm:$0xff] }
  0x13   : > { %v3631_v14 = vld [vmem:[%s4553_s20 + $0x118] sm:$0xff]  ;;  %v3632_v18 = vld [vmem:[%s4553_s20 + $0x120] sm:$0xff]  ;;  %v3633_v22 = vld [vmem:[%s4553_s20 + $0x128] sm:$0xff] }
  0x14   : > { %v3663_v15 = vld [vmem:[%s4553_s20 + $0x218] sm:$0xff]  ;;  %v3664_v19 = vld [vmem:[%s4553_s20 + $0x220] sm:$0xff]  ;;  %v3665_v23 = vld [vmem:[%s4553_s20 + $0x228] sm:$0xff] }
  0x15   : > { %v3695_v16 = vld [vmem:[%s4553_s20 + $0x318] sm:$0xff]  ;;  %v3696_v20 = vld [vmem:[%s4553_s20 + $0x320] sm:$0xff]  ;;  %v3697_v24 = vld [vmem:[%s4553_s20 + $0x328] sm:$0xff] }
  0x16   : > { %v3602_v25 = vld [vmem:[%s4553_s20 + $0x30] sm:$0xff]  ;;  %v3603_v29 = vld [vmem:[%s4553_s20 + $0x38] sm:$0xff]  ;;  %v3604_v33 = vld [vmem:[%s4553_s20 + $0x40] sm:$0xff] }
  0x17   : > { %v3634_v26 = vld [vmem:[%s4553_s20 + $0x130] sm:$0xff]  ;;  %v3635_v30 = vld [vmem:[%s4553_s20 + $0x138] sm:$0xff]  ;;  %v3636_v34 = vld [vmem:[%s4553_s20 + $0x140] sm:$0xff] }
  0x18   : > { %v3666_v27 = vld [vmem:[%s4553_s20 + $0x230] sm:$0xff]  ;;  %v3667_v31 = vld [vmem:[%s4553_s20 + $0x238] sm:$0xff]  ;;  %v3668_v37 = vld [vmem:[%s4553_s20 + $0x240] sm:$0xff] }
  0x19   : > { %v3698_v28 = vld [vmem:[%s4553_s20 + $0x330] sm:$0xff]  ;;  %v3699_v32 = vld [vmem:[%s4553_s20 + $0x338] sm:$0xff]  ;;  %v3700_v38 = vld [vmem:[%s4553_s20 + $0x340] sm:$0xff] }
  0x1a   : > { %v3605_v58 = vld [vmem:[%s4553_s20 + $0x48] sm:$0xff] }
  0x1b   : > { %v3637_v59 = vld [vmem:[%s4553_s20 + $0x148] sm:$0xff] }
  0x1c   : > { %v3669_v0 = vld [vmem:[%s4553_s20 + $0x248] sm:$0xff] }
  0x1d   : > { %v3701_v1 = vld [vmem:[%s4553_s20 + $0x348] sm:$0xff] }
  0x1f   : > { %3467 = vmatmul.msk.bf16.gmra.mxu0 %vm1083_vm0, %v3597_v5 }
  0x20   : > { %3499 = vmatmul.msk.bf16.gmra.mxu1 %vm1083_vm0, %v3629_v6 }
  0x21   : > { %3531 = vmatmul.msk.bf16.gmra.mxu2 %vm1083_vm0, %v3661_v7 }
  0x22   : > { %3563 = vmatmul.msk.bf16.gmra.mxu3 %vm1083_vm0, %v3693_v8 }
  0x2f   : > { %3468 = vmatmul.msk.bf16.gmra.mxu0 %vm1083_vm0, %v3598_v9 }
  0x30   : > { %3500 = vmatmul.msk.bf16.gmra.mxu1 %vm1083_vm0, %v3630_v10 }
  0x31   : > { %3532 = vmatmul.msk.bf16.gmra.mxu2 %vm1083_vm0, %v3662_v11 }
  0x32   : > { %3564 = vmatmul.msk.bf16.gmra.mxu3 %vm1083_vm0, %v3694_v12 }
  0x3f   : > { %3469 = vmatmul.msk.bf16.gmra.mxu0 %vm1083_vm0, %v3599_v13 }
  0x40   : > { %3501 = vmatmul.msk.bf16.gmra.mxu1 %vm1083_vm0, %v3631_v14 }
  0x41   : > { %3533 = vmatmul.msk.bf16.gmra.mxu2 %vm1083_vm0, %v3663_v15 }
  0x42   : > { %3565 = vmatmul.msk.bf16.gmra.mxu3 %vm1083_vm0, %v3695_v16 }
  0x4f   : > { %3470 = vmatmul.msk.bf16.gmra.mxu0 %vm1083_vm0, %v3600_v17 }
  0x50   : > { %3502 = vmatmul.msk.bf16.gmra.mxu1 %vm1083_vm0, %v3632_v18 }
  0x51   : > { %3534 = vmatmul.msk.bf16.gmra.mxu2 %vm1083_vm0, %v3664_v19 }
  0x52   : > { %3566 = vmatmul.msk.bf16.gmra.mxu3 %vm1083_vm0, %v3696_v20 }
  0x5f   : > { %3471 = vmatmul.msk.bf16.gmra.mxu0 %vm1083_vm0, %v3601_v21 }
  0x60   : > { %3503 = vmatmul.msk.bf16.gmra.mxu1 %vm1083_vm0, %v3633_v22 }
  0x61   : > { %3535 = vmatmul.msk.bf16.gmra.mxu2 %vm1083_vm0, %v3665_v23 }
  0x62   : > { %3567 = vmatmul.msk.bf16.gmra.mxu3 %vm1083_vm0, %v3697_v24 }
  0x6f   : > { %3472 = vmatmul.msk.bf16.gmra.mxu0 %vm1083_vm0, %v3602_v25 }
  0x70   : > { %3504 = vmatmul.msk.bf16.gmra.mxu1 %vm1083_vm0, %v3634_v26  ;;  %v3606_v26 = vld [vmem:[%s4553_s20 + $0x50] sm:$0xff] }
  0x71   : > { %3536 = vmatmul.msk.bf16.gmra.mxu2 %vm1083_vm0, %v3666_v27  ;;  %v3638_v27 = vld [vmem:[%s4553_s20 + $0x150] sm:$0xff] }
  0x72   : > { %3568 = vmatmul.msk.bf16.gmra.mxu3 %vm1083_vm0, %v3698_v28 }
  0x7f   : > { %3473 = vmatmul.msk.bf16.gmra.mxu0 %vm1083_vm0, %v3603_v29 }
  0x80   : > { %3505 = vmatmul.msk.bf16.gmra.mxu1 %vm1083_vm0, %v3635_v30 }
  0x81   : > { %3537 = vmatmul.msk.bf16.gmra.mxu2 %vm1083_vm0, %v3667_v31 }
  0x82   : > { %3569 = vmatmul.msk.bf16.gmra.mxu3 %vm1083_vm0, %v3699_v32  ;;  %v3670_v32 = vld [vmem:[%s4553_s20 + $0x250] sm:$0xff] }
  0x8c   : > { %v1477_v35 = vpop.f32.mrf.mxu0 }
  0x8d   : > { %v1637_v36 = vpop.f32.mrf.mxu1  ;;  %v1478_v40 = vadd.f32 %v4626_v39, %v1477_v35 }
  0x8e   : > { %v1638_v41 = vadd.f32 %v4626_v39, %v1637_v36 }
  0x8f   : > { %3474 = vmatmul.msk.bf16.gmra.mxu0 %vm1083_vm0, %v3604_v33  ;;  %v2117_v48 = vmax.f32 %v1478_v40, 0.0  ;;  %v3702_v33 = vld [vmem:[%s4553_s20 + $0x350] sm:$0xff] }
  0x90   : > { %3506 = vmatmul.msk.bf16.gmra.mxu1 %vm1083_vm0, %v3636_v34  ;;  %v2181_v49 = vmax.f32 %v1638_v41, 0.0 }
  0x91   : > { %3538 = vmatmul.msk.bf16.gmra.mxu2 %vm1083_vm0, %v3668_v37 }
  0x92   : > { %3570 = vmatmul.msk.bf16.gmra.mxu3 %vm1083_vm0, %v3700_v38 }
  0x94   : > { %v1797_v42 = vpop.f32.mrf.mxu2  ;;  %v1479_v44 = vpop.f32.mrf.mxu0 }
  0x95   : > { %v1957_v43 = vpop.f32.mrf.mxu3  ;;  %v1639_v45 = vpop.f32.mrf.mxu1  ;;  %v1480_v46 = vadd.f32 %v4626_v39, %v1479_v44  ;;  %v1798_v54 = vadd.f32 %v4626_v39, %v1797_v42 }
  0x96   : > { %v1640_v47 = vadd.f32 %v4626_v39, %v1639_v45  ;;  %v1958_v55 = vadd.f32 %v4626_v39, %v1957_v43 }
  0x97   : > { %v2118_v50 = vmax.f32 %v1480_v46, 0.0  ;;  %v2245_v2 = vmax.f32 %v1798_v54, 0.0 }
  0x98   : > { %v2182_v51 = vmax.f32 %v1640_v47, 0.0  ;;  %v2309_v3 = vmax.f32 %v1958_v55, 0.0 }
  0x99   : > { %v3728_v52 = vpack.c.bf16 %v2118_v50, %v2117_v48 }
  0x9a   : > { %v3888_v53 = vpack.c.bf16 %v2182_v51, %v2181_v49 }
  0x9b   : > { %3729 = vst [vmem:[%s4641_s25] sm:$0xff] %v3728_v52  }
  0x9c   : > { %v1799_v56 = vpop.f32.mrf.mxu2  ;;  %4396 = vst [vmem:[%s4641_s25 + $0x100] sm:$0xff] %v3888_v53   ;;  %v1482_v62 = vpop.f32.mrf.mxu0 }
  0x9d   : > { %v1959_v57 = vpop.f32.mrf.mxu3  ;;  %v1800_v60 = vadd.f32 %v4626_v39, %v1799_v56  ;;  %v1642_v63 = vpop.f32.mrf.mxu1  ;;  %v1483_v8 = vadd.f32 %v4626_v39, %v1482_v62 }
  0x9e   : > { %v1960_v61 = vadd.f32 %v4626_v39, %v1959_v57  ;;  %v1643_v9 = vadd.f32 %v4626_v39, %v1642_v63 }
  0x9f   : > { %v2246_v4 = vmax.f32 %v1800_v60, 0.0  ;;  %3475 = vmatmul.msk.bf16.gmra.mxu0 %vm1083_vm0, %v3605_v58  ;;  %v2119_v16 = vmax.f32 %v1483_v8, 0.0  ;;  %v3639_v60 = vld [vmem:[%s4553_s20 + $0x158] sm:$0xff] }
  0xa0   : > { %v2310_v5 = vmax.f32 %v1960_v61, 0.0  ;;  %3507 = vmatmul.msk.bf16.gmra.mxu1 %vm1083_vm0, %v3637_v59  ;;  %v2183_v17 = vmax.f32 %v1643_v9, 0.0  ;;  %v3607_v59 = vld [vmem:[%s4553_s20 + $0x58] sm:$0xff] }
  0xa1   : > { %v4048_v6 = vpack.c.bf16 %v2246_v4, %v2245_v2  ;;  %3539 = vmatmul.msk.bf16.gmra.mxu2 %vm1083_vm0, %v3669_v0  ;;  %v3703_v2 = vld [vmem:[%s4553_s20 + $0x358] sm:$0xff] }
  0xa2   : > { %v4208_v7 = vpack.c.bf16 %v2310_v5, %v2309_v3  ;;  %3571 = vmatmul.msk.bf16.gmra.mxu3 %vm1083_vm0, %v3701_v1  ;;  %v3671_v1 = vld [vmem:[%s4553_s20 + $0x258] sm:$0xff] }
  0xa3   : > { %4428 = vst [vmem:[%s4641_s25 + $0x200] sm:$0xff] %v4048_v6  }
  0xa4   : > { %4460 = vst [vmem:[%s4641_s25 + $0x300] sm:$0xff] %v4208_v7   ;;  %v1802_v10 = vpop.f32.mrf.mxu2  ;;  %v1484_v12 = vpop.f32.mrf.mxu0 }
  0xa5   : > { %v1962_v11 = vpop.f32.mrf.mxu3  ;;  %v1644_v13 = vpop.f32.mrf.mxu1  ;;  %v1485_v14 = vadd.f32 %v4626_v39, %v1484_v12  ;;  %v1803_v22 = vadd.f32 %v4626_v39, %v1802_v10 }
  0xa6   : > { %v1645_v15 = vadd.f32 %v4626_v39, %v1644_v13  ;;  %v1963_v23 = vadd.f32 %v4626_v39, %v1962_v11 }
  0xa7   : > { %v2120_v18 = vmax.f32 %v1485_v14, 0.0  ;;  %v2247_v34 = vmax.f32 %v1803_v22, 0.0 }
  0xa8   : > { %v2184_v19 = vmax.f32 %v1645_v15, 0.0  ;;  %v2311_v35 = vmax.f32 %v1963_v23, 0.0 }
  0xa9   : > { %v3733_v20 = vpack.c.bf16 %v2120_v18, %v2119_v16 }
  0xaa   : > { %v3893_v21 = vpack.c.bf16 %v2184_v19, %v2183_v17 }
  0xab   : > { %4365 = vst [vmem:[%s4641_s25 + $0x8] sm:$0xff] %v3733_v20  }
  0xac   : > { %v1804_v24 = vpop.f32.mrf.mxu2  ;;  %4397 = vst [vmem:[%s4641_s25 + $0x108] sm:$0xff] %v3893_v21   ;;  %v1487_v30 = vpop.f32.mrf.mxu0 }
  0xad   : > { %v1964_v25 = vpop.f32.mrf.mxu3  ;;  %v1805_v28 = vadd.f32 %v4626_v39, %v1804_v24  ;;  %v1647_v31 = vpop.f32.mrf.mxu1  ;;  %v1488_v41 = vadd.f32 %v4626_v39, %v1487_v30 }
  0xae   : > { %v1965_v29 = vadd.f32 %v4626_v39, %v1964_v25  ;;  %v1648_v42 = vadd.f32 %v4626_v39, %v1647_v31 }
  0xaf   : > { %v2248_v36 = vmax.f32 %v1805_v28, 0.0  ;;  %3476 = vmatmul.msk.bf16.gmra.mxu0 %vm1083_vm0, %v3606_v26  ;;  %v2121_v49 = vmax.f32 %v1488_v41, 0.0  ;;  %v3640_v28 = vld [vmem:[%s4553_s20 + $0x160] sm:$0xff] }
  0xb0   : > { %v2312_v37 = vmax.f32 %v1965_v29, 0.0  ;;  %3508 = vmatmul.msk.bf16.gmra.mxu1 %vm1083_vm0, %v3638_v27  ;;  %v2185_v50 = vmax.f32 %v1648_v42, 0.0  ;;  %v3608_v27 = vld [vmem:[%s4553_s20 + $0x60] sm:$0xff] }
  0xb1   : > { %v4053_v38 = vpack.c.bf16 %v2248_v36, %v2247_v34  ;;  %3540 = vmatmul.msk.bf16.gmra.mxu2 %vm1083_vm0, %v3670_v32  ;;  %v3704_v34 = vld [vmem:[%s4553_s20 + $0x360] sm:$0xff] }
  0xb2   : > { %v4213_v40 = vpack.c.bf16 %v2312_v37, %v2311_v35  ;;  %3572 = vmatmul.msk.bf16.gmra.mxu3 %vm1083_vm0, %v3702_v33  ;;  %v3672_v33 = vld [vmem:[%s4553_s20 + $0x260] sm:$0xff] }
  0xb3   : > { %4429 = vst [vmem:[%s4641_s25 + $0x208] sm:$0xff] %v4053_v38  }
  0xb4   : > { %4461 = vst [vmem:[%s4641_s25 + $0x308] sm:$0xff] %v4213_v40   ;;  %v1807_v43 = vpop.f32.mrf.mxu2  ;;  %v1489_v45 = vpop.f32.mrf.mxu0 }
  0xb5   : > { %v1967_v44 = vpop.f32.mrf.mxu3  ;;  %v1649_v46 = vpop.f32.mrf.mxu1  ;;  %v1490_v47 = vadd.f32 %v4626_v39, %v1489_v45  ;;  %v1808_v55 = vadd.f32 %v4626_v39, %v1807_v43 }
  0xb6   : > { %v1650_v48 = vadd.f32 %v4626_v39, %v1649_v46  ;;  %v1968_v56 = vadd.f32 %v4626_v39, %v1967_v44 }
  0xb7   : > { %v2122_v51 = vmax.f32 %v1490_v47, 0.0  ;;  %v2249_v3 = vmax.f32 %v1808_v55, 0.0 }
  0xb8   : > { %v2186_v52 = vmax.f32 %v1650_v48, 0.0  ;;  %v2313_v4 = vmax.f32 %v1968_v56, 0.0 }
  0xb9   : > { %v3738_v53 = vpack.c.bf16 %v2122_v51, %v2121_v49 }
  0xba   : > { %v3898_v54 = vpack.c.bf16 %v2186_v52, %v2185_v50 }
  0xbb   : > { %4366 = vst [vmem:[%s4641_s25 + $0x10] sm:$0xff] %v3738_v53  }
  0xbc   : > { %v1809_v57 = vpop.f32.mrf.mxu2  ;;  %4398 = vst [vmem:[%s4641_s25 + $0x110] sm:$0xff] %v3898_v54   ;;  %v1492_v63 = vpop.f32.mrf.mxu0 }
  0xbd   : > { %v1969_v58 = vpop.f32.mrf.mxu3  ;;  %v1810_v61 = vadd.f32 %v4626_v39, %v1809_v57  ;;  %v1652_v0 = vpop.f32.mrf.mxu1  ;;  %v1493_v9 = vadd.f32 %v4626_v39, %v1492_v63 }
  0xbe   : > { %v1970_v62 = vadd.f32 %v4626_v39, %v1969_v58  ;;  %v1653_v10 = vadd.f32 %v4626_v39, %v1652_v0 }
  0xbf   : > { %v2250_v5 = vmax.f32 %v1810_v61, 0.0  ;;  %3477 = vmatmul.msk.bf16.gmra.mxu0 %vm1083_vm0, %v3607_v59  ;;  %v2123_v17 = vmax.f32 %v1493_v9, 0.0  ;;  %v3641_v61 = vld [vmem:[%s4553_s20 + $0x168] sm:$0xff] }
  0xc0   : > { %v2314_v6 = vmax.f32 %v1970_v62, 0.0  ;;  %3509 = vmatmul.msk.bf16.gmra.mxu1 %vm1083_vm0, %v3639_v60  ;;  %v2187_v18 = vmax.f32 %v1653_v10, 0.0  ;;  %v3609_v60 = vld [vmem:[%s4553_s20 + $0x68] sm:$0xff] }
  0xc1   : > { %v4058_v7 = vpack.c.bf16 %v2250_v5, %v2249_v3  ;;  %3541 = vmatmul.msk.bf16.gmra.mxu2 %vm1083_vm0, %v3671_v1  ;;  %v3705_v3 = vld [vmem:[%s4553_s20 + $0x368] sm:$0xff] }
  0xc2   : > { %v4218_v8 = vpack.c.bf16 %v2314_v6, %v2313_v4  ;;  %3573 = vmatmul.msk.bf16.gmra.mxu3 %vm1083_vm0, %v3703_v2  ;;  %v3673_v2 = vld [vmem:[%s4553_s20 + $0x268] sm:$0xff] }
  0xc3   : > { %4430 = vst [vmem:[%s4641_s25 + $0x210] sm:$0xff] %v4058_v7  }
  0xc4   : > { %4462 = vst [vmem:[%s4641_s25 + $0x310] sm:$0xff] %v4218_v8   ;;  %v1812_v11 = vpop.f32.mrf.mxu2  ;;  %v1494_v13 = vpop.f32.mrf.mxu0 }
  0xc5   : > { %v1972_v12 = vpop.f32.mrf.mxu3  ;;  %v1654_v14 = vpop.f32.mrf.mxu1  ;;  %v1495_v15 = vadd.f32 %v4626_v39, %v1494_v13  ;;  %v1813_v23 = vadd.f32 %v4626_v39, %v1812_v11 }
  0xc6   : > { %v1655_v16 = vadd.f32 %v4626_v39, %v1654_v14  ;;  %v1973_v24 = vadd.f32 %v4626_v39, %v1972_v12 }
  0xc7   : > { %v2124_v19 = vmax.f32 %v1495_v15, 0.0  ;;  %v2251_v35 = vmax.f32 %v1813_v23, 0.0 }
  0xc8   : > { %v2188_v20 = vmax.f32 %v1655_v16, 0.0  ;;  %v2315_v36 = vmax.f32 %v1973_v24, 0.0 }
  0xc9   : > { %v3743_v21 = vpack.c.bf16 %v2124_v19, %v2123_v17 }
  0xca   : > { %v3903_v22 = vpack.c.bf16 %v2188_v20, %v2187_v18 }
  0xcb   : > { %4367 = vst [vmem:[%s4641_s25 + $0x18] sm:$0xff] %v3743_v21  }
  0xcc   : > { %v1814_v25 = vpop.f32.mrf.mxu2  ;;  %4399 = vst [vmem:[%s4641_s25 + $0x118] sm:$0xff] %v3903_v22   ;;  %v1497_v31 = vpop.f32.mrf.mxu0 }
  0xcd   : > { %v1974_v26 = vpop.f32.mrf.mxu3  ;;  %v1815_v29 = vadd.f32 %v4626_v39, %v1814_v25  ;;  %v1657_v32 = vpop.f32.mrf.mxu1  ;;  %v1498_v42 = vadd.f32 %v4626_v39, %v1497_v31 }
  0xce   : > { %v1975_v30 = vadd.f32 %v4626_v39, %v1974_v26  ;;  %v1658_v43 = vadd.f32 %v4626_v39, %v1657_v32 }
  0xcf   : > { %v2252_v37 = vmax.f32 %v1815_v29, 0.0  ;;  %3478 = vmatmul.msk.bf16.gmra.mxu0 %vm1083_vm0, %v3608_v27  ;;  %v2125_v50 = vmax.f32 %v1498_v42, 0.0  ;;  %v3642_v29 = vld [vmem:[%s4553_s20 + $0x170] sm:$0xff] }
  0xd0   : > { %v2316_v38 = vmax.f32 %v1975_v30, 0.0  ;;  %3510 = vmatmul.msk.bf16.gmra.mxu1 %vm1083_vm0, %v3640_v28  ;;  %v2189_v51 = vmax.f32 %v1658_v43, 0.0  ;;  %v3610_v28 = vld [vmem:[%s4553_s20 + $0x70] sm:$0xff] }
  0xd1   : > { %v4063_v40 = vpack.c.bf16 %v2252_v37, %v2251_v35  ;;  %3542 = vmatmul.msk.bf16.gmra.mxu2 %vm1083_vm0, %v3672_v33  ;;  %v3706_v35 = vld [vmem:[%s4553_s20 + $0x370] sm:$0xff] }
  0xd2   : > { %v4223_v41 = vpack.c.bf16 %v2316_v38, %v2315_v36  ;;  %3574 = vmatmul.msk.bf16.gmra.mxu3 %vm1083_vm0, %v3704_v34  ;;  %v3674_v34 = vld [vmem:[%s4553_s20 + $0x270] sm:$0xff] }
  0xd3   : > { %4431 = vst [vmem:[%s4641_s25 + $0x218] sm:$0xff] %v4063_v40  }
  0xd4   : > { %4463 = vst [vmem:[%s4641_s25 + $0x318] sm:$0xff] %v4223_v41   ;;  %v1817_v44 = vpop.f32.mrf.mxu2  ;;  %v1499_v46 = vpop.f32.mrf.mxu0 }
  0xd5   : > { %v1977_v45 = vpop.f32.mrf.mxu3  ;;  %v1659_v47 = vpop.f32.mrf.mxu1  ;;  %v1500_v48 = vadd.f32 %v4626_v39, %v1499_v46  ;;  %v1818_v56 = vadd.f32 %v4626_v39, %v1817_v44 }
  0xd6   : > { %v1660_v49 = vadd.f32 %v4626_v39, %v1659_v47  ;;  %v1978_v57 = vadd.f32 %v4626_v39, %v1977_v45 }
  0xd7   : > { %v2126_v52 = vmax.f32 %v1500_v48, 0.0  ;;  %v2253_v4 = vmax.f32 %v1818_v56, 0.0 }
  0xd8   : > { %v2190_v53 = vmax.f32 %v1660_v49, 0.0  ;;  %v2317_v5 = vmax.f32 %v1978_v57, 0.0 }
  0xd9   : > { %v3748_v54 = vpack.c.bf16 %v2126_v52, %v2125_v50 }
  0xda   : > { %v3908_v55 = vpack.c.bf16 %v2190_v53, %v2189_v51 }
  0xdb   : > { %4368 = vst [vmem:[%s4641_s25 + $0x20] sm:$0xff] %v3748_v54  }
  0xdc   : > { %v1819_v58 = vpop.f32.mrf.mxu2  ;;  %4400 = vst [vmem:[%s4641_s25 + $0x120] sm:$0xff] %v3908_v55   ;;  %v1502_v0 = vpop.f32.mrf.mxu0 }
  0xdd   : > { %v1979_v59 = vpop.f32.mrf.mxu3  ;;  %v1820_v62 = vadd.f32 %v4626_v39, %v1819_v58  ;;  %v1662_v1 = vpop.f32.mrf.mxu1  ;;  %v1503_v10 = vadd.f32 %v4626_v39, %v1502_v0 }
  0xde   : > { %v1980_v63 = vadd.f32 %v4626_v39, %v1979_v59  ;;  %v1663_v11 = vadd.f32 %v4626_v39, %v1662_v1 }
  0xdf   : > { %v2254_v6 = vmax.f32 %v1820_v62, 0.0  ;;  %3479 = vmatmul.msk.bf16.gmra.mxu0 %vm1083_vm0, %v3609_v60  ;;  %v2127_v18 = vmax.f32 %v1503_v10, 0.0  ;;  %v3643_v62 = vld [vmem:[%s4553_s20 + $0x178] sm:$0xff] }
  0xe0   : > { %v2318_v7 = vmax.f32 %v1980_v63, 0.0  ;;  %3511 = vmatmul.msk.bf16.gmra.mxu1 %vm1083_vm0, %v3641_v61  ;;  %v2191_v19 = vmax.f32 %v1663_v11, 0.0  ;;  %v3611_v61 = vld [vmem:[%s4553_s20 + $0x78] sm:$0xff] }
  0xe1   : > { %v4068_v8 = vpack.c.bf16 %v2254_v6, %v2253_v4  ;;  %3543 = vmatmul.msk.bf16.gmra.mxu2 %vm1083_vm0, %v3673_v2  ;;  %v3707_v4 = vld [vmem:[%s4553_s20 + $0x378] sm:$0xff] }
  0xe2   : > { %v4228_v9 = vpack.c.bf16 %v2318_v7, %v2317_v5  ;;  %3575 = vmatmul.msk.bf16.gmra.mxu3 %vm1083_vm0, %v3705_v3  ;;  %v3675_v3 = vld [vmem:[%s4553_s20 + $0x278] sm:$0xff] }
  0xe3   : > { %4432 = vst [vmem:[%s4641_s25 + $0x220] sm:$0xff] %v4068_v8  }
  0xe4   : > { %4464 = vst [vmem:[%s4641_s25 + $0x320] sm:$0xff] %v4228_v9   ;;  %v1822_v12 = vpop.f32.mrf.mxu2  ;;  %v1504_v14 = vpop.f32.mrf.mxu0 }
  0xe5   : > { %v1982_v13 = vpop.f32.mrf.mxu3  ;;  %v1664_v15 = vpop.f32.mrf.mxu1  ;;  %v1505_v16 = vadd.f32 %v4626_v39, %v1504_v14  ;;  %v1823_v24 = vadd.f32 %v4626_v39, %v1822_v12 }
  0xe6   : > { %v1665_v17 = vadd.f32 %v4626_v39, %v1664_v15  ;;  %v1983_v25 = vadd.f32 %v4626_v39, %v1982_v13 }
  0xe7   : > { %v2128_v20 = vmax.f32 %v1505_v16, 0.0  ;;  %v2255_v36 = vmax.f32 %v1823_v24, 0.0 }
  0xe8   : > { %v2192_v21 = vmax.f32 %v1665_v17, 0.0  ;;  %v2319_v37 = vmax.f32 %v1983_v25, 0.0 }
  0xe9   : > { %v3753_v22 = vpack.c.bf16 %v2128_v20, %v2127_v18 }
  0xea   : > { %v3913_v23 = vpack.c.bf16 %v2192_v21, %v2191_v19 }
  0xeb   : > { %4369 = vst [vmem:[%s4641_s25 + $0x28] sm:$0xff] %v3753_v22  }
  0xec   : > { %v1824_v26 = vpop.f32.mrf.mxu2  ;;  %4401 = vst [vmem:[%s4641_s25 + $0x128] sm:$0xff] %v3913_v23   ;;  %v1507_v32 = vpop.f32.mrf.mxu0 }
  0xed   : > { %v1984_v27 = vpop.f32.mrf.mxu3  ;;  %v1825_v30 = vadd.f32 %v4626_v39, %v1824_v26  ;;  %v1667_v33 = vpop.f32.mrf.mxu1  ;;  %v1508_v43 = vadd.f32 %v4626_v39, %v1507_v32 }
  0xee   : > { %v1985_v31 = vadd.f32 %v4626_v39, %v1984_v27  ;;  %v1668_v44 = vadd.f32 %v4626_v39, %v1667_v33 }
  0xef   : > { %v2256_v38 = vmax.f32 %v1825_v30, 0.0  ;;  %3480 = vmatmul.msk.bf16.gmra.mxu0 %vm1083_vm0, %v3610_v28  ;;  %v2129_v51 = vmax.f32 %v1508_v43, 0.0  ;;  %v3644_v30 = vld [vmem:[%s4553_s20 + $0x180] sm:$0xff] }
  0xf0   : > { %v2320_v40 = vmax.f32 %v1985_v31, 0.0  ;;  %3512 = vmatmul.msk.bf16.gmra.mxu1 %vm1083_vm0, %v3642_v29  ;;  %v2193_v52 = vmax.f32 %v1668_v44, 0.0  ;;  %v3612_v29 = vld [vmem:[%s4553_s20 + $0x80] sm:$0xff] }
  0xf1   : > { %v4073_v41 = vpack.c.bf16 %v2256_v38, %v2255_v36  ;;  %3544 = vmatmul.msk.bf16.gmra.mxu2 %vm1083_vm0, %v3674_v34  ;;  %v3708_v36 = vld [vmem:[%s4553_s20 + $0x380] sm:$0xff] }
  0xf2   : > { %v4233_v42 = vpack.c.bf16 %v2320_v40, %v2319_v37  ;;  %3576 = vmatmul.msk.bf16.gmra.mxu3 %vm1083_vm0, %v3706_v35  ;;  %v3676_v35 = vld [vmem:[%s4553_s20 + $0x280] sm:$0xff] }
  0xf3   : > { %4433 = vst [vmem:[%s4641_s25 + $0x228] sm:$0xff] %v4073_v41  }
  0xf4   : > { %4465 = vst [vmem:[%s4641_s25 + $0x328] sm:$0xff] %v4233_v42   ;;  %v1827_v45 = vpop.f32.mrf.mxu2  ;;  %v1509_v47 = vpop.f32.mrf.mxu0 }
  0xf5   : > { %v1987_v46 = vpop.f32.mrf.mxu3  ;;  %v1669_v48 = vpop.f32.mrf.mxu1  ;;  %v1510_v49 = vadd.f32 %v4626_v39, %v1509_v47  ;;  %v1828_v57 = vadd.f32 %v4626_v39, %v1827_v45 }
  0xf6   : > { %v1670_v50 = vadd.f32 %v4626_v39, %v1669_v48  ;;  %v1988_v58 = vadd.f32 %v4626_v39, %v1987_v46 }
  0xf7   : > { %v2130_v53 = vmax.f32 %v1510_v49, 0.0  ;;  %v2257_v5 = vmax.f32 %v1828_v57, 0.0 }
  0xf8   : > { %v2194_v54 = vmax.f32 %v1670_v50, 0.0  ;;  %v2321_v6 = vmax.f32 %v1988_v58, 0.0 }
  0xf9   : > { %v3758_v55 = vpack.c.bf16 %v2130_v53, %v2129_v51 }
  0xfa   : > { %v3918_v56 = vpack.c.bf16 %v2194_v54, %v2193_v52 }
  0xfb   : > { %4370 = vst [vmem:[%s4641_s25 + $0x30] sm:$0xff] %v3758_v55  }
  0xfc   : > { %v1829_v59 = vpop.f32.mrf.mxu2  ;;  %4402 = vst [vmem:[%s4641_s25 + $0x130] sm:$0xff] %v3918_v56   ;;  %v1512_v1 = vpop.f32.mrf.mxu0 }
  0xfd   : > { %v1989_v60 = vpop.f32.mrf.mxu3  ;;  %v1830_v63 = vadd.f32 %v4626_v39, %v1829_v59  ;;  %v1672_v2 = vpop.f32.mrf.mxu1  ;;  %v1513_v11 = vadd.f32 %v4626_v39, %v1512_v1 }
  0xfe   : > { %v1990_v0 = vadd.f32 %v4626_v39, %v1989_v60  ;;  %v1673_v12 = vadd.f32 %v4626_v39, %v1672_v2 }
  0xff   : > { %v2258_v7 = vmax.f32 %v1830_v63, 0.0  ;;  %3481 = vmatmul.msk.bf16.gmra.mxu0 %vm1083_vm0, %v3611_v61  ;;  %v2131_v19 = vmax.f32 %v1513_v11, 0.0  ;;  %v3645_v63 = vld [vmem:[%s4553_s20 + $0x188] sm:$0xff] }
 0x100   : > { %v2322_v8 = vmax.f32 %v1990_v0, 0.0  ;;  %3513 = vmatmul.msk.bf16.gmra.mxu1 %vm1083_vm0, %v3643_v62  ;;  %v2195_v20 = vmax.f32 %v1673_v12, 0.0  ;;  %v3613_v62 = vld [vmem:[%s4553_s20 + $0x88] sm:$0xff] }
 0x101   : > { %v4078_v9 = vpack.c.bf16 %v2258_v7, %v2257_v5  ;;  %3545 = vmatmul.msk.bf16.gmra.mxu2 %vm1083_vm0, %v3675_v3  ;;  %v3709_v5 = vld [vmem:[%s4553_s20 + $0x388] sm:$0xff] }
 0x102   : > { %v4238_v10 = vpack.c.bf16 %v2322_v8, %v2321_v6  ;;  %3577 = vmatmul.msk.bf16.gmra.mxu3 %vm1083_vm0, %v3707_v4  ;;  %v3677_v4 = vld [vmem:[%s4553_s20 + $0x288] sm:$0xff] }
 0x103   : > { %4434 = vst [vmem:[%s4641_s25 + $0x230] sm:$0xff] %v4078_v9  }
 0x104   : > { %4466 = vst [vmem:[%s4641_s25 + $0x330] sm:$0xff] %v4238_v10   ;;  %v1832_v13 = vpop.f32.mrf.mxu2  ;;  %v1514_v15 = vpop.f32.mrf.mxu0 }
 0x105   : > { %v1992_v14 = vpop.f32.mrf.mxu3  ;;  %v1674_v16 = vpop.f32.mrf.mxu1  ;;  %v1515_v17 = vadd.f32 %v4626_v39, %v1514_v15  ;;  %v1833_v25 = vadd.f32 %v4626_v39, %v1832_v13 }
 0x106   : > { %v1675_v18 = vadd.f32 %v4626_v39, %v1674_v16  ;;  %v1993_v26 = vadd.f32 %v4626_v39, %v1992_v14 }
 0x107   : > { %v2132_v21 = vmax.f32 %v1515_v17, 0.0  ;;  %v2259_v37 = vmax.f32 %v1833_v25, 0.0 }
 0x108   : > { %v2196_v22 = vmax.f32 %v1675_v18, 0.0  ;;  %v2323_v38 = vmax.f32 %v1993_v26, 0.0 }
 0x109   : > { %v3763_v23 = vpack.c.bf16 %v2132_v21, %v2131_v19 }
 0x10a   : > { %v3923_v24 = vpack.c.bf16 %v2196_v22, %v2195_v20 }
 0x10b   : > { %4371 = vst [vmem:[%s4641_s25 + $0x38] sm:$0xff] %v3763_v23  }
 0x10c   : > { %v1834_v27 = vpop.f32.mrf.mxu2  ;;  %4403 = vst [vmem:[%s4641_s25 + $0x138] sm:$0xff] %v3923_v24   ;;  %v1517_v33 = vpop.f32.mrf.mxu0 }
 0x10d   : > { %v1994_v28 = vpop.f32.mrf.mxu3  ;;  %v1835_v31 = vadd.f32 %v4626_v39, %v1834_v27  ;;  %v1677_v34 = vpop.f32.mrf.mxu1  ;;  %v1518_v44 = vadd.f32 %v4626_v39, %v1517_v33 }
 0x10e   : > { %v1995_v32 = vadd.f32 %v4626_v39, %v1994_v28  ;;  %v1678_v45 = vadd.f32 %v4626_v39, %v1677_v34 }
 0x10f   : > { %v2260_v40 = vmax.f32 %v1835_v31, 0.0  ;;  %3482 = vmatmul.msk.bf16.gmra.mxu0 %vm1083_vm0, %v3612_v29  ;;  %v2133_v52 = vmax.f32 %v1518_v44, 0.0  ;;  %v3646_v31 = vld [vmem:[%s4553_s20 + $0x190] sm:$0xff] }
 0x110   : > { %v2324_v41 = vmax.f32 %v1995_v32, 0.0  ;;  %3514 = vmatmul.msk.bf16.gmra.mxu1 %vm1083_vm0, %v3644_v30  ;;  %v2197_v53 = vmax.f32 %v1678_v45, 0.0  ;;  %v3614_v30 = vld [vmem:[%s4553_s20 + $0x90] sm:$0xff] }
 0x111   : > { %v4083_v42 = vpack.c.bf16 %v2260_v40, %v2259_v37  ;;  %3546 = vmatmul.msk.bf16.gmra.mxu2 %vm1083_vm0, %v3676_v35  ;;  %v3710_v37 = vld [vmem:[%s4553_s20 + $0x390] sm:$0xff] }
 0x112   : > { %v4243_v43 = vpack.c.bf16 %v2324_v41, %v2323_v38  ;;  %3578 = vmatmul.msk.bf16.gmra.mxu3 %vm1083_vm0, %v3708_v36  ;;  %v3678_v36 = vld [vmem:[%s4553_s20 + $0x290] sm:$0xff] }
 0x113   : > { %4435 = vst [vmem:[%s4641_s25 + $0x238] sm:$0xff] %v4083_v42  }
 0x114   : > { %4467 = vst [vmem:[%s4641_s25 + $0x338] sm:$0xff] %v4243_v43   ;;  %v1837_v46 = vpop.f32.mrf.mxu2  ;;  %v1519_v48 = vpop.f32.mrf.mxu0 }
 0x115   : > { %v1997_v47 = vpop.f32.mrf.mxu3  ;;  %v1679_v49 = vpop.f32.mrf.mxu1  ;;  %v1520_v50 = vadd.f32 %v4626_v39, %v1519_v48  ;;  %v1838_v58 = vadd.f32 %v4626_v39, %v1837_v46 }
 0x116   : > { %v1680_v51 = vadd.f32 %v4626_v39, %v1679_v49  ;;  %v1998_v59 = vadd.f32 %v4626_v39, %v1997_v47 }
 0x117   : > { %v2134_v54 = vmax.f32 %v1520_v50, 0.0  ;;  %v2261_v6 = vmax.f32 %v1838_v58, 0.0 }
 0x118   : > { %v2198_v55 = vmax.f32 %v1680_v51, 0.0  ;;  %v2325_v7 = vmax.f32 %v1998_v59, 0.0 }
 0x119   : > { %v3768_v56 = vpack.c.bf16 %v2134_v54, %v2133_v52 }
 0x11a   : > { %v3928_v57 = vpack.c.bf16 %v2198_v55, %v2197_v53 }
 0x11b   : > { %4372 = vst [vmem:[%s4641_s25 + $0x40] sm:$0xff] %v3768_v56  }
 0x11c   : > { %v1839_v60 = vpop.f32.mrf.mxu2  ;;  %4404 = vst [vmem:[%s4641_s25 + $0x140] sm:$0xff] %v3928_v57   ;;  %v1522_v2 = vpop.f32.mrf.mxu0 }
 0x11d   : > { %v1999_v61 = vpop.f32.mrf.mxu3  ;;  %v1840_v0 = vadd.f32 %v4626_v39, %v1839_v60  ;;  %v1682_v3 = vpop.f32.mrf.mxu1  ;;  %v1523_v12 = vadd.f32 %v4626_v39, %v1522_v2 }
 0x11e   : > { %v2000_v1 = vadd.f32 %v4626_v39, %v1999_v61  ;;  %v1683_v13 = vadd.f32 %v4626_v39, %v1682_v3 }
 0x11f   : > { %v2262_v8 = vmax.f32 %v1840_v0, 0.0  ;;  %3483 = vmatmul.msk.bf16.gmra.mxu0 %vm1083_vm0, %v3613_v62  ;;  %v2135_v20 = vmax.f32 %v1523_v12, 0.0  ;;  %v3647_v0 = vld [vmem:[%s4553_s20 + $0x198] sm:$0xff] }
 0x120   : > { %v2326_v9 = vmax.f32 %v2000_v1, 0.0  ;;  %3515 = vmatmul.msk.bf16.gmra.mxu1 %vm1083_vm0, %v3645_v63  ;;  %v2199_v21 = vmax.f32 %v1683_v13, 0.0  ;;  %v3615_v63 = vld [vmem:[%s4553_s20 + $0x98] sm:$0xff] }
 0x121   : > { %v4088_v10 = vpack.c.bf16 %v2262_v8, %v2261_v6  ;;  %3547 = vmatmul.msk.bf16.gmra.mxu2 %vm1083_vm0, %v3677_v4  ;;  %v3711_v6 = vld [vmem:[%s4553_s20 + $0x398] sm:$0xff] }
 0x122   : > { %v4248_v11 = vpack.c.bf16 %v2326_v9, %v2325_v7  ;;  %3579 = vmatmul.msk.bf16.gmra.mxu3 %vm1083_vm0, %v3709_v5  ;;  %v3679_v5 = vld [vmem:[%s4553_s20 + $0x298] sm:$0xff] }
 0x123   : > { %4436 = vst [vmem:[%s4641_s25 + $0x240] sm:$0xff] %v4088_v10  }
 0x124   : > { %4468 = vst [vmem:[%s4641_s25 + $0x340] sm:$0xff] %v4248_v11   ;;  %v1842_v14 = vpop.f32.mrf.mxu2  ;;  %v1524_v16 = vpop.f32.mrf.mxu0 }
 0x125   : > { %v2002_v15 = vpop.f32.mrf.mxu3  ;;  %v1684_v17 = vpop.f32.mrf.mxu1  ;;  %v1525_v18 = vadd.f32 %v4626_v39, %v1524_v16  ;;  %v1843_v26 = vadd.f32 %v4626_v39, %v1842_v14 }
 0x126   : > { %v1685_v19 = vadd.f32 %v4626_v39, %v1684_v17  ;;  %v2003_v27 = vadd.f32 %v4626_v39, %v2002_v15 }
 0x127   : > { %v2136_v22 = vmax.f32 %v1525_v18, 0.0  ;;  %v2263_v38 = vmax.f32 %v1843_v26, 0.0 }
 0x128   : > { %v2200_v23 = vmax.f32 %v1685_v19, 0.0  ;;  %v2327_v40 = vmax.f32 %v2003_v27, 0.0 }
 0x129   : > { %v3773_v24 = vpack.c.bf16 %v2136_v22, %v2135_v20 }
 0x12a   : > { %v3933_v25 = vpack.c.bf16 %v2200_v23, %v2199_v21 }
 0x12b   : > { %4373 = vst [vmem:[%s4641_s25 + $0x48] sm:$0xff] %v3773_v24  }
 0x12c   : > { %v1844_v28 = vpop.f32.mrf.mxu2  ;;  %4405 = vst [vmem:[%s4641_s25 + $0x148] sm:$0xff] %v3933_v25   ;;  %v1527_v34 = vpop.f32.mrf.mxu0 }
 0x12d   : > { %v2004_v29 = vpop.f32.mrf.mxu3  ;;  %v1845_v32 = vadd.f32 %v4626_v39, %v1844_v28  ;;  %v1687_v35 = vpop.f32.mrf.mxu1  ;;  %v1528_v45 = vadd.f32 %v4626_v39, %v1527_v34 }
 0x12e   : > { %v2005_v33 = vadd.f32 %v4626_v39, %v2004_v29  ;;  %v1688_v46 = vadd.f32 %v4626_v39, %v1687_v35 }
 0x12f   : > { %v2264_v41 = vmax.f32 %v1845_v32, 0.0  ;;  %3484 = vmatmul.msk.bf16.gmra.mxu0 %vm1083_vm0, %v3614_v30  ;;  %v2137_v53 = vmax.f32 %v1528_v45, 0.0  ;;  %v3648_v32 = vld [vmem:[%s4553_s20 + $0x1a0] sm:$0xff] }
 0x130   : > { %v2328_v42 = vmax.f32 %v2005_v33, 0.0  ;;  %3516 = vmatmul.msk.bf16.gmra.mxu1 %vm1083_vm0, %v3646_v31  ;;  %v2201_v54 = vmax.f32 %v1688_v46, 0.0  ;;  %v3616_v31 = vld [vmem:[%s4553_s20 + $0xa0] sm:$0xff] }
 0x131   : > { %v4093_v43 = vpack.c.bf16 %v2264_v41, %v2263_v38  ;;  %3548 = vmatmul.msk.bf16.gmra.mxu2 %vm1083_vm0, %v3678_v36  ;;  %v3712_v38 = vld [vmem:[%s4553_s20 + $0x3a0] sm:$0xff] }
 0x132   : > { %v4253_v44 = vpack.c.bf16 %v2328_v42, %v2327_v40  ;;  %3580 = vmatmul.msk.bf16.gmra.mxu3 %vm1083_vm0, %v3710_v37  ;;  %v3680_v37 = vld [vmem:[%s4553_s20 + $0x2a0] sm:$0xff] }
 0x133   : > { %4437 = vst [vmem:[%s4641_s25 + $0x248] sm:$0xff] %v4093_v43  }
 0x134   : > { %4469 = vst [vmem:[%s4641_s25 + $0x348] sm:$0xff] %v4253_v44   ;;  %v1847_v47 = vpop.f32.mrf.mxu2  ;;  %v1529_v49 = vpop.f32.mrf.mxu0 }
 0x135   : > { %v2007_v48 = vpop.f32.mrf.mxu3  ;;  %v1689_v50 = vpop.f32.mrf.mxu1  ;;  %v1530_v51 = vadd.f32 %v4626_v39, %v1529_v49  ;;  %v1848_v59 = vadd.f32 %v4626_v39, %v1847_v47 }
 0x136   : > { %v1690_v52 = vadd.f32 %v4626_v39, %v1689_v50  ;;  %v2008_v60 = vadd.f32 %v4626_v39, %v2007_v48 }
 0x137   : > { %v2138_v55 = vmax.f32 %v1530_v51, 0.0  ;;  %v2265_v7 = vmax.f32 %v1848_v59, 0.0 }
 0x138   : > { %v2202_v56 = vmax.f32 %v1690_v52, 0.0  ;;  %v2329_v8 = vmax.f32 %v2008_v60, 0.0 }
 0x139   : > { %v3778_v57 = vpack.c.bf16 %v2138_v55, %v2137_v53 }
 0x13a   : > { %v3938_v58 = vpack.c.bf16 %v2202_v56, %v2201_v54 }
 0x13b   : > { %4374 = vst [vmem:[%s4641_s25 + $0x50] sm:$0xff] %v3778_v57  }
 0x13c   : > { %v1849_v61 = vpop.f32.mrf.mxu2  ;;  %4406 = vst [vmem:[%s4641_s25 + $0x150] sm:$0xff] %v3938_v58   ;;  %v1532_v3 = vpop.f32.mrf.mxu0 }
 0x13d   : > { %v2009_v62 = vpop.f32.mrf.mxu3  ;;  %v1850_v1 = vadd.f32 %v4626_v39, %v1849_v61  ;;  %v1692_v4 = vpop.f32.mrf.mxu1  ;;  %v1533_v13 = vadd.f32 %v4626_v39, %v1532_v3 }
 0x13e   : > { %v2010_v2 = vadd.f32 %v4626_v39, %v2009_v62  ;;  %v1693_v14 = vadd.f32 %v4626_v39, %v1692_v4 }
 0x13f   : > { %v2266_v9 = vmax.f32 %v1850_v1, 0.0  ;;  %3485 = vmatmul.msk.bf16.gmra.mxu0 %vm1083_vm0, %v3615_v63  ;;  %v2139_v21 = vmax.f32 %v1533_v13, 0.0  ;;  %v3649_v1 = vld [vmem:[%s4553_s20 + $0x1a8] sm:$0xff] }
 0x140   : > { %v2330_v10 = vmax.f32 %v2010_v2, 0.0  ;;  %3517 = vmatmul.msk.bf16.gmra.mxu1 %vm1083_vm0, %v3647_v0  ;;  %v2203_v22 = vmax.f32 %v1693_v14, 0.0  ;;  %v3617_v0 = vld [vmem:[%s4553_s20 + $0xa8] sm:$0xff] }
 0x141   : > { %v4098_v11 = vpack.c.bf16 %v2266_v9, %v2265_v7  ;;  %3549 = vmatmul.msk.bf16.gmra.mxu2 %vm1083_vm0, %v3679_v5  ;;  %v3713_v7 = vld [vmem:[%s4553_s20 + $0x3a8] sm:$0xff] }
 0x142   : > { %v4258_v12 = vpack.c.bf16 %v2330_v10, %v2329_v8  ;;  %3581 = vmatmul.msk.bf16.gmra.mxu3 %vm1083_vm0, %v3711_v6  ;;  %v3681_v6 = vld [vmem:[%s4553_s20 + $0x2a8] sm:$0xff] }
 0x143   : > { %4438 = vst [vmem:[%s4641_s25 + $0x250] sm:$0xff] %v4098_v11  }
 0x144   : > { %4470 = vst [vmem:[%s4641_s25 + $0x350] sm:$0xff] %v4258_v12   ;;  %v1852_v15 = vpop.f32.mrf.mxu2  ;;  %v1534_v17 = vpop.f32.mrf.mxu0 }
 0x145   : > { %v2012_v16 = vpop.f32.mrf.mxu3  ;;  %v1694_v18 = vpop.f32.mrf.mxu1  ;;  %v1535_v19 = vadd.f32 %v4626_v39, %v1534_v17  ;;  %v1853_v27 = vadd.f32 %v4626_v39, %v1852_v15 }
 0x146   : > { %v1695_v20 = vadd.f32 %v4626_v39, %v1694_v18  ;;  %v2013_v28 = vadd.f32 %v4626_v39, %v2012_v16 }
 0x147   : > { %v2140_v23 = vmax.f32 %v1535_v19, 0.0  ;;  %v2267_v40 = vmax.f32 %v1853_v27, 0.0 }
 0x148   : > { %v2204_v24 = vmax.f32 %v1695_v20, 0.0  ;;  %v2331_v41 = vmax.f32 %v2013_v28, 0.0 }
 0x149   : > { %v3783_v25 = vpack.c.bf16 %v2140_v23, %v2139_v21 }
 0x14a   : > { %v3943_v26 = vpack.c.bf16 %v2204_v24, %v2203_v22 }
 0x14b   : > { %4375 = vst [vmem:[%s4641_s25 + $0x58] sm:$0xff] %v3783_v25  }
 0x14c   : > { %v1854_v29 = vpop.f32.mrf.mxu2  ;;  %4407 = vst [vmem:[%s4641_s25 + $0x158] sm:$0xff] %v3943_v26   ;;  %v1537_v35 = vpop.f32.mrf.mxu0 }
 0x14d   : > { %v2014_v30 = vpop.f32.mrf.mxu3  ;;  %v1855_v33 = vadd.f32 %v4626_v39, %v1854_v29  ;;  %v1697_v36 = vpop.f32.mrf.mxu1  ;;  %v1538_v46 = vadd.f32 %v4626_v39, %v1537_v35 }
 0x14e   : > { %v2015_v34 = vadd.f32 %v4626_v39, %v2014_v30  ;;  %v1698_v47 = vadd.f32 %v4626_v39, %v1697_v36 }
 0x14f   : > { %v2268_v42 = vmax.f32 %v1855_v33, 0.0  ;;  %3486 = vmatmul.msk.bf16.gmra.mxu0 %vm1083_vm0, %v3616_v31  ;;  %v2141_v54 = vmax.f32 %v1538_v46, 0.0  ;;  %v3650_v33 = vld [vmem:[%s4553_s20 + $0x1b0] sm:$0xff] }
 0x150   : > { %v2332_v43 = vmax.f32 %v2015_v34, 0.0  ;;  %3518 = vmatmul.msk.bf16.gmra.mxu1 %vm1083_vm0, %v3648_v32  ;;  %v2205_v55 = vmax.f32 %v1698_v47, 0.0  ;;  %v3618_v32 = vld [vmem:[%s4553_s20 + $0xb0] sm:$0xff] }
 0x151   : > { %v4103_v44 = vpack.c.bf16 %v2268_v42, %v2267_v40  ;;  %3550 = vmatmul.msk.bf16.gmra.mxu2 %vm1083_vm0, %v3680_v37  ;;  %v3714_v40 = vld [vmem:[%s4553_s20 + $0x3b0] sm:$0xff] }
 0x152   : > { %v4263_v45 = vpack.c.bf16 %v2332_v43, %v2331_v41  ;;  %3582 = vmatmul.msk.bf16.gmra.mxu3 %vm1083_vm0, %v3712_v38  ;;  %v3682_v38 = vld [vmem:[%s4553_s20 + $0x2b0] sm:$0xff] }
 0x153   : > { %4439 = vst [vmem:[%s4641_s25 + $0x258] sm:$0xff] %v4103_v44  }
 0x154   : > { %4471 = vst [vmem:[%s4641_s25 + $0x358] sm:$0xff] %v4263_v45   ;;  %v1857_v48 = vpop.f32.mrf.mxu2  ;;  %v1539_v50 = vpop.f32.mrf.mxu0 }
 0x155   : > { %v2017_v49 = vpop.f32.mrf.mxu3  ;;  %v1699_v51 = vpop.f32.mrf.mxu1  ;;  %v1540_v52 = vadd.f32 %v4626_v39, %v1539_v50  ;;  %v1858_v60 = vadd.f32 %v4626_v39, %v1857_v48 }
 0x156   : > { %v1700_v53 = vadd.f32 %v4626_v39, %v1699_v51  ;;  %v2018_v61 = vadd.f32 %v4626_v39, %v2017_v49 }
 0x157   : > { %v2142_v56 = vmax.f32 %v1540_v52, 0.0  ;;  %v2269_v8 = vmax.f32 %v1858_v60, 0.0 }
 0x158   : > { %v2206_v57 = vmax.f32 %v1700_v53, 0.0  ;;  %v2333_v9 = vmax.f32 %v2018_v61, 0.0 }
 0x159   : > { %v3788_v58 = vpack.c.bf16 %v2142_v56, %v2141_v54 }
 0x15a   : > { %v3948_v59 = vpack.c.bf16 %v2206_v57, %v2205_v55 }
 0x15b   : > { %4376 = vst [vmem:[%s4641_s25 + $0x60] sm:$0xff] %v3788_v58  }
 0x15c   : > { %v1859_v62 = vpop.f32.mrf.mxu2  ;;  %4408 = vst [vmem:[%s4641_s25 + $0x160] sm:$0xff] %v3948_v59   ;;  %v1542_v4 = vpop.f32.mrf.mxu0 }
 0x15d   : > { %v2019_v63 = vpop.f32.mrf.mxu3  ;;  %v1860_v2 = vadd.f32 %v4626_v39, %v1859_v62  ;;  %v1702_v5 = vpop.f32.mrf.mxu1 }
 0x15e   : > { %v2020_v3 = vadd.f32 %v4626_v39, %v2019_v63  ;;  %v4902_v39 = vld [vmem:[%s5222_s2] ss:$0 sm:$0xff] }
 0x15f   : > { %v2270_v10 = vmax.f32 %v1860_v2, 0.0  ;;  %3487 = vmatmul.msk.bf16.gmra.mxu0 %vm1083_vm0, %v3617_v0  ;;  %v1543_v14 = vadd.f32 %v4902_v39, %v1542_v4  ;;  %v1703_v15 = vadd.f32 %v4902_v39, %v1702_v5  ;;  %v3651_v2 = vld [vmem:[%s4553_s20 + $0x1b8] sm:$0xff] }
 0x160   : > { %v2334_v11 = vmax.f32 %v2020_v3, 0.0  ;;  %3519 = vmatmul.msk.bf16.gmra.mxu1 %vm1083_vm0, %v3649_v1  ;;  %v3619_v1 = vld [vmem:[%s4553_s20 + $0xb8] sm:$0xff] }
 0x161   : > { %v4108_v12 = vpack.c.bf16 %v2270_v10, %v2269_v8  ;;  %3551 = vmatmul.msk.bf16.gmra.mxu2 %vm1083_vm0, %v3681_v6  ;;  %v2143_v22 = vmax.f32 %v1543_v14, 0.0  ;;  %v2207_v23 = vmax.f32 %v1703_v15, 0.0  ;;  %v3715_v8 = vld [vmem:[%s4553_s20 + $0x3b8] sm:$0xff] }
 0x162   : > { %v4268_v13 = vpack.c.bf16 %v2334_v11, %v2333_v9  ;;  %3583 = vmatmul.msk.bf16.gmra.mxu3 %vm1083_vm0, %v3713_v7  ;;  %v3683_v7 = vld [vmem:[%s4553_s20 + $0x2b8] sm:$0xff] }
 0x163   : > { %4440 = vst [vmem:[%s4641_s25 + $0x260] sm:$0xff] %v4108_v12  }
 0x164   : > { %4472 = vst [vmem:[%s4641_s25 + $0x360] sm:$0xff] %v4268_v13   ;;  %v1862_v16 = vpop.f32.mrf.mxu2  ;;  %v1544_v18 = vpop.f32.mrf.mxu0 }
 0x165   : > { %v2022_v17 = vpop.f32.mrf.mxu3  ;;  %v1704_v19 = vpop.f32.mrf.mxu1  ;;  %v1545_v20 = vadd.f32 %v4902_v39, %v1544_v18  ;;  %v1863_v28 = vadd.f32 %v4902_v39, %v1862_v16 }
 0x166   : > { %v1705_v21 = vadd.f32 %v4902_v39, %v1704_v19  ;;  %v2023_v29 = vadd.f32 %v4902_v39, %v2022_v17 }
 0x167   : > { %v2144_v24 = vmax.f32 %v1545_v20, 0.0  ;;  %v2271_v41 = vmax.f32 %v1863_v28, 0.0 }
 0x168   : > { %v2208_v25 = vmax.f32 %v1705_v21, 0.0  ;;  %v2335_v42 = vmax.f32 %v2023_v29, 0.0 }
 0x169   : > { %v3793_v26 = vpack.c.bf16 %v2144_v24, %v2143_v22 }
 0x16a   : > { %v3953_v27 = vpack.c.bf16 %v2208_v25, %v2207_v23 }
 0x16b   : > { %4377 = vst [vmem:[%s4641_s25 + $0x68] sm:$0xff] %v3793_v26  }
 0x16c   : > { %v1864_v30 = vpop.f32.mrf.mxu2  ;;  %4409 = vst [vmem:[%s4641_s25 + $0x168] sm:$0xff] %v3953_v27   ;;  %v1547_v36 = vpop.f32.mrf.mxu0 }
 0x16d   : > { %v2024_v31 = vpop.f32.mrf.mxu3  ;;  %v1865_v34 = vadd.f32 %v4902_v39, %v1864_v30  ;;  %v1707_v37 = vpop.f32.mrf.mxu1  ;;  %v1548_v47 = vadd.f32 %v4902_v39, %v1547_v36 }
 0x16e   : > { %v2025_v35 = vadd.f32 %v4902_v39, %v2024_v31  ;;  %v1708_v48 = vadd.f32 %v4902_v39, %v1707_v37 }
 0x16f   : > { %v2272_v43 = vmax.f32 %v1865_v34, 0.0  ;;  %3488 = vmatmul.msk.bf16.gmra.mxu0 %vm1083_vm0, %v3618_v32  ;;  %v2145_v55 = vmax.f32 %v1548_v47, 0.0  ;;  %v3652_v34 = vld [vmem:[%s4553_s20 + $0x1c0] sm:$0xff] }
 0x170   : > { %v2336_v44 = vmax.f32 %v2025_v35, 0.0  ;;  %3520 = vmatmul.msk.bf16.gmra.mxu1 %vm1083_vm0, %v3650_v33  ;;  %v2209_v56 = vmax.f32 %v1708_v48, 0.0  ;;  %v3620_v33 = vld [vmem:[%s4553_s20 + $0xc0] sm:$0xff] }
 0x171   : > { %v4113_v45 = vpack.c.bf16 %v2272_v43, %v2271_v41  ;;  %3552 = vmatmul.msk.bf16.gmra.mxu2 %vm1083_vm0, %v3682_v38  ;;  %v3716_v41 = vld [vmem:[%s4553_s20 + $0x3c0] sm:$0xff] }
 0x172   : > { %v4273_v46 = vpack.c.bf16 %v2336_v44, %v2335_v42  ;;  %3584 = vmatmul.msk.bf16.gmra.mxu3 %vm1083_vm0, %v3714_v40  ;;  %v3684_v40 = vld [vmem:[%s4553_s20 + $0x2c0] sm:$0xff] }
 0x173   : > { %4441 = vst [vmem:[%s4641_s25 + $0x268] sm:$0xff] %v4113_v45  }
 0x174   : > { %4473 = vst [vmem:[%s4641_s25 + $0x368] sm:$0xff] %v4273_v46   ;;  %v1867_v49 = vpop.f32.mrf.mxu2  ;;  %v1549_v51 = vpop.f32.mrf.mxu0 }
 0x175   : > { %v2027_v50 = vpop.f32.mrf.mxu3  ;;  %v1709_v52 = vpop.f32.mrf.mxu1  ;;  %v1550_v53 = vadd.f32 %v4902_v39, %v1549_v51  ;;  %v1868_v61 = vadd.f32 %v4902_v39, %v1867_v49 }
 0x176   : > { %v1710_v54 = vadd.f32 %v4902_v39, %v1709_v52  ;;  %v2028_v62 = vadd.f32 %v4902_v39, %v2027_v50 }
 0x177   : > { %v2146_v57 = vmax.f32 %v1550_v53, 0.0  ;;  %v2273_v9 = vmax.f32 %v1868_v61, 0.0 }
 0x178   : > { %v2210_v58 = vmax.f32 %v1710_v54, 0.0  ;;  %v2337_v10 = vmax.f32 %v2028_v62, 0.0 }
 0x179   : > { %v3798_v59 = vpack.c.bf16 %v2146_v57, %v2145_v55 }
 0x17a   : > { %v3958_v60 = vpack.c.bf16 %v2210_v58, %v2209_v56 }
 0x17b   : > { %4378 = vst [vmem:[%s4641_s25 + $0x70] sm:$0xff] %v3798_v59  }
 0x17c   : > { %v1869_v63 = vpop.f32.mrf.mxu2  ;;  %4410 = vst [vmem:[%s4641_s25 + $0x170] sm:$0xff] %v3958_v60   ;;  %v1552_v5 = vpop.f32.mrf.mxu0 }
 0x17d   : > { %v2029_v0 = vpop.f32.mrf.mxu3  ;;  %v1870_v3 = vadd.f32 %v4902_v39, %v1869_v63  ;;  %v1712_v6 = vpop.f32.mrf.mxu1  ;;  %v1553_v15 = vadd.f32 %v4902_v39, %v1552_v5 }
 0x17e   : > { %v2030_v4 = vadd.f32 %v4902_v39, %v2029_v0  ;;  %v1713_v16 = vadd.f32 %v4902_v39, %v1712_v6 }
 0x17f   : > { %v2274_v11 = vmax.f32 %v1870_v3, 0.0  ;;  %3489 = vmatmul.msk.bf16.gmra.mxu0 %vm1083_vm0, %v3619_v1  ;;  %v2147_v23 = vmax.f32 %v1553_v15, 0.0  ;;  %v3653_v3 = vld [vmem:[%s4553_s20 + $0x1c8] sm:$0xff] }
 0x180   : > { %v2338_v12 = vmax.f32 %v2030_v4, 0.0  ;;  %3521 = vmatmul.msk.bf16.gmra.mxu1 %vm1083_vm0, %v3651_v2  ;;  %v2211_v24 = vmax.f32 %v1713_v16, 0.0  ;;  %v3621_v2 = vld [vmem:[%s4553_s20 + $0xc8] sm:$0xff] }
 0x181   : > { %v4118_v13 = vpack.c.bf16 %v2274_v11, %v2273_v9  ;;  %3553 = vmatmul.msk.bf16.gmra.mxu2 %vm1083_vm0, %v3683_v7  ;;  %v3717_v9 = vld [vmem:[%s4553_s20 + $0x3c8] sm:$0xff] }
 0x182   : > { %v4278_v14 = vpack.c.bf16 %v2338_v12, %v2337_v10  ;;  %3585 = vmatmul.msk.bf16.gmra.mxu3 %vm1083_vm0, %v3715_v8  ;;  %v3685_v8 = vld [vmem:[%s4553_s20 + $0x2c8] sm:$0xff] }
 0x183   : > { %4442 = vst [vmem:[%s4641_s25 + $0x270] sm:$0xff] %v4118_v13  }
 0x184   : > { %4474 = vst [vmem:[%s4641_s25 + $0x370] sm:$0xff] %v4278_v14   ;;  %v1872_v17 = vpop.f32.mrf.mxu2  ;;  %v1554_v19 = vpop.f32.mrf.mxu0 }
 0x185   : > { %v2032_v18 = vpop.f32.mrf.mxu3  ;;  %v1714_v20 = vpop.f32.mrf.mxu1  ;;  %v1555_v21 = vadd.f32 %v4902_v39, %v1554_v19  ;;  %v1873_v29 = vadd.f32 %v4902_v39, %v1872_v17 }
 0x186   : > { %v1715_v22 = vadd.f32 %v4902_v39, %v1714_v20  ;;  %v2033_v30 = vadd.f32 %v4902_v39, %v2032_v18 }
 0x187   : > { %v2148_v25 = vmax.f32 %v1555_v21, 0.0  ;;  %v2275_v42 = vmax.f32 %v1873_v29, 0.0 }
 0x188   : > { %v2212_v26 = vmax.f32 %v1715_v22, 0.0  ;;  %v2339_v43 = vmax.f32 %v2033_v30, 0.0 }
 0x189   : > { %v3803_v27 = vpack.c.bf16 %v2148_v25, %v2147_v23 }
 0x18a   : > { %v3963_v28 = vpack.c.bf16 %v2212_v26, %v2211_v24 }
 0x18b   : > { %4379 = vst [vmem:[%s4641_s25 + $0x78] sm:$0xff] %v3803_v27  }
 0x18c   : > { %v1874_v31 = vpop.f32.mrf.mxu2  ;;  %4411 = vst [vmem:[%s4641_s25 + $0x178] sm:$0xff] %v3963_v28   ;;  %v1557_v37 = vpop.f32.mrf.mxu0 }
 0x18d   : > { %v2034_v32 = vpop.f32.mrf.mxu3  ;;  %v1875_v35 = vadd.f32 %v4902_v39, %v1874_v31  ;;  %v1717_v38 = vpop.f32.mrf.mxu1  ;;  %v1558_v48 = vadd.f32 %v4902_v39, %v1557_v37 }
 0x18e   : > { %v2035_v36 = vadd.f32 %v4902_v39, %v2034_v32  ;;  %v1718_v49 = vadd.f32 %v4902_v39, %v1717_v38 }
 0x18f   : > { %v2276_v44 = vmax.f32 %v1875_v35, 0.0  ;;  %3490 = vmatmul.msk.bf16.gmra.mxu0 %vm1083_vm0, %v3620_v33  ;;  %v2149_v56 = vmax.f32 %v1558_v48, 0.0  ;;  %v3654_v35 = vld [vmem:[%s4553_s20 + $0x1d0] sm:$0xff] }
 0x190   : > { %v2340_v45 = vmax.f32 %v2035_v36, 0.0  ;;  %3522 = vmatmul.msk.bf16.gmra.mxu1 %vm1083_vm0, %v3652_v34  ;;  %v2213_v57 = vmax.f32 %v1718_v49, 0.0  ;;  %v3622_v34 = vld [vmem:[%s4553_s20 + $0xd0] sm:$0xff] }
 0x191   : > { %v4123_v46 = vpack.c.bf16 %v2276_v44, %v2275_v42  ;;  %3554 = vmatmul.msk.bf16.gmra.mxu2 %vm1083_vm0, %v3684_v40  ;;  %v3718_v42 = vld [vmem:[%s4553_s20 + $0x3d0] sm:$0xff] }
 0x192   : > { %v4283_v47 = vpack.c.bf16 %v2340_v45, %v2339_v43  ;;  %3586 = vmatmul.msk.bf16.gmra.mxu3 %vm1083_vm0, %v3716_v41  ;;  %v3686_v41 = vld [vmem:[%s4553_s20 + $0x2d0] sm:$0xff] }
 0x193   : > { %4443 = vst [vmem:[%s4641_s25 + $0x278] sm:$0xff] %v4123_v46  }
 0x194   : > { %4475 = vst [vmem:[%s4641_s25 + $0x378] sm:$0xff] %v4283_v47   ;;  %v1877_v50 = vpop.f32.mrf.mxu2  ;;  %v1559_v52 = vpop.f32.mrf.mxu0 }
 0x195   : > { %v2037_v51 = vpop.f32.mrf.mxu3  ;;  %v1719_v53 = vpop.f32.mrf.mxu1  ;;  %v1560_v54 = vadd.f32 %v4902_v39, %v1559_v52  ;;  %v1878_v62 = vadd.f32 %v4902_v39, %v1877_v50 }
 0x196   : > { %v1720_v55 = vadd.f32 %v4902_v39, %v1719_v53  ;;  %v2038_v63 = vadd.f32 %v4902_v39, %v2037_v51 }
 0x197   : > { %v2150_v58 = vmax.f32 %v1560_v54, 0.0  ;;  %v2277_v10 = vmax.f32 %v1878_v62, 0.0 }
 0x198   : > { %v2214_v59 = vmax.f32 %v1720_v55, 0.0  ;;  %v2341_v11 = vmax.f32 %v2038_v63, 0.0 }
 0x199   : > { %v3808_v60 = vpack.c.bf16 %v2150_v58, %v2149_v56 }
 0x19a   : > { %v3968_v61 = vpack.c.bf16 %v2214_v59, %v2213_v57 }
 0x19b   : > { %4380 = vst [vmem:[%s4641_s25 + $0x80] sm:$0xff] %v3808_v60  }
 0x19c   : > { %v1879_v0 = vpop.f32.mrf.mxu2  ;;  %4412 = vst [vmem:[%s4641_s25 + $0x180] sm:$0xff] %v3968_v61   ;;  %v1562_v6 = vpop.f32.mrf.mxu0 }
 0x19d   : > { %v2039_v1 = vpop.f32.mrf.mxu3  ;;  %v1880_v4 = vadd.f32 %v4902_v39, %v1879_v0  ;;  %v1722_v7 = vpop.f32.mrf.mxu1  ;;  %v1563_v16 = vadd.f32 %v4902_v39, %v1562_v6 }
 0x19e   : > { %v2040_v5 = vadd.f32 %v4902_v39, %v2039_v1  ;;  %v1723_v17 = vadd.f32 %v4902_v39, %v1722_v7 }
 0x19f   : > { %v2278_v12 = vmax.f32 %v1880_v4, 0.0  ;;  %3491 = vmatmul.msk.bf16.gmra.mxu0 %vm1083_vm0, %v3621_v2  ;;  %v2151_v24 = vmax.f32 %v1563_v16, 0.0  ;;  %v3655_v4 = vld [vmem:[%s4553_s20 + $0x1d8] sm:$0xff] }
 0x1a0   : > { %v2342_v13 = vmax.f32 %v2040_v5, 0.0  ;;  %3523 = vmatmul.msk.bf16.gmra.mxu1 %vm1083_vm0, %v3653_v3  ;;  %v2215_v25 = vmax.f32 %v1723_v17, 0.0  ;;  %v3623_v3 = vld [vmem:[%s4553_s20 + $0xd8] sm:$0xff] }
 0x1a1   : > { %v4128_v14 = vpack.c.bf16 %v2278_v12, %v2277_v10  ;;  %3555 = vmatmul.msk.bf16.gmra.mxu2 %vm1083_vm0, %v3685_v8  ;;  %v3719_v10 = vld [vmem:[%s4553_s20 + $0x3d8] sm:$0xff] }
 0x1a2   : > { %v4288_v15 = vpack.c.bf16 %v2342_v13, %v2341_v11  ;;  %3587 = vmatmul.msk.bf16.gmra.mxu3 %vm1083_vm0, %v3717_v9  ;;  %v3687_v9 = vld [vmem:[%s4553_s20 + $0x2d8] sm:$0xff] }
 0x1a3   : > { %4444 = vst [vmem:[%s4641_s25 + $0x280] sm:$0xff] %v4128_v14  }
 0x1a4   : > { %4476 = vst [vmem:[%s4641_s25 + $0x380] sm:$0xff] %v4288_v15   ;;  %v1882_v18 = vpop.f32.mrf.mxu2  ;;  %v1564_v20 = vpop.f32.mrf.mxu0 }
 0x1a5   : > { %v2042_v19 = vpop.f32.mrf.mxu3  ;;  %v1724_v21 = vpop.f32.mrf.mxu1  ;;  %v1565_v22 = vadd.f32 %v4902_v39, %v1564_v20  ;;  %v1883_v30 = vadd.f32 %v4902_v39, %v1882_v18 }
 0x1a6   : > { %v1725_v23 = vadd.f32 %v4902_v39, %v1724_v21  ;;  %v2043_v31 = vadd.f32 %v4902_v39, %v2042_v19 }
 0x1a7   : > { %v2152_v26 = vmax.f32 %v1565_v22, 0.0  ;;  %v2279_v43 = vmax.f32 %v1883_v30, 0.0 }
 0x1a8   : > { %v2216_v27 = vmax.f32 %v1725_v23, 0.0  ;;  %v2343_v44 = vmax.f32 %v2043_v31, 0.0 }
 0x1a9   : > { %v3813_v28 = vpack.c.bf16 %v2152_v26, %v2151_v24 }
 0x1aa   : > { %v3973_v29 = vpack.c.bf16 %v2216_v27, %v2215_v25 }
 0x1ab   : > { %4381 = vst [vmem:[%s4641_s25 + $0x88] sm:$0xff] %v3813_v28  }
 0x1ac   : > { %v1884_v32 = vpop.f32.mrf.mxu2  ;;  %4413 = vst [vmem:[%s4641_s25 + $0x188] sm:$0xff] %v3973_v29   ;;  %v1567_v38 = vpop.f32.mrf.mxu0 }
 0x1ad   : > { %v2044_v33 = vpop.f32.mrf.mxu3  ;;  %v1885_v36 = vadd.f32 %v4902_v39, %v1884_v32  ;;  %v1727_v40 = vpop.f32.mrf.mxu1  ;;  %v1568_v49 = vadd.f32 %v4902_v39, %v1567_v38 }
 0x1ae   : > { %v2045_v37 = vadd.f32 %v4902_v39, %v2044_v33  ;;  %v1728_v50 = vadd.f32 %v4902_v39, %v1727_v40 }
 0x1af   : > { %v2280_v45 = vmax.f32 %v1885_v36, 0.0  ;;  %3492 = vmatmul.msk.bf16.gmra.mxu0 %vm1083_vm0, %v3622_v34  ;;  %v2153_v57 = vmax.f32 %v1568_v49, 0.0  ;;  %v3656_v36 = vld [vmem:[%s4553_s20 + $0x1e0] sm:$0xff] }
 0x1b0   : > { %v2344_v46 = vmax.f32 %v2045_v37, 0.0  ;;  %3524 = vmatmul.msk.bf16.gmra.mxu1 %vm1083_vm0, %v3654_v35  ;;  %v2217_v58 = vmax.f32 %v1728_v50, 0.0  ;;  %v3624_v35 = vld [vmem:[%s4553_s20 + $0xe0] sm:$0xff] }
 0x1b1   : > { %v4133_v47 = vpack.c.bf16 %v2280_v45, %v2279_v43  ;;  %3556 = vmatmul.msk.bf16.gmra.mxu2 %vm1083_vm0, %v3686_v41  ;;  %v3720_v43 = vld [vmem:[%s4553_s20 + $0x3e0] sm:$0xff] }
 0x1b2   : > { %v4293_v48 = vpack.c.bf16 %v2344_v46, %v2343_v44  ;;  %3588 = vmatmul.msk.bf16.gmra.mxu3 %vm1083_vm0, %v3718_v42  ;;  %v3688_v42 = vld [vmem:[%s4553_s20 + $0x2e0] sm:$0xff] }
 0x1b3   : > { %4445 = vst [vmem:[%s4641_s25 + $0x288] sm:$0xff] %v4133_v47  }
 0x1b4   : > { %4477 = vst [vmem:[%s4641_s25 + $0x388] sm:$0xff] %v4293_v48   ;;  %v1887_v51 = vpop.f32.mrf.mxu2  ;;  %v1569_v53 = vpop.f32.mrf.mxu0 }
 0x1b5   : > { %v2047_v52 = vpop.f32.mrf.mxu3  ;;  %v1729_v54 = vpop.f32.mrf.mxu1  ;;  %v1570_v55 = vadd.f32 %v4902_v39, %v1569_v53  ;;  %v1888_v63 = vadd.f32 %v4902_v39, %v1887_v51 }
 0x1b6   : > { %v1730_v56 = vadd.f32 %v4902_v39, %v1729_v54  ;;  %v2048_v0 = vadd.f32 %v4902_v39, %v2047_v52 }
 0x1b7   : > { %v2154_v59 = vmax.f32 %v1570_v55, 0.0  ;;  %v2281_v11 = vmax.f32 %v1888_v63, 0.0 }
 0x1b8   : > { %v2218_v60 = vmax.f32 %v1730_v56, 0.0  ;;  %v2345_v12 = vmax.f32 %v2048_v0, 0.0 }
 0x1b9   : > { %v3818_v61 = vpack.c.bf16 %v2154_v59, %v2153_v57 }
 0x1ba   : > { %v3978_v62 = vpack.c.bf16 %v2218_v60, %v2217_v58 }
 0x1bb   : > { %4382 = vst [vmem:[%s4641_s25 + $0x90] sm:$0xff] %v3818_v61  }
 0x1bc   : > { %v1889_v1 = vpop.f32.mrf.mxu2  ;;  %4414 = vst [vmem:[%s4641_s25 + $0x190] sm:$0xff] %v3978_v62   ;;  %v1572_v7 = vpop.f32.mrf.mxu0 }
 0x1bd   : > { %v2049_v2 = vpop.f32.mrf.mxu3  ;;  %v1890_v5 = vadd.f32 %v4902_v39, %v1889_v1  ;;  %v1732_v8 = vpop.f32.mrf.mxu1  ;;  %v1573_v17 = vadd.f32 %v4902_v39, %v1572_v7 }
 0x1be   : > { %v2050_v6 = vadd.f32 %v4902_v39, %v2049_v2  ;;  %v1733_v18 = vadd.f32 %v4902_v39, %v1732_v8 }
 0x1bf   : > { %v2282_v13 = vmax.f32 %v1890_v5, 0.0  ;;  %3493 = vmatmul.msk.bf16.gmra.mxu0 %vm1083_vm0, %v3623_v3  ;;  %v2155_v25 = vmax.f32 %v1573_v17, 0.0  ;;  %v3657_v5 = vld [vmem:[%s4553_s20 + $0x1e8] sm:$0xff] }
 0x1c0   : > { %v2346_v14 = vmax.f32 %v2050_v6, 0.0  ;;  %3525 = vmatmul.msk.bf16.gmra.mxu1 %vm1083_vm0, %v3655_v4  ;;  %v2219_v26 = vmax.f32 %v1733_v18, 0.0  ;;  %v3625_v4 = vld [vmem:[%s4553_s20 + $0xe8] sm:$0xff] }
 0x1c1   : > { %v4138_v15 = vpack.c.bf16 %v2282_v13, %v2281_v11  ;;  %3557 = vmatmul.msk.bf16.gmra.mxu2 %vm1083_vm0, %v3687_v9  ;;  %v3721_v11 = vld [vmem:[%s4553_s20 + $0x3e8] sm:$0xff] }
 0x1c2   : > { %v4298_v16 = vpack.c.bf16 %v2346_v14, %v2345_v12  ;;  %3589 = vmatmul.msk.bf16.gmra.mxu3 %vm1083_vm0, %v3719_v10  ;;  %v3689_v10 = vld [vmem:[%s4553_s20 + $0x2e8] sm:$0xff] }
 0x1c3   : > { %4446 = vst [vmem:[%s4641_s25 + $0x290] sm:$0xff] %v4138_v15  }
 0x1c4   : > { %4478 = vst [vmem:[%s4641_s25 + $0x390] sm:$0xff] %v4298_v16   ;;  %v1892_v19 = vpop.f32.mrf.mxu2  ;;  %v1574_v21 = vpop.f32.mrf.mxu0 }
 0x1c5   : > { %v2052_v20 = vpop.f32.mrf.mxu3  ;;  %v1734_v22 = vpop.f32.mrf.mxu1  ;;  %v1575_v23 = vadd.f32 %v4902_v39, %v1574_v21  ;;  %v1893_v31 = vadd.f32 %v4902_v39, %v1892_v19 }
 0x1c6   : > { %v1735_v24 = vadd.f32 %v4902_v39, %v1734_v22  ;;  %v2053_v32 = vadd.f32 %v4902_v39, %v2052_v20 }
 0x1c7   : > { %v2156_v27 = vmax.f32 %v1575_v23, 0.0  ;;  %v2283_v44 = vmax.f32 %v1893_v31, 0.0 }
 0x1c8   : > { %v2220_v28 = vmax.f32 %v1735_v24, 0.0  ;;  %v2347_v45 = vmax.f32 %v2053_v32, 0.0 }
 0x1c9   : > { %v3823_v29 = vpack.c.bf16 %v2156_v27, %v2155_v25 }
 0x1ca   : > { %v3983_v30 = vpack.c.bf16 %v2220_v28, %v2219_v26 }
 0x1cb   : > { %4383 = vst [vmem:[%s4641_s25 + $0x98] sm:$0xff] %v3823_v29  }
 0x1cc   : > { %v1894_v33 = vpop.f32.mrf.mxu2  ;;  %4415 = vst [vmem:[%s4641_s25 + $0x198] sm:$0xff] %v3983_v30   ;;  %v1577_v40 = vpop.f32.mrf.mxu0 }
 0x1cd   : > { %v2054_v34 = vpop.f32.mrf.mxu3  ;;  %v1895_v37 = vadd.f32 %v4902_v39, %v1894_v33  ;;  %v1737_v41 = vpop.f32.mrf.mxu1  ;;  %v1578_v50 = vadd.f32 %v4902_v39, %v1577_v40 }
 0x1ce   : > { %v2055_v38 = vadd.f32 %v4902_v39, %v2054_v34  ;;  %v1738_v51 = vadd.f32 %v4902_v39, %v1737_v41 }
 0x1cf   : > { %v2284_v46 = vmax.f32 %v1895_v37, 0.0  ;;  %3494 = vmatmul.msk.bf16.gmra.mxu0 %vm1083_vm0, %v3624_v35  ;;  %v2157_v58 = vmax.f32 %v1578_v50, 0.0  ;;  %v3658_v37 = vld [vmem:[%s4553_s20 + $0x1f0] sm:$0xff] }
 0x1d0   : > { %v2348_v47 = vmax.f32 %v2055_v38, 0.0  ;;  %3526 = vmatmul.msk.bf16.gmra.mxu1 %vm1083_vm0, %v3656_v36  ;;  %v2221_v59 = vmax.f32 %v1738_v51, 0.0  ;;  %v3626_v36 = vld [vmem:[%s4553_s20 + $0xf0] sm:$0xff] }
 0x1d1   : > { %v4143_v48 = vpack.c.bf16 %v2284_v46, %v2283_v44  ;;  %3558 = vmatmul.msk.bf16.gmra.mxu2 %vm1083_vm0, %v3688_v42  ;;  %v3722_v44 = vld [vmem:[%s4553_s20 + $0x3f0] sm:$0xff] }
 0x1d2   : > { %v4303_v49 = vpack.c.bf16 %v2348_v47, %v2347_v45  ;;  %3590 = vmatmul.msk.bf16.gmra.mxu3 %vm1083_vm0, %v3720_v43  ;;  %v3690_v43 = vld [vmem:[%s4553_s20 + $0x2f0] sm:$0xff] }
 0x1d3   : > { %4447 = vst [vmem:[%s4641_s25 + $0x298] sm:$0xff] %v4143_v48  }
 0x1d4   : > { %4479 = vst [vmem:[%s4641_s25 + $0x398] sm:$0xff] %v4303_v49   ;;  %v1897_v52 = vpop.f32.mrf.mxu2  ;;  %v1579_v54 = vpop.f32.mrf.mxu0 }
 0x1d5   : > { %v2057_v53 = vpop.f32.mrf.mxu3  ;;  %v1739_v55 = vpop.f32.mrf.mxu1  ;;  %v1580_v56 = vadd.f32 %v4902_v39, %v1579_v54  ;;  %v1898_v0 = vadd.f32 %v4902_v39, %v1897_v52 }
 0x1d6   : > { %v1740_v57 = vadd.f32 %v4902_v39, %v1739_v55  ;;  %v2058_v1 = vadd.f32 %v4902_v39, %v2057_v53 }
 0x1d7   : > { %v2158_v60 = vmax.f32 %v1580_v56, 0.0  ;;  %v2285_v12 = vmax.f32 %v1898_v0, 0.0 }
 0x1d8   : > { %v2222_v61 = vmax.f32 %v1740_v57, 0.0  ;;  %v2349_v13 = vmax.f32 %v2058_v1, 0.0 }
 0x1d9   : > { %v3828_v62 = vpack.c.bf16 %v2158_v60, %v2157_v58 }
 0x1da   : > { %v3988_v63 = vpack.c.bf16 %v2222_v61, %v2221_v59 }
 0x1db   : > { %4384 = vst [vmem:[%s4641_s25 + $0xa0] sm:$0xff] %v3828_v62  }
 0x1dc   : > { %v1899_v2 = vpop.f32.mrf.mxu2  ;;  %4416 = vst [vmem:[%s4641_s25 + $0x1a0] sm:$0xff] %v3988_v63   ;;  %v1582_v8 = vpop.f32.mrf.mxu0 }
 0x1dd   : > { %v2059_v3 = vpop.f32.mrf.mxu3  ;;  %v1900_v6 = vadd.f32 %v4902_v39, %v1899_v2  ;;  %v1742_v9 = vpop.f32.mrf.mxu1  ;;  %v1583_v18 = vadd.f32 %v4902_v39, %v1582_v8 }
 0x1de   : > { %v2060_v7 = vadd.f32 %v4902_v39, %v2059_v3  ;;  %v1743_v19 = vadd.f32 %v4902_v39, %v1742_v9 }
 0x1df   : > { %v2286_v14 = vmax.f32 %v1900_v6, 0.0  ;;  %3495 = vmatmul.msk.bf16.gmra.mxu0 %vm1083_vm0, %v3625_v4  ;;  %v2159_v26 = vmax.f32 %v1583_v18, 0.0  ;;  %v3659_v6 = vld [vmem:[%s4553_s20 + $0x1f8] sm:$0xff] }
 0x1e0   : > { %v2350_v15 = vmax.f32 %v2060_v7, 0.0  ;;  %3527 = vmatmul.msk.bf16.gmra.mxu1 %vm1083_vm0, %v3657_v5  ;;  %v2223_v27 = vmax.f32 %v1743_v19, 0.0  ;;  %v3627_v5 = vld [vmem:[%s4553_s20 + $0xf8] sm:$0xff] }
 0x1e1   : > { %v4148_v16 = vpack.c.bf16 %v2286_v14, %v2285_v12  ;;  %3559 = vmatmul.msk.bf16.gmra.mxu2 %vm1083_vm0, %v3689_v10  ;;  %v3723_v12 = vld [vmem:[%s4553_s20 + $0x3f8] sm:$0xff] }
 0x1e2   : > { %v4308_v17 = vpack.c.bf16 %v2350_v15, %v2349_v13  ;;  %3591 = vmatmul.msk.bf16.gmra.mxu3 %vm1083_vm0, %v3721_v11  ;;  %v3691_v11 = vld [vmem:[%s4553_s20 + $0x2f8] sm:$0xff] }
 0x1e3   : > { %4448 = vst [vmem:[%s4641_s25 + $0x2a0] sm:$0xff] %v4148_v16  }
 0x1e4   : > { %4480 = vst [vmem:[%s4641_s25 + $0x3a0] sm:$0xff] %v4308_v17   ;;  %v1902_v20 = vpop.f32.mrf.mxu2  ;;  %v1584_v22 = vpop.f32.mrf.mxu0 }
 0x1e5   : > { %v2062_v21 = vpop.f32.mrf.mxu3  ;;  %v1744_v23 = vpop.f32.mrf.mxu1  ;;  %v1585_v24 = vadd.f32 %v4902_v39, %v1584_v22  ;;  %v1903_v32 = vadd.f32 %v4902_v39, %v1902_v20 }
 0x1e6   : > { %v1745_v25 = vadd.f32 %v4902_v39, %v1744_v23  ;;  %v2063_v33 = vadd.f32 %v4902_v39, %v2062_v21 }
 0x1e7   : > { %v2160_v28 = vmax.f32 %v1585_v24, 0.0  ;;  %v2287_v45 = vmax.f32 %v1903_v32, 0.0 }
 0x1e8   : > { %v2224_v29 = vmax.f32 %v1745_v25, 0.0  ;;  %v2351_v46 = vmax.f32 %v2063_v33, 0.0 }
 0x1e9   : > { %v3833_v30 = vpack.c.bf16 %v2160_v28, %v2159_v26 }
 0x1ea   : > { %v3993_v31 = vpack.c.bf16 %v2224_v29, %v2223_v27 }
 0x1eb   : > { %4385 = vst [vmem:[%s4641_s25 + $0xa8] sm:$0xff] %v3833_v30  }
 0x1ec   : > { %v1904_v34 = vpop.f32.mrf.mxu2  ;;  %4417 = vst [vmem:[%s4641_s25 + $0x1a8] sm:$0xff] %v3993_v31   ;;  %v1587_v41 = vpop.f32.mrf.mxu0 }
 0x1ed   : > { %v2064_v35 = vpop.f32.mrf.mxu3  ;;  %v1905_v38 = vadd.f32 %v4902_v39, %v1904_v34  ;;  %v1747_v42 = vpop.f32.mrf.mxu1  ;;  %v1588_v51 = vadd.f32 %v4902_v39, %v1587_v41 }
 0x1ee   : > { %v2065_v40 = vadd.f32 %v4902_v39, %v2064_v35  ;;  %v1748_v52 = vadd.f32 %v4902_v39, %v1747_v42 }
 0x1ef   : > { %v2288_v47 = vmax.f32 %v1905_v38, 0.0  ;;  %3496 = vmatmul.msk.bf16.gmra.mxu0 %vm1083_vm0, %v3626_v36  ;;  %v2161_v59 = vmax.f32 %v1588_v51, 0.0 }
 0x1f0   : > { %v2352_v48 = vmax.f32 %v2065_v40, 0.0  ;;  %3528 = vmatmul.msk.bf16.gmra.mxu1 %vm1083_vm0, %v3658_v37  ;;  %v2225_v60 = vmax.f32 %v1748_v52, 0.0 }
 0x1f1   : > { %v4153_v49 = vpack.c.bf16 %v2288_v47, %v2287_v45  ;;  %3560 = vmatmul.msk.bf16.gmra.mxu2 %vm1083_vm0, %v3690_v43 }
 0x1f2   : > { %v4313_v50 = vpack.c.bf16 %v2352_v48, %v2351_v46  ;;  %3592 = vmatmul.msk.bf16.gmra.mxu3 %vm1083_vm0, %v3722_v44 }
 0x1f3   : > { %4449 = vst [vmem:[%s4641_s25 + $0x2a8] sm:$0xff] %v4153_v49  }
 0x1f4   : > { %4481 = vst [vmem:[%s4641_s25 + $0x3a8] sm:$0xff] %v4313_v50   ;;  %v1907_v53 = vpop.f32.mrf.mxu2  ;;  %v1589_v55 = vpop.f32.mrf.mxu0 }
 0x1f5   : > { %v2067_v54 = vpop.f32.mrf.mxu3  ;;  %v1749_v56 = vpop.f32.mrf.mxu1  ;;  %v1590_v57 = vadd.f32 %v4902_v39, %v1589_v55  ;;  %v1908_v1 = vadd.f32 %v4902_v39, %v1907_v53 }
 0x1f6   : > { %v1750_v58 = vadd.f32 %v4902_v39, %v1749_v56  ;;  %v2068_v2 = vadd.f32 %v4902_v39, %v2067_v54 }
 0x1f7   : > { %v2162_v61 = vmax.f32 %v1590_v57, 0.0  ;;  %v2289_v13 = vmax.f32 %v1908_v1, 0.0 }
 0x1f8   : > { %v2226_v62 = vmax.f32 %v1750_v58, 0.0  ;;  %v2353_v14 = vmax.f32 %v2068_v2, 0.0 }
 0x1f9   : > { %v3838_v63 = vpack.c.bf16 %v2162_v61, %v2161_v59 }
 0x1fa   : > { %v3998_v0 = vpack.c.bf16 %v2226_v62, %v2225_v60 }
 0x1fb   : > { %4386 = vst [vmem:[%s4641_s25 + $0xb0] sm:$0xff] %v3838_v63  }
 0x1fc   : > { %v1909_v3 = vpop.f32.mrf.mxu2  ;;  %4418 = vst [vmem:[%s4641_s25 + $0x1b0] sm:$0xff] %v3998_v0   ;;  %v1592_v9 = vpop.f32.mrf.mxu0 }
 0x1fd   : > { %v2069_v4 = vpop.f32.mrf.mxu3  ;;  %v1910_v7 = vadd.f32 %v4902_v39, %v1909_v3  ;;  %v1752_v10 = vpop.f32.mrf.mxu1  ;;  %v1593_v19 = vadd.f32 %v4902_v39, %v1592_v9 }
 0x1fe   : > { %v2070_v8 = vadd.f32 %v4902_v39, %v2069_v4  ;;  %v1753_v20 = vadd.f32 %v4902_v39, %v1752_v10 }
 0x1ff   : > { %v2290_v15 = vmax.f32 %v1910_v7, 0.0  ;;  %3497 = vmatmul.msk.bf16.gmra.mxu0 %vm1083_vm0, %v3627_v5  ;;  %v2163_v27 = vmax.f32 %v1593_v19, 0.0 }
 0x200   : > { %v2354_v16 = vmax.f32 %v2070_v8, 0.0  ;;  %3529 = vmatmul.msk.bf16.gmra.mxu1 %vm1083_vm0, %v3659_v6  ;;  %v2227_v28 = vmax.f32 %v1753_v20, 0.0 }
 0x201   : > { %v4158_v17 = vpack.c.bf16 %v2290_v15, %v2289_v13  ;;  %3561 = vmatmul.msk.bf16.gmra.mxu2 %vm1083_vm0, %v3691_v11 }
 0x202   : > { %v4318_v18 = vpack.c.bf16 %v2354_v16, %v2353_v14  ;;  %3593 = vmatmul.msk.bf16.gmra.mxu3 %vm1083_vm0, %v3723_v12 }
 0x203   : > { %4450 = vst [vmem:[%s4641_s25 + $0x2b0] sm:$0xff] %v4158_v17  }
 0x204   : > { %4482 = vst [vmem:[%s4641_s25 + $0x3b0] sm:$0xff] %v4318_v18   ;;  %v1912_v21 = vpop.f32.mrf.mxu2  ;;  %v1594_v23 = vpop.f32.mrf.mxu0 }
 0x205   : > { %v2072_v22 = vpop.f32.mrf.mxu3  ;;  %v1754_v24 = vpop.f32.mrf.mxu1  ;;  %v1595_v25 = vadd.f32 %v4902_v39, %v1594_v23  ;;  %v1913_v33 = vadd.f32 %v4902_v39, %v1912_v21 }
 0x206   : > { %v1755_v26 = vadd.f32 %v4902_v39, %v1754_v24  ;;  %v2073_v34 = vadd.f32 %v4902_v39, %v2072_v22 }
 0x207   : > { %v2164_v29 = vmax.f32 %v1595_v25, 0.0  ;;  %v2291_v42 = vmax.f32 %v1913_v33, 0.0 }
 0x208   : > { %v2228_v30 = vmax.f32 %v1755_v26, 0.0  ;;  %v2355_v43 = vmax.f32 %v2073_v34, 0.0 }
 0x209   : > { %v3843_v31 = vpack.c.bf16 %v2164_v29, %v2163_v27 }
 0x20a   : > { %v4003_v32 = vpack.c.bf16 %v2228_v30, %v2227_v28 }
 0x20b   : > { %4387 = vst [vmem:[%s4641_s25 + $0xb8] sm:$0xff] %v3843_v31  }
 0x20c   : > { %v1914_v35 = vpop.f32.mrf.mxu2  ;;  %4419 = vst [vmem:[%s4641_s25 + $0x1b8] sm:$0xff] %v4003_v32   ;;  %v1597_v40 = vpop.f32.mrf.mxu0 }
 0x20d   : > { %v2074_v36 = vpop.f32.mrf.mxu3  ;;  %v1915_v37 = vadd.f32 %v4902_v39, %v1914_v35  ;;  %v1757_v41 = vpop.f32.mrf.mxu1  ;;  %v1598_v48 = vadd.f32 %v4902_v39, %v1597_v40 }
 0x20e   : > { %v2075_v38 = vadd.f32 %v4902_v39, %v2074_v36  ;;  %v1758_v49 = vadd.f32 %v4902_v39, %v1757_v41 }
 0x20f   : > { %v2292_v44 = vmax.f32 %v1915_v37, 0.0  ;;  %v2165_v56 = vmax.f32 %v1598_v48, 0.0 }
 0x210   : > { %v2356_v45 = vmax.f32 %v2075_v38, 0.0  ;;  %v2229_v57 = vmax.f32 %v1758_v49, 0.0 }
 0x211   : > { %v4163_v46 = vpack.c.bf16 %v2292_v44, %v2291_v42 }
 0x212   : > { %v4323_v47 = vpack.c.bf16 %v2356_v45, %v2355_v43 }
 0x213   : > { %4451 = vst [vmem:[%s4641_s25 + $0x2b8] sm:$0xff] %v4163_v46  }
 0x214   : > { %4483 = vst [vmem:[%s4641_s25 + $0x3b8] sm:$0xff] %v4323_v47   ;;  %v1917_v50 = vpop.f32.mrf.mxu2  ;;  %v1599_v52 = vpop.f32.mrf.mxu0 }
 0x215   : > { %v2077_v51 = vpop.f32.mrf.mxu3  ;;  %v1759_v53 = vpop.f32.mrf.mxu1  ;;  %v1600_v54 = vadd.f32 %v4902_v39, %v1599_v52  ;;  %v1918_v62 = vadd.f32 %v4902_v39, %v1917_v50 }
 0x216   : > { %v1760_v55 = vadd.f32 %v4902_v39, %v1759_v53  ;;  %v2078_v63 = vadd.f32 %v4902_v39, %v2077_v51 }
 0x217   : > { %v2166_v58 = vmax.f32 %v1600_v54, 0.0  ;;  %v2293_v6 = vmax.f32 %v1918_v62, 0.0 }
 0x218   : > { %v2230_v59 = vmax.f32 %v1760_v55, 0.0  ;;  %v2357_v7 = vmax.f32 %v2078_v63, 0.0 }
 0x219   : > { %v3848_v60 = vpack.c.bf16 %v2166_v58, %v2165_v56 }
 0x21a   : > { %v4008_v61 = vpack.c.bf16 %v2230_v59, %v2229_v57  ;;  %v5151_v59 = vld [vmem:[%s5222_s2] ss:$0 sm:$0xff] }
 0x21b   : > { %4388 = vst [vmem:[%s4641_s25 + $0xc0] sm:$0xff] %v3848_v60  }
 0x21c   : > { %v1919_v0 = vpop.f32.mrf.mxu2  ;;  %4420 = vst [vmem:[%s4641_s25 + $0x1c0] sm:$0xff] %v4008_v61   ;;  %v1602_v4 = vpop.f32.mrf.mxu0 }
 0x21d   : > { %v2079_v1 = vpop.f32.mrf.mxu3  ;;  %v1920_v2 = vadd.f32 %v4902_v39, %v1919_v0  ;;  %v1762_v5 = vpop.f32.mrf.mxu1  ;;  %v1603_v12 = vadd.f32 %v4902_v39, %v1602_v4 }
 0x21e   : > { %v2080_v3 = vadd.f32 %v4902_v39, %v2079_v1  ;;  %v1763_v13 = vadd.f32 %v4902_v39, %v1762_v5 }
 0x21f   : > { %v2294_v8 = vmax.f32 %v1920_v2, 0.0  ;;  %v2167_v20 = vmax.f32 %v1603_v12, 0.0 }
 0x220   : > { %v2358_v9 = vmax.f32 %v2080_v3, 0.0  ;;  %v2231_v21 = vmax.f32 %v1763_v13, 0.0 }
 0x221   : > { %v4168_v10 = vpack.c.bf16 %v2294_v8, %v2293_v6 }
 0x222   : > { %v4328_v11 = vpack.c.bf16 %v2358_v9, %v2357_v7 }
 0x223   : > { %4452 = vst [vmem:[%s4641_s25 + $0x2c0] sm:$0xff] %v4168_v10  }
 0x224   : > { %4484 = vst [vmem:[%s4641_s25 + $0x3c0] sm:$0xff] %v4328_v11   ;;  %v1922_v14 = vpop.f32.mrf.mxu2  ;;  %v1604_v16 = vpop.f32.mrf.mxu0 }
 0x225   : > { %v2082_v15 = vpop.f32.mrf.mxu3  ;;  %v1764_v17 = vpop.f32.mrf.mxu1  ;;  %v1605_v18 = vadd.f32 %v4902_v39, %v1604_v16  ;;  %v1923_v26 = vadd.f32 %v4902_v39, %v1922_v14 }
 0x226   : > { %v1765_v19 = vadd.f32 %v4902_v39, %v1764_v17  ;;  %v2083_v27 = vadd.f32 %v4902_v39, %v2082_v15 }
 0x227   : > { %v2168_v22 = vmax.f32 %v1605_v18, 0.0  ;;  %v2295_v34 = vmax.f32 %v1923_v26, 0.0 }
 0x228   : > { %v2232_v23 = vmax.f32 %v1765_v19, 0.0  ;;  %v2359_v35 = vmax.f32 %v2083_v27, 0.0 }
 0x229   : > { %v3853_v24 = vpack.c.bf16 %v2168_v22, %v2167_v20 }
 0x22a   : > { %v4013_v25 = vpack.c.bf16 %v2232_v23, %v2231_v21 }
 0x22b   : > { %4389 = vst [vmem:[%s4641_s25 + $0xc8] sm:$0xff] %v3853_v24  }
 0x22c   : > { %v1924_v28 = vpop.f32.mrf.mxu2  ;;  %4421 = vst [vmem:[%s4641_s25 + $0x1c8] sm:$0xff] %v4013_v25   ;;  %v1607_v32 = vpop.f32.mrf.mxu0 }
 0x22d   : > { %v2084_v29 = vpop.f32.mrf.mxu3  ;;  %v1925_v30 = vadd.f32 %v4902_v39, %v1924_v28  ;;  %v1767_v33 = vpop.f32.mrf.mxu1  ;;  %v1608_v41 = vadd.f32 %v4902_v39, %v1607_v32 }
 0x22e   : > { %v2085_v31 = vadd.f32 %v4902_v39, %v2084_v29  ;;  %v1768_v42 = vadd.f32 %v4902_v39, %v1767_v33 }
 0x22f   : > { %v2296_v36 = vmax.f32 %v1925_v30, 0.0  ;;  %v2169_v49 = vmax.f32 %v1608_v41, 0.0 }
 0x230   : > { %v2360_v37 = vmax.f32 %v2085_v31, 0.0  ;;  %v2233_v50 = vmax.f32 %v1768_v42, 0.0 }
 0x231   : > { %v4173_v38 = vpack.c.bf16 %v2296_v36, %v2295_v34 }
 0x232   : > { %v4333_v40 = vpack.c.bf16 %v2360_v37, %v2359_v35 }
 0x233   : > { %4453 = vst [vmem:[%s4641_s25 + $0x2c8] sm:$0xff] %v4173_v38  }
 0x234   : > { %4485 = vst [vmem:[%s4641_s25 + $0x3c8] sm:$0xff] %v4333_v40   ;;  %v1927_v43 = vpop.f32.mrf.mxu2  ;;  %v1609_v45 = vpop.f32.mrf.mxu0 }
 0x235   : > { %v2087_v44 = vpop.f32.mrf.mxu3  ;;  %v1769_v46 = vpop.f32.mrf.mxu1  ;;  %v1610_v47 = vadd.f32 %v4902_v39, %v1609_v45  ;;  %v1928_v55 = vadd.f32 %v4902_v39, %v1927_v43 }
 0x236   : > { %v1770_v48 = vadd.f32 %v4902_v39, %v1769_v46  ;;  %v2088_v56 = vadd.f32 %v4902_v39, %v2087_v44 }
 0x237   : > { %v2170_v51 = vmax.f32 %v1610_v47, 0.0  ;;  %v2297_v0 = vmax.f32 %v1928_v55, 0.0 }
 0x238   : > { %v2234_v52 = vmax.f32 %v1770_v48, 0.0  ;;  %v2361_v1 = vmax.f32 %v2088_v56, 0.0 }
 0x239   : > { %v3858_v53 = vpack.c.bf16 %v2170_v51, %v2169_v49 }
 0x23a   : > { %v4018_v54 = vpack.c.bf16 %v2234_v52, %v2233_v50 }
 0x23b   : > { %4390 = vst [vmem:[%s4641_s25 + $0xd0] sm:$0xff] %v3858_v53  }
 0x23c   : > { %v1929_v57 = vpop.f32.mrf.mxu2  ;;  %4422 = vst [vmem:[%s4641_s25 + $0x1d0] sm:$0xff] %v4018_v54   ;;  %v1612_v62 = vpop.f32.mrf.mxu0 }
 0x23d   : > { %v2089_v58 = vpop.f32.mrf.mxu3  ;;  %v1930_v60 = vadd.f32 %v5151_v59, %v1929_v57  ;;  %v1772_v63 = vpop.f32.mrf.mxu1  ;;  %v1613_v5 = vadd.f32 %v5151_v59, %v1612_v62 }
 0x23e   : > { %v2090_v61 = vadd.f32 %v5151_v59, %v2089_v58  ;;  %v1773_v6 = vadd.f32 %v5151_v59, %v1772_v63 }
 0x23f   : > { %v2298_v39 = vmax.f32 %v1930_v60, 0.0  ;;  %v2171_v13 = vmax.f32 %v1613_v5, 0.0 }
 0x240   : > { %v2362_v2 = vmax.f32 %v2090_v61, 0.0  ;;  %v2235_v14 = vmax.f32 %v1773_v6, 0.0 }
 0x241   : > { %v4178_v3 = vpack.c.bf16 %v2298_v39, %v2297_v0 }
 0x242   : > { %v4338_v4 = vpack.c.bf16 %v2362_v2, %v2361_v1 }
 0x243   : > { %4454 = vst [vmem:[%s4641_s25 + $0x2d0] sm:$0xff] %v4178_v3  }
 0x244   : > { %4486 = vst [vmem:[%s4641_s25 + $0x3d0] sm:$0xff] %v4338_v4   ;;  %v1932_v7 = vpop.f32.mrf.mxu2  ;;  %v1614_v9 = vpop.f32.mrf.mxu0 }
 0x245   : > { %v2092_v8 = vpop.f32.mrf.mxu3  ;;  %v1774_v10 = vpop.f32.mrf.mxu1  ;;  %v1615_v11 = vadd.f32 %v5151_v59, %v1614_v9  ;;  %v1933_v19 = vadd.f32 %v5151_v59, %v1932_v7 }
 0x246   : > { %v1775_v12 = vadd.f32 %v5151_v59, %v1774_v10  ;;  %v2093_v20 = vadd.f32 %v5151_v59, %v2092_v8 }
 0x247   : > { %v2172_v15 = vmax.f32 %v1615_v11, 0.0  ;;  %v2299_v27 = vmax.f32 %v1933_v19, 0.0 }
 0x248   : > { %v2236_v16 = vmax.f32 %v1775_v12, 0.0  ;;  %v2363_v28 = vmax.f32 %v2093_v20, 0.0 }
 0x249   : > { %v3863_v17 = vpack.c.bf16 %v2172_v15, %v2171_v13 }
 0x24a   : > { %v4023_v18 = vpack.c.bf16 %v2236_v16, %v2235_v14 }
 0x24b   : > { %4391 = vst [vmem:[%s4641_s25 + $0xd8] sm:$0xff] %v3863_v17  }
 0x24c   : > { %v1934_v21 = vpop.f32.mrf.mxu2  ;;  %4423 = vst [vmem:[%s4641_s25 + $0x1d8] sm:$0xff] %v4023_v18   ;;  %v1617_v25 = vpop.f32.mrf.mxu0 }
 0x24d   : > { %v2094_v22 = vpop.f32.mrf.mxu3  ;;  %v1935_v23 = vadd.f32 %v5151_v59, %v1934_v21  ;;  %v1777_v26 = vpop.f32.mrf.mxu1  ;;  %v1618_v33 = vadd.f32 %v5151_v59, %v1617_v25 }
 0x24e   : > { %v2095_v24 = vadd.f32 %v5151_v59, %v2094_v22  ;;  %v1778_v34 = vadd.f32 %v5151_v59, %v1777_v26 }
 0x24f   : > { %v2300_v29 = vmax.f32 %v1935_v23, 0.0  ;;  %v2173_v42 = vmax.f32 %v1618_v33, 0.0 }
 0x250   : > { %v2364_v30 = vmax.f32 %v2095_v24, 0.0  ;;  %v2237_v43 = vmax.f32 %v1778_v34, 0.0 }
 0x251   : > { %v4183_v31 = vpack.c.bf16 %v2300_v29, %v2299_v27 }
 0x252   : > { %v4343_v32 = vpack.c.bf16 %v2364_v30, %v2363_v28 }
 0x253   : > { %4455 = vst [vmem:[%s4641_s25 + $0x2d8] sm:$0xff] %v4183_v31  }
 0x254   : > { %4487 = vst [vmem:[%s4641_s25 + $0x3d8] sm:$0xff] %v4343_v32   ;;  %v1937_v35 = vpop.f32.mrf.mxu2  ;;  %v1619_v37 = vpop.f32.mrf.mxu0 }
 0x255   : > { %v2097_v36 = vpop.f32.mrf.mxu3  ;;  %v1779_v38 = vpop.f32.mrf.mxu1  ;;  %v1620_v40 = vadd.f32 %v5151_v59, %v1619_v37  ;;  %v1938_v48 = vadd.f32 %v5151_v59, %v1937_v35 }
 0x256   : > { %v1780_v41 = vadd.f32 %v5151_v59, %v1779_v38  ;;  %v2098_v49 = vadd.f32 %v5151_v59, %v2097_v36 }
 0x257   : > { %v2174_v44 = vmax.f32 %v1620_v40, 0.0  ;;  %v2301_v56 = vmax.f32 %v1938_v48, 0.0 }
 0x258   : > { %v2238_v45 = vmax.f32 %v1780_v41, 0.0  ;;  %v2365_v57 = vmax.f32 %v2098_v49, 0.0 }
 0x259   : > { %v3868_v46 = vpack.c.bf16 %v2174_v44, %v2173_v42 }
 0x25a   : > { %v4028_v47 = vpack.c.bf16 %v2238_v45, %v2237_v43 }
 0x25b   : > { %4392 = vst [vmem:[%s4641_s25 + $0xe0] sm:$0xff] %v3868_v46  }
 0x25c   : > { %v1939_v50 = vpop.f32.mrf.mxu2  ;;  %4424 = vst [vmem:[%s4641_s25 + $0x1e0] sm:$0xff] %v4028_v47   ;;  %v1622_v54 = vpop.f32.mrf.mxu0 }
 0x25d   : > { %v2099_v51 = vpop.f32.mrf.mxu3  ;;  %v1940_v52 = vadd.f32 %v5151_v59, %v1939_v50  ;;  %v1782_v55 = vpop.f32.mrf.mxu1  ;;  %v1623_v63 = vadd.f32 %v5151_v59, %v1622_v54 }
 0x25e   : > { %v2100_v53 = vadd.f32 %v5151_v59, %v2099_v51  ;;  %v1783_v0 = vadd.f32 %v5151_v59, %v1782_v55 }
 0x25f   : > { %v2302_v58 = vmax.f32 %v1940_v52, 0.0  ;;  %v2175_v6 = vmax.f32 %v1623_v63, 0.0 }
 0x260   : > { %v2366_v60 = vmax.f32 %v2100_v53, 0.0  ;;  %v2239_v7 = vmax.f32 %v1783_v0, 0.0 }
 0x261   : > { %v4188_v61 = vpack.c.bf16 %v2302_v58, %v2301_v56 }
 0x262   : > { %v4348_v62 = vpack.c.bf16 %v2366_v60, %v2365_v57 }
 0x263   : > { %4456 = vst [vmem:[%s4641_s25 + $0x2e0] sm:$0xff] %v4188_v61  }
 0x264   : > { %4488 = vst [vmem:[%s4641_s25 + $0x3e0] sm:$0xff] %v4348_v62   ;;  %v1942_v1 = vpop.f32.mrf.mxu2  ;;  %v1624_v2 = vpop.f32.mrf.mxu0 }
 0x265   : > { %v2102_v39 = vpop.f32.mrf.mxu3  ;;  %v1784_v3 = vpop.f32.mrf.mxu1  ;;  %v1625_v4 = vadd.f32 %v5151_v59, %v1624_v2  ;;  %v1943_v12 = vadd.f32 %v5151_v59, %v1942_v1 }
 0x266   : > { %v1785_v5 = vadd.f32 %v5151_v59, %v1784_v3  ;;  %v2103_v13 = vadd.f32 %v5151_v59, %v2102_v39 }
 0x267   : > { %v2176_v8 = vmax.f32 %v1625_v4, 0.0  ;;  %v2303_v20 = vmax.f32 %v1943_v12, 0.0 }
 0x268   : > { %v2240_v9 = vmax.f32 %v1785_v5, 0.0  ;;  %v2367_v21 = vmax.f32 %v2103_v13, 0.0 }
 0x269   : > { %v3873_v10 = vpack.c.bf16 %v2176_v8, %v2175_v6 }
 0x26a   : > { %v4033_v11 = vpack.c.bf16 %v2240_v9, %v2239_v7 }
 0x26b   : > { %4393 = vst [vmem:[%s4641_s25 + $0xe8] sm:$0xff] %v3873_v10  }
 0x26c   : > { %v1944_v14 = vpop.f32.mrf.mxu2  ;;  %4425 = vst [vmem:[%s4641_s25 + $0x1e8] sm:$0xff] %v4033_v11   ;;  %v1627_v18 = vpop.f32.mrf.mxu0 }
 0x26d   : > { %v2104_v15 = vpop.f32.mrf.mxu3  ;;  %v1945_v16 = vadd.f32 %v5151_v59, %v1944_v14  ;;  %v1787_v19 = vpop.f32.mrf.mxu1  ;;  %v1628_v26 = vadd.f32 %v5151_v59, %v1627_v18 }
 0x26e   : > { %v2105_v17 = vadd.f32 %v5151_v59, %v2104_v15  ;;  %v1788_v27 = vadd.f32 %v5151_v59, %v1787_v19 }
 0x26f   : > { %v2304_v22 = vmax.f32 %v1945_v16, 0.0  ;;  %v2177_v34 = vmax.f32 %v1628_v26, 0.0 }
 0x270   : > { %v2368_v23 = vmax.f32 %v2105_v17, 0.0  ;;  %v2241_v35 = vmax.f32 %v1788_v27, 0.0 }
 0x271   : > { %v4193_v24 = vpack.c.bf16 %v2304_v22, %v2303_v20 }
 0x272   : > { %v4353_v25 = vpack.c.bf16 %v2368_v23, %v2367_v21 }
 0x273   : > { %4457 = vst [vmem:[%s4641_s25 + $0x2e8] sm:$0xff] %v4193_v24  }
 0x274   : > { %4489 = vst [vmem:[%s4641_s25 + $0x3e8] sm:$0xff] %v4353_v25   ;;  %v1947_v28 = vpop.f32.mrf.mxu2  ;;  %v1629_v30 = vpop.f32.mrf.mxu0 }
 0x275   : > { %v2107_v29 = vpop.f32.mrf.mxu3  ;;  %v1789_v31 = vpop.f32.mrf.mxu1  ;;  %v1630_v32 = vadd.f32 %v5151_v59, %v1629_v30  ;;  %v1948_v41 = vadd.f32 %v5151_v59, %v1947_v28 }
 0x276   : > { %v1790_v33 = vadd.f32 %v5151_v59, %v1789_v31  ;;  %v2108_v42 = vadd.f32 %v5151_v59, %v2107_v29 }
 0x277   : > { %v2178_v36 = vmax.f32 %v1630_v32, 0.0  ;;  %v2305_v49 = vmax.f32 %v1948_v41, 0.0 }
 0x278   : > { %v2242_v37 = vmax.f32 %v1790_v33, 0.0  ;;  %v2369_v50 = vmax.f32 %v2108_v42, 0.0 }
 0x279   : > { %v3878_v38 = vpack.c.bf16 %v2178_v36, %v2177_v34 }
 0x27a   : > { %v4038_v40 = vpack.c.bf16 %v2242_v37, %v2241_v35 }
 0x27b   : > { %4394 = vst [vmem:[%s4641_s25 + $0xf0] sm:$0xff] %v3878_v38  }
 0x27c   : > { %v1949_v43 = vpop.f32.mrf.mxu2  ;;  %4426 = vst [vmem:[%s4641_s25 + $0x1f0] sm:$0xff] %v4038_v40   ;;  %v1632_v47 = vpop.f32.mrf.mxu0 }
 0x27d   : > { %v2109_v44 = vpop.f32.mrf.mxu3  ;;  %v1950_v45 = vadd.f32 %v5151_v59, %v1949_v43  ;;  %v1792_v48 = vpop.f32.mrf.mxu1  ;;  %v1633_v55 = vadd.f32 %v5151_v59, %v1632_v47 }
 0x27e   : > { %v2110_v46 = vadd.f32 %v5151_v59, %v2109_v44  ;;  %v1793_v56 = vadd.f32 %v5151_v59, %v1792_v48 }
 0x27f   : > { %v2306_v51 = vmax.f32 %v1950_v45, 0.0  ;;  %v2179_v0 = vmax.f32 %v1633_v55, 0.0 }
 0x280   : > { %v2370_v52 = vmax.f32 %v2110_v46, 0.0  ;;  %v2243_v1 = vmax.f32 %v1793_v56, 0.0 }
 0x281   : > { %v4198_v53 = vpack.c.bf16 %v2306_v51, %v2305_v49 }
 0x282   : > { %v4358_v54 = vpack.c.bf16 %v2370_v52, %v2369_v50 }
 0x283   : > { %4458 = vst [vmem:[%s4641_s25 + $0x2f0] sm:$0xff] %v4198_v53  }
 0x284   : > { %4490 = vst [vmem:[%s4641_s25 + $0x3f0] sm:$0xff] %v4358_v54   ;;  %v1952_v57 = vpop.f32.mrf.mxu2  ;;  %v1634_v60 = vpop.f32.mrf.mxu0 }
 0x285   : > { %v2112_v58 = vpop.f32.mrf.mxu3  ;;  %v1794_v61 = vpop.f32.mrf.mxu1  ;;  %v1635_v62 = vadd.f32 %v5151_v59, %v1634_v60  ;;  %v1953_v5 = vadd.f32 %v5151_v59, %v1952_v57 }
 0x286   : > { %v1795_v63 = vadd.f32 %v5151_v59, %v1794_v61  ;;  %v2113_v6 = vadd.f32 %v5151_v59, %v2112_v58 }
 0x287   : > { %v2180_v39 = vmax.f32 %v1635_v62, 0.0  ;;  %v2307_v11 = vmax.f32 %v1953_v5, 0.0 }
 0x288   : > { %v2244_v2 = vmax.f32 %v1795_v63, 0.0  ;;  %v2371_v12 = vmax.f32 %v2113_v6, 0.0 }
 0x289   : > { %v3883_v3 = vpack.c.bf16 %v2180_v39, %v2179_v0 }
 0x28a   : > { %v4043_v4 = vpack.c.bf16 %v2244_v2, %v2243_v1 }
 0x28b   : > { %4395 = vst [vmem:[%s4641_s25 + $0xf8] sm:$0xff] %v3883_v3  }
 0x28c   : > { %v1954_v7 = vpop.f32.mrf.mxu2  ;;  %4427 = vst [vmem:[%s4641_s25 + $0x1f8] sm:$0xff] %v4043_v4  }
 0x28d   : > { %v2114_v8 = vpop.f32.mrf.mxu3  ;;  %v1955_v9 = vadd.f32 %v5151_v59, %v1954_v7 }
 0x28e   : > { %v2115_v10 = vadd.f32 %v5151_v59, %v2114_v8 }
 0x28f   : > { %v2308_v13 = vmax.f32 %v1955_v9, 0.0 }
 0x290   : > { %v2372_v14 = vmax.f32 %v2115_v10, 0.0 }
 0x291   : > { %v4203_v15 = vpack.c.bf16 %v2308_v13, %v2307_v11 }
 0x292   : > { %v4363_v16 = vpack.c.bf16 %v2372_v14, %v2371_v12 }
 0x293   : > { %4459 = vst [vmem:[%s4641_s25 + $0x2f8] sm:$0xff] %v4203_v15  }
 0x294   : > { %4491 = vst [vmem:[%s4641_s25 + $0x3f8] sm:$0xff] %v4363_v16  }
 0x295 PF: > { %s13_s12 = sadd.s32 1, %s4512_s12  }
 0x296   : > { %p10_p4 = scmp.ge.s32.totalorder %s13_s12, 6  }
 0x298   :  { %12 = sbr.rel (!%p10_p4) target bundleno = 1 (0x1), region = 62 }

// kernel: encoder_forward.7
= control target key start
LH: loop header
LB: loop body
LE: loop exit
PB: predicated region body
PF: predicated region fallthrough
CT: control target
= control target key end

     0   :  { %s8169_s1 = inlined_call_operand.vmem [shape: bf16[256,128], index: 1, kind: input, shape index: {}]   ;;  %s8170_s2 = inlined_call_operand.vmem [shape: f32[1,128], index: 2, kind: input, shape index: {}]   ;;  %s8171_s0 = inlined_call_operand.vmem [shape: bf16[2048,256], index: 0, kind: input, shape index: {}]   ;;  %s8172_s3 = inlined_call_operand.vmem [shape: bf16[2048,128], index: 3, kind: output, shape index: {}]  }
   0x1   :  { %v5103_v0 = vld [vmem:[%s8169_s1 + $0x38] sm:$0xff]  ;;  %v5102_v2 = vld [vmem:[%s8169_s1 + $0x30] sm:$0xff]  ;;  %v5101_v4 = vld [vmem:[%s8169_s1 + $0x28] sm:$0xff] }
   0x2   :  { %v5111_v1 = vld [vmem:[%s8169_s1 + $0x78] sm:$0xff]  ;;  %1682 = vmatpush.bf16.msra.mxu0 %v5103_v0  ;;  %5879 = vmatpush.bf16.msra.mxu2 %v5103_v0  ;;  %v5110_v3 = vld [vmem:[%s8169_s1 + $0x70] sm:$0xff]  ;;  %v5109_v5 = vld [vmem:[%s8169_s1 + $0x68] sm:$0xff] }
   0x3   :  { %2331 = vmatpush.bf16.msra.mxu1 %v5111_v1  ;;  %5887 = vmatpush.bf16.msra.mxu3 %v5111_v1  ;;  %v5100_v6 = vld [vmem:[%s8169_s1 + $0x20] sm:$0xff]  ;;  %v5099_v8 = vld [vmem:[%s8169_s1 + $0x18] sm:$0xff]  ;;  %v5098_v10 = vld [vmem:[%s8169_s1 + $0x10] sm:$0xff] }
   0x4   :  { %v5108_v7 = vld [vmem:[%s8169_s1 + $0x60] sm:$0xff]  ;;  %v5107_v9 = vld [vmem:[%s8169_s1 + $0x58] sm:$0xff]  ;;  %v5106_v11 = vld [vmem:[%s8169_s1 + $0x50] sm:$0xff] }
   0x5   :  { %v5097_v12 = vld [vmem:[%s8169_s1 + $0x8] sm:$0xff]  ;;  %v5096_v14 = vld [vmem:[%s8169_s1] sm:$0xff]  ;;  %v3762_v28 = vld [vmem:[%s8171_s0 + $0x10] sm:$0xf] }
   0x6   :  { %1683 = vmatpush.bf16.msra.mxu0 %v5102_v2  ;;  %5880 = vmatpush.bf16.msra.mxu2 %v5102_v2  ;;  %v5105_v13 = vld [vmem:[%s8169_s1 + $0x48] sm:$0xff]  ;;  %v5104_v15 = vld [vmem:[%s8169_s1 + $0x40] sm:$0xff]  ;;  %v4843_v29 = vld [vmem:[%s8171_s0 + $0x14] sm:$0xf0] }
   0x7   :  { %2332 = vmatpush.bf16.msra.mxu1 %v5110_v3  ;;  %5888 = vmatpush.bf16.msra.mxu3 %v5110_v3  ;;  %v3754_v16 = vld [vmem:[%s8171_s0] sm:$0xf]  ;;  %v4841_v17 = vld [vmem:[%s8171_s0 + $0x4] sm:$0xf0]  ;;  %v4840_v20 = vld [vmem:[%s8171_s0 + $0x4] sm:$0xf]  ;;  %v3763_v36 = vor.u32 %v4843_v29, %v3762_v28 }
   0x8   :  { %v4266_v18 = vld [vmem:[%s8171_s0 + $0x400] sm:$0xf]  ;;  %v4969_v19 = vld [vmem:[%s8171_s0 + $0x404] sm:$0xf0]  ;;  %v3756_v21 = vld [vmem:[%s8171_s0 + $0x8] sm:$0xf0]  ;;  %v3755_v24 = vor.u32 %v4841_v17, %v3754_v16 }
   0x9   :  { %v4968_v22 = vld [vmem:[%s8171_s0 + $0x404] sm:$0xf]  ;;  %v4268_v23 = vld [vmem:[%s8171_s0 + $0x408] sm:$0xf0]  ;;  %v4267_v25 = vor.u32 %v4969_v19, %v4266_v18  ;;  %v3759_v26 = vor.u32 %v4840_v20, %v3756_v21  ;;  %v4274_v30 = vld [vmem:[%s8171_s0 + $0x410] sm:$0xf] }
   0xa   :  { %1684 = vmatpush.bf16.msra.mxu0 %v5101_v4  ;;  %5881 = vmatpush.bf16.msra.mxu2 %v5101_v4  ;;  %v4271_v27 = vor.u32 %v4968_v22, %v4268_v23  ;;  %v4971_v31 = vld [vmem:[%s8171_s0 + $0x414] sm:$0xf0]  ;;  %v4842_v32 = vld [vmem:[%s8171_s0 + $0x14] sm:$0xf]  ;;  %v3764_v33 = vld [vmem:[%s8171_s0 + $0x18] sm:$0xf0] }
   0xb   :  { %2333 = vmatpush.bf16.msra.mxu1 %v5109_v5  ;;  %5889 = vmatpush.bf16.msra.mxu3 %v5109_v5  ;;  %v4970_v34 = vld [vmem:[%s8171_s0 + $0x414] sm:$0xf]  ;;  %v4276_v35 = vld [vmem:[%s8171_s0 + $0x418] sm:$0xf0]  ;;  %v4275_v37 = vor.u32 %v4971_v31, %v4274_v30  ;;  %v3767_v38 = vor.u32 %v4842_v32, %v3764_v33  ;;  %v3770_v40 = vld [vmem:[%s8171_s0 + $0x20] sm:$0xf] }
   0xc   :  { %v4279_v39 = vor.u32 %v4970_v34, %v4276_v35  ;;  %v4845_v41 = vld [vmem:[%s8171_s0 + $0x24] sm:$0xf0]  ;;  %v4282_v42 = vld [vmem:[%s8171_s0 + $0x420] sm:$0xf]  ;;  %v4844_v44 = vld [vmem:[%s8171_s0 + $0x24] sm:$0xf] }
   0xd   :  { %v4973_v43 = vld [vmem:[%s8171_s0 + $0x424] sm:$0xf0]  ;;  %v3772_v45 = vld [vmem:[%s8171_s0 + $0x28] sm:$0xf0]  ;;  %v4972_v46 = vld [vmem:[%s8171_s0 + $0x424] sm:$0xf]  ;;  %v3771_v48 = vor.u32 %v4845_v41, %v3770_v40 }
   0xe   :  { %1685 = vmatpush.bf16.msra.mxu0 %v5100_v6  ;;  %5882 = vmatpush.bf16.msra.mxu2 %v5100_v6  ;;  %v4284_v47 = vld [vmem:[%s8171_s0 + $0x428] sm:$0xf0]  ;;  %v4283_v49 = vor.u32 %v4973_v43, %v4282_v42  ;;  %v3775_v50 = vor.u32 %v4844_v44, %v3772_v45  ;;  %v3778_v52 = vld [vmem:[%s8171_s0 + $0x30] sm:$0xf]  ;;  %v4847_v53 = vld [vmem:[%s8171_s0 + $0x34] sm:$0xf0] }
   0xf   :  { %2334 = vmatpush.bf16.msra.mxu1 %v5108_v7  ;;  %5890 = vmatpush.bf16.msra.mxu3 %v5108_v7  ;;  %v4287_v51 = vor.u32 %v4972_v46, %v4284_v47  ;;  %v4290_v54 = vld [vmem:[%s8171_s0 + $0x430] sm:$0xf]  ;;  %v4975_v55 = vld [vmem:[%s8171_s0 + $0x434] sm:$0xf0]  ;;  %v4846_v56 = vld [vmem:[%s8171_s0 + $0x34] sm:$0xf]  ;;  %v3779_v60 = vor.u32 %v4847_v53, %v3778_v52 }
  0x10   :  { %v3780_v57 = vld [vmem:[%s8171_s0 + $0x38] sm:$0xf0]  ;;  %v4974_v58 = vld [vmem:[%s8171_s0 + $0x434] sm:$0xf]  ;;  %v4291_v61 = vor.u32 %v4975_v55, %v4290_v54  ;;  %v3786_v0 = vld [vmem:[%s8171_s0 + $0x40] sm:$0xf] }
  0x11   :  { %v4292_v59 = vld [vmem:[%s8171_s0 + $0x438] sm:$0xf0]  ;;  %v3783_v62 = vor.u32 %v4846_v56, %v3780_v57  ;;  %v4849_v1 = vld [vmem:[%s8171_s0 + $0x44] sm:$0xf0]  ;;  %v4298_v2 = vld [vmem:[%s8171_s0 + $0x440] sm:$0xf] }
  0x12   :  { %1686 = vmatpush.bf16.msra.mxu0 %v5099_v8  ;;  %5883 = vmatpush.bf16.msra.mxu2 %v5099_v8  ;;  %v4295_v63 = vor.u32 %v4974_v58, %v4292_v59  ;;  %v4977_v3 = vld [vmem:[%s8171_s0 + $0x444] sm:$0xf0]  ;;  %v4848_v4 = vld [vmem:[%s8171_s0 + $0x44] sm:$0xf]  ;;  %v3788_v5 = vld [vmem:[%s8171_s0 + $0x48] sm:$0xf0]  ;;  %v3787_v8 = vor.u32 %v4849_v1, %v3786_v0 }
  0x13   :  { %2335 = vmatpush.bf16.msra.mxu1 %v5107_v9  ;;  %5891 = vmatpush.bf16.msra.mxu3 %v5107_v9  ;;  %v4976_v6 = vld [vmem:[%s8171_s0 + $0x444] sm:$0xf]  ;;  %v4300_v7 = vld [vmem:[%s8171_s0 + $0x448] sm:$0xf0]  ;;  %v4299_v9 = vor.u32 %v4977_v3, %v4298_v2  ;;  %v4850_v16 = vld [vmem:[%s8171_s0 + $0x54] sm:$0xf] }
  0x14   :  { %v3796_v17 = vld [vmem:[%s8171_s0 + $0x58] sm:$0xf0]  ;;  %v4978_v18 = vld [vmem:[%s8171_s0 + $0x454] sm:$0xf]  ;;  %v4852_v28 = vld [vmem:[%s8171_s0 + $0x64] sm:$0xf] }
  0x15   :  { %v4308_v19 = vld [vmem:[%s8171_s0 + $0x458] sm:$0xf0]  ;;  %v3799_v22 = vor.u32 %v4850_v16, %v3796_v17  ;;  %v3804_v29 = vld [vmem:[%s8171_s0 + $0x68] sm:$0xf0]  ;;  %v4980_v30 = vld [vmem:[%s8171_s0 + $0x464] sm:$0xf] }
  0x16   :  { %1687 = vmatpush.bf16.msra.mxu0 %v5098_v10  ;;  %5884 = vmatpush.bf16.msra.mxu2 %v5098_v10  ;;  %v3791_v10 = vor.u32 %v4848_v4, %v3788_v5  ;;  %v4311_v23 = vor.u32 %v4978_v18, %v4308_v19  ;;  %v4316_v31 = vld [vmem:[%s8171_s0 + $0x468] sm:$0xf0]  ;;  %v3807_v34 = vor.u32 %v4852_v28, %v3804_v29  ;;  %v4854_v40 = vld [vmem:[%s8171_s0 + $0x74] sm:$0xf]  ;;  %v3812_v41 = vld [vmem:[%s8171_s0 + $0x78] sm:$0xf0] }
  0x17   :  { %2336 = vmatpush.bf16.msra.mxu1 %v5106_v11  ;;  %5892 = vmatpush.bf16.msra.mxu3 %v5106_v11  ;;  %v4303_v11 = vor.u32 %v4976_v6, %v4300_v7  ;;  %v4319_v35 = vor.u32 %v4980_v30, %v4316_v31  ;;  %v4982_v42 = vld [vmem:[%s8171_s0 + $0x474] sm:$0xf]  ;;  %v4324_v43 = vld [vmem:[%s8171_s0 + $0x478] sm:$0xf0]  ;;  %v3815_v46 = vor.u32 %v4854_v40, %v3812_v41  ;;  %v4856_v52 = vld [vmem:[%s8171_s0 + $0x84] sm:$0xf] }
  0x18   :  { %v4327_v47 = vor.u32 %v4982_v42, %v4324_v43  ;;  %v3820_v53 = vld [vmem:[%s8171_s0 + $0x88] sm:$0xf0]  ;;  %v4984_v54 = vld [vmem:[%s8171_s0 + $0x484] sm:$0xf]  ;;  %v4986_v16 = vld [vmem:[%s8171_s0 + $0x494] sm:$0xf] }
  0x19   :  { %v4332_v55 = vld [vmem:[%s8171_s0 + $0x488] sm:$0xf0]  ;;  %v3823_v59 = vor.u32 %v4856_v52, %v3820_v53  ;;  %v4340_v17 = vld [vmem:[%s8171_s0 + $0x498] sm:$0xf0]  ;;  %v3834_v42 = vld [vmem:[%s8171_s0 + $0xa0] sm:$0xf] }
  0x1a   :  { %1688 = vmatpush.bf16.msra.mxu0 %v5097_v12  ;;  %5885 = vmatpush.bf16.msra.mxu2 %v5097_v12  ;;  %v3794_v12 = vld [vmem:[%s8171_s0 + $0x50] sm:$0xf]  ;;  %v4861_v43 = vld [vmem:[%s8171_s0 + $0xa4] sm:$0xf0] }
  0x1b   :  { %2337 = vmatpush.bf16.msra.mxu1 %v5105_v13  ;;  %5893 = vmatpush.bf16.msra.mxu3 %v5105_v13  ;;  %v4851_v13 = vld [vmem:[%s8171_s0 + $0x54] sm:$0xf0]  ;;  %v3835_v53 = vor.u32 %v4861_v43, %v3834_v42 }
  0x1c   :  { %v3795_v20 = vor.u32 %v4851_v13, %v3794_v12  ;;  %v4858_v12 = vld [vmem:[%s8171_s0 + $0x94] sm:$0xf]  ;;  %v3828_v13 = vld [vmem:[%s8171_s0 + $0x98] sm:$0xf0] }
  0x1e   :  { %1689 = vmatpush.bf16.msra.mxu0 %v5096_v14  ;;  %5886 = vmatpush.bf16.msra.mxu2 %v5096_v14  ;;  %v4306_v14 = vld [vmem:[%s8171_s0 + $0x450] sm:$0xf] }
  0x1f   :  { %2338 = vmatpush.bf16.msra.mxu1 %v5104_v15  ;;  %5894 = vmatpush.bf16.msra.mxu3 %v5104_v15  ;;  %v4979_v15 = vld [vmem:[%s8171_s0 + $0x454] sm:$0xf0] }
  0x20   :  { %v4307_v21 = vor.u32 %v4979_v15, %v4306_v14 }
  0x21   :  { %1690 = vmatmul.bf16.vlgmr.msra.gmra.mxu0 %v3755_v24  ;;  %2010 = vmatmul.bf16.vlgmr.msra.gmra.mxu2 %v4267_v25  ;;  %v3802_v24 = vld [vmem:[%s8171_s0 + $0x60] sm:$0xf]  ;;  %v4853_v25 = vld [vmem:[%s8171_s0 + $0x64] sm:$0xf0] }
  0x22   :  { %2339 = vmatmul.bf16.vlgmr.msra.gmra.mxu1 %v3759_v26  ;;  %2659 = vmatmul.bf16.vlgmr.msra.gmra.mxu3 %v4271_v27  ;;  %v4314_v26 = vld [vmem:[%s8171_s0 + $0x460] sm:$0xf]  ;;  %v4981_v27 = vld [vmem:[%s8171_s0 + $0x464] sm:$0xf0]  ;;  %v3803_v32 = vor.u32 %v4853_v25, %v3802_v24 }
  0x23   :  { %v4315_v33 = vor.u32 %v4981_v27, %v4314_v26  ;;  %v3831_v26 = vor.u32 %v4858_v12, %v3828_v13  ;;  %v4343_v27 = vor.u32 %v4986_v16, %v4340_v17  ;;  %v3842_v13 = vld [vmem:[%s8171_s0 + $0xb0] sm:$0xf]  ;;  %v4991_v16 = vld [vmem:[%s8171_s0 + $0x4b4] sm:$0xf0]  ;;  %v4862_v17 = vld [vmem:[%s8171_s0 + $0xb4] sm:$0xf] }
  0x31   :  { %1695 = vmatmul.bf16.gmra.mxu0 %v3763_v36  ;;  %2015 = vmatmul.bf16.gmra.mxu2 %v4275_v37  ;;  %v3810_v36 = vld [vmem:[%s8171_s0 + $0x70] sm:$0xf]  ;;  %v4855_v37 = vld [vmem:[%s8171_s0 + $0x74] sm:$0xf0] }
  0x32   :  { %2344 = vmatmul.bf16.gmra.mxu1 %v3767_v38  ;;  %2664 = vmatmul.bf16.gmra.mxu3 %v4279_v39  ;;  %v4322_v38 = vld [vmem:[%s8171_s0 + $0x470] sm:$0xf]  ;;  %v4983_v39 = vld [vmem:[%s8171_s0 + $0x474] sm:$0xf0]  ;;  %v3811_v44 = vor.u32 %v4855_v37, %v3810_v36 }
  0x33   :  { %v4323_v45 = vor.u32 %v4983_v39, %v4322_v38 }
  0x41   :  { %1700 = vmatmul.bf16.gmra.mxu0 %v3771_v48  ;;  %2020 = vmatmul.bf16.gmra.mxu2 %v4283_v49  ;;  %v3818_v48 = vld [vmem:[%s8171_s0 + $0x80] sm:$0xf]  ;;  %v4857_v49 = vld [vmem:[%s8171_s0 + $0x84] sm:$0xf0] }
  0x42   :  { %2349 = vmatmul.bf16.gmra.mxu1 %v3775_v50  ;;  %2669 = vmatmul.bf16.gmra.mxu3 %v4287_v51  ;;  %v4330_v50 = vld [vmem:[%s8171_s0 + $0x480] sm:$0xf]  ;;  %v4985_v51 = vld [vmem:[%s8171_s0 + $0x484] sm:$0xf0]  ;;  %v3819_v56 = vor.u32 %v4857_v49, %v3818_v48 }
  0x43   :  { %v4331_v57 = vor.u32 %v4985_v51, %v4330_v50  ;;  %v4988_v50 = vld [vmem:[%s8171_s0 + $0x4a4] sm:$0xf]  ;;  %v4348_v51 = vld [vmem:[%s8171_s0 + $0x4a8] sm:$0xf0] }
  0x51   :  { %1705 = vmatmul.bf16.gmra.mxu0 %v3779_v60  ;;  %2025 = vmatmul.bf16.gmra.mxu2 %v4291_v61  ;;  %v4335_v60 = vor.u32 %v4984_v54, %v4332_v55  ;;  %v6187_v61 = vld [vmem:[%s8170_s2] ss:$0 sm:$0xff] }
  0x52   :  { %2354 = vmatmul.bf16.gmra.mxu1 %v3783_v62  ;;  %2674 = vmatmul.bf16.gmra.mxu3 %v4295_v63 }
  0x61   :  { %1710 = vmatmul.bf16.gmra.mxu0 %v3787_v8  ;;  %2030 = vmatmul.bf16.gmra.mxu2 %v4299_v9  ;;  %v3826_v8 = vld [vmem:[%s8171_s0 + $0x90] sm:$0xf]  ;;  %v4859_v9 = vld [vmem:[%s8171_s0 + $0x94] sm:$0xf0] }
  0x62   :  { %2359 = vmatmul.bf16.gmra.mxu1 %v3791_v10  ;;  %2679 = vmatmul.bf16.gmra.mxu3 %v4303_v11  ;;  %v4338_v10 = vld [vmem:[%s8171_s0 + $0x490] sm:$0xf]  ;;  %v4987_v11 = vld [vmem:[%s8171_s0 + $0x494] sm:$0xf0]  ;;  %v3827_v19 = vor.u32 %v4859_v9, %v3826_v8 }
  0x63   :  { %v4339_v24 = vor.u32 %v4987_v11, %v4338_v10 }
  0x71   :  { %1715 = vmatmul.bf16.gmra.mxu0 %v3795_v20  ;;  %2035 = vmatmul.bf16.gmra.mxu2 %v4307_v21 }
  0x72   :  { %2364 = vmatmul.bf16.gmra.mxu1 %v3799_v22  ;;  %2684 = vmatmul.bf16.gmra.mxu3 %v4311_v23 }
  0x81   :  { %1720 = vmatmul.bf16.gmra.mxu0 %v3803_v32  ;;  %2040 = vmatmul.bf16.gmra.mxu2 %v4315_v33 }
  0x82   :  { %2369 = vmatmul.bf16.gmra.mxu1 %v3807_v34  ;;  %2689 = vmatmul.bf16.gmra.mxu3 %v4319_v35 }
  0x91   :  { %1725 = vmatmul.bf16.gmra.mxu0 %v3811_v44  ;;  %2045 = vmatmul.bf16.gmra.mxu2 %v4323_v45  ;;  %v4346_v44 = vld [vmem:[%s8171_s0 + $0x4a0] sm:$0xf]  ;;  %v4989_v45 = vld [vmem:[%s8171_s0 + $0x4a4] sm:$0xf0] }
  0x92   :  { %2374 = vmatmul.bf16.gmra.mxu1 %v3815_v46  ;;  %2694 = vmatmul.bf16.gmra.mxu3 %v4327_v47  ;;  %v4860_v46 = vld [vmem:[%s8171_s0 + $0xa4] sm:$0xf]  ;;  %v3836_v47 = vld [vmem:[%s8171_s0 + $0xa8] sm:$0xf0] }
  0x9e   :  { %v1691_v58 = vpop.f32.mrf.mxu0 }
  0x9f   :  { %v2340_v62 = vpop.f32.mrf.mxu1  ;;  %v1692_v63 = vadd.f32 %v6187_v61, %v1691_v58  ;;  %v4347_v58 = vor.u32 %v4989_v45, %v4346_v44 }
  0xa1   :  { %1730 = vmatmul.bf16.gmra.mxu0 %v3819_v56  ;;  %2050 = vmatmul.bf16.gmra.mxu2 %v4331_v57  ;;  %v2341_v3 = vadd.f32 %v2340_v62, %v1692_v63  ;;  %v4351_v62 = vor.u32 %v4988_v50, %v4348_v51  ;;  %v4993_v50 = vld [vmem:[%s8171_s0 + $0x4c4] sm:$0xf0]  ;;  %v4864_v51 = vld [vmem:[%s8171_s0 + $0xc4] sm:$0xf] }
  0xa2   :  { %2379 = vmatmul.bf16.gmra.mxu1 %v3823_v59  ;;  %2699 = vmatmul.bf16.gmra.mxu3 %v4335_v60  ;;  %v3839_v60 = vor.u32 %v4860_v46, %v3836_v47  ;;  %v3850_v47 = vld [vmem:[%s8171_s0 + $0xc0] sm:$0xf] }
  0xa3   :  { %v2980_v14 = vmax.f32 %v2341_v3, 0.0 }
  0xa4   :  { %v2011_v0 = vpop.f32.mrf.mxu2 }
  0xa5   :  { %v2660_v1 = vpop.f32.mrf.mxu3  ;;  %v2012_v6 = vadd.f32 %v6187_v61, %v2011_v0 }
  0xa6   :  { %v1693_v2 = vpop.f32.mrf.mxu0 }
  0xa7   :  { %v1694_v4 = vadd.f32 %v6187_v61, %v1693_v2  ;;  %v2342_v5 = vpop.f32.mrf.mxu1  ;;  %v2661_v20 = vadd.f32 %v2660_v1, %v2012_v6 }
  0xa9   :  { %v2343_v7 = vadd.f32 %v2342_v5, %v1694_v4  ;;  %v3108_v30 = vmax.f32 %v2661_v20, 0.0 }
  0xab   :  { %v2981_v15 = vmax.f32 %v2343_v7, 0.0 }
  0xac   :  { %v2013_v18 = vpop.f32.mrf.mxu2 }
  0xad   :  { %v5115_v21 = vpack.c.bf16 %v2981_v15, %v2980_v14  ;;  %v2014_v22 = vadd.f32 %v6187_v61, %v2013_v18  ;;  %v2662_v23 = vpop.f32.mrf.mxu3  ;;  %v4863_v14 = vld [vmem:[%s8171_s0 + $0xb4] sm:$0xf0]  ;;  %v4354_v15 = vld [vmem:[%s8171_s0 + $0x4b0] sm:$0xf]  ;;  %v3844_v18 = vld [vmem:[%s8171_s0 + $0xb8] sm:$0xf0] }
  0xae   :  { %v1696_v25 = vpop.f32.mrf.mxu0 }
  0xaf   :  { %5116 = vst [vmem:[%s8172_s3] sm:$0xff] %v5115_v21   ;;  %v2663_v28 = vadd.f32 %v2662_v23, %v2014_v22  ;;  %v2345_v29 = vpop.f32.mrf.mxu1  ;;  %v1697_v33 = vadd.f32 %v6187_v61, %v1696_v25  ;;  %v4990_v21 = vld [vmem:[%s8171_s0 + $0x4b4] sm:$0xf]  ;;  %v4356_v22 = vld [vmem:[%s8171_s0 + $0x4b8] sm:$0xf0] }
  0xb1   :  { %v3109_v31 = vmax.f32 %v2663_v28, 0.0  ;;  %1735 = vmatmul.bf16.gmra.mxu0 %v3827_v19  ;;  %2055 = vmatmul.bf16.gmra.mxu2 %v4339_v24  ;;  %v2346_v37 = vadd.f32 %v2345_v29, %v1697_v33  ;;  %v3843_v24 = vor.u32 %v4863_v14, %v3842_v13  ;;  %v4355_v29 = vor.u32 %v4991_v16, %v4354_v15 }
  0xb2   :  { %2384 = vmatmul.bf16.gmra.mxu1 %v3831_v26  ;;  %2704 = vmatmul.bf16.gmra.mxu3 %v4343_v27 }
  0xb3   :  { %v5435_v32 = vpack.c.bf16 %v3109_v31, %v3108_v30  ;;  %v2982_v48 = vmax.f32 %v2346_v37, 0.0  ;;  %v3847_v31 = vor.u32 %v4862_v17, %v3844_v18  ;;  %v3858_v18 = vld [vmem:[%s8171_s0 + $0xd0] sm:$0xf] }
  0xb4   :  { %v2016_v34 = vpop.f32.mrf.mxu2 }
  0xb5   :  { %5815 = vst [vmem:[%s8172_s3 + $0x200] sm:$0xff] %v5435_v32   ;;  %v2665_v35 = vpop.f32.mrf.mxu3  ;;  %v2017_v40 = vadd.f32 %v6187_v61, %v2016_v34  ;;  %v4359_v32 = vor.u32 %v4990_v21, %v4356_v22  ;;  %v4995_v21 = vld [vmem:[%s8171_s0 + $0x4d4] sm:$0xf0]  ;;  %v4866_v22 = vld [vmem:[%s8171_s0 + $0xd4] sm:$0xf] }
  0xb6   :  { %v1698_v36 = vpop.f32.mrf.mxu0 }
  0xb7   :  { %v1699_v38 = vadd.f32 %v6187_v61, %v1698_v36  ;;  %v2347_v39 = vpop.f32.mrf.mxu1  ;;  %v2666_v54 = vadd.f32 %v2665_v35, %v2017_v40 }
  0xb9   :  { %v2348_v41 = vadd.f32 %v2347_v39, %v1699_v38  ;;  %v3110_v1 = vmax.f32 %v2666_v54, 0.0 }
  0xbb   :  { %v2983_v49 = vmax.f32 %v2348_v41, 0.0 }
  0xbc   :  { %v2018_v52 = vpop.f32.mrf.mxu2 }
  0xbd   :  { %v5120_v55 = vpack.c.bf16 %v2983_v49, %v2982_v48  ;;  %v2019_v56 = vadd.f32 %v6187_v61, %v2018_v52  ;;  %v2667_v57 = vpop.f32.mrf.mxu3  ;;  %v4865_v48 = vld [vmem:[%s8171_s0 + $0xc4] sm:$0xf0]  ;;  %v4362_v49 = vld [vmem:[%s8171_s0 + $0x4c0] sm:$0xf]  ;;  %v3852_v52 = vld [vmem:[%s8171_s0 + $0xc8] sm:$0xf0] }
  0xbe   :  { %v1701_v59 = vpop.f32.mrf.mxu0 }
  0xbf   :  { %5752 = vst [vmem:[%s8172_s3 + $0x8] sm:$0xff] %v5120_v55   ;;  %v2668_v63 = vadd.f32 %v2667_v57, %v2019_v56  ;;  %v2350_v0 = vpop.f32.mrf.mxu1  ;;  %v1702_v4 = vadd.f32 %v6187_v61, %v1701_v59  ;;  %v4992_v55 = vld [vmem:[%s8171_s0 + $0x4c4] sm:$0xf]  ;;  %v4364_v56 = vld [vmem:[%s8171_s0 + $0x4c8] sm:$0xf0] }
  0xc1   :  { %v3111_v2 = vmax.f32 %v2668_v63, 0.0  ;;  %1740 = vmatmul.bf16.gmra.mxu0 %v3835_v53  ;;  %2060 = vmatmul.bf16.gmra.mxu2 %v4347_v58  ;;  %v2351_v8 = vadd.f32 %v2350_v0, %v1702_v4  ;;  %v3851_v58 = vor.u32 %v4865_v48, %v3850_v47  ;;  %v4363_v0 = vor.u32 %v4993_v50, %v4362_v49 }
  0xc2   :  { %2389 = vmatmul.bf16.gmra.mxu1 %v3839_v60  ;;  %2709 = vmatmul.bf16.gmra.mxu3 %v4351_v62 }
  0xc3   :  { %v5440_v3 = vpack.c.bf16 %v3111_v2, %v3110_v1  ;;  %v2984_v19 = vmax.f32 %v2351_v8, 0.0  ;;  %v3855_v2 = vor.u32 %v4864_v51, %v3852_v52  ;;  %v3866_v52 = vld [vmem:[%s8171_s0 + $0xe0] sm:$0xf] }
  0xc4   :  { %v2021_v5 = vpop.f32.mrf.mxu2 }
  0xc5   :  { %5816 = vst [vmem:[%s8172_s3 + $0x208] sm:$0xff] %v5440_v3   ;;  %v2670_v6 = vpop.f32.mrf.mxu3  ;;  %v2022_v11 = vadd.f32 %v6187_v61, %v2021_v5  ;;  %v4367_v3 = vor.u32 %v4992_v55, %v4364_v56  ;;  %v4997_v55 = vld [vmem:[%s8171_s0 + $0x4e4] sm:$0xf0]  ;;  %v4868_v56 = vld [vmem:[%s8171_s0 + $0xe4] sm:$0xf] }
  0xc6   :  { %v1703_v7 = vpop.f32.mrf.mxu0 }
  0xc7   :  { %v1704_v9 = vadd.f32 %v6187_v61, %v1703_v7  ;;  %v2352_v10 = vpop.f32.mrf.mxu1  ;;  %v2671_v25 = vadd.f32 %v2670_v6, %v2022_v11 }
  0xc9   :  { %v2353_v12 = vadd.f32 %v2352_v10, %v1704_v9  ;;  %v3112_v35 = vmax.f32 %v2671_v25, 0.0 }
  0xcb   :  { %v2985_v20 = vmax.f32 %v2353_v12, 0.0 }
  0xcc   :  { %v2023_v23 = vpop.f32.mrf.mxu2 }
  0xcd   :  { %v5125_v26 = vpack.c.bf16 %v2985_v20, %v2984_v19  ;;  %v2024_v27 = vadd.f32 %v6187_v61, %v2023_v23  ;;  %v2672_v28 = vpop.f32.mrf.mxu3  ;;  %v4867_v19 = vld [vmem:[%s8171_s0 + $0xd4] sm:$0xf0]  ;;  %v4370_v20 = vld [vmem:[%s8171_s0 + $0x4d0] sm:$0xf]  ;;  %v3860_v23 = vld [vmem:[%s8171_s0 + $0xd8] sm:$0xf0] }
  0xce   :  { %v1706_v30 = vpop.f32.mrf.mxu0 }
  0xcf   :  { %5753 = vst [vmem:[%s8172_s3 + $0x10] sm:$0xff] %v5125_v26   ;;  %v2673_v33 = vadd.f32 %v2672_v28, %v2024_v27  ;;  %v2355_v34 = vpop.f32.mrf.mxu1  ;;  %v1707_v38 = vadd.f32 %v6187_v61, %v1706_v30  ;;  %v4994_v26 = vld [vmem:[%s8171_s0 + $0x4d4] sm:$0xf]  ;;  %v4372_v27 = vld [vmem:[%s8171_s0 + $0x4d8] sm:$0xf0] }
  0xd1   :  { %v3113_v36 = vmax.f32 %v2673_v33, 0.0  ;;  %1745 = vmatmul.bf16.gmra.mxu0 %v3843_v24  ;;  %2065 = vmatmul.bf16.gmra.mxu2 %v4355_v29  ;;  %v2356_v42 = vadd.f32 %v2355_v34, %v1707_v38  ;;  %v3859_v29 = vor.u32 %v4867_v19, %v3858_v18  ;;  %v4371_v34 = vor.u32 %v4995_v21, %v4370_v20 }
  0xd2   :  { %2394 = vmatmul.bf16.gmra.mxu1 %v3847_v31  ;;  %2714 = vmatmul.bf16.gmra.mxu3 %v4359_v32 }
  0xd3   :  { %v5445_v37 = vpack.c.bf16 %v3113_v36, %v3112_v35  ;;  %v2986_v53 = vmax.f32 %v2356_v42, 0.0  ;;  %v3863_v36 = vor.u32 %v4866_v22, %v3860_v23  ;;  %v3874_v23 = vld [vmem:[%s8171_s0 + $0xf0] sm:$0xf] }
  0xd4   :  { %v2026_v39 = vpop.f32.mrf.mxu2 }
  0xd5   :  { %5817 = vst [vmem:[%s8172_s3 + $0x210] sm:$0xff] %v5445_v37   ;;  %v2675_v40 = vpop.f32.mrf.mxu3  ;;  %v2027_v45 = vadd.f32 %v6187_v61, %v2026_v39  ;;  %v4375_v37 = vor.u32 %v4994_v26, %v4372_v27  ;;  %v4999_v26 = vld [vmem:[%s8171_s0 + $0x4f4] sm:$0xf0]  ;;  %v4870_v27 = vld [vmem:[%s8171_s0 + $0xf4] sm:$0xf] }
  0xd6   :  { %v1708_v41 = vpop.f32.mrf.mxu0 }
  0xd7   :  { %v1709_v43 = vadd.f32 %v6187_v61, %v1708_v41  ;;  %v2357_v44 = vpop.f32.mrf.mxu1  ;;  %v2676_v59 = vadd.f32 %v2675_v40, %v2027_v45 }
  0xd9   :  { %v2358_v46 = vadd.f32 %v2357_v44, %v1709_v43  ;;  %v3114_v6 = vmax.f32 %v2676_v59, 0.0 }
  0xdb   :  { %v2987_v54 = vmax.f32 %v2358_v46, 0.0 }
  0xdc   :  { %v2028_v57 = vpop.f32.mrf.mxu2 }
  0xdd   :  { %v5130_v60 = vpack.c.bf16 %v2987_v54, %v2986_v53  ;;  %v2029_v62 = vadd.f32 %v6187_v61, %v2028_v57  ;;  %v2677_v63 = vpop.f32.mrf.mxu3  ;;  %v4869_v53 = vld [vmem:[%s8171_s0 + $0xe4] sm:$0xf0]  ;;  %v4378_v54 = vld [vmem:[%s8171_s0 + $0x4e0] sm:$0xf]  ;;  %v3868_v57 = vld [vmem:[%s8171_s0 + $0xe8] sm:$0xf0] }
  0xde   :  { %v1711_v1 = vpop.f32.mrf.mxu0 }
  0xdf   :  { %5754 = vst [vmem:[%s8172_s3 + $0x18] sm:$0xff] %v5130_v60   ;;  %v2678_v4 = vadd.f32 %v2677_v63, %v2029_v62  ;;  %v2360_v5 = vpop.f32.mrf.mxu1  ;;  %v1712_v9 = vadd.f32 %v6187_v61, %v1711_v1  ;;  %v4996_v60 = vld [vmem:[%s8171_s0 + $0x4e4] sm:$0xf]  ;;  %v4380_v62 = vld [vmem:[%s8171_s0 + $0x4e8] sm:$0xf0] }
  0xe1   :  { %v3115_v7 = vmax.f32 %v2678_v4, 0.0  ;;  %1750 = vmatmul.bf16.gmra.mxu0 %v3851_v58  ;;  %2070 = vmatmul.bf16.gmra.mxu2 %v4363_v0  ;;  %v2361_v13 = vadd.f32 %v2360_v5, %v1712_v9  ;;  %v3867_v0 = vor.u32 %v4869_v53, %v3866_v52  ;;  %v4379_v5 = vor.u32 %v4997_v55, %v4378_v54 }
  0xe2   :  { %2399 = vmatmul.bf16.gmra.mxu1 %v3855_v2  ;;  %2719 = vmatmul.bf16.gmra.mxu3 %v4367_v3 }
  0xe3   :  { %v5450_v8 = vpack.c.bf16 %v3115_v7, %v3114_v6  ;;  %v2988_v24 = vmax.f32 %v2361_v13, 0.0  ;;  %v3871_v7 = vor.u32 %v4868_v56, %v3868_v57  ;;  %v3882_v57 = vld [vmem:[%s8171_s0 + $0x100] sm:$0xf] }
  0xe4   :  { %v2031_v10 = vpop.f32.mrf.mxu2 }
  0xe5   :  { %5818 = vst [vmem:[%s8172_s3 + $0x218] sm:$0xff] %v5450_v8   ;;  %v2680_v11 = vpop.f32.mrf.mxu3  ;;  %v2032_v16 = vadd.f32 %v6187_v61, %v2031_v10  ;;  %v4383_v8 = vor.u32 %v4996_v60, %v4380_v62  ;;  %v5001_v60 = vld [vmem:[%s8171_s0 + $0x504] sm:$0xf0]  ;;  %v4872_v62 = vld [vmem:[%s8171_s0 + $0x104] sm:$0xf] }
  0xe6   :  { %v1713_v12 = vpop.f32.mrf.mxu0 }
  0xe7   :  { %v1714_v14 = vadd.f32 %v6187_v61, %v1713_v12  ;;  %v2362_v15 = vpop.f32.mrf.mxu1  ;;  %v2681_v30 = vadd.f32 %v2680_v11, %v2032_v16 }
  0xe9   :  { %v2363_v17 = vadd.f32 %v2362_v15, %v1714_v14  ;;  %v3116_v40 = vmax.f32 %v2681_v30, 0.0 }
  0xeb   :  { %v2989_v25 = vmax.f32 %v2363_v17, 0.0 }
  0xec   :  { %v2033_v28 = vpop.f32.mrf.mxu2 }
  0xed   :  { %v5135_v31 = vpack.c.bf16 %v2989_v25, %v2988_v24  ;;  %v2034_v32 = vadd.f32 %v6187_v61, %v2033_v28  ;;  %v2682_v33 = vpop.f32.mrf.mxu3  ;;  %v4871_v24 = vld [vmem:[%s8171_s0 + $0xf4] sm:$0xf0]  ;;  %v4386_v25 = vld [vmem:[%s8171_s0 + $0x4f0] sm:$0xf]  ;;  %v3876_v28 = vld [vmem:[%s8171_s0 + $0xf8] sm:$0xf0] }
  0xee   :  { %v1716_v35 = vpop.f32.mrf.mxu0 }
  0xef   :  { %5755 = vst [vmem:[%s8172_s3 + $0x20] sm:$0xff] %v5135_v31   ;;  %v2683_v38 = vadd.f32 %v2682_v33, %v2034_v32  ;;  %v2365_v39 = vpop.f32.mrf.mxu1  ;;  %v1717_v43 = vadd.f32 %v6187_v61, %v1716_v35  ;;  %v4998_v31 = vld [vmem:[%s8171_s0 + $0x4f4] sm:$0xf]  ;;  %v4388_v32 = vld [vmem:[%s8171_s0 + $0x4f8] sm:$0xf0] }
  0xf1   :  { %v3117_v41 = vmax.f32 %v2683_v38, 0.0  ;;  %1755 = vmatmul.bf16.gmra.mxu0 %v3859_v29  ;;  %2075 = vmatmul.bf16.gmra.mxu2 %v4371_v34  ;;  %v2366_v47 = vadd.f32 %v2365_v39, %v1717_v43  ;;  %v3875_v34 = vor.u32 %v4871_v24, %v3874_v23  ;;  %v4387_v39 = vor.u32 %v4999_v26, %v4386_v25 }
  0xf2   :  { %2404 = vmatmul.bf16.gmra.mxu1 %v3863_v36  ;;  %2724 = vmatmul.bf16.gmra.mxu3 %v4375_v37 }
  0xf3   :  { %v5455_v42 = vpack.c.bf16 %v3117_v41, %v3116_v40  ;;  %v2990_v58 = vmax.f32 %v2366_v47, 0.0  ;;  %v3879_v41 = vor.u32 %v4870_v27, %v3876_v28  ;;  %v3890_v28 = vld [vmem:[%s8171_s0 + $0x110] sm:$0xf] }
  0xf4   :  { %v2036_v44 = vpop.f32.mrf.mxu2 }
  0xf5   :  { %5819 = vst [vmem:[%s8172_s3 + $0x220] sm:$0xff] %v5455_v42   ;;  %v2685_v45 = vpop.f32.mrf.mxu3  ;;  %v2037_v50 = vadd.f32 %v6187_v61, %v2036_v44  ;;  %v4391_v42 = vor.u32 %v4998_v31, %v4388_v32  ;;  %v5003_v31 = vld [vmem:[%s8171_s0 + $0x514] sm:$0xf0]  ;;  %v4874_v32 = vld [vmem:[%s8171_s0 + $0x114] sm:$0xf] }
  0xf6   :  { %v1718_v46 = vpop.f32.mrf.mxu0 }
  0xf7   :  { %v1719_v48 = vadd.f32 %v6187_v61, %v1718_v46  ;;  %v2367_v49 = vpop.f32.mrf.mxu1  ;;  %v2686_v1 = vadd.f32 %v2685_v45, %v2037_v50 }
  0xf9   :  { %v2368_v51 = vadd.f32 %v2367_v49, %v1719_v48  ;;  %v3118_v11 = vmax.f32 %v2686_v1, 0.0 }
  0xfb   :  { %v2991_v59 = vmax.f32 %v2368_v51, 0.0 }
  0xfc   :  { %v2038_v63 = vpop.f32.mrf.mxu2 }
  0xfd   :  { %v5140_v2 = vpack.c.bf16 %v2991_v59, %v2990_v58  ;;  %v2039_v3 = vadd.f32 %v6187_v61, %v2038_v63  ;;  %v2687_v4 = vpop.f32.mrf.mxu3  ;;  %v4873_v58 = vld [vmem:[%s8171_s0 + $0x104] sm:$0xf0]  ;;  %v4394_v59 = vld [vmem:[%s8171_s0 + $0x500] sm:$0xf]  ;;  %v3884_v63 = vld [vmem:[%s8171_s0 + $0x108] sm:$0xf0] }
  0xfe   :  { %v1721_v6 = vpop.f32.mrf.mxu0 }
  0xff   :  { %5756 = vst [vmem:[%s8172_s3 + $0x28] sm:$0xff] %v5140_v2   ;;  %v2688_v9 = vadd.f32 %v2687_v4, %v2039_v3  ;;  %v2370_v10 = vpop.f32.mrf.mxu1  ;;  %v1722_v14 = vadd.f32 %v6187_v61, %v1721_v6  ;;  %v5000_v2 = vld [vmem:[%s8171_s0 + $0x504] sm:$0xf]  ;;  %v4396_v3 = vld [vmem:[%s8171_s0 + $0x508] sm:$0xf0] }
 0x101   :  { %v3119_v12 = vmax.f32 %v2688_v9, 0.0  ;;  %1760 = vmatmul.bf16.gmra.mxu0 %v3867_v0  ;;  %2080 = vmatmul.bf16.gmra.mxu2 %v4379_v5  ;;  %v2371_v18 = vadd.f32 %v2370_v10, %v1722_v14  ;;  %v3883_v5 = vor.u32 %v4873_v58, %v3882_v57  ;;  %v4395_v10 = vor.u32 %v5001_v60, %v4394_v59 }
 0x102   :  { %2409 = vmatmul.bf16.gmra.mxu1 %v3871_v7  ;;  %2729 = vmatmul.bf16.gmra.mxu3 %v4383_v8 }
 0x103   :  { %v5460_v13 = vpack.c.bf16 %v3119_v12, %v3118_v11  ;;  %v2992_v29 = vmax.f32 %v2371_v18, 0.0  ;;  %v3887_v12 = vor.u32 %v4872_v62, %v3884_v63  ;;  %v3898_v63 = vld [vmem:[%s8171_s0 + $0x120] sm:$0xf] }
 0x104   :  { %v2041_v15 = vpop.f32.mrf.mxu2 }
 0x105   :  { %5820 = vst [vmem:[%s8172_s3 + $0x228] sm:$0xff] %v5460_v13   ;;  %v2690_v16 = vpop.f32.mrf.mxu3  ;;  %v2042_v21 = vadd.f32 %v6187_v61, %v2041_v15  ;;  %v4399_v13 = vor.u32 %v5000_v2, %v4396_v3  ;;  %v5005_v2 = vld [vmem:[%s8171_s0 + $0x524] sm:$0xf0]  ;;  %v4876_v3 = vld [vmem:[%s8171_s0 + $0x124] sm:$0xf] }
 0x106   :  { %v1723_v17 = vpop.f32.mrf.mxu0 }
 0x107   :  { %v1724_v19 = vadd.f32 %v6187_v61, %v1723_v17  ;;  %v2372_v20 = vpop.f32.mrf.mxu1  ;;  %v2691_v35 = vadd.f32 %v2690_v16, %v2042_v21 }
 0x109   :  { %v2373_v22 = vadd.f32 %v2372_v20, %v1724_v19  ;;  %v3120_v45 = vmax.f32 %v2691_v35, 0.0 }
 0x10b   :  { %v2993_v30 = vmax.f32 %v2373_v22, 0.0 }
 0x10c   :  { %v2043_v33 = vpop.f32.mrf.mxu2 }
 0x10d   :  { %v5145_v36 = vpack.c.bf16 %v2993_v30, %v2992_v29  ;;  %v2044_v37 = vadd.f32 %v6187_v61, %v2043_v33  ;;  %v2692_v38 = vpop.f32.mrf.mxu3  ;;  %v4875_v29 = vld [vmem:[%s8171_s0 + $0x114] sm:$0xf0]  ;;  %v4402_v30 = vld [vmem:[%s8171_s0 + $0x510] sm:$0xf]  ;;  %v3892_v33 = vld [vmem:[%s8171_s0 + $0x118] sm:$0xf0] }
 0x10e   :  { %v1726_v40 = vpop.f32.mrf.mxu0 }
 0x10f   :  { %5757 = vst [vmem:[%s8172_s3 + $0x30] sm:$0xff] %v5145_v36   ;;  %v2693_v43 = vadd.f32 %v2692_v38, %v2044_v37  ;;  %v2375_v44 = vpop.f32.mrf.mxu1  ;;  %v1727_v48 = vadd.f32 %v6187_v61, %v1726_v40  ;;  %v5002_v36 = vld [vmem:[%s8171_s0 + $0x514] sm:$0xf]  ;;  %v4404_v37 = vld [vmem:[%s8171_s0 + $0x518] sm:$0xf0] }
 0x111   :  { %v3121_v46 = vmax.f32 %v2693_v43, 0.0  ;;  %1765 = vmatmul.bf16.gmra.mxu0 %v3875_v34  ;;  %2085 = vmatmul.bf16.gmra.mxu2 %v4387_v39  ;;  %v2376_v52 = vadd.f32 %v2375_v44, %v1727_v48  ;;  %v3891_v39 = vor.u32 %v4875_v29, %v3890_v28  ;;  %v4403_v44 = vor.u32 %v5003_v31, %v4402_v30 }
 0x112   :  { %2414 = vmatmul.bf16.gmra.mxu1 %v3879_v41  ;;  %2734 = vmatmul.bf16.gmra.mxu3 %v4391_v42 }
 0x113   :  { %v5465_v47 = vpack.c.bf16 %v3121_v46, %v3120_v45  ;;  %v2994_v0 = vmax.f32 %v2376_v52, 0.0  ;;  %v3895_v46 = vor.u32 %v4874_v32, %v3892_v33  ;;  %v3906_v33 = vld [vmem:[%s8171_s0 + $0x130] sm:$0xf] }
 0x114   :  { %v2046_v49 = vpop.f32.mrf.mxu2 }
 0x115   :  { %5821 = vst [vmem:[%s8172_s3 + $0x230] sm:$0xff] %v5465_v47   ;;  %v2695_v50 = vpop.f32.mrf.mxu3  ;;  %v2047_v55 = vadd.f32 %v6187_v61, %v2046_v49  ;;  %v4407_v47 = vor.u32 %v5002_v36, %v4404_v37  ;;  %v5007_v36 = vld [vmem:[%s8171_s0 + $0x534] sm:$0xf0]  ;;  %v4878_v37 = vld [vmem:[%s8171_s0 + $0x134] sm:$0xf] }
 0x116   :  { %v1728_v51 = vpop.f32.mrf.mxu0 }
 0x117   :  { %v1729_v53 = vadd.f32 %v6187_v61, %v1728_v51  ;;  %v2377_v54 = vpop.f32.mrf.mxu1  ;;  %v2696_v6 = vadd.f32 %v2695_v50, %v2047_v55 }
 0x119   :  { %v2378_v56 = vadd.f32 %v2377_v54, %v1729_v53  ;;  %v3122_v16 = vmax.f32 %v2696_v6, 0.0 }
 0x11b   :  { %v2995_v1 = vmax.f32 %v2378_v56, 0.0 }
 0x11c   :  { %v2048_v4 = vpop.f32.mrf.mxu2 }
 0x11d   :  { %v5150_v7 = vpack.c.bf16 %v2995_v1, %v2994_v0  ;;  %v2049_v8 = vadd.f32 %v6187_v61, %v2048_v4  ;;  %v2697_v9 = vpop.f32.mrf.mxu3  ;;  %v4877_v0 = vld [vmem:[%s8171_s0 + $0x124] sm:$0xf0]  ;;  %v4410_v1 = vld [vmem:[%s8171_s0 + $0x520] sm:$0xf]  ;;  %v3900_v4 = vld [vmem:[%s8171_s0 + $0x128] sm:$0xf0] }
 0x11e   :  { %v1731_v11 = vpop.f32.mrf.mxu0 }
 0x11f   :  { %5758 = vst [vmem:[%s8172_s3 + $0x38] sm:$0xff] %v5150_v7   ;;  %v2698_v14 = vadd.f32 %v2697_v9, %v2049_v8  ;;  %v2380_v15 = vpop.f32.mrf.mxu1  ;;  %v1732_v19 = vadd.f32 %v6187_v61, %v1731_v11  ;;  %v5004_v7 = vld [vmem:[%s8171_s0 + $0x524] sm:$0xf]  ;;  %v4412_v8 = vld [vmem:[%s8171_s0 + $0x528] sm:$0xf0] }
 0x121   :  { %v3123_v17 = vmax.f32 %v2698_v14, 0.0  ;;  %1770 = vmatmul.bf16.gmra.mxu0 %v3883_v5  ;;  %2090 = vmatmul.bf16.gmra.mxu2 %v4395_v10  ;;  %v2381_v23 = vadd.f32 %v2380_v15, %v1732_v19  ;;  %v3899_v10 = vor.u32 %v4877_v0, %v3898_v63  ;;  %v4411_v15 = vor.u32 %v5005_v2, %v4410_v1 }
 0x122   :  { %2419 = vmatmul.bf16.gmra.mxu1 %v3887_v12  ;;  %2739 = vmatmul.bf16.gmra.mxu3 %v4399_v13 }
 0x123   :  { %v5470_v18 = vpack.c.bf16 %v3123_v17, %v3122_v16  ;;  %v2996_v34 = vmax.f32 %v2381_v23, 0.0  ;;  %v3903_v17 = vor.u32 %v4876_v3, %v3900_v4  ;;  %v3914_v4 = vld [vmem:[%s8171_s0 + $0x140] sm:$0xf] }
 0x124   :  { %v2051_v20 = vpop.f32.mrf.mxu2 }
 0x125   :  { %5822 = vst [vmem:[%s8172_s3 + $0x238] sm:$0xff] %v5470_v18   ;;  %v2700_v21 = vpop.f32.mrf.mxu3  ;;  %v2052_v26 = vadd.f32 %v6187_v61, %v2051_v20  ;;  %v4415_v18 = vor.u32 %v5004_v7, %v4412_v8  ;;  %v5009_v7 = vld [vmem:[%s8171_s0 + $0x544] sm:$0xf0]  ;;  %v4880_v8 = vld [vmem:[%s8171_s0 + $0x144] sm:$0xf] }
 0x126   :  { %v1733_v22 = vpop.f32.mrf.mxu0 }
 0x127   :  { %v1734_v24 = vadd.f32 %v6187_v61, %v1733_v22  ;;  %v2382_v25 = vpop.f32.mrf.mxu1  ;;  %v2701_v40 = vadd.f32 %v2700_v21, %v2052_v26 }
 0x129   :  { %v2383_v27 = vadd.f32 %v2382_v25, %v1734_v24  ;;  %v3124_v50 = vmax.f32 %v2701_v40, 0.0 }
 0x12b   :  { %v2997_v35 = vmax.f32 %v2383_v27, 0.0 }
 0x12c   :  { %v2053_v38 = vpop.f32.mrf.mxu2 }
 0x12d   :  { %v5155_v41 = vpack.c.bf16 %v2997_v35, %v2996_v34  ;;  %v2054_v42 = vadd.f32 %v6187_v61, %v2053_v38  ;;  %v2702_v43 = vpop.f32.mrf.mxu3  ;;  %v4879_v34 = vld [vmem:[%s8171_s0 + $0x134] sm:$0xf0]  ;;  %v4418_v35 = vld [vmem:[%s8171_s0 + $0x530] sm:$0xf]  ;;  %v3908_v38 = vld [vmem:[%s8171_s0 + $0x138] sm:$0xf0] }
 0x12e   :  { %v1736_v45 = vpop.f32.mrf.mxu0 }
 0x12f   :  { %5759 = vst [vmem:[%s8172_s3 + $0x40] sm:$0xff] %v5155_v41   ;;  %v2703_v48 = vadd.f32 %v2702_v43, %v2054_v42  ;;  %v2385_v49 = vpop.f32.mrf.mxu1  ;;  %v1737_v53 = vadd.f32 %v6187_v61, %v1736_v45  ;;  %v5006_v41 = vld [vmem:[%s8171_s0 + $0x534] sm:$0xf]  ;;  %v4420_v42 = vld [vmem:[%s8171_s0 + $0x538] sm:$0xf0] }
 0x131   :  { %v3125_v51 = vmax.f32 %v2703_v48, 0.0  ;;  %1775 = vmatmul.bf16.gmra.mxu0 %v3891_v39  ;;  %2095 = vmatmul.bf16.gmra.mxu2 %v4403_v44  ;;  %v2386_v57 = vadd.f32 %v2385_v49, %v1737_v53  ;;  %v3907_v44 = vor.u32 %v4879_v34, %v3906_v33  ;;  %v4419_v49 = vor.u32 %v5007_v36, %v4418_v35 }
 0x132   :  { %2424 = vmatmul.bf16.gmra.mxu1 %v3895_v46  ;;  %2744 = vmatmul.bf16.gmra.mxu3 %v4407_v47 }
 0x133   :  { %v5475_v52 = vpack.c.bf16 %v3125_v51, %v3124_v50  ;;  %v2998_v5 = vmax.f32 %v2386_v57, 0.0  ;;  %v3911_v51 = vor.u32 %v4878_v37, %v3908_v38  ;;  %v3922_v38 = vld [vmem:[%s8171_s0 + $0x150] sm:$0xf] }
 0x134   :  { %v2056_v54 = vpop.f32.mrf.mxu2 }
 0x135   :  { %5823 = vst [vmem:[%s8172_s3 + $0x240] sm:$0xff] %v5475_v52   ;;  %v2705_v55 = vpop.f32.mrf.mxu3  ;;  %v2057_v60 = vadd.f32 %v6187_v61, %v2056_v54  ;;  %v4423_v52 = vor.u32 %v5006_v41, %v4420_v42  ;;  %v5011_v41 = vld [vmem:[%s8171_s0 + $0x554] sm:$0xf0]  ;;  %v4882_v42 = vld [vmem:[%s8171_s0 + $0x154] sm:$0xf] }
 0x136   :  { %v1738_v56 = vpop.f32.mrf.mxu0 }
 0x137   :  { %v1739_v58 = vadd.f32 %v6187_v61, %v1738_v56  ;;  %v2387_v59 = vpop.f32.mrf.mxu1  ;;  %v2706_v11 = vadd.f32 %v2705_v55, %v2057_v60 }
 0x139   :  { %v2388_v62 = vadd.f32 %v2387_v59, %v1739_v58  ;;  %v3126_v21 = vmax.f32 %v2706_v11, 0.0 }
 0x13b   :  { %v2999_v6 = vmax.f32 %v2388_v62, 0.0 }
 0x13c   :  { %v2058_v9 = vpop.f32.mrf.mxu2 }
 0x13d   :  { %v5160_v12 = vpack.c.bf16 %v2999_v6, %v2998_v5  ;;  %v2059_v13 = vadd.f32 %v6187_v61, %v2058_v9  ;;  %v2707_v14 = vpop.f32.mrf.mxu3  ;;  %v4881_v5 = vld [vmem:[%s8171_s0 + $0x144] sm:$0xf0]  ;;  %v4426_v6 = vld [vmem:[%s8171_s0 + $0x540] sm:$0xf]  ;;  %v3916_v9 = vld [vmem:[%s8171_s0 + $0x148] sm:$0xf0] }
 0x13e   :  { %v1741_v16 = vpop.f32.mrf.mxu0 }
 0x13f   :  { %5760 = vst [vmem:[%s8172_s3 + $0x48] sm:$0xff] %v5160_v12   ;;  %v2708_v19 = vadd.f32 %v2707_v14, %v2059_v13  ;;  %v2390_v20 = vpop.f32.mrf.mxu1  ;;  %v1742_v24 = vadd.f32 %v6187_v61, %v1741_v16  ;;  %v5008_v12 = vld [vmem:[%s8171_s0 + $0x544] sm:$0xf]  ;;  %v4428_v13 = vld [vmem:[%s8171_s0 + $0x548] sm:$0xf0] }
 0x141   :  { %v3127_v22 = vmax.f32 %v2708_v19, 0.0  ;;  %1780 = vmatmul.bf16.gmra.mxu0 %v3899_v10  ;;  %2100 = vmatmul.bf16.gmra.mxu2 %v4411_v15  ;;  %v2391_v28 = vadd.f32 %v2390_v20, %v1742_v24  ;;  %v3915_v15 = vor.u32 %v4881_v5, %v3914_v4  ;;  %v4427_v20 = vor.u32 %v5009_v7, %v4426_v6 }
 0x142   :  { %2429 = vmatmul.bf16.gmra.mxu1 %v3903_v17  ;;  %2749 = vmatmul.bf16.gmra.mxu3 %v4415_v18 }
 0x143   :  { %v5480_v23 = vpack.c.bf16 %v3127_v22, %v3126_v21  ;;  %v3000_v39 = vmax.f32 %v2391_v28, 0.0  ;;  %v3919_v22 = vor.u32 %v4880_v8, %v3916_v9  ;;  %v3930_v9 = vld [vmem:[%s8171_s0 + $0x160] sm:$0xf] }
 0x144   :  { %v2061_v25 = vpop.f32.mrf.mxu2 }
 0x145   :  { %5824 = vst [vmem:[%s8172_s3 + $0x248] sm:$0xff] %v5480_v23   ;;  %v2710_v26 = vpop.f32.mrf.mxu3  ;;  %v2062_v31 = vadd.f32 %v6187_v61, %v2061_v25  ;;  %v4431_v23 = vor.u32 %v5008_v12, %v4428_v13  ;;  %v5013_v12 = vld [vmem:[%s8171_s0 + $0x564] sm:$0xf0]  ;;  %v4884_v13 = vld [vmem:[%s8171_s0 + $0x164] sm:$0xf] }
 0x146   :  { %v1743_v27 = vpop.f32.mrf.mxu0 }
 0x147   :  { %v1744_v29 = vadd.f32 %v6187_v61, %v1743_v27  ;;  %v2392_v30 = vpop.f32.mrf.mxu1  ;;  %v2711_v45 = vadd.f32 %v2710_v26, %v2062_v31 }
 0x149   :  { %v2393_v32 = vadd.f32 %v2392_v30, %v1744_v29  ;;  %v3128_v55 = vmax.f32 %v2711_v45, 0.0 }
 0x14b   :  { %v3001_v40 = vmax.f32 %v2393_v32, 0.0 }
 0x14c   :  { %v2063_v43 = vpop.f32.mrf.mxu2 }
 0x14d   :  { %v5165_v46 = vpack.c.bf16 %v3001_v40, %v3000_v39  ;;  %v2064_v47 = vadd.f32 %v6187_v61, %v2063_v43  ;;  %v2712_v48 = vpop.f32.mrf.mxu3  ;;  %v4883_v39 = vld [vmem:[%s8171_s0 + $0x154] sm:$0xf0]  ;;  %v4434_v40 = vld [vmem:[%s8171_s0 + $0x550] sm:$0xf]  ;;  %v3924_v43 = vld [vmem:[%s8171_s0 + $0x158] sm:$0xf0] }
 0x14e   :  { %v1746_v50 = vpop.f32.mrf.mxu0 }
 0x14f   :  { %5761 = vst [vmem:[%s8172_s3 + $0x50] sm:$0xff] %v5165_v46   ;;  %v2713_v53 = vadd.f32 %v2712_v48, %v2064_v47  ;;  %v2395_v54 = vpop.f32.mrf.mxu1  ;;  %v1747_v58 = vadd.f32 %v6187_v61, %v1746_v50  ;;  %v5010_v46 = vld [vmem:[%s8171_s0 + $0x554] sm:$0xf]  ;;  %v4436_v47 = vld [vmem:[%s8171_s0 + $0x558] sm:$0xf0] }
 0x151   :  { %v3129_v56 = vmax.f32 %v2713_v53, 0.0  ;;  %1785 = vmatmul.bf16.gmra.mxu0 %v3907_v44  ;;  %2105 = vmatmul.bf16.gmra.mxu2 %v4419_v49  ;;  %v2396_v63 = vadd.f32 %v2395_v54, %v1747_v58  ;;  %v3923_v49 = vor.u32 %v4883_v39, %v3922_v38  ;;  %v4435_v54 = vor.u32 %v5011_v41, %v4434_v40 }
 0x152   :  { %2434 = vmatmul.bf16.gmra.mxu1 %v3911_v51  ;;  %2754 = vmatmul.bf16.gmra.mxu3 %v4423_v52 }
 0x153   :  { %v5485_v57 = vpack.c.bf16 %v3129_v56, %v3128_v55  ;;  %v3002_v10 = vmax.f32 %v2396_v63, 0.0  ;;  %v3927_v56 = vor.u32 %v4882_v42, %v3924_v43  ;;  %v3938_v43 = vld [vmem:[%s8171_s0 + $0x170] sm:$0xf] }
 0x154   :  { %v2066_v59 = vpop.f32.mrf.mxu2 }
 0x155   :  { %5825 = vst [vmem:[%s8172_s3 + $0x250] sm:$0xff] %v5485_v57   ;;  %v2715_v60 = vpop.f32.mrf.mxu3  ;;  %v2067_v2 = vadd.f32 %v6187_v61, %v2066_v59  ;;  %v4439_v57 = vor.u32 %v5010_v46, %v4436_v47  ;;  %v5015_v46 = vld [vmem:[%s8171_s0 + $0x574] sm:$0xf0]  ;;  %v4886_v47 = vld [vmem:[%s8171_s0 + $0x174] sm:$0xf] }
 0x156   :  { %v1748_v62 = vpop.f32.mrf.mxu0 }
 0x157   :  { %v1749_v0 = vadd.f32 %v6187_v61, %v1748_v62  ;;  %v2397_v1 = vpop.f32.mrf.mxu1  ;;  %v2716_v16 = vadd.f32 %v2715_v60, %v2067_v2 }
 0x159   :  { %v2398_v3 = vadd.f32 %v2397_v1, %v1749_v0  ;;  %v3130_v26 = vmax.f32 %v2716_v16, 0.0 }
 0x15b   :  { %v3003_v11 = vmax.f32 %v2398_v3, 0.0 }
 0x15c   :  { %v2068_v14 = vpop.f32.mrf.mxu2 }
 0x15d   :  { %v5170_v17 = vpack.c.bf16 %v3003_v11, %v3002_v10  ;;  %v2069_v18 = vadd.f32 %v6187_v61, %v2068_v14  ;;  %v2717_v19 = vpop.f32.mrf.mxu3  ;;  %v4885_v10 = vld [vmem:[%s8171_s0 + $0x164] sm:$0xf0]  ;;  %v4442_v11 = vld [vmem:[%s8171_s0 + $0x560] sm:$0xf]  ;;  %v3932_v14 = vld [vmem:[%s8171_s0 + $0x168] sm:$0xf0] }
 0x15e   :  { %v1751_v21 = vpop.f32.mrf.mxu0 }
 0x15f   :  { %5762 = vst [vmem:[%s8172_s3 + $0x58] sm:$0xff] %v5170_v17   ;;  %v2718_v24 = vadd.f32 %v2717_v19, %v2069_v18  ;;  %v2400_v25 = vpop.f32.mrf.mxu1  ;;  %v1752_v29 = vadd.f32 %v6187_v61, %v1751_v21  ;;  %v5012_v17 = vld [vmem:[%s8171_s0 + $0x564] sm:$0xf]  ;;  %v4444_v18 = vld [vmem:[%s8171_s0 + $0x568] sm:$0xf0] }
 0x161   :  { %v3131_v27 = vmax.f32 %v2718_v24, 0.0  ;;  %1790 = vmatmul.bf16.gmra.mxu0 %v3915_v15  ;;  %2110 = vmatmul.bf16.gmra.mxu2 %v4427_v20  ;;  %v2401_v33 = vadd.f32 %v2400_v25, %v1752_v29  ;;  %v3931_v20 = vor.u32 %v4885_v10, %v3930_v9  ;;  %v4443_v25 = vor.u32 %v5013_v12, %v4442_v11 }
 0x162   :  { %2439 = vmatmul.bf16.gmra.mxu1 %v3919_v22  ;;  %2759 = vmatmul.bf16.gmra.mxu3 %v4431_v23 }
 0x163   :  { %v5490_v28 = vpack.c.bf16 %v3131_v27, %v3130_v26  ;;  %v3004_v44 = vmax.f32 %v2401_v33, 0.0  ;;  %v3935_v27 = vor.u32 %v4884_v13, %v3932_v14  ;;  %v3946_v14 = vld [vmem:[%s8171_s0 + $0x180] sm:$0xf] }
 0x164   :  { %v2071_v30 = vpop.f32.mrf.mxu2 }
 0x165   :  { %5826 = vst [vmem:[%s8172_s3 + $0x258] sm:$0xff] %v5490_v28   ;;  %v2720_v31 = vpop.f32.mrf.mxu3  ;;  %v2072_v36 = vadd.f32 %v6187_v61, %v2071_v30  ;;  %v4447_v28 = vor.u32 %v5012_v17, %v4444_v18  ;;  %v5017_v17 = vld [vmem:[%s8171_s0 + $0x584] sm:$0xf0]  ;;  %v4888_v18 = vld [vmem:[%s8171_s0 + $0x184] sm:$0xf] }
 0x166   :  { %v1753_v32 = vpop.f32.mrf.mxu0 }
 0x167   :  { %v1754_v34 = vadd.f32 %v6187_v61, %v1753_v32  ;;  %v2402_v35 = vpop.f32.mrf.mxu1  ;;  %v2721_v50 = vadd.f32 %v2720_v31, %v2072_v36 }
 0x169   :  { %v2403_v37 = vadd.f32 %v2402_v35, %v1754_v34  ;;  %v3132_v60 = vmax.f32 %v2721_v50, 0.0 }
 0x16b   :  { %v3005_v45 = vmax.f32 %v2403_v37, 0.0 }
 0x16c   :  { %v2073_v48 = vpop.f32.mrf.mxu2 }
 0x16d   :  { %v5175_v51 = vpack.c.bf16 %v3005_v45, %v3004_v44  ;;  %v2074_v52 = vadd.f32 %v6187_v61, %v2073_v48  ;;  %v2722_v53 = vpop.f32.mrf.mxu3  ;;  %v6631_v61 = vld [vmem:[%s8170_s2] ss:$0 sm:$0xff]  ;;  %v4887_v44 = vld [vmem:[%s8171_s0 + $0x174] sm:$0xf0]  ;;  %v4450_v45 = vld [vmem:[%s8171_s0 + $0x570] sm:$0xf] }
 0x16e   :  { %v1756_v55 = vpop.f32.mrf.mxu0  ;;  %v3940_v48 = vld [vmem:[%s8171_s0 + $0x178] sm:$0xf0] }
 0x16f   :  { %5763 = vst [vmem:[%s8172_s3 + $0x60] sm:$0xff] %v5175_v51   ;;  %v2723_v58 = vadd.f32 %v2722_v53, %v2074_v52  ;;  %v2405_v59 = vpop.f32.mrf.mxu1  ;;  %v1757_v0 = vadd.f32 %v6631_v61, %v1756_v55  ;;  %v5014_v51 = vld [vmem:[%s8171_s0 + $0x574] sm:$0xf]  ;;  %v4452_v52 = vld [vmem:[%s8171_s0 + $0x578] sm:$0xf0] }
 0x171   :  { %v3133_v62 = vmax.f32 %v2723_v58, 0.0  ;;  %1795 = vmatmul.bf16.gmra.mxu0 %v3923_v49  ;;  %2115 = vmatmul.bf16.gmra.mxu2 %v4435_v54  ;;  %v2406_v4 = vadd.f32 %v2405_v59, %v1757_v0  ;;  %v3939_v54 = vor.u32 %v4887_v44, %v3938_v43  ;;  %v4451_v59 = vor.u32 %v5015_v46, %v4450_v45 }
 0x172   :  { %2444 = vmatmul.bf16.gmra.mxu1 %v3927_v56  ;;  %2764 = vmatmul.bf16.gmra.mxu3 %v4439_v57 }
 0x173   :  { %v5495_v63 = vpack.c.bf16 %v3133_v62, %v3132_v60  ;;  %v3006_v15 = vmax.f32 %v2406_v4, 0.0  ;;  %v3943_v62 = vor.u32 %v4886_v47, %v3940_v48  ;;  %v3954_v48 = vld [vmem:[%s8171_s0 + $0x190] sm:$0xf] }
 0x174   :  { %v2076_v1 = vpop.f32.mrf.mxu2 }
 0x175   :  { %5827 = vst [vmem:[%s8172_s3 + $0x260] sm:$0xff] %v5495_v63   ;;  %v2725_v2 = vpop.f32.mrf.mxu3  ;;  %v2077_v7 = vadd.f32 %v6631_v61, %v2076_v1  ;;  %v4455_v63 = vor.u32 %v5014_v51, %v4452_v52  ;;  %v5019_v51 = vld [vmem:[%s8171_s0 + $0x594] sm:$0xf0]  ;;  %v4890_v52 = vld [vmem:[%s8171_s0 + $0x194] sm:$0xf] }
 0x176   :  { %v1758_v3 = vpop.f32.mrf.mxu0 }
 0x177   :  { %v1759_v5 = vadd.f32 %v6631_v61, %v1758_v3  ;;  %v2407_v6 = vpop.f32.mrf.mxu1  ;;  %v2726_v21 = vadd.f32 %v2725_v2, %v2077_v7 }
 0x179   :  { %v2408_v8 = vadd.f32 %v2407_v6, %v1759_v5  ;;  %v3134_v31 = vmax.f32 %v2726_v21, 0.0 }
 0x17b   :  { %v3007_v16 = vmax.f32 %v2408_v8, 0.0 }
 0x17c   :  { %v2078_v19 = vpop.f32.mrf.mxu2 }
 0x17d   :  { %v5180_v22 = vpack.c.bf16 %v3007_v16, %v3006_v15  ;;  %v2079_v23 = vadd.f32 %v6631_v61, %v2078_v19  ;;  %v2727_v24 = vpop.f32.mrf.mxu3  ;;  %v4889_v15 = vld [vmem:[%s8171_s0 + $0x184] sm:$0xf0]  ;;  %v4458_v16 = vld [vmem:[%s8171_s0 + $0x580] sm:$0xf]  ;;  %v3948_v19 = vld [vmem:[%s8171_s0 + $0x188] sm:$0xf0] }
 0x17e   :  { %v1761_v26 = vpop.f32.mrf.mxu0 }
 0x17f   :  { %5764 = vst [vmem:[%s8172_s3 + $0x68] sm:$0xff] %v5180_v22   ;;  %v2728_v29 = vadd.f32 %v2727_v24, %v2079_v23  ;;  %v2410_v30 = vpop.f32.mrf.mxu1  ;;  %v1762_v34 = vadd.f32 %v6631_v61, %v1761_v26  ;;  %v5016_v22 = vld [vmem:[%s8171_s0 + $0x584] sm:$0xf]  ;;  %v4460_v23 = vld [vmem:[%s8171_s0 + $0x588] sm:$0xf0] }
 0x181   :  { %v3135_v32 = vmax.f32 %v2728_v29, 0.0  ;;  %1800 = vmatmul.bf16.gmra.mxu0 %v3931_v20  ;;  %2120 = vmatmul.bf16.gmra.mxu2 %v4443_v25  ;;  %v2411_v38 = vadd.f32 %v2410_v30, %v1762_v34  ;;  %v3947_v25 = vor.u32 %v4889_v15, %v3946_v14  ;;  %v4459_v30 = vor.u32 %v5017_v17, %v4458_v16 }
 0x182   :  { %2449 = vmatmul.bf16.gmra.mxu1 %v3935_v27  ;;  %2769 = vmatmul.bf16.gmra.mxu3 %v4447_v28 }
 0x183   :  { %v5500_v33 = vpack.c.bf16 %v3135_v32, %v3134_v31  ;;  %v3008_v49 = vmax.f32 %v2411_v38, 0.0  ;;  %v3951_v32 = vor.u32 %v4888_v18, %v3948_v19  ;;  %v3962_v19 = vld [vmem:[%s8171_s0 + $0x1a0] sm:$0xf] }
 0x184   :  { %v2081_v35 = vpop.f32.mrf.mxu2 }
 0x185   :  { %5828 = vst [vmem:[%s8172_s3 + $0x268] sm:$0xff] %v5500_v33   ;;  %v2730_v36 = vpop.f32.mrf.mxu3  ;;  %v2082_v41 = vadd.f32 %v6631_v61, %v2081_v35  ;;  %v4463_v33 = vor.u32 %v5016_v22, %v4460_v23  ;;  %v5021_v22 = vld [vmem:[%s8171_s0 + $0x5a4] sm:$0xf0]  ;;  %v4892_v23 = vld [vmem:[%s8171_s0 + $0x1a4] sm:$0xf] }
 0x186   :  { %v1763_v37 = vpop.f32.mrf.mxu0 }
 0x187   :  { %v1764_v39 = vadd.f32 %v6631_v61, %v1763_v37  ;;  %v2412_v40 = vpop.f32.mrf.mxu1  ;;  %v2731_v55 = vadd.f32 %v2730_v36, %v2082_v41 }
 0x189   :  { %v2413_v42 = vadd.f32 %v2412_v40, %v1764_v39  ;;  %v3136_v2 = vmax.f32 %v2731_v55, 0.0 }
 0x18b   :  { %v3009_v50 = vmax.f32 %v2413_v42, 0.0 }
 0x18c   :  { %v2083_v53 = vpop.f32.mrf.mxu2 }
 0x18d   :  { %v5185_v56 = vpack.c.bf16 %v3009_v50, %v3008_v49  ;;  %v2084_v57 = vadd.f32 %v6631_v61, %v2083_v53  ;;  %v2732_v58 = vpop.f32.mrf.mxu3  ;;  %v4891_v49 = vld [vmem:[%s8171_s0 + $0x194] sm:$0xf0]  ;;  %v4466_v50 = vld [vmem:[%s8171_s0 + $0x590] sm:$0xf]  ;;  %v3956_v53 = vld [vmem:[%s8171_s0 + $0x198] sm:$0xf0] }
 0x18e   :  { %v1766_v60 = vpop.f32.mrf.mxu0 }
 0x18f   :  { %5765 = vst [vmem:[%s8172_s3 + $0x70] sm:$0xff] %v5185_v56   ;;  %v2733_v0 = vadd.f32 %v2732_v58, %v2084_v57  ;;  %v2415_v1 = vpop.f32.mrf.mxu1  ;;  %v1767_v5 = vadd.f32 %v6631_v61, %v1766_v60  ;;  %v5018_v56 = vld [vmem:[%s8171_s0 + $0x594] sm:$0xf]  ;;  %v4468_v57 = vld [vmem:[%s8171_s0 + $0x598] sm:$0xf0] }
 0x191   :  { %v3137_v3 = vmax.f32 %v2733_v0, 0.0  ;;  %1805 = vmatmul.bf16.gmra.mxu0 %v3939_v54  ;;  %2125 = vmatmul.bf16.gmra.mxu2 %v4451_v59  ;;  %v2416_v9 = vadd.f32 %v2415_v1, %v1767_v5  ;;  %v3955_v59 = vor.u32 %v4891_v49, %v3954_v48  ;;  %v4467_v1 = vor.u32 %v5019_v51, %v4466_v50 }
 0x192   :  { %2454 = vmatmul.bf16.gmra.mxu1 %v3943_v62  ;;  %2774 = vmatmul.bf16.gmra.mxu3 %v4455_v63 }
 0x193   :  { %v5505_v4 = vpack.c.bf16 %v3137_v3, %v3136_v2  ;;  %v3010_v20 = vmax.f32 %v2416_v9, 0.0  ;;  %v3959_v3 = vor.u32 %v4890_v52, %v3956_v53  ;;  %v3970_v53 = vld [vmem:[%s8171_s0 + $0x1b0] sm:$0xf] }
 0x194   :  { %v2086_v6 = vpop.f32.mrf.mxu2 }
 0x195   :  { %5829 = vst [vmem:[%s8172_s3 + $0x270] sm:$0xff] %v5505_v4   ;;  %v2735_v7 = vpop.f32.mrf.mxu3  ;;  %v2087_v12 = vadd.f32 %v6631_v61, %v2086_v6  ;;  %v4471_v4 = vor.u32 %v5018_v56, %v4468_v57  ;;  %v5023_v56 = vld [vmem:[%s8171_s0 + $0x5b4] sm:$0xf0]  ;;  %v4894_v57 = vld [vmem:[%s8171_s0 + $0x1b4] sm:$0xf] }
 0x196   :  { %v1768_v8 = vpop.f32.mrf.mxu0 }
 0x197   :  { %v1769_v10 = vadd.f32 %v6631_v61, %v1768_v8  ;;  %v2417_v11 = vpop.f32.mrf.mxu1  ;;  %v2736_v26 = vadd.f32 %v2735_v7, %v2087_v12 }
 0x199   :  { %v2418_v13 = vadd.f32 %v2417_v11, %v1769_v10  ;;  %v3138_v36 = vmax.f32 %v2736_v26, 0.0 }
 0x19b   :  { %v3011_v21 = vmax.f32 %v2418_v13, 0.0 }
 0x19c   :  { %v2088_v24 = vpop.f32.mrf.mxu2 }
 0x19d   :  { %v5190_v27 = vpack.c.bf16 %v3011_v21, %v3010_v20  ;;  %v2089_v28 = vadd.f32 %v6631_v61, %v2088_v24  ;;  %v2737_v29 = vpop.f32.mrf.mxu3  ;;  %v4893_v20 = vld [vmem:[%s8171_s0 + $0x1a4] sm:$0xf0]  ;;  %v4474_v21 = vld [vmem:[%s8171_s0 + $0x5a0] sm:$0xf]  ;;  %v3964_v24 = vld [vmem:[%s8171_s0 + $0x1a8] sm:$0xf0] }
 0x19e   :  { %v1771_v31 = vpop.f32.mrf.mxu0 }
 0x19f   :  { %5766 = vst [vmem:[%s8172_s3 + $0x78] sm:$0xff] %v5190_v27   ;;  %v2738_v34 = vadd.f32 %v2737_v29, %v2089_v28  ;;  %v2420_v35 = vpop.f32.mrf.mxu1  ;;  %v1772_v39 = vadd.f32 %v6631_v61, %v1771_v31  ;;  %v5020_v27 = vld [vmem:[%s8171_s0 + $0x5a4] sm:$0xf]  ;;  %v4476_v28 = vld [vmem:[%s8171_s0 + $0x5a8] sm:$0xf0] }
 0x1a1   :  { %v3139_v37 = vmax.f32 %v2738_v34, 0.0  ;;  %1810 = vmatmul.bf16.gmra.mxu0 %v3947_v25  ;;  %2130 = vmatmul.bf16.gmra.mxu2 %v4459_v30  ;;  %v2421_v43 = vadd.f32 %v2420_v35, %v1772_v39  ;;  %v3963_v30 = vor.u32 %v4893_v20, %v3962_v19  ;;  %v4475_v35 = vor.u32 %v5021_v22, %v4474_v21 }
 0x1a2   :  { %2459 = vmatmul.bf16.gmra.mxu1 %v3951_v32  ;;  %2779 = vmatmul.bf16.gmra.mxu3 %v4463_v33 }
 0x1a3   :  { %v5510_v38 = vpack.c.bf16 %v3139_v37, %v3138_v36  ;;  %v3012_v54 = vmax.f32 %v2421_v43, 0.0  ;;  %v3967_v37 = vor.u32 %v4892_v23, %v3964_v24  ;;  %v3978_v24 = vld [vmem:[%s8171_s0 + $0x1c0] sm:$0xf] }
 0x1a4   :  { %v2091_v40 = vpop.f32.mrf.mxu2 }
 0x1a5   :  { %5830 = vst [vmem:[%s8172_s3 + $0x278] sm:$0xff] %v5510_v38   ;;  %v2740_v41 = vpop.f32.mrf.mxu3  ;;  %v2092_v46 = vadd.f32 %v6631_v61, %v2091_v40  ;;  %v4479_v38 = vor.u32 %v5020_v27, %v4476_v28  ;;  %v5025_v27 = vld [vmem:[%s8171_s0 + $0x5c4] sm:$0xf0]  ;;  %v4896_v28 = vld [vmem:[%s8171_s0 + $0x1c4] sm:$0xf] }
 0x1a6   :  { %v1773_v42 = vpop.f32.mrf.mxu0 }
 0x1a7   :  { %v1774_v44 = vadd.f32 %v6631_v61, %v1773_v42  ;;  %v2422_v45 = vpop.f32.mrf.mxu1  ;;  %v2741_v60 = vadd.f32 %v2740_v41, %v2092_v46 }
 0x1a9   :  { %v2423_v47 = vadd.f32 %v2422_v45, %v1774_v44  ;;  %v3140_v7 = vmax.f32 %v2741_v60, 0.0 }
 0x1ab   :  { %v3013_v55 = vmax.f32 %v2423_v47, 0.0 }
 0x1ac   :  { %v2093_v58 = vpop.f32.mrf.mxu2 }
 0x1ad   :  { %v5195_v62 = vpack.c.bf16 %v3013_v55, %v3012_v54  ;;  %v2094_v63 = vadd.f32 %v6631_v61, %v2093_v58  ;;  %v2742_v0 = vpop.f32.mrf.mxu3  ;;  %v4895_v54 = vld [vmem:[%s8171_s0 + $0x1b4] sm:$0xf0]  ;;  %v4482_v55 = vld [vmem:[%s8171_s0 + $0x5b0] sm:$0xf]  ;;  %v3972_v58 = vld [vmem:[%s8171_s0 + $0x1b8] sm:$0xf0] }
 0x1ae   :  { %v1776_v2 = vpop.f32.mrf.mxu0 }
 0x1af   :  { %5767 = vst [vmem:[%s8172_s3 + $0x80] sm:$0xff] %v5195_v62   ;;  %v2743_v5 = vadd.f32 %v2742_v0, %v2094_v63  ;;  %v2425_v6 = vpop.f32.mrf.mxu1  ;;  %v1777_v10 = vadd.f32 %v6631_v61, %v1776_v2  ;;  %v5022_v62 = vld [vmem:[%s8171_s0 + $0x5b4] sm:$0xf]  ;;  %v4484_v63 = vld [vmem:[%s8171_s0 + $0x5b8] sm:$0xf0] }
 0x1b1   :  { %v3141_v8 = vmax.f32 %v2743_v5, 0.0  ;;  %1815 = vmatmul.bf16.gmra.mxu0 %v3955_v59  ;;  %2135 = vmatmul.bf16.gmra.mxu2 %v4467_v1  ;;  %v2426_v14 = vadd.f32 %v2425_v6, %v1777_v10  ;;  %v3971_v1 = vor.u32 %v4895_v54, %v3970_v53  ;;  %v4483_v6 = vor.u32 %v5023_v56, %v4482_v55 }
 0x1b2   :  { %2464 = vmatmul.bf16.gmra.mxu1 %v3959_v3  ;;  %2784 = vmatmul.bf16.gmra.mxu3 %v4471_v4 }
 0x1b3   :  { %v5515_v9 = vpack.c.bf16 %v3141_v8, %v3140_v7  ;;  %v3014_v25 = vmax.f32 %v2426_v14, 0.0  ;;  %v3975_v8 = vor.u32 %v4894_v57, %v3972_v58  ;;  %v3986_v58 = vld [vmem:[%s8171_s0 + $0x1d0] sm:$0xf] }
 0x1b4   :  { %v2096_v11 = vpop.f32.mrf.mxu2 }
 0x1b5   :  { %5831 = vst [vmem:[%s8172_s3 + $0x280] sm:$0xff] %v5515_v9   ;;  %v2745_v12 = vpop.f32.mrf.mxu3  ;;  %v2097_v17 = vadd.f32 %v6631_v61, %v2096_v11  ;;  %v4487_v9 = vor.u32 %v5022_v62, %v4484_v63  ;;  %v5027_v62 = vld [vmem:[%s8171_s0 + $0x5d4] sm:$0xf0]  ;;  %v4898_v63 = vld [vmem:[%s8171_s0 + $0x1d4] sm:$0xf] }
 0x1b6   :  { %v1778_v13 = vpop.f32.mrf.mxu0 }
 0x1b7   :  { %v1779_v15 = vadd.f32 %v6631_v61, %v1778_v13  ;;  %v2427_v16 = vpop.f32.mrf.mxu1  ;;  %v2746_v31 = vadd.f32 %v2745_v12, %v2097_v17 }
 0x1b9   :  { %v2428_v18 = vadd.f32 %v2427_v16, %v1779_v15  ;;  %v3142_v41 = vmax.f32 %v2746_v31, 0.0 }
 0x1bb   :  { %v3015_v26 = vmax.f32 %v2428_v18, 0.0 }
 0x1bc   :  { %v2098_v29 = vpop.f32.mrf.mxu2 }
 0x1bd   :  { %v5200_v32 = vpack.c.bf16 %v3015_v26, %v3014_v25  ;;  %v2099_v33 = vadd.f32 %v6631_v61, %v2098_v29  ;;  %v2747_v34 = vpop.f32.mrf.mxu3  ;;  %v4897_v25 = vld [vmem:[%s8171_s0 + $0x1c4] sm:$0xf0]  ;;  %v4490_v26 = vld [vmem:[%s8171_s0 + $0x5c0] sm:$0xf]  ;;  %v3980_v29 = vld [vmem:[%s8171_s0 + $0x1c8] sm:$0xf0] }
 0x1be   :  { %v1781_v36 = vpop.f32.mrf.mxu0 }
 0x1bf   :  { %5768 = vst [vmem:[%s8172_s3 + $0x88] sm:$0xff] %v5200_v32   ;;  %v2748_v39 = vadd.f32 %v2747_v34, %v2099_v33  ;;  %v2430_v40 = vpop.f32.mrf.mxu1  ;;  %v1782_v44 = vadd.f32 %v6631_v61, %v1781_v36  ;;  %v5024_v32 = vld [vmem:[%s8171_s0 + $0x5c4] sm:$0xf]  ;;  %v4492_v33 = vld [vmem:[%s8171_s0 + $0x5c8] sm:$0xf0] }
 0x1c1   :  { %v3143_v42 = vmax.f32 %v2748_v39, 0.0  ;;  %1820 = vmatmul.bf16.gmra.mxu0 %v3963_v30  ;;  %2140 = vmatmul.bf16.gmra.mxu2 %v4475_v35  ;;  %v2431_v48 = vadd.f32 %v2430_v40, %v1782_v44  ;;  %v3979_v35 = vor.u32 %v4897_v25, %v3978_v24  ;;  %v4491_v40 = vor.u32 %v5025_v27, %v4490_v26 }
 0x1c2   :  { %2469 = vmatmul.bf16.gmra.mxu1 %v3967_v37  ;;  %2789 = vmatmul.bf16.gmra.mxu3 %v4479_v38 }
 0x1c3   :  { %v5520_v43 = vpack.c.bf16 %v3143_v42, %v3142_v41  ;;  %v3016_v59 = vmax.f32 %v2431_v48, 0.0  ;;  %v3983_v42 = vor.u32 %v4896_v28, %v3980_v29  ;;  %v3994_v29 = vld [vmem:[%s8171_s0 + $0x1e0] sm:$0xf] }
 0x1c4   :  { %v2101_v45 = vpop.f32.mrf.mxu2 }
 0x1c5   :  { %5832 = vst [vmem:[%s8172_s3 + $0x288] sm:$0xff] %v5520_v43   ;;  %v2750_v46 = vpop.f32.mrf.mxu3  ;;  %v2102_v51 = vadd.f32 %v6631_v61, %v2101_v45  ;;  %v4495_v43 = vor.u32 %v5024_v32, %v4492_v33  ;;  %v5029_v32 = vld [vmem:[%s8171_s0 + $0x5e4] sm:$0xf0]  ;;  %v4900_v33 = vld [vmem:[%s8171_s0 + $0x1e4] sm:$0xf] }
 0x1c6   :  { %v1783_v47 = vpop.f32.mrf.mxu0 }
 0x1c7   :  { %v1784_v49 = vadd.f32 %v6631_v61, %v1783_v47  ;;  %v2432_v50 = vpop.f32.mrf.mxu1  ;;  %v2751_v2 = vadd.f32 %v2750_v46, %v2102_v51 }
 0x1c9   :  { %v2433_v52 = vadd.f32 %v2432_v50, %v1784_v49  ;;  %v3144_v12 = vmax.f32 %v2751_v2, 0.0 }
 0x1cb   :  { %v3017_v60 = vmax.f32 %v2433_v52, 0.0 }
 0x1cc   :  { %v2103_v0 = vpop.f32.mrf.mxu2 }
 0x1cd   :  { %v5205_v3 = vpack.c.bf16 %v3017_v60, %v3016_v59  ;;  %v2104_v4 = vadd.f32 %v6631_v61, %v2103_v0  ;;  %v2752_v5 = vpop.f32.mrf.mxu3  ;;  %v4899_v59 = vld [vmem:[%s8171_s0 + $0x1d4] sm:$0xf0]  ;;  %v4498_v60 = vld [vmem:[%s8171_s0 + $0x5d0] sm:$0xf]  ;;  %v3988_v0 = vld [vmem:[%s8171_s0 + $0x1d8] sm:$0xf0] }
 0x1ce   :  { %v1786_v7 = vpop.f32.mrf.mxu0 }
 0x1cf   :  { %5769 = vst [vmem:[%s8172_s3 + $0x90] sm:$0xff] %v5205_v3   ;;  %v2753_v10 = vadd.f32 %v2752_v5, %v2104_v4  ;;  %v2435_v11 = vpop.f32.mrf.mxu1  ;;  %v1787_v15 = vadd.f32 %v6631_v61, %v1786_v7  ;;  %v5026_v3 = vld [vmem:[%s8171_s0 + $0x5d4] sm:$0xf]  ;;  %v4500_v4 = vld [vmem:[%s8171_s0 + $0x5d8] sm:$0xf0] }
 0x1d1   :  { %v3145_v13 = vmax.f32 %v2753_v10, 0.0  ;;  %1825 = vmatmul.bf16.gmra.mxu0 %v3971_v1  ;;  %2145 = vmatmul.bf16.gmra.mxu2 %v4483_v6  ;;  %v2436_v19 = vadd.f32 %v2435_v11, %v1787_v15  ;;  %v3987_v6 = vor.u32 %v4899_v59, %v3986_v58  ;;  %v4499_v11 = vor.u32 %v5027_v62, %v4498_v60 }
 0x1d2   :  { %2474 = vmatmul.bf16.gmra.mxu1 %v3975_v8  ;;  %2794 = vmatmul.bf16.gmra.mxu3 %v4487_v9 }
 0x1d3   :  { %v5525_v14 = vpack.c.bf16 %v3145_v13, %v3144_v12  ;;  %v3018_v30 = vmax.f32 %v2436_v19, 0.0  ;;  %v3991_v13 = vor.u32 %v4898_v63, %v3988_v0  ;;  %v4002_v0 = vld [vmem:[%s8171_s0 + $0x1f0] sm:$0xf] }
 0x1d4   :  { %v2106_v16 = vpop.f32.mrf.mxu2 }
 0x1d5   :  { %5833 = vst [vmem:[%s8172_s3 + $0x290] sm:$0xff] %v5525_v14   ;;  %v2755_v17 = vpop.f32.mrf.mxu3  ;;  %v2107_v22 = vadd.f32 %v6631_v61, %v2106_v16  ;;  %v4503_v14 = vor.u32 %v5026_v3, %v4500_v4  ;;  %v5031_v3 = vld [vmem:[%s8171_s0 + $0x5f4] sm:$0xf0]  ;;  %v4902_v4 = vld [vmem:[%s8171_s0 + $0x1f4] sm:$0xf] }
 0x1d6   :  { %v1788_v18 = vpop.f32.mrf.mxu0 }
 0x1d7   :  { %v1789_v20 = vadd.f32 %v6631_v61, %v1788_v18  ;;  %v2437_v21 = vpop.f32.mrf.mxu1  ;;  %v2756_v36 = vadd.f32 %v2755_v17, %v2107_v22 }
 0x1d9   :  { %v2438_v23 = vadd.f32 %v2437_v21, %v1789_v20  ;;  %v3146_v46 = vmax.f32 %v2756_v36, 0.0 }
 0x1db   :  { %v3019_v31 = vmax.f32 %v2438_v23, 0.0 }
 0x1dc   :  { %v2108_v34 = vpop.f32.mrf.mxu2 }
 0x1dd   :  { %v5210_v37 = vpack.c.bf16 %v3019_v31, %v3018_v30  ;;  %v2109_v38 = vadd.f32 %v6631_v61, %v2108_v34  ;;  %v2757_v39 = vpop.f32.mrf.mxu3  ;;  %v4901_v30 = vld [vmem:[%s8171_s0 + $0x1e4] sm:$0xf0]  ;;  %v4506_v31 = vld [vmem:[%s8171_s0 + $0x5e0] sm:$0xf]  ;;  %v3996_v34 = vld [vmem:[%s8171_s0 + $0x1e8] sm:$0xf0] }
 0x1de   :  { %v1791_v41 = vpop.f32.mrf.mxu0 }
 0x1df   :  { %5770 = vst [vmem:[%s8172_s3 + $0x98] sm:$0xff] %v5210_v37   ;;  %v2758_v44 = vadd.f32 %v2757_v39, %v2109_v38  ;;  %v2440_v45 = vpop.f32.mrf.mxu1  ;;  %v1792_v49 = vadd.f32 %v6631_v61, %v1791_v41  ;;  %v5028_v37 = vld [vmem:[%s8171_s0 + $0x5e4] sm:$0xf]  ;;  %v4508_v38 = vld [vmem:[%s8171_s0 + $0x5e8] sm:$0xf0] }
 0x1e1   :  { %v3147_v47 = vmax.f32 %v2758_v44, 0.0  ;;  %1830 = vmatmul.bf16.gmra.mxu0 %v3979_v35  ;;  %2150 = vmatmul.bf16.gmra.mxu2 %v4491_v40  ;;  %v2441_v53 = vadd.f32 %v2440_v45, %v1792_v49  ;;  %v3995_v40 = vor.u32 %v4901_v30, %v3994_v29  ;;  %v4507_v45 = vor.u32 %v5029_v32, %v4506_v31 }
 0x1e2   :  { %2479 = vmatmul.bf16.gmra.mxu1 %v3983_v42  ;;  %2799 = vmatmul.bf16.gmra.mxu3 %v4495_v43 }
 0x1e3   :  { %v5530_v48 = vpack.c.bf16 %v3147_v47, %v3146_v46  ;;  %v3020_v1 = vmax.f32 %v2441_v53, 0.0  ;;  %v3999_v47 = vor.u32 %v4900_v33, %v3996_v34  ;;  %v4010_v34 = vld [vmem:[%s8171_s0 + $0x200] sm:$0xf] }
 0x1e4   :  { %v2111_v50 = vpop.f32.mrf.mxu2 }
 0x1e5   :  { %5834 = vst [vmem:[%s8172_s3 + $0x298] sm:$0xff] %v5530_v48   ;;  %v2760_v51 = vpop.f32.mrf.mxu3  ;;  %v2112_v56 = vadd.f32 %v6631_v61, %v2111_v50  ;;  %v4511_v48 = vor.u32 %v5028_v37, %v4508_v38  ;;  %v5033_v37 = vld [vmem:[%s8171_s0 + $0x604] sm:$0xf0]  ;;  %v4904_v38 = vld [vmem:[%s8171_s0 + $0x204] sm:$0xf] }
 0x1e6   :  { %v1793_v52 = vpop.f32.mrf.mxu0 }
 0x1e7   :  { %v1794_v54 = vadd.f32 %v6631_v61, %v1793_v52  ;;  %v2442_v55 = vpop.f32.mrf.mxu1  ;;  %v2761_v7 = vadd.f32 %v2760_v51, %v2112_v56 }
 0x1e9   :  { %v2443_v57 = vadd.f32 %v2442_v55, %v1794_v54  ;;  %v3148_v17 = vmax.f32 %v2761_v7, 0.0 }
 0x1eb   :  { %v3021_v2 = vmax.f32 %v2443_v57, 0.0 }
 0x1ec   :  { %v2113_v5 = vpop.f32.mrf.mxu2 }
 0x1ed   :  { %v5215_v8 = vpack.c.bf16 %v3021_v2, %v3020_v1  ;;  %v2114_v9 = vadd.f32 %v6631_v61, %v2113_v5  ;;  %v2762_v10 = vpop.f32.mrf.mxu3  ;;  %v4903_v1 = vld [vmem:[%s8171_s0 + $0x1f4] sm:$0xf0]  ;;  %v4514_v2 = vld [vmem:[%s8171_s0 + $0x5f0] sm:$0xf]  ;;  %v4004_v5 = vld [vmem:[%s8171_s0 + $0x1f8] sm:$0xf0] }
 0x1ee   :  { %v1796_v12 = vpop.f32.mrf.mxu0 }
 0x1ef   :  { %5771 = vst [vmem:[%s8172_s3 + $0xa0] sm:$0xff] %v5215_v8   ;;  %v2763_v15 = vadd.f32 %v2762_v10, %v2114_v9  ;;  %v2445_v16 = vpop.f32.mrf.mxu1  ;;  %v1797_v20 = vadd.f32 %v6631_v61, %v1796_v12  ;;  %v5030_v8 = vld [vmem:[%s8171_s0 + $0x5f4] sm:$0xf]  ;;  %v4516_v9 = vld [vmem:[%s8171_s0 + $0x5f8] sm:$0xf0] }
 0x1f1   :  { %v3149_v18 = vmax.f32 %v2763_v15, 0.0  ;;  %1835 = vmatmul.bf16.gmra.mxu0 %v3987_v6  ;;  %2155 = vmatmul.bf16.gmra.mxu2 %v4499_v11  ;;  %v2446_v24 = vadd.f32 %v2445_v16, %v1797_v20  ;;  %v4003_v11 = vor.u32 %v4903_v1, %v4002_v0  ;;  %v4515_v16 = vor.u32 %v5031_v3, %v4514_v2 }
 0x1f2   :  { %2484 = vmatmul.bf16.gmra.mxu1 %v3991_v13  ;;  %2804 = vmatmul.bf16.gmra.mxu3 %v4503_v14 }
 0x1f3   :  { %v5535_v19 = vpack.c.bf16 %v3149_v18, %v3148_v17  ;;  %v3022_v35 = vmax.f32 %v2446_v24, 0.0  ;;  %v4007_v18 = vor.u32 %v4902_v4, %v4004_v5  ;;  %v4018_v5 = vld [vmem:[%s8171_s0 + $0x210] sm:$0xf] }
 0x1f4   :  { %v2116_v21 = vpop.f32.mrf.mxu2 }
 0x1f5   :  { %5835 = vst [vmem:[%s8172_s3 + $0x2a0] sm:$0xff] %v5535_v19   ;;  %v2765_v22 = vpop.f32.mrf.mxu3  ;;  %v2117_v27 = vadd.f32 %v6631_v61, %v2116_v21  ;;  %v4519_v19 = vor.u32 %v5030_v8, %v4516_v9  ;;  %v5035_v8 = vld [vmem:[%s8171_s0 + $0x614] sm:$0xf0]  ;;  %v4906_v9 = vld [vmem:[%s8171_s0 + $0x214] sm:$0xf] }
 0x1f6   :  { %v1798_v23 = vpop.f32.mrf.mxu0 }
 0x1f7   :  { %v1799_v25 = vadd.f32 %v6631_v61, %v1798_v23  ;;  %v2447_v26 = vpop.f32.mrf.mxu1  ;;  %v2766_v41 = vadd.f32 %v2765_v22, %v2117_v27 }
 0x1f9   :  { %v2448_v28 = vadd.f32 %v2447_v26, %v1799_v25  ;;  %v3150_v51 = vmax.f32 %v2766_v41, 0.0 }
 0x1fb   :  { %v3023_v36 = vmax.f32 %v2448_v28, 0.0 }
 0x1fc   :  { %v2118_v39 = vpop.f32.mrf.mxu2 }
 0x1fd   :  { %v5220_v42 = vpack.c.bf16 %v3023_v36, %v3022_v35  ;;  %v2119_v43 = vadd.f32 %v6631_v61, %v2118_v39  ;;  %v2767_v44 = vpop.f32.mrf.mxu3  ;;  %v4905_v35 = vld [vmem:[%s8171_s0 + $0x204] sm:$0xf0]  ;;  %v4522_v36 = vld [vmem:[%s8171_s0 + $0x600] sm:$0xf]  ;;  %v4012_v39 = vld [vmem:[%s8171_s0 + $0x208] sm:$0xf0] }
 0x1fe   :  { %v1801_v46 = vpop.f32.mrf.mxu0 }
 0x1ff   :  { %5772 = vst [vmem:[%s8172_s3 + $0xa8] sm:$0xff] %v5220_v42   ;;  %v2768_v49 = vadd.f32 %v2767_v44, %v2119_v43  ;;  %v2450_v50 = vpop.f32.mrf.mxu1  ;;  %v1802_v54 = vadd.f32 %v6631_v61, %v1801_v46  ;;  %v5032_v42 = vld [vmem:[%s8171_s0 + $0x604] sm:$0xf]  ;;  %v4524_v43 = vld [vmem:[%s8171_s0 + $0x608] sm:$0xf0] }
 0x201   :  { %v3151_v52 = vmax.f32 %v2768_v49, 0.0  ;;  %1840 = vmatmul.bf16.gmra.mxu0 %v3995_v40  ;;  %2160 = vmatmul.bf16.gmra.mxu2 %v4507_v45  ;;  %v2451_v58 = vadd.f32 %v2450_v50, %v1802_v54  ;;  %v4011_v45 = vor.u32 %v4905_v35, %v4010_v34  ;;  %v4523_v50 = vor.u32 %v5033_v37, %v4522_v36 }
 0x202   :  { %2489 = vmatmul.bf16.gmra.mxu1 %v3999_v47  ;;  %2809 = vmatmul.bf16.gmra.mxu3 %v4511_v48 }
 0x203   :  { %v5540_v53 = vpack.c.bf16 %v3151_v52, %v3150_v51  ;;  %v3024_v6 = vmax.f32 %v2451_v58, 0.0  ;;  %v4015_v52 = vor.u32 %v4904_v38, %v4012_v39  ;;  %v4026_v39 = vld [vmem:[%s8171_s0 + $0x220] sm:$0xf] }
 0x204   :  { %v2121_v55 = vpop.f32.mrf.mxu2 }
 0x205   :  { %5836 = vst [vmem:[%s8172_s3 + $0x2a8] sm:$0xff] %v5540_v53   ;;  %v2770_v56 = vpop.f32.mrf.mxu3  ;;  %v2122_v62 = vadd.f32 %v6631_v61, %v2121_v55  ;;  %v4527_v53 = vor.u32 %v5032_v42, %v4524_v43  ;;  %v5037_v42 = vld [vmem:[%s8171_s0 + $0x624] sm:$0xf0]  ;;  %v4908_v43 = vld [vmem:[%s8171_s0 + $0x224] sm:$0xf] }
 0x206   :  { %v1803_v57 = vpop.f32.mrf.mxu0 }
 0x207   :  { %v1804_v59 = vadd.f32 %v6631_v61, %v1803_v57  ;;  %v2452_v60 = vpop.f32.mrf.mxu1  ;;  %v2771_v12 = vadd.f32 %v2770_v56, %v2122_v62 }
 0x209   :  { %v2453_v63 = vadd.f32 %v2452_v60, %v1804_v59  ;;  %v3152_v22 = vmax.f32 %v2771_v12, 0.0 }
 0x20b   :  { %v3025_v7 = vmax.f32 %v2453_v63, 0.0 }
 0x20c   :  { %v2123_v10 = vpop.f32.mrf.mxu2 }
 0x20d   :  { %v5225_v13 = vpack.c.bf16 %v3025_v7, %v3024_v6  ;;  %v2124_v14 = vadd.f32 %v6631_v61, %v2123_v10  ;;  %v2772_v15 = vpop.f32.mrf.mxu3  ;;  %v4907_v6 = vld [vmem:[%s8171_s0 + $0x214] sm:$0xf0]  ;;  %v4530_v7 = vld [vmem:[%s8171_s0 + $0x610] sm:$0xf]  ;;  %v4020_v10 = vld [vmem:[%s8171_s0 + $0x218] sm:$0xf0] }
 0x20e   :  { %v1806_v17 = vpop.f32.mrf.mxu0 }
 0x20f   :  { %5773 = vst [vmem:[%s8172_s3 + $0xb0] sm:$0xff] %v5225_v13   ;;  %v2773_v20 = vadd.f32 %v2772_v15, %v2124_v14  ;;  %v2455_v21 = vpop.f32.mrf.mxu1  ;;  %v1807_v25 = vadd.f32 %v6631_v61, %v1806_v17  ;;  %v5034_v13 = vld [vmem:[%s8171_s0 + $0x614] sm:$0xf]  ;;  %v4532_v14 = vld [vmem:[%s8171_s0 + $0x618] sm:$0xf0] }
 0x211   :  { %v3153_v23 = vmax.f32 %v2773_v20, 0.0  ;;  %1845 = vmatmul.bf16.gmra.mxu0 %v4003_v11  ;;  %2165 = vmatmul.bf16.gmra.mxu2 %v4515_v16  ;;  %v2456_v29 = vadd.f32 %v2455_v21, %v1807_v25  ;;  %v4019_v16 = vor.u32 %v4907_v6, %v4018_v5  ;;  %v4531_v21 = vor.u32 %v5035_v8, %v4530_v7 }
 0x212   :  { %2494 = vmatmul.bf16.gmra.mxu1 %v4007_v18  ;;  %2814 = vmatmul.bf16.gmra.mxu3 %v4519_v19 }
 0x213   :  { %v5545_v24 = vpack.c.bf16 %v3153_v23, %v3152_v22  ;;  %v3026_v40 = vmax.f32 %v2456_v29, 0.0  ;;  %v4023_v23 = vor.u32 %v4906_v9, %v4020_v10  ;;  %v4034_v10 = vld [vmem:[%s8171_s0 + $0x230] sm:$0xf] }
 0x214   :  { %v2126_v26 = vpop.f32.mrf.mxu2 }
 0x215   :  { %5837 = vst [vmem:[%s8172_s3 + $0x2b0] sm:$0xff] %v5545_v24   ;;  %v2775_v27 = vpop.f32.mrf.mxu3  ;;  %v2127_v32 = vadd.f32 %v6631_v61, %v2126_v26  ;;  %v4535_v24 = vor.u32 %v5034_v13, %v4532_v14  ;;  %v5039_v13 = vld [vmem:[%s8171_s0 + $0x634] sm:$0xf0]  ;;  %v4910_v14 = vld [vmem:[%s8171_s0 + $0x234] sm:$0xf] }
 0x216   :  { %v1808_v28 = vpop.f32.mrf.mxu0 }
 0x217   :  { %v1809_v30 = vadd.f32 %v6631_v61, %v1808_v28  ;;  %v2457_v31 = vpop.f32.mrf.mxu1  ;;  %v2776_v46 = vadd.f32 %v2775_v27, %v2127_v32 }
 0x219   :  { %v2458_v33 = vadd.f32 %v2457_v31, %v1809_v30  ;;  %v3154_v56 = vmax.f32 %v2776_v46, 0.0 }
 0x21b   :  { %v3027_v41 = vmax.f32 %v2458_v33, 0.0 }
 0x21c   :  { %v2128_v44 = vpop.f32.mrf.mxu2 }
 0x21d   :  { %v5230_v47 = vpack.c.bf16 %v3027_v41, %v3026_v40  ;;  %v2129_v48 = vadd.f32 %v6631_v61, %v2128_v44  ;;  %v2777_v49 = vpop.f32.mrf.mxu3  ;;  %v4909_v40 = vld [vmem:[%s8171_s0 + $0x224] sm:$0xf0]  ;;  %v4538_v41 = vld [vmem:[%s8171_s0 + $0x620] sm:$0xf]  ;;  %v4028_v44 = vld [vmem:[%s8171_s0 + $0x228] sm:$0xf0] }
 0x21e   :  { %v1811_v51 = vpop.f32.mrf.mxu0 }
 0x21f   :  { %5774 = vst [vmem:[%s8172_s3 + $0xb8] sm:$0xff] %v5230_v47   ;;  %v2778_v54 = vadd.f32 %v2777_v49, %v2129_v48  ;;  %v2460_v55 = vpop.f32.mrf.mxu1  ;;  %v1812_v59 = vadd.f32 %v6631_v61, %v1811_v51  ;;  %v5036_v47 = vld [vmem:[%s8171_s0 + $0x624] sm:$0xf]  ;;  %v4540_v48 = vld [vmem:[%s8171_s0 + $0x628] sm:$0xf0] }
 0x221   :  { %v3155_v57 = vmax.f32 %v2778_v54, 0.0  ;;  %1850 = vmatmul.bf16.gmra.mxu0 %v4011_v45  ;;  %2170 = vmatmul.bf16.gmra.mxu2 %v4523_v50  ;;  %v2461_v0 = vadd.f32 %v2460_v55, %v1812_v59  ;;  %v4027_v50 = vor.u32 %v4909_v40, %v4026_v39  ;;  %v4539_v55 = vor.u32 %v5037_v42, %v4538_v41 }
 0x222   :  { %2499 = vmatmul.bf16.gmra.mxu1 %v4015_v52  ;;  %2819 = vmatmul.bf16.gmra.mxu3 %v4527_v53 }
 0x223   :  { %v5550_v58 = vpack.c.bf16 %v3155_v57, %v3154_v56  ;;  %v3028_v11 = vmax.f32 %v2461_v0, 0.0  ;;  %v4031_v57 = vor.u32 %v4908_v43, %v4028_v44  ;;  %v4042_v44 = vld [vmem:[%s8171_s0 + $0x240] sm:$0xf] }
 0x224   :  { %v2131_v60 = vpop.f32.mrf.mxu2 }
 0x225   :  { %5838 = vst [vmem:[%s8172_s3 + $0x2b8] sm:$0xff] %v5550_v58   ;;  %v2780_v62 = vpop.f32.mrf.mxu3  ;;  %v2132_v3 = vadd.f32 %v6631_v61, %v2131_v60  ;;  %v4543_v58 = vor.u32 %v5036_v47, %v4540_v48  ;;  %v5041_v47 = vld [vmem:[%s8171_s0 + $0x644] sm:$0xf0]  ;;  %v4912_v48 = vld [vmem:[%s8171_s0 + $0x244] sm:$0xf] }
 0x226   :  { %v1813_v63 = vpop.f32.mrf.mxu0 }
 0x227   :  { %v1814_v1 = vadd.f32 %v6631_v61, %v1813_v63  ;;  %v2462_v2 = vpop.f32.mrf.mxu1  ;;  %v2781_v17 = vadd.f32 %v2780_v62, %v2132_v3 }
 0x229   :  { %v2463_v4 = vadd.f32 %v2462_v2, %v1814_v1  ;;  %v3156_v27 = vmax.f32 %v2781_v17, 0.0 }
 0x22b   :  { %v3029_v12 = vmax.f32 %v2463_v4, 0.0 }
 0x22c   :  { %v2133_v15 = vpop.f32.mrf.mxu2 }
 0x22d   :  { %v5235_v18 = vpack.c.bf16 %v3029_v12, %v3028_v11  ;;  %v2134_v19 = vadd.f32 %v6631_v61, %v2133_v15  ;;  %v2782_v20 = vpop.f32.mrf.mxu3  ;;  %v4911_v11 = vld [vmem:[%s8171_s0 + $0x234] sm:$0xf0]  ;;  %v4546_v12 = vld [vmem:[%s8171_s0 + $0x630] sm:$0xf]  ;;  %v4036_v15 = vld [vmem:[%s8171_s0 + $0x238] sm:$0xf0] }
 0x22e   :  { %v1816_v22 = vpop.f32.mrf.mxu0 }
 0x22f   :  { %5775 = vst [vmem:[%s8172_s3 + $0xc0] sm:$0xff] %v5235_v18   ;;  %v2783_v25 = vadd.f32 %v2782_v20, %v2134_v19  ;;  %v2465_v26 = vpop.f32.mrf.mxu1  ;;  %v1817_v30 = vadd.f32 %v6631_v61, %v1816_v22  ;;  %v5038_v18 = vld [vmem:[%s8171_s0 + $0x634] sm:$0xf]  ;;  %v4548_v19 = vld [vmem:[%s8171_s0 + $0x638] sm:$0xf0] }
 0x231   :  { %v3157_v28 = vmax.f32 %v2783_v25, 0.0  ;;  %1855 = vmatmul.bf16.gmra.mxu0 %v4019_v16  ;;  %2175 = vmatmul.bf16.gmra.mxu2 %v4531_v21  ;;  %v2466_v34 = vadd.f32 %v2465_v26, %v1817_v30  ;;  %v4035_v21 = vor.u32 %v4911_v11, %v4034_v10  ;;  %v4547_v26 = vor.u32 %v5039_v13, %v4546_v12 }
 0x232   :  { %2504 = vmatmul.bf16.gmra.mxu1 %v4023_v23  ;;  %2824 = vmatmul.bf16.gmra.mxu3 %v4535_v24 }
 0x233   :  { %v5555_v29 = vpack.c.bf16 %v3157_v28, %v3156_v27  ;;  %v3030_v45 = vmax.f32 %v2466_v34, 0.0  ;;  %v4039_v28 = vor.u32 %v4910_v14, %v4036_v15  ;;  %v4050_v15 = vld [vmem:[%s8171_s0 + $0x250] sm:$0xf] }
 0x234   :  { %v2136_v31 = vpop.f32.mrf.mxu2 }
 0x235   :  { %5839 = vst [vmem:[%s8172_s3 + $0x2c0] sm:$0xff] %v5555_v29   ;;  %v2785_v32 = vpop.f32.mrf.mxu3  ;;  %v2137_v37 = vadd.f32 %v6631_v61, %v2136_v31  ;;  %v4551_v29 = vor.u32 %v5038_v18, %v4548_v19  ;;  %v5043_v18 = vld [vmem:[%s8171_s0 + $0x654] sm:$0xf0]  ;;  %v4914_v19 = vld [vmem:[%s8171_s0 + $0x254] sm:$0xf] }
 0x236   :  { %v1818_v33 = vpop.f32.mrf.mxu0 }
 0x237   :  { %v1819_v35 = vadd.f32 %v6631_v61, %v1818_v33  ;;  %v2467_v36 = vpop.f32.mrf.mxu1  ;;  %v2786_v51 = vadd.f32 %v2785_v32, %v2137_v37 }
 0x239   :  { %v2468_v38 = vadd.f32 %v2467_v36, %v1819_v35  ;;  %v3158_v62 = vmax.f32 %v2786_v51, 0.0 }
 0x23b   :  { %v3031_v46 = vmax.f32 %v2468_v38, 0.0 }
 0x23c   :  { %v2138_v49 = vpop.f32.mrf.mxu2 }
 0x23d   :  { %v5240_v52 = vpack.c.bf16 %v3031_v46, %v3030_v45  ;;  %v2139_v53 = vadd.f32 %v6631_v61, %v2138_v49  ;;  %v2787_v54 = vpop.f32.mrf.mxu3  ;;  %v7078_v61 = vld [vmem:[%s8170_s2] ss:$0 sm:$0xff]  ;;  %v4913_v45 = vld [vmem:[%s8171_s0 + $0x244] sm:$0xf0]  ;;  %v4044_v49 = vld [vmem:[%s8171_s0 + $0x248] sm:$0xf0] }
 0x23e   :  { %v1821_v56 = vpop.f32.mrf.mxu0  ;;  %v4554_v46 = vld [vmem:[%s8171_s0 + $0x640] sm:$0xf] }
 0x23f   :  { %5776 = vst [vmem:[%s8172_s3 + $0xc8] sm:$0xff] %v5240_v52   ;;  %v2788_v59 = vadd.f32 %v2787_v54, %v2139_v53  ;;  %v2470_v60 = vpop.f32.mrf.mxu1  ;;  %v1822_v1 = vadd.f32 %v7078_v61, %v1821_v56  ;;  %v5040_v52 = vld [vmem:[%s8171_s0 + $0x644] sm:$0xf]  ;;  %v4556_v53 = vld [vmem:[%s8171_s0 + $0x648] sm:$0xf0] }
 0x241   :  { %v3159_v63 = vmax.f32 %v2788_v59, 0.0  ;;  %1860 = vmatmul.bf16.gmra.mxu0 %v4027_v50  ;;  %2180 = vmatmul.bf16.gmra.mxu2 %v4539_v55  ;;  %v2471_v5 = vadd.f32 %v2470_v60, %v1822_v1  ;;  %v4043_v55 = vor.u32 %v4913_v45, %v4042_v44  ;;  %v4555_v60 = vor.u32 %v5041_v47, %v4554_v46 }
 0x242   :  { %2509 = vmatmul.bf16.gmra.mxu1 %v4031_v57  ;;  %2829 = vmatmul.bf16.gmra.mxu3 %v4543_v58 }
 0x243   :  { %v5560_v0 = vpack.c.bf16 %v3159_v63, %v3158_v62  ;;  %v3032_v16 = vmax.f32 %v2471_v5, 0.0  ;;  %v4047_v63 = vor.u32 %v4912_v48, %v4044_v49  ;;  %v4058_v49 = vld [vmem:[%s8171_s0 + $0x260] sm:$0xf] }
 0x244   :  { %v2141_v2 = vpop.f32.mrf.mxu2 }
 0x245   :  { %5840 = vst [vmem:[%s8172_s3 + $0x2c8] sm:$0xff] %v5560_v0   ;;  %v2790_v3 = vpop.f32.mrf.mxu3  ;;  %v2142_v8 = vadd.f32 %v7078_v61, %v2141_v2  ;;  %v4559_v0 = vor.u32 %v5040_v52, %v4556_v53  ;;  %v5045_v52 = vld [vmem:[%s8171_s0 + $0x664] sm:$0xf0]  ;;  %v4916_v53 = vld [vmem:[%s8171_s0 + $0x264] sm:$0xf] }
 0x246   :  { %v1823_v4 = vpop.f32.mrf.mxu0 }
 0x247   :  { %v1824_v6 = vadd.f32 %v7078_v61, %v1823_v4  ;;  %v2472_v7 = vpop.f32.mrf.mxu1  ;;  %v2791_v22 = vadd.f32 %v2790_v3, %v2142_v8 }
 0x249   :  { %v2473_v9 = vadd.f32 %v2472_v7, %v1824_v6  ;;  %v3160_v32 = vmax.f32 %v2791_v22, 0.0 }
 0x24b   :  { %v3033_v17 = vmax.f32 %v2473_v9, 0.0 }
 0x24c   :  { %v2143_v20 = vpop.f32.mrf.mxu2 }
 0x24d   :  { %v5245_v23 = vpack.c.bf16 %v3033_v17, %v3032_v16  ;;  %v2144_v24 = vadd.f32 %v7078_v61, %v2143_v20  ;;  %v2792_v25 = vpop.f32.mrf.mxu3  ;;  %v4915_v16 = vld [vmem:[%s8171_s0 + $0x254] sm:$0xf0]  ;;  %v4562_v17 = vld [vmem:[%s8171_s0 + $0x650] sm:$0xf]  ;;  %v4052_v20 = vld [vmem:[%s8171_s0 + $0x258] sm:$0xf0] }
 0x24e   :  { %v1826_v27 = vpop.f32.mrf.mxu0 }
 0x24f   :  { %5777 = vst [vmem:[%s8172_s3 + $0xd0] sm:$0xff] %v5245_v23   ;;  %v2793_v30 = vadd.f32 %v2792_v25, %v2144_v24  ;;  %v2475_v31 = vpop.f32.mrf.mxu1  ;;  %v1827_v35 = vadd.f32 %v7078_v61, %v1826_v27  ;;  %v5042_v23 = vld [vmem:[%s8171_s0 + $0x654] sm:$0xf]  ;;  %v4564_v24 = vld [vmem:[%s8171_s0 + $0x658] sm:$0xf0] }
 0x251   :  { %v3161_v33 = vmax.f32 %v2793_v30, 0.0  ;;  %1865 = vmatmul.bf16.gmra.mxu0 %v4035_v21  ;;  %2185 = vmatmul.bf16.gmra.mxu2 %v4547_v26  ;;  %v2476_v39 = vadd.f32 %v2475_v31, %v1827_v35  ;;  %v4051_v26 = vor.u32 %v4915_v16, %v4050_v15  ;;  %v4563_v31 = vor.u32 %v5043_v18, %v4562_v17 }
 0x252   :  { %2514 = vmatmul.bf16.gmra.mxu1 %v4039_v28  ;;  %2834 = vmatmul.bf16.gmra.mxu3 %v4551_v29 }
 0x253   :  { %v5565_v34 = vpack.c.bf16 %v3161_v33, %v3160_v32  ;;  %v3034_v50 = vmax.f32 %v2476_v39, 0.0  ;;  %v4055_v33 = vor.u32 %v4914_v19, %v4052_v20  ;;  %v4066_v20 = vld [vmem:[%s8171_s0 + $0x270] sm:$0xf] }
 0x254   :  { %v2146_v36 = vpop.f32.mrf.mxu2 }
 0x255   :  { %5841 = vst [vmem:[%s8172_s3 + $0x2d0] sm:$0xff] %v5565_v34   ;;  %v2795_v37 = vpop.f32.mrf.mxu3  ;;  %v2147_v42 = vadd.f32 %v7078_v61, %v2146_v36  ;;  %v4567_v34 = vor.u32 %v5042_v23, %v4564_v24  ;;  %v5047_v23 = vld [vmem:[%s8171_s0 + $0x674] sm:$0xf0]  ;;  %v4918_v24 = vld [vmem:[%s8171_s0 + $0x274] sm:$0xf] }
 0x256   :  { %v1828_v38 = vpop.f32.mrf.mxu0 }
 0x257   :  { %v1829_v40 = vadd.f32 %v7078_v61, %v1828_v38  ;;  %v2477_v41 = vpop.f32.mrf.mxu1  ;;  %v2796_v56 = vadd.f32 %v2795_v37, %v2147_v42 }
 0x259   :  { %v2478_v43 = vadd.f32 %v2477_v41, %v1829_v40  ;;  %v3162_v3 = vmax.f32 %v2796_v56, 0.0 }
 0x25b   :  { %v3035_v51 = vmax.f32 %v2478_v43, 0.0 }
 0x25c   :  { %v2148_v54 = vpop.f32.mrf.mxu2 }
 0x25d   :  { %v5250_v57 = vpack.c.bf16 %v3035_v51, %v3034_v50  ;;  %v2149_v58 = vadd.f32 %v7078_v61, %v2148_v54  ;;  %v2797_v59 = vpop.f32.mrf.mxu3  ;;  %v4917_v50 = vld [vmem:[%s8171_s0 + $0x264] sm:$0xf0]  ;;  %v4570_v51 = vld [vmem:[%s8171_s0 + $0x660] sm:$0xf]  ;;  %v4060_v54 = vld [vmem:[%s8171_s0 + $0x268] sm:$0xf0] }
 0x25e   :  { %v1831_v62 = vpop.f32.mrf.mxu0 }
 0x25f   :  { %5778 = vst [vmem:[%s8172_s3 + $0xd8] sm:$0xff] %v5250_v57   ;;  %v2798_v1 = vadd.f32 %v2797_v59, %v2149_v58  ;;  %v2480_v2 = vpop.f32.mrf.mxu1  ;;  %v1832_v6 = vadd.f32 %v7078_v61, %v1831_v62  ;;  %v5044_v57 = vld [vmem:[%s8171_s0 + $0x664] sm:$0xf]  ;;  %v4572_v58 = vld [vmem:[%s8171_s0 + $0x668] sm:$0xf0] }
 0x261   :  { %v3163_v4 = vmax.f32 %v2798_v1, 0.0  ;;  %1870 = vmatmul.bf16.gmra.mxu0 %v4043_v55  ;;  %2190 = vmatmul.bf16.gmra.mxu2 %v4555_v60  ;;  %v2481_v10 = vadd.f32 %v2480_v2, %v1832_v6  ;;  %v4059_v60 = vor.u32 %v4917_v50, %v4058_v49  ;;  %v4571_v2 = vor.u32 %v5045_v52, %v4570_v51 }
 0x262   :  { %2519 = vmatmul.bf16.gmra.mxu1 %v4047_v63  ;;  %2839 = vmatmul.bf16.gmra.mxu3 %v4559_v0 }
 0x263   :  { %v5570_v5 = vpack.c.bf16 %v3163_v4, %v3162_v3  ;;  %v3036_v21 = vmax.f32 %v2481_v10, 0.0  ;;  %v4063_v4 = vor.u32 %v4916_v53, %v4060_v54  ;;  %v4074_v54 = vld [vmem:[%s8171_s0 + $0x280] sm:$0xf] }
 0x264   :  { %v2151_v7 = vpop.f32.mrf.mxu2 }
 0x265   :  { %5842 = vst [vmem:[%s8172_s3 + $0x2d8] sm:$0xff] %v5570_v5   ;;  %v2800_v8 = vpop.f32.mrf.mxu3  ;;  %v2152_v13 = vadd.f32 %v7078_v61, %v2151_v7  ;;  %v4575_v5 = vor.u32 %v5044_v57, %v4572_v58  ;;  %v5049_v57 = vld [vmem:[%s8171_s0 + $0x684] sm:$0xf0]  ;;  %v4920_v58 = vld [vmem:[%s8171_s0 + $0x284] sm:$0xf] }
 0x266   :  { %v1833_v9 = vpop.f32.mrf.mxu0 }
 0x267   :  { %v1834_v11 = vadd.f32 %v7078_v61, %v1833_v9  ;;  %v2482_v12 = vpop.f32.mrf.mxu1  ;;  %v2801_v27 = vadd.f32 %v2800_v8, %v2152_v13 }
 0x269   :  { %v2483_v14 = vadd.f32 %v2482_v12, %v1834_v11  ;;  %v3164_v37 = vmax.f32 %v2801_v27, 0.0 }
 0x26b   :  { %v3037_v22 = vmax.f32 %v2483_v14, 0.0 }
 0x26c   :  { %v2153_v25 = vpop.f32.mrf.mxu2 }
 0x26d   :  { %v5255_v28 = vpack.c.bf16 %v3037_v22, %v3036_v21  ;;  %v2154_v29 = vadd.f32 %v7078_v61, %v2153_v25  ;;  %v2802_v30 = vpop.f32.mrf.mxu3  ;;  %v4919_v21 = vld [vmem:[%s8171_s0 + $0x274] sm:$0xf0]  ;;  %v4578_v22 = vld [vmem:[%s8171_s0 + $0x670] sm:$0xf]  ;;  %v4068_v25 = vld [vmem:[%s8171_s0 + $0x278] sm:$0xf0] }
 0x26e   :  { %v1836_v32 = vpop.f32.mrf.mxu0 }
 0x26f   :  { %5779 = vst [vmem:[%s8172_s3 + $0xe0] sm:$0xff] %v5255_v28   ;;  %v2803_v35 = vadd.f32 %v2802_v30, %v2154_v29  ;;  %v2485_v36 = vpop.f32.mrf.mxu1  ;;  %v1837_v40 = vadd.f32 %v7078_v61, %v1836_v32  ;;  %v5046_v28 = vld [vmem:[%s8171_s0 + $0x674] sm:$0xf]  ;;  %v4580_v29 = vld [vmem:[%s8171_s0 + $0x678] sm:$0xf0] }
 0x271   :  { %v3165_v38 = vmax.f32 %v2803_v35, 0.0  ;;  %1875 = vmatmul.bf16.gmra.mxu0 %v4051_v26  ;;  %2195 = vmatmul.bf16.gmra.mxu2 %v4563_v31  ;;  %v2486_v44 = vadd.f32 %v2485_v36, %v1837_v40  ;;  %v4067_v31 = vor.u32 %v4919_v21, %v4066_v20  ;;  %v4579_v36 = vor.u32 %v5047_v23, %v4578_v22 }
 0x272   :  { %2524 = vmatmul.bf16.gmra.mxu1 %v4055_v33  ;;  %2844 = vmatmul.bf16.gmra.mxu3 %v4567_v34 }
 0x273   :  { %v5575_v39 = vpack.c.bf16 %v3165_v38, %v3164_v37  ;;  %v3038_v55 = vmax.f32 %v2486_v44, 0.0  ;;  %v4071_v38 = vor.u32 %v4918_v24, %v4068_v25  ;;  %v4082_v25 = vld [vmem:[%s8171_s0 + $0x290] sm:$0xf] }
 0x274   :  { %v2156_v41 = vpop.f32.mrf.mxu2 }
 0x275   :  { %5843 = vst [vmem:[%s8172_s3 + $0x2e0] sm:$0xff] %v5575_v39   ;;  %v2805_v42 = vpop.f32.mrf.mxu3  ;;  %v2157_v47 = vadd.f32 %v7078_v61, %v2156_v41  ;;  %v4583_v39 = vor.u32 %v5046_v28, %v4580_v29  ;;  %v5051_v28 = vld [vmem:[%s8171_s0 + $0x694] sm:$0xf0]  ;;  %v4922_v29 = vld [vmem:[%s8171_s0 + $0x294] sm:$0xf] }
 0x276   :  { %v1838_v43 = vpop.f32.mrf.mxu0 }
 0x277   :  { %v1839_v45 = vadd.f32 %v7078_v61, %v1838_v43  ;;  %v2487_v46 = vpop.f32.mrf.mxu1  ;;  %v2806_v62 = vadd.f32 %v2805_v42, %v2157_v47 }
 0x279   :  { %v2488_v48 = vadd.f32 %v2487_v46, %v1839_v45  ;;  %v3166_v8 = vmax.f32 %v2806_v62, 0.0 }
 0x27b   :  { %v3039_v56 = vmax.f32 %v2488_v48, 0.0 }
 0x27c   :  { %v2158_v59 = vpop.f32.mrf.mxu2 }
 0x27d   :  { %v5260_v63 = vpack.c.bf16 %v3039_v56, %v3038_v55  ;;  %v2159_v0 = vadd.f32 %v7078_v61, %v2158_v59  ;;  %v2807_v1 = vpop.f32.mrf.mxu3  ;;  %v4921_v55 = vld [vmem:[%s8171_s0 + $0x284] sm:$0xf0]  ;;  %v4586_v56 = vld [vmem:[%s8171_s0 + $0x680] sm:$0xf]  ;;  %v4076_v59 = vld [vmem:[%s8171_s0 + $0x288] sm:$0xf0] }
 0x27e   :  { %v1841_v3 = vpop.f32.mrf.mxu0 }
 0x27f   :  { %5780 = vst [vmem:[%s8172_s3 + $0xe8] sm:$0xff] %v5260_v63   ;;  %v2808_v6 = vadd.f32 %v2807_v1, %v2159_v0  ;;  %v2490_v7 = vpop.f32.mrf.mxu1  ;;  %v1842_v11 = vadd.f32 %v7078_v61, %v1841_v3  ;;  %v5048_v63 = vld [vmem:[%s8171_s0 + $0x684] sm:$0xf]  ;;  %v4588_v0 = vld [vmem:[%s8171_s0 + $0x688] sm:$0xf0] }
 0x281   :  { %v3167_v9 = vmax.f32 %v2808_v6, 0.0  ;;  %1880 = vmatmul.bf16.gmra.mxu0 %v4059_v60  ;;  %2200 = vmatmul.bf16.gmra.mxu2 %v4571_v2  ;;  %v2491_v15 = vadd.f32 %v2490_v7, %v1842_v11  ;;  %v4075_v2 = vor.u32 %v4921_v55, %v4074_v54  ;;  %v4587_v7 = vor.u32 %v5049_v57, %v4586_v56 }
 0x282   :  { %2529 = vmatmul.bf16.gmra.mxu1 %v4063_v4  ;;  %2849 = vmatmul.bf16.gmra.mxu3 %v4575_v5 }
 0x283   :  { %v5580_v10 = vpack.c.bf16 %v3167_v9, %v3166_v8  ;;  %v3040_v26 = vmax.f32 %v2491_v15, 0.0  ;;  %v4079_v9 = vor.u32 %v4920_v58, %v4076_v59  ;;  %v4090_v59 = vld [vmem:[%s8171_s0 + $0x2a0] sm:$0xf] }
 0x284   :  { %v2161_v12 = vpop.f32.mrf.mxu2 }
 0x285   :  { %5844 = vst [vmem:[%s8172_s3 + $0x2e8] sm:$0xff] %v5580_v10   ;;  %v2810_v13 = vpop.f32.mrf.mxu3  ;;  %v2162_v18 = vadd.f32 %v7078_v61, %v2161_v12  ;;  %v4591_v10 = vor.u32 %v5048_v63, %v4588_v0  ;;  %v5053_v63 = vld [vmem:[%s8171_s0 + $0x6a4] sm:$0xf0]  ;;  %v4924_v0 = vld [vmem:[%s8171_s0 + $0x2a4] sm:$0xf] }
 0x286   :  { %v1843_v14 = vpop.f32.mrf.mxu0 }
 0x287   :  { %v1844_v16 = vadd.f32 %v7078_v61, %v1843_v14  ;;  %v2492_v17 = vpop.f32.mrf.mxu1  ;;  %v2811_v32 = vadd.f32 %v2810_v13, %v2162_v18 }
 0x289   :  { %v2493_v19 = vadd.f32 %v2492_v17, %v1844_v16  ;;  %v3168_v42 = vmax.f32 %v2811_v32, 0.0 }
 0x28b   :  { %v3041_v27 = vmax.f32 %v2493_v19, 0.0 }
 0x28c   :  { %v2163_v30 = vpop.f32.mrf.mxu2 }
 0x28d   :  { %v5265_v33 = vpack.c.bf16 %v3041_v27, %v3040_v26  ;;  %v2164_v34 = vadd.f32 %v7078_v61, %v2163_v30  ;;  %v2812_v35 = vpop.f32.mrf.mxu3  ;;  %v4923_v26 = vld [vmem:[%s8171_s0 + $0x294] sm:$0xf0]  ;;  %v4594_v27 = vld [vmem:[%s8171_s0 + $0x690] sm:$0xf]  ;;  %v4084_v30 = vld [vmem:[%s8171_s0 + $0x298] sm:$0xf0] }
 0x28e   :  { %v1846_v37 = vpop.f32.mrf.mxu0 }
 0x28f   :  { %5781 = vst [vmem:[%s8172_s3 + $0xf0] sm:$0xff] %v5265_v33   ;;  %v2813_v40 = vadd.f32 %v2812_v35, %v2164_v34  ;;  %v2495_v41 = vpop.f32.mrf.mxu1  ;;  %v1847_v45 = vadd.f32 %v7078_v61, %v1846_v37  ;;  %v5050_v33 = vld [vmem:[%s8171_s0 + $0x694] sm:$0xf]  ;;  %v4596_v34 = vld [vmem:[%s8171_s0 + $0x698] sm:$0xf0] }
 0x291   :  { %v3169_v43 = vmax.f32 %v2813_v40, 0.0  ;;  %1885 = vmatmul.bf16.gmra.mxu0 %v4067_v31  ;;  %2205 = vmatmul.bf16.gmra.mxu2 %v4579_v36  ;;  %v2496_v49 = vadd.f32 %v2495_v41, %v1847_v45  ;;  %v4083_v36 = vor.u32 %v4923_v26, %v4082_v25  ;;  %v4595_v41 = vor.u32 %v5051_v28, %v4594_v27 }
 0x292   :  { %2534 = vmatmul.bf16.gmra.mxu1 %v4071_v38  ;;  %2854 = vmatmul.bf16.gmra.mxu3 %v4583_v39 }
 0x293   :  { %v5585_v44 = vpack.c.bf16 %v3169_v43, %v3168_v42  ;;  %v3042_v60 = vmax.f32 %v2496_v49, 0.0  ;;  %v4087_v43 = vor.u32 %v4922_v29, %v4084_v30  ;;  %v4098_v30 = vld [vmem:[%s8171_s0 + $0x2b0] sm:$0xf] }
 0x294   :  { %v2166_v46 = vpop.f32.mrf.mxu2 }
 0x295   :  { %5845 = vst [vmem:[%s8172_s3 + $0x2f0] sm:$0xff] %v5585_v44   ;;  %v2815_v47 = vpop.f32.mrf.mxu3  ;;  %v2167_v52 = vadd.f32 %v7078_v61, %v2166_v46  ;;  %v4599_v44 = vor.u32 %v5050_v33, %v4596_v34  ;;  %v5055_v33 = vld [vmem:[%s8171_s0 + $0x6b4] sm:$0xf0]  ;;  %v4926_v34 = vld [vmem:[%s8171_s0 + $0x2b4] sm:$0xf] }
 0x296   :  { %v1848_v48 = vpop.f32.mrf.mxu0 }
 0x297   :  { %v1849_v50 = vadd.f32 %v7078_v61, %v1848_v48  ;;  %v2497_v51 = vpop.f32.mrf.mxu1  ;;  %v2816_v3 = vadd.f32 %v2815_v47, %v2167_v52 }
 0x299   :  { %v2498_v53 = vadd.f32 %v2497_v51, %v1849_v50  ;;  %v3170_v13 = vmax.f32 %v2816_v3, 0.0 }
 0x29b   :  { %v3043_v62 = vmax.f32 %v2498_v53, 0.0 }
 0x29c   :  { %v2168_v1 = vpop.f32.mrf.mxu2 }
 0x29d   :  { %v5270_v4 = vpack.c.bf16 %v3043_v62, %v3042_v60  ;;  %v2169_v5 = vadd.f32 %v7078_v61, %v2168_v1  ;;  %v2817_v6 = vpop.f32.mrf.mxu3  ;;  %v4925_v60 = vld [vmem:[%s8171_s0 + $0x2a4] sm:$0xf0]  ;;  %v4602_v62 = vld [vmem:[%s8171_s0 + $0x6a0] sm:$0xf]  ;;  %v4092_v1 = vld [vmem:[%s8171_s0 + $0x2a8] sm:$0xf0] }
 0x29e   :  { %v1851_v8 = vpop.f32.mrf.mxu0 }
 0x29f   :  { %5782 = vst [vmem:[%s8172_s3 + $0xf8] sm:$0xff] %v5270_v4   ;;  %v2818_v11 = vadd.f32 %v2817_v6, %v2169_v5  ;;  %v2500_v12 = vpop.f32.mrf.mxu1  ;;  %v1852_v16 = vadd.f32 %v7078_v61, %v1851_v8  ;;  %v5052_v4 = vld [vmem:[%s8171_s0 + $0x6a4] sm:$0xf]  ;;  %v4604_v5 = vld [vmem:[%s8171_s0 + $0x6a8] sm:$0xf0] }
 0x2a1   :  { %v3171_v14 = vmax.f32 %v2818_v11, 0.0  ;;  %1890 = vmatmul.bf16.gmra.mxu0 %v4075_v2  ;;  %2210 = vmatmul.bf16.gmra.mxu2 %v4587_v7  ;;  %v2501_v20 = vadd.f32 %v2500_v12, %v1852_v16  ;;  %v4091_v7 = vor.u32 %v4925_v60, %v4090_v59  ;;  %v4603_v12 = vor.u32 %v5053_v63, %v4602_v62 }
 0x2a2   :  { %2539 = vmatmul.bf16.gmra.mxu1 %v4079_v9  ;;  %2859 = vmatmul.bf16.gmra.mxu3 %v4591_v10 }
 0x2a3   :  { %v5590_v15 = vpack.c.bf16 %v3171_v14, %v3170_v13  ;;  %v3044_v31 = vmax.f32 %v2501_v20, 0.0  ;;  %v4095_v14 = vor.u32 %v4924_v0, %v4092_v1  ;;  %v4106_v1 = vld [vmem:[%s8171_s0 + $0x2c0] sm:$0xf] }
 0x2a4   :  { %v2171_v17 = vpop.f32.mrf.mxu2 }
 0x2a5   :  { %5846 = vst [vmem:[%s8172_s3 + $0x2f8] sm:$0xff] %v5590_v15   ;;  %v2820_v18 = vpop.f32.mrf.mxu3  ;;  %v2172_v23 = vadd.f32 %v7078_v61, %v2171_v17  ;;  %v4607_v15 = vor.u32 %v5052_v4, %v4604_v5  ;;  %v5057_v4 = vld [vmem:[%s8171_s0 + $0x6c4] sm:$0xf0]  ;;  %v4928_v5 = vld [vmem:[%s8171_s0 + $0x2c4] sm:$0xf] }
 0x2a6   :  { %v1853_v19 = vpop.f32.mrf.mxu0 }
 0x2a7   :  { %v1854_v21 = vadd.f32 %v7078_v61, %v1853_v19  ;;  %v2502_v22 = vpop.f32.mrf.mxu1  ;;  %v2821_v37 = vadd.f32 %v2820_v18, %v2172_v23 }
 0x2a9   :  { %v2503_v24 = vadd.f32 %v2502_v22, %v1854_v21  ;;  %v3172_v47 = vmax.f32 %v2821_v37, 0.0 }
 0x2ab   :  { %v3045_v32 = vmax.f32 %v2503_v24, 0.0 }
 0x2ac   :  { %v2173_v35 = vpop.f32.mrf.mxu2 }
 0x2ad   :  { %v5275_v38 = vpack.c.bf16 %v3045_v32, %v3044_v31  ;;  %v2174_v39 = vadd.f32 %v7078_v61, %v2173_v35  ;;  %v2822_v40 = vpop.f32.mrf.mxu3  ;;  %v4927_v31 = vld [vmem:[%s8171_s0 + $0x2b4] sm:$0xf0]  ;;  %v4610_v32 = vld [vmem:[%s8171_s0 + $0x6b0] sm:$0xf]  ;;  %v4100_v35 = vld [vmem:[%s8171_s0 + $0x2b8] sm:$0xf0] }
 0x2ae   :  { %v1856_v42 = vpop.f32.mrf.mxu0 }
 0x2af   :  { %5783 = vst [vmem:[%s8172_s3 + $0x100] sm:$0xff] %v5275_v38   ;;  %v2823_v45 = vadd.f32 %v2822_v40, %v2174_v39  ;;  %v2505_v46 = vpop.f32.mrf.mxu1  ;;  %v1857_v50 = vadd.f32 %v7078_v61, %v1856_v42  ;;  %v5054_v38 = vld [vmem:[%s8171_s0 + $0x6b4] sm:$0xf]  ;;  %v4612_v39 = vld [vmem:[%s8171_s0 + $0x6b8] sm:$0xf0] }
 0x2b1   :  { %v3173_v48 = vmax.f32 %v2823_v45, 0.0  ;;  %1895 = vmatmul.bf16.gmra.mxu0 %v4083_v36  ;;  %2215 = vmatmul.bf16.gmra.mxu2 %v4595_v41  ;;  %v2506_v54 = vadd.f32 %v2505_v46, %v1857_v50  ;;  %v4099_v41 = vor.u32 %v4927_v31, %v4098_v30  ;;  %v4611_v46 = vor.u32 %v5055_v33, %v4610_v32 }
 0x2b2   :  { %2544 = vmatmul.bf16.gmra.mxu1 %v4087_v43  ;;  %2864 = vmatmul.bf16.gmra.mxu3 %v4599_v44 }
 0x2b3   :  { %v5595_v49 = vpack.c.bf16 %v3173_v48, %v3172_v47  ;;  %v3046_v2 = vmax.f32 %v2506_v54, 0.0  ;;  %v4103_v48 = vor.u32 %v4926_v34, %v4100_v35  ;;  %v4114_v35 = vld [vmem:[%s8171_s0 + $0x2d0] sm:$0xf] }
 0x2b4   :  { %v2176_v51 = vpop.f32.mrf.mxu2 }
 0x2b5   :  { %5847 = vst [vmem:[%s8172_s3 + $0x300] sm:$0xff] %v5595_v49   ;;  %v2825_v52 = vpop.f32.mrf.mxu3  ;;  %v2177_v57 = vadd.f32 %v7078_v61, %v2176_v51  ;;  %v4615_v49 = vor.u32 %v5054_v38, %v4612_v39  ;;  %v5059_v38 = vld [vmem:[%s8171_s0 + $0x6d4] sm:$0xf0]  ;;  %v4930_v39 = vld [vmem:[%s8171_s0 + $0x2d4] sm:$0xf] }
 0x2b6   :  { %v1858_v53 = vpop.f32.mrf.mxu0 }
 0x2b7   :  { %v1859_v55 = vadd.f32 %v7078_v61, %v1858_v53  ;;  %v2507_v56 = vpop.f32.mrf.mxu1  ;;  %v2826_v8 = vadd.f32 %v2825_v52, %v2177_v57 }
 0x2b9   :  { %v2508_v58 = vadd.f32 %v2507_v56, %v1859_v55  ;;  %v3174_v18 = vmax.f32 %v2826_v8, 0.0 }
 0x2bb   :  { %v3047_v3 = vmax.f32 %v2508_v58, 0.0 }
 0x2bc   :  { %v2178_v6 = vpop.f32.mrf.mxu2 }
 0x2bd   :  { %v5280_v9 = vpack.c.bf16 %v3047_v3, %v3046_v2  ;;  %v2179_v10 = vadd.f32 %v7078_v61, %v2178_v6  ;;  %v2827_v11 = vpop.f32.mrf.mxu3  ;;  %v4929_v2 = vld [vmem:[%s8171_s0 + $0x2c4] sm:$0xf0]  ;;  %v4618_v3 = vld [vmem:[%s8171_s0 + $0x6c0] sm:$0xf]  ;;  %v4108_v6 = vld [vmem:[%s8171_s0 + $0x2c8] sm:$0xf0] }
 0x2be   :  { %v1861_v13 = vpop.f32.mrf.mxu0 }
 0x2bf   :  { %5784 = vst [vmem:[%s8172_s3 + $0x108] sm:$0xff] %v5280_v9   ;;  %v2828_v16 = vadd.f32 %v2827_v11, %v2179_v10  ;;  %v2510_v17 = vpop.f32.mrf.mxu1  ;;  %v1862_v21 = vadd.f32 %v7078_v61, %v1861_v13  ;;  %v5056_v9 = vld [vmem:[%s8171_s0 + $0x6c4] sm:$0xf]  ;;  %v4620_v10 = vld [vmem:[%s8171_s0 + $0x6c8] sm:$0xf0] }
 0x2c1   :  { %v3175_v19 = vmax.f32 %v2828_v16, 0.0  ;;  %1900 = vmatmul.bf16.gmra.mxu0 %v4091_v7  ;;  %2220 = vmatmul.bf16.gmra.mxu2 %v4603_v12  ;;  %v2511_v25 = vadd.f32 %v2510_v17, %v1862_v21  ;;  %v4107_v12 = vor.u32 %v4929_v2, %v4106_v1  ;;  %v4619_v17 = vor.u32 %v5057_v4, %v4618_v3 }
 0x2c2   :  { %2549 = vmatmul.bf16.gmra.mxu1 %v4095_v14  ;;  %2869 = vmatmul.bf16.gmra.mxu3 %v4607_v15 }
 0x2c3   :  { %v5600_v20 = vpack.c.bf16 %v3175_v19, %v3174_v18  ;;  %v3048_v36 = vmax.f32 %v2511_v25, 0.0  ;;  %v4111_v19 = vor.u32 %v4928_v5, %v4108_v6  ;;  %v4122_v6 = vld [vmem:[%s8171_s0 + $0x2e0] sm:$0xf] }
 0x2c4   :  { %v2181_v22 = vpop.f32.mrf.mxu2 }
 0x2c5   :  { %5848 = vst [vmem:[%s8172_s3 + $0x308] sm:$0xff] %v5600_v20   ;;  %v2830_v23 = vpop.f32.mrf.mxu3  ;;  %v2182_v28 = vadd.f32 %v7078_v61, %v2181_v22  ;;  %v4623_v20 = vor.u32 %v5056_v9, %v4620_v10  ;;  %v5061_v9 = vld [vmem:[%s8171_s0 + $0x6e4] sm:$0xf0]  ;;  %v4932_v10 = vld [vmem:[%s8171_s0 + $0x2e4] sm:$0xf] }
 0x2c6   :  { %v1863_v24 = vpop.f32.mrf.mxu0 }
 0x2c7   :  { %v1864_v26 = vadd.f32 %v7078_v61, %v1863_v24  ;;  %v2512_v27 = vpop.f32.mrf.mxu1  ;;  %v2831_v42 = vadd.f32 %v2830_v23, %v2182_v28 }
 0x2c9   :  { %v2513_v29 = vadd.f32 %v2512_v27, %v1864_v26  ;;  %v3176_v52 = vmax.f32 %v2831_v42, 0.0 }
 0x2cb   :  { %v3049_v37 = vmax.f32 %v2513_v29, 0.0 }
 0x2cc   :  { %v2183_v40 = vpop.f32.mrf.mxu2 }
 0x2cd   :  { %v5285_v43 = vpack.c.bf16 %v3049_v37, %v3048_v36  ;;  %v2184_v44 = vadd.f32 %v7078_v61, %v2183_v40  ;;  %v2832_v45 = vpop.f32.mrf.mxu3  ;;  %v4931_v36 = vld [vmem:[%s8171_s0 + $0x2d4] sm:$0xf0]  ;;  %v4626_v37 = vld [vmem:[%s8171_s0 + $0x6d0] sm:$0xf]  ;;  %v4116_v40 = vld [vmem:[%s8171_s0 + $0x2d8] sm:$0xf0] }
 0x2ce   :  { %v1866_v47 = vpop.f32.mrf.mxu0 }
 0x2cf   :  { %5785 = vst [vmem:[%s8172_s3 + $0x110] sm:$0xff] %v5285_v43   ;;  %v2833_v50 = vadd.f32 %v2832_v45, %v2184_v44  ;;  %v2515_v51 = vpop.f32.mrf.mxu1  ;;  %v1867_v55 = vadd.f32 %v7078_v61, %v1866_v47  ;;  %v5058_v43 = vld [vmem:[%s8171_s0 + $0x6d4] sm:$0xf]  ;;  %v4628_v44 = vld [vmem:[%s8171_s0 + $0x6d8] sm:$0xf0] }
 0x2d1   :  { %v3177_v53 = vmax.f32 %v2833_v50, 0.0  ;;  %1905 = vmatmul.bf16.gmra.mxu0 %v4099_v41  ;;  %2225 = vmatmul.bf16.gmra.mxu2 %v4611_v46  ;;  %v2516_v59 = vadd.f32 %v2515_v51, %v1867_v55  ;;  %v4115_v46 = vor.u32 %v4931_v36, %v4114_v35  ;;  %v4627_v51 = vor.u32 %v5059_v38, %v4626_v37 }
 0x2d2   :  { %2554 = vmatmul.bf16.gmra.mxu1 %v4103_v48  ;;  %2874 = vmatmul.bf16.gmra.mxu3 %v4615_v49 }
 0x2d3   :  { %v5605_v54 = vpack.c.bf16 %v3177_v53, %v3176_v52  ;;  %v3050_v7 = vmax.f32 %v2516_v59, 0.0  ;;  %v4119_v53 = vor.u32 %v4930_v39, %v4116_v40  ;;  %v4130_v40 = vld [vmem:[%s8171_s0 + $0x2f0] sm:$0xf] }
 0x2d4   :  { %v2186_v56 = vpop.f32.mrf.mxu2 }
 0x2d5   :  { %5849 = vst [vmem:[%s8172_s3 + $0x310] sm:$0xff] %v5605_v54   ;;  %v2835_v57 = vpop.f32.mrf.mxu3  ;;  %v2187_v63 = vadd.f32 %v7078_v61, %v2186_v56  ;;  %v4631_v54 = vor.u32 %v5058_v43, %v4628_v44  ;;  %v5063_v43 = vld [vmem:[%s8171_s0 + $0x6f4] sm:$0xf0]  ;;  %v4934_v44 = vld [vmem:[%s8171_s0 + $0x2f4] sm:$0xf] }
 0x2d6   :  { %v1868_v58 = vpop.f32.mrf.mxu0 }
 0x2d7   :  { %v1869_v60 = vadd.f32 %v7078_v61, %v1868_v58  ;;  %v2517_v62 = vpop.f32.mrf.mxu1  ;;  %v2836_v13 = vadd.f32 %v2835_v57, %v2187_v63 }
 0x2d9   :  { %v2518_v0 = vadd.f32 %v2517_v62, %v1869_v60  ;;  %v3178_v23 = vmax.f32 %v2836_v13, 0.0 }
 0x2db   :  { %v3051_v8 = vmax.f32 %v2518_v0, 0.0 }
 0x2dc   :  { %v2188_v11 = vpop.f32.mrf.mxu2 }
 0x2dd   :  { %v5290_v14 = vpack.c.bf16 %v3051_v8, %v3050_v7  ;;  %v2189_v15 = vadd.f32 %v7078_v61, %v2188_v11  ;;  %v2837_v16 = vpop.f32.mrf.mxu3  ;;  %v4933_v7 = vld [vmem:[%s8171_s0 + $0x2e4] sm:$0xf0]  ;;  %v4634_v8 = vld [vmem:[%s8171_s0 + $0x6e0] sm:$0xf]  ;;  %v4124_v11 = vld [vmem:[%s8171_s0 + $0x2e8] sm:$0xf0] }
 0x2de   :  { %v1871_v18 = vpop.f32.mrf.mxu0 }
 0x2df   :  { %5786 = vst [vmem:[%s8172_s3 + $0x118] sm:$0xff] %v5290_v14   ;;  %v2838_v21 = vadd.f32 %v2837_v16, %v2189_v15  ;;  %v2520_v22 = vpop.f32.mrf.mxu1  ;;  %v1872_v26 = vadd.f32 %v7078_v61, %v1871_v18  ;;  %v5060_v14 = vld [vmem:[%s8171_s0 + $0x6e4] sm:$0xf]  ;;  %v4636_v15 = vld [vmem:[%s8171_s0 + $0x6e8] sm:$0xf0] }
 0x2e1   :  { %v3179_v24 = vmax.f32 %v2838_v21, 0.0  ;;  %1910 = vmatmul.bf16.gmra.mxu0 %v4107_v12  ;;  %2230 = vmatmul.bf16.gmra.mxu2 %v4619_v17  ;;  %v2521_v30 = vadd.f32 %v2520_v22, %v1872_v26  ;;  %v4123_v17 = vor.u32 %v4933_v7, %v4122_v6  ;;  %v4635_v22 = vor.u32 %v5061_v9, %v4634_v8 }
 0x2e2   :  { %2559 = vmatmul.bf16.gmra.mxu1 %v4111_v19  ;;  %2879 = vmatmul.bf16.gmra.mxu3 %v4623_v20 }
 0x2e3   :  { %v5610_v25 = vpack.c.bf16 %v3179_v24, %v3178_v23  ;;  %v3052_v41 = vmax.f32 %v2521_v30, 0.0  ;;  %v4127_v24 = vor.u32 %v4932_v10, %v4124_v11  ;;  %v4138_v11 = vld [vmem:[%s8171_s0 + $0x300] sm:$0xf] }
 0x2e4   :  { %v2191_v27 = vpop.f32.mrf.mxu2 }
 0x2e5   :  { %5850 = vst [vmem:[%s8172_s3 + $0x318] sm:$0xff] %v5610_v25   ;;  %v2840_v28 = vpop.f32.mrf.mxu3  ;;  %v2192_v33 = vadd.f32 %v7078_v61, %v2191_v27  ;;  %v4639_v25 = vor.u32 %v5060_v14, %v4636_v15  ;;  %v5065_v14 = vld [vmem:[%s8171_s0 + $0x704] sm:$0xf0]  ;;  %v4936_v15 = vld [vmem:[%s8171_s0 + $0x304] sm:$0xf] }
 0x2e6   :  { %v1873_v29 = vpop.f32.mrf.mxu0 }
 0x2e7   :  { %v1874_v31 = vadd.f32 %v7078_v61, %v1873_v29  ;;  %v2522_v32 = vpop.f32.mrf.mxu1  ;;  %v2841_v47 = vadd.f32 %v2840_v28, %v2192_v33 }
 0x2e9   :  { %v2523_v34 = vadd.f32 %v2522_v32, %v1874_v31  ;;  %v3180_v57 = vmax.f32 %v2841_v47, 0.0 }
 0x2eb   :  { %v3053_v42 = vmax.f32 %v2523_v34, 0.0 }
 0x2ec   :  { %v2193_v45 = vpop.f32.mrf.mxu2 }
 0x2ed   :  { %v5295_v48 = vpack.c.bf16 %v3053_v42, %v3052_v41  ;;  %v2194_v49 = vadd.f32 %v7078_v61, %v2193_v45  ;;  %v2842_v50 = vpop.f32.mrf.mxu3  ;;  %v4935_v41 = vld [vmem:[%s8171_s0 + $0x2f4] sm:$0xf0]  ;;  %v4642_v42 = vld [vmem:[%s8171_s0 + $0x6f0] sm:$0xf]  ;;  %v4132_v45 = vld [vmem:[%s8171_s0 + $0x2f8] sm:$0xf0] }
 0x2ee   :  { %v1876_v52 = vpop.f32.mrf.mxu0 }
 0x2ef   :  { %5787 = vst [vmem:[%s8172_s3 + $0x120] sm:$0xff] %v5295_v48   ;;  %v2843_v55 = vadd.f32 %v2842_v50, %v2194_v49  ;;  %v2525_v56 = vpop.f32.mrf.mxu1  ;;  %v1877_v60 = vadd.f32 %v7078_v61, %v1876_v52  ;;  %v5062_v48 = vld [vmem:[%s8171_s0 + $0x6f4] sm:$0xf]  ;;  %v4644_v49 = vld [vmem:[%s8171_s0 + $0x6f8] sm:$0xf0] }
 0x2f1   :  { %v3181_v58 = vmax.f32 %v2843_v55, 0.0  ;;  %1915 = vmatmul.bf16.gmra.mxu0 %v4115_v46  ;;  %2235 = vmatmul.bf16.gmra.mxu2 %v4627_v51  ;;  %v2526_v1 = vadd.f32 %v2525_v56, %v1877_v60  ;;  %v4131_v51 = vor.u32 %v4935_v41, %v4130_v40  ;;  %v4643_v56 = vor.u32 %v5063_v43, %v4642_v42 }
 0x2f2   :  { %2564 = vmatmul.bf16.gmra.mxu1 %v4119_v53  ;;  %2884 = vmatmul.bf16.gmra.mxu3 %v4631_v54 }
 0x2f3   :  { %v5615_v59 = vpack.c.bf16 %v3181_v58, %v3180_v57  ;;  %v3054_v12 = vmax.f32 %v2526_v1, 0.0  ;;  %v4135_v58 = vor.u32 %v4934_v44, %v4132_v45  ;;  %v4146_v45 = vld [vmem:[%s8171_s0 + $0x310] sm:$0xf] }
 0x2f4   :  { %v2196_v62 = vpop.f32.mrf.mxu2 }
 0x2f5   :  { %5851 = vst [vmem:[%s8172_s3 + $0x320] sm:$0xff] %v5615_v59   ;;  %v2845_v63 = vpop.f32.mrf.mxu3  ;;  %v2197_v4 = vadd.f32 %v7078_v61, %v2196_v62  ;;  %v4647_v59 = vor.u32 %v5062_v48, %v4644_v49  ;;  %v5067_v48 = vld [vmem:[%s8171_s0 + $0x714] sm:$0xf0]  ;;  %v4938_v49 = vld [vmem:[%s8171_s0 + $0x314] sm:$0xf] }
 0x2f6   :  { %v1878_v0 = vpop.f32.mrf.mxu0 }
 0x2f7   :  { %v1879_v2 = vadd.f32 %v7078_v61, %v1878_v0  ;;  %v2527_v3 = vpop.f32.mrf.mxu1  ;;  %v2846_v18 = vadd.f32 %v2845_v63, %v2197_v4 }
 0x2f9   :  { %v2528_v5 = vadd.f32 %v2527_v3, %v1879_v2  ;;  %v3182_v28 = vmax.f32 %v2846_v18, 0.0 }
 0x2fb   :  { %v3055_v13 = vmax.f32 %v2528_v5, 0.0 }
 0x2fc   :  { %v2198_v16 = vpop.f32.mrf.mxu2 }
 0x2fd   :  { %v5300_v19 = vpack.c.bf16 %v3055_v13, %v3054_v12  ;;  %v2199_v20 = vadd.f32 %v7078_v61, %v2198_v16  ;;  %v2847_v21 = vpop.f32.mrf.mxu3  ;;  %v4937_v12 = vld [vmem:[%s8171_s0 + $0x304] sm:$0xf0]  ;;  %v4650_v13 = vld [vmem:[%s8171_s0 + $0x700] sm:$0xf]  ;;  %v4140_v16 = vld [vmem:[%s8171_s0 + $0x308] sm:$0xf0] }
 0x2fe   :  { %v1881_v23 = vpop.f32.mrf.mxu0 }
 0x2ff   :  { %5788 = vst [vmem:[%s8172_s3 + $0x128] sm:$0xff] %v5300_v19   ;;  %v2848_v26 = vadd.f32 %v2847_v21, %v2199_v20  ;;  %v2530_v27 = vpop.f32.mrf.mxu1  ;;  %v1882_v31 = vadd.f32 %v7078_v61, %v1881_v23  ;;  %v5064_v19 = vld [vmem:[%s8171_s0 + $0x704] sm:$0xf]  ;;  %v4652_v20 = vld [vmem:[%s8171_s0 + $0x708] sm:$0xf0] }
 0x301   :  { %v3183_v29 = vmax.f32 %v2848_v26, 0.0  ;;  %1920 = vmatmul.bf16.gmra.mxu0 %v4123_v17  ;;  %2240 = vmatmul.bf16.gmra.mxu2 %v4635_v22  ;;  %v2531_v35 = vadd.f32 %v2530_v27, %v1882_v31  ;;  %v4139_v22 = vor.u32 %v4937_v12, %v4138_v11  ;;  %v4651_v27 = vor.u32 %v5065_v14, %v4650_v13 }
 0x302   :  { %2569 = vmatmul.bf16.gmra.mxu1 %v4127_v24  ;;  %2889 = vmatmul.bf16.gmra.mxu3 %v4639_v25 }
 0x303   :  { %v5620_v30 = vpack.c.bf16 %v3183_v29, %v3182_v28  ;;  %v3056_v46 = vmax.f32 %v2531_v35, 0.0  ;;  %v4143_v29 = vor.u32 %v4936_v15, %v4140_v16  ;;  %v4154_v16 = vld [vmem:[%s8171_s0 + $0x320] sm:$0xf] }
 0x304   :  { %v2201_v32 = vpop.f32.mrf.mxu2 }
 0x305   :  { %5852 = vst [vmem:[%s8172_s3 + $0x328] sm:$0xff] %v5620_v30   ;;  %v2850_v33 = vpop.f32.mrf.mxu3  ;;  %v2202_v38 = vadd.f32 %v7078_v61, %v2201_v32  ;;  %v4655_v30 = vor.u32 %v5064_v19, %v4652_v20  ;;  %v5069_v19 = vld [vmem:[%s8171_s0 + $0x724] sm:$0xf0]  ;;  %v4940_v20 = vld [vmem:[%s8171_s0 + $0x324] sm:$0xf] }
 0x306   :  { %v1883_v34 = vpop.f32.mrf.mxu0 }
 0x307   :  { %v1884_v36 = vadd.f32 %v7078_v61, %v1883_v34  ;;  %v2532_v37 = vpop.f32.mrf.mxu1  ;;  %v2851_v52 = vadd.f32 %v2850_v33, %v2202_v38 }
 0x309   :  { %v2533_v39 = vadd.f32 %v2532_v37, %v1884_v36  ;;  %v3184_v63 = vmax.f32 %v2851_v52, 0.0 }
 0x30b   :  { %v3057_v47 = vmax.f32 %v2533_v39, 0.0 }
 0x30c   :  { %v2203_v50 = vpop.f32.mrf.mxu2 }
 0x30d   :  { %v5305_v53 = vpack.c.bf16 %v3057_v47, %v3056_v46  ;;  %v2204_v54 = vadd.f32 %v7078_v61, %v2203_v50  ;;  %v2852_v55 = vpop.f32.mrf.mxu3  ;;  %v7525_v61 = vld [vmem:[%s8170_s2] ss:$0 sm:$0xff]  ;;  %v4939_v46 = vld [vmem:[%s8171_s0 + $0x314] sm:$0xf0]  ;;  %v4658_v47 = vld [vmem:[%s8171_s0 + $0x710] sm:$0xf] }
 0x30e   :  { %v1886_v57 = vpop.f32.mrf.mxu0  ;;  %v4148_v50 = vld [vmem:[%s8171_s0 + $0x318] sm:$0xf0] }
 0x30f   :  { %5789 = vst [vmem:[%s8172_s3 + $0x130] sm:$0xff] %v5305_v53   ;;  %v2853_v60 = vadd.f32 %v2852_v55, %v2204_v54  ;;  %v2535_v62 = vpop.f32.mrf.mxu1  ;;  %v1887_v2 = vadd.f32 %v7525_v61, %v1886_v57  ;;  %v5066_v53 = vld [vmem:[%s8171_s0 + $0x714] sm:$0xf]  ;;  %v4660_v54 = vld [vmem:[%s8171_s0 + $0x718] sm:$0xf0] }
 0x311   :  { %v3185_v0 = vmax.f32 %v2853_v60, 0.0  ;;  %1925 = vmatmul.bf16.gmra.mxu0 %v4131_v51  ;;  %2245 = vmatmul.bf16.gmra.mxu2 %v4643_v56  ;;  %v2536_v6 = vadd.f32 %v2535_v62, %v1887_v2  ;;  %v4147_v56 = vor.u32 %v4939_v46, %v4146_v45  ;;  %v4659_v62 = vor.u32 %v5067_v48, %v4658_v47 }
 0x312   :  { %2574 = vmatmul.bf16.gmra.mxu1 %v4135_v58  ;;  %2894 = vmatmul.bf16.gmra.mxu3 %v4647_v59 }
 0x313   :  { %v5625_v1 = vpack.c.bf16 %v3185_v0, %v3184_v63  ;;  %v3058_v17 = vmax.f32 %v2536_v6, 0.0  ;;  %v4151_v0 = vor.u32 %v4938_v49, %v4148_v50  ;;  %v4162_v50 = vld [vmem:[%s8171_s0 + $0x330] sm:$0xf] }
 0x314   :  { %v2206_v3 = vpop.f32.mrf.mxu2 }
 0x315   :  { %5853 = vst [vmem:[%s8172_s3 + $0x330] sm:$0xff] %v5625_v1   ;;  %v2855_v4 = vpop.f32.mrf.mxu3  ;;  %v2207_v9 = vadd.f32 %v7525_v61, %v2206_v3  ;;  %v4663_v1 = vor.u32 %v5066_v53, %v4660_v54  ;;  %v5071_v53 = vld [vmem:[%s8171_s0 + $0x734] sm:$0xf0]  ;;  %v4942_v54 = vld [vmem:[%s8171_s0 + $0x334] sm:$0xf] }
 0x316   :  { %v1888_v5 = vpop.f32.mrf.mxu0 }
 0x317   :  { %v1889_v7 = vadd.f32 %v7525_v61, %v1888_v5  ;;  %v2537_v8 = vpop.f32.mrf.mxu1  ;;  %v2856_v23 = vadd.f32 %v2855_v4, %v2207_v9 }
 0x319   :  { %v2538_v10 = vadd.f32 %v2537_v8, %v1889_v7  ;;  %v3186_v33 = vmax.f32 %v2856_v23, 0.0 }
 0x31b   :  { %v3059_v18 = vmax.f32 %v2538_v10, 0.0 }
 0x31c   :  { %v2208_v21 = vpop.f32.mrf.mxu2 }
 0x31d   :  { %v5310_v24 = vpack.c.bf16 %v3059_v18, %v3058_v17  ;;  %v2209_v25 = vadd.f32 %v7525_v61, %v2208_v21  ;;  %v2857_v26 = vpop.f32.mrf.mxu3  ;;  %v4941_v17 = vld [vmem:[%s8171_s0 + $0x324] sm:$0xf0]  ;;  %v4666_v18 = vld [vmem:[%s8171_s0 + $0x720] sm:$0xf]  ;;  %v4156_v21 = vld [vmem:[%s8171_s0 + $0x328] sm:$0xf0] }
 0x31e   :  { %v1891_v28 = vpop.f32.mrf.mxu0 }
 0x31f   :  { %5790 = vst [vmem:[%s8172_s3 + $0x138] sm:$0xff] %v5310_v24   ;;  %v2858_v31 = vadd.f32 %v2857_v26, %v2209_v25  ;;  %v2540_v32 = vpop.f32.mrf.mxu1  ;;  %v1892_v36 = vadd.f32 %v7525_v61, %v1891_v28  ;;  %v5068_v24 = vld [vmem:[%s8171_s0 + $0x724] sm:$0xf]  ;;  %v4668_v25 = vld [vmem:[%s8171_s0 + $0x728] sm:$0xf0] }
 0x321   :  { %v3187_v34 = vmax.f32 %v2858_v31, 0.0  ;;  %1930 = vmatmul.bf16.gmra.mxu0 %v4139_v22  ;;  %2250 = vmatmul.bf16.gmra.mxu2 %v4651_v27  ;;  %v2541_v40 = vadd.f32 %v2540_v32, %v1892_v36  ;;  %v4155_v27 = vor.u32 %v4941_v17, %v4154_v16  ;;  %v4667_v32 = vor.u32 %v5069_v19, %v4666_v18 }
 0x322   :  { %2579 = vmatmul.bf16.gmra.mxu1 %v4143_v29  ;;  %2899 = vmatmul.bf16.gmra.mxu3 %v4655_v30 }
 0x323   :  { %v5630_v35 = vpack.c.bf16 %v3187_v34, %v3186_v33  ;;  %v3060_v51 = vmax.f32 %v2541_v40, 0.0  ;;  %v4159_v34 = vor.u32 %v4940_v20, %v4156_v21  ;;  %v4170_v21 = vld [vmem:[%s8171_s0 + $0x340] sm:$0xf] }
 0x324   :  { %v2211_v37 = vpop.f32.mrf.mxu2 }
 0x325   :  { %5854 = vst [vmem:[%s8172_s3 + $0x338] sm:$0xff] %v5630_v35   ;;  %v2860_v38 = vpop.f32.mrf.mxu3  ;;  %v2212_v43 = vadd.f32 %v7525_v61, %v2211_v37  ;;  %v4671_v35 = vor.u32 %v5068_v24, %v4668_v25  ;;  %v5073_v24 = vld [vmem:[%s8171_s0 + $0x744] sm:$0xf0]  ;;  %v4944_v25 = vld [vmem:[%s8171_s0 + $0x344] sm:$0xf] }
 0x326   :  { %v1893_v39 = vpop.f32.mrf.mxu0 }
 0x327   :  { %v1894_v41 = vadd.f32 %v7525_v61, %v1893_v39  ;;  %v2542_v42 = vpop.f32.mrf.mxu1  ;;  %v2861_v57 = vadd.f32 %v2860_v38, %v2212_v43 }
 0x329   :  { %v2543_v44 = vadd.f32 %v2542_v42, %v1894_v41  ;;  %v3188_v4 = vmax.f32 %v2861_v57, 0.0 }
 0x32b   :  { %v3061_v52 = vmax.f32 %v2543_v44, 0.0 }
 0x32c   :  { %v2213_v55 = vpop.f32.mrf.mxu2 }
 0x32d   :  { %v5315_v58 = vpack.c.bf16 %v3061_v52, %v3060_v51  ;;  %v2214_v59 = vadd.f32 %v7525_v61, %v2213_v55  ;;  %v2862_v60 = vpop.f32.mrf.mxu3  ;;  %v4943_v51 = vld [vmem:[%s8171_s0 + $0x334] sm:$0xf0]  ;;  %v4674_v52 = vld [vmem:[%s8171_s0 + $0x730] sm:$0xf]  ;;  %v4164_v55 = vld [vmem:[%s8171_s0 + $0x338] sm:$0xf0] }
 0x32e   :  { %v1896_v63 = vpop.f32.mrf.mxu0 }
 0x32f   :  { %5791 = vst [vmem:[%s8172_s3 + $0x140] sm:$0xff] %v5315_v58   ;;  %v2863_v2 = vadd.f32 %v2862_v60, %v2214_v59  ;;  %v2545_v3 = vpop.f32.mrf.mxu1  ;;  %v1897_v7 = vadd.f32 %v7525_v61, %v1896_v63  ;;  %v5070_v58 = vld [vmem:[%s8171_s0 + $0x734] sm:$0xf]  ;;  %v4676_v59 = vld [vmem:[%s8171_s0 + $0x738] sm:$0xf0] }
 0x331   :  { %v3189_v5 = vmax.f32 %v2863_v2, 0.0  ;;  %1935 = vmatmul.bf16.gmra.mxu0 %v4147_v56  ;;  %2255 = vmatmul.bf16.gmra.mxu2 %v4659_v62  ;;  %v2546_v11 = vadd.f32 %v2545_v3, %v1897_v7  ;;  %v4163_v62 = vor.u32 %v4943_v51, %v4162_v50  ;;  %v4675_v3 = vor.u32 %v5071_v53, %v4674_v52 }
 0x332   :  { %2584 = vmatmul.bf16.gmra.mxu1 %v4151_v0  ;;  %2904 = vmatmul.bf16.gmra.mxu3 %v4663_v1 }
 0x333   :  { %v5635_v6 = vpack.c.bf16 %v3189_v5, %v3188_v4  ;;  %v3062_v22 = vmax.f32 %v2546_v11, 0.0  ;;  %v4167_v5 = vor.u32 %v4942_v54, %v4164_v55  ;;  %v4178_v55 = vld [vmem:[%s8171_s0 + $0x350] sm:$0xf] }
 0x334   :  { %v2216_v8 = vpop.f32.mrf.mxu2 }
 0x335   :  { %5855 = vst [vmem:[%s8172_s3 + $0x340] sm:$0xff] %v5635_v6   ;;  %v2865_v9 = vpop.f32.mrf.mxu3  ;;  %v2217_v14 = vadd.f32 %v7525_v61, %v2216_v8  ;;  %v4679_v6 = vor.u32 %v5070_v58, %v4676_v59  ;;  %v5075_v58 = vld [vmem:[%s8171_s0 + $0x754] sm:$0xf0]  ;;  %v4946_v59 = vld [vmem:[%s8171_s0 + $0x354] sm:$0xf] }
 0x336   :  { %v1898_v10 = vpop.f32.mrf.mxu0 }
 0x337   :  { %v1899_v12 = vadd.f32 %v7525_v61, %v1898_v10  ;;  %v2547_v13 = vpop.f32.mrf.mxu1  ;;  %v2866_v28 = vadd.f32 %v2865_v9, %v2217_v14 }
 0x339   :  { %v2548_v15 = vadd.f32 %v2547_v13, %v1899_v12  ;;  %v3190_v38 = vmax.f32 %v2866_v28, 0.0 }
 0x33b   :  { %v3063_v23 = vmax.f32 %v2548_v15, 0.0 }
 0x33c   :  { %v2218_v26 = vpop.f32.mrf.mxu2 }
 0x33d   :  { %v5320_v29 = vpack.c.bf16 %v3063_v23, %v3062_v22  ;;  %v2219_v30 = vadd.f32 %v7525_v61, %v2218_v26  ;;  %v2867_v31 = vpop.f32.mrf.mxu3  ;;  %v4945_v22 = vld [vmem:[%s8171_s0 + $0x344] sm:$0xf0]  ;;  %v4682_v23 = vld [vmem:[%s8171_s0 + $0x740] sm:$0xf]  ;;  %v4172_v26 = vld [vmem:[%s8171_s0 + $0x348] sm:$0xf0] }
 0x33e   :  { %v1901_v33 = vpop.f32.mrf.mxu0 }
 0x33f   :  { %5792 = vst [vmem:[%s8172_s3 + $0x148] sm:$0xff] %v5320_v29   ;;  %v2868_v36 = vadd.f32 %v2867_v31, %v2219_v30  ;;  %v2550_v37 = vpop.f32.mrf.mxu1  ;;  %v1902_v41 = vadd.f32 %v7525_v61, %v1901_v33  ;;  %v5072_v29 = vld [vmem:[%s8171_s0 + $0x744] sm:$0xf]  ;;  %v4684_v30 = vld [vmem:[%s8171_s0 + $0x748] sm:$0xf0] }
 0x341   :  { %v3191_v39 = vmax.f32 %v2868_v36, 0.0  ;;  %1940 = vmatmul.bf16.gmra.mxu0 %v4155_v27  ;;  %2260 = vmatmul.bf16.gmra.mxu2 %v4667_v32  ;;  %v2551_v45 = vadd.f32 %v2550_v37, %v1902_v41  ;;  %v4171_v32 = vor.u32 %v4945_v22, %v4170_v21  ;;  %v4683_v37 = vor.u32 %v5073_v24, %v4682_v23 }
 0x342   :  { %2589 = vmatmul.bf16.gmra.mxu1 %v4159_v34  ;;  %2909 = vmatmul.bf16.gmra.mxu3 %v4671_v35 }
 0x343   :  { %v5640_v40 = vpack.c.bf16 %v3191_v39, %v3190_v38  ;;  %v3064_v56 = vmax.f32 %v2551_v45, 0.0  ;;  %v4175_v39 = vor.u32 %v4944_v25, %v4172_v26  ;;  %v4186_v26 = vld [vmem:[%s8171_s0 + $0x360] sm:$0xf] }
 0x344   :  { %v2221_v42 = vpop.f32.mrf.mxu2 }
 0x345   :  { %5856 = vst [vmem:[%s8172_s3 + $0x348] sm:$0xff] %v5640_v40   ;;  %v2870_v43 = vpop.f32.mrf.mxu3  ;;  %v2222_v48 = vadd.f32 %v7525_v61, %v2221_v42  ;;  %v4687_v40 = vor.u32 %v5072_v29, %v4684_v30  ;;  %v5077_v29 = vld [vmem:[%s8171_s0 + $0x764] sm:$0xf0]  ;;  %v4948_v30 = vld [vmem:[%s8171_s0 + $0x364] sm:$0xf] }
 0x346   :  { %v1903_v44 = vpop.f32.mrf.mxu0 }
 0x347   :  { %v1904_v46 = vadd.f32 %v7525_v61, %v1903_v44  ;;  %v2552_v47 = vpop.f32.mrf.mxu1  ;;  %v2871_v63 = vadd.f32 %v2870_v43, %v2222_v48 }
 0x349   :  { %v2553_v49 = vadd.f32 %v2552_v47, %v1904_v46  ;;  %v3192_v9 = vmax.f32 %v2871_v63, 0.0 }
 0x34b   :  { %v3065_v57 = vmax.f32 %v2553_v49, 0.0 }
 0x34c   :  { %v2223_v60 = vpop.f32.mrf.mxu2 }
 0x34d   :  { %v5325_v0 = vpack.c.bf16 %v3065_v57, %v3064_v56  ;;  %v2224_v1 = vadd.f32 %v7525_v61, %v2223_v60  ;;  %v2872_v2 = vpop.f32.mrf.mxu3  ;;  %v4947_v56 = vld [vmem:[%s8171_s0 + $0x354] sm:$0xf0]  ;;  %v4690_v57 = vld [vmem:[%s8171_s0 + $0x750] sm:$0xf]  ;;  %v4180_v60 = vld [vmem:[%s8171_s0 + $0x358] sm:$0xf0] }
 0x34e   :  { %v1906_v4 = vpop.f32.mrf.mxu0 }
 0x34f   :  { %5793 = vst [vmem:[%s8172_s3 + $0x150] sm:$0xff] %v5325_v0   ;;  %v2873_v7 = vadd.f32 %v2872_v2, %v2224_v1  ;;  %v2555_v8 = vpop.f32.mrf.mxu1  ;;  %v1907_v12 = vadd.f32 %v7525_v61, %v1906_v4  ;;  %v5074_v0 = vld [vmem:[%s8171_s0 + $0x754] sm:$0xf]  ;;  %v4692_v1 = vld [vmem:[%s8171_s0 + $0x758] sm:$0xf0] }
 0x351   :  { %v3193_v10 = vmax.f32 %v2873_v7, 0.0  ;;  %1945 = vmatmul.bf16.gmra.mxu0 %v4163_v62  ;;  %2265 = vmatmul.bf16.gmra.mxu2 %v4675_v3  ;;  %v2556_v16 = vadd.f32 %v2555_v8, %v1907_v12  ;;  %v4179_v3 = vor.u32 %v4947_v56, %v4178_v55  ;;  %v4691_v8 = vor.u32 %v5075_v58, %v4690_v57 }
 0x352   :  { %2594 = vmatmul.bf16.gmra.mxu1 %v4167_v5  ;;  %2914 = vmatmul.bf16.gmra.mxu3 %v4679_v6 }
 0x353   :  { %v5645_v11 = vpack.c.bf16 %v3193_v10, %v3192_v9  ;;  %v3066_v27 = vmax.f32 %v2556_v16, 0.0  ;;  %v4183_v10 = vor.u32 %v4946_v59, %v4180_v60  ;;  %v4194_v60 = vld [vmem:[%s8171_s0 + $0x370] sm:$0xf] }
 0x354   :  { %v2226_v13 = vpop.f32.mrf.mxu2 }
 0x355   :  { %5857 = vst [vmem:[%s8172_s3 + $0x350] sm:$0xff] %v5645_v11   ;;  %v2875_v14 = vpop.f32.mrf.mxu3  ;;  %v2227_v19 = vadd.f32 %v7525_v61, %v2226_v13  ;;  %v4695_v11 = vor.u32 %v5074_v0, %v4692_v1  ;;  %v5079_v0 = vld [vmem:[%s8171_s0 + $0x774] sm:$0xf0]  ;;  %v4950_v1 = vld [vmem:[%s8171_s0 + $0x374] sm:$0xf] }
 0x356   :  { %v1908_v15 = vpop.f32.mrf.mxu0 }
 0x357   :  { %v1909_v17 = vadd.f32 %v7525_v61, %v1908_v15  ;;  %v2557_v18 = vpop.f32.mrf.mxu1  ;;  %v2876_v33 = vadd.f32 %v2875_v14, %v2227_v19 }
 0x359   :  { %v2558_v20 = vadd.f32 %v2557_v18, %v1909_v17  ;;  %v3194_v43 = vmax.f32 %v2876_v33, 0.0 }
 0x35b   :  { %v3067_v28 = vmax.f32 %v2558_v20, 0.0 }
 0x35c   :  { %v2228_v31 = vpop.f32.mrf.mxu2 }
 0x35d   :  { %v5330_v34 = vpack.c.bf16 %v3067_v28, %v3066_v27  ;;  %v2229_v35 = vadd.f32 %v7525_v61, %v2228_v31  ;;  %v2877_v36 = vpop.f32.mrf.mxu3  ;;  %v4949_v27 = vld [vmem:[%s8171_s0 + $0x364] sm:$0xf0]  ;;  %v4698_v28 = vld [vmem:[%s8171_s0 + $0x760] sm:$0xf]  ;;  %v4188_v31 = vld [vmem:[%s8171_s0 + $0x368] sm:$0xf0] }
 0x35e   :  { %v1911_v38 = vpop.f32.mrf.mxu0 }
 0x35f   :  { %5794 = vst [vmem:[%s8172_s3 + $0x158] sm:$0xff] %v5330_v34   ;;  %v2878_v41 = vadd.f32 %v2877_v36, %v2229_v35  ;;  %v2560_v42 = vpop.f32.mrf.mxu1  ;;  %v1912_v46 = vadd.f32 %v7525_v61, %v1911_v38  ;;  %v5076_v34 = vld [vmem:[%s8171_s0 + $0x764] sm:$0xf]  ;;  %v4700_v35 = vld [vmem:[%s8171_s0 + $0x768] sm:$0xf0] }
 0x361   :  { %v3195_v44 = vmax.f32 %v2878_v41, 0.0  ;;  %1950 = vmatmul.bf16.gmra.mxu0 %v4171_v32  ;;  %2270 = vmatmul.bf16.gmra.mxu2 %v4683_v37  ;;  %v2561_v50 = vadd.f32 %v2560_v42, %v1912_v46  ;;  %v4187_v37 = vor.u32 %v4949_v27, %v4186_v26  ;;  %v4699_v42 = vor.u32 %v5077_v29, %v4698_v28 }
 0x362   :  { %2599 = vmatmul.bf16.gmra.mxu1 %v4175_v39  ;;  %2919 = vmatmul.bf16.gmra.mxu3 %v4687_v40 }
 0x363   :  { %v5650_v45 = vpack.c.bf16 %v3195_v44, %v3194_v43  ;;  %v3068_v62 = vmax.f32 %v2561_v50, 0.0  ;;  %v4191_v44 = vor.u32 %v4948_v30, %v4188_v31  ;;  %v4202_v31 = vld [vmem:[%s8171_s0 + $0x380] sm:$0xf] }
 0x364   :  { %v2231_v47 = vpop.f32.mrf.mxu2 }
 0x365   :  { %5858 = vst [vmem:[%s8172_s3 + $0x358] sm:$0xff] %v5650_v45   ;;  %v2880_v48 = vpop.f32.mrf.mxu3  ;;  %v2232_v53 = vadd.f32 %v7525_v61, %v2231_v47  ;;  %v4703_v45 = vor.u32 %v5076_v34, %v4700_v35  ;;  %v5081_v34 = vld [vmem:[%s8171_s0 + $0x784] sm:$0xf0]  ;;  %v4952_v35 = vld [vmem:[%s8171_s0 + $0x384] sm:$0xf] }
 0x366   :  { %v1913_v49 = vpop.f32.mrf.mxu0 }
 0x367   :  { %v1914_v51 = vadd.f32 %v7525_v61, %v1913_v49  ;;  %v2562_v52 = vpop.f32.mrf.mxu1  ;;  %v2881_v4 = vadd.f32 %v2880_v48, %v2232_v53 }
 0x369   :  { %v2563_v54 = vadd.f32 %v2562_v52, %v1914_v51  ;;  %v3196_v14 = vmax.f32 %v2881_v4, 0.0 }
 0x36b   :  { %v3069_v63 = vmax.f32 %v2563_v54, 0.0 }
 0x36c   :  { %v2233_v2 = vpop.f32.mrf.mxu2 }
 0x36d   :  { %v5335_v5 = vpack.c.bf16 %v3069_v63, %v3068_v62  ;;  %v2234_v6 = vadd.f32 %v7525_v61, %v2233_v2  ;;  %v2882_v7 = vpop.f32.mrf.mxu3  ;;  %v4951_v62 = vld [vmem:[%s8171_s0 + $0x374] sm:$0xf0]  ;;  %v4706_v63 = vld [vmem:[%s8171_s0 + $0x770] sm:$0xf]  ;;  %v4196_v2 = vld [vmem:[%s8171_s0 + $0x378] sm:$0xf0] }
 0x36e   :  { %v1916_v9 = vpop.f32.mrf.mxu0 }
 0x36f   :  { %5795 = vst [vmem:[%s8172_s3 + $0x160] sm:$0xff] %v5335_v5   ;;  %v2883_v12 = vadd.f32 %v2882_v7, %v2234_v6  ;;  %v2565_v13 = vpop.f32.mrf.mxu1  ;;  %v1917_v17 = vadd.f32 %v7525_v61, %v1916_v9  ;;  %v5078_v5 = vld [vmem:[%s8171_s0 + $0x774] sm:$0xf]  ;;  %v4708_v6 = vld [vmem:[%s8171_s0 + $0x778] sm:$0xf0] }
 0x371   :  { %v3197_v15 = vmax.f32 %v2883_v12, 0.0  ;;  %1955 = vmatmul.bf16.gmra.mxu0 %v4179_v3  ;;  %2275 = vmatmul.bf16.gmra.mxu2 %v4691_v8  ;;  %v2566_v21 = vadd.f32 %v2565_v13, %v1917_v17  ;;  %v4195_v8 = vor.u32 %v4951_v62, %v4194_v60  ;;  %v4707_v13 = vor.u32 %v5079_v0, %v4706_v63 }
 0x372   :  { %2604 = vmatmul.bf16.gmra.mxu1 %v4183_v10  ;;  %2924 = vmatmul.bf16.gmra.mxu3 %v4695_v11 }
 0x373   :  { %v5655_v16 = vpack.c.bf16 %v3197_v15, %v3196_v14  ;;  %v3070_v32 = vmax.f32 %v2566_v21, 0.0  ;;  %v4199_v15 = vor.u32 %v4950_v1, %v4196_v2  ;;  %v4210_v2 = vld [vmem:[%s8171_s0 + $0x390] sm:$0xf] }
 0x374   :  { %v2236_v18 = vpop.f32.mrf.mxu2 }
 0x375   :  { %5859 = vst [vmem:[%s8172_s3 + $0x360] sm:$0xff] %v5655_v16   ;;  %v2885_v19 = vpop.f32.mrf.mxu3  ;;  %v2237_v24 = vadd.f32 %v7525_v61, %v2236_v18  ;;  %v4711_v16 = vor.u32 %v5078_v5, %v4708_v6  ;;  %v5083_v5 = vld [vmem:[%s8171_s0 + $0x794] sm:$0xf0]  ;;  %v4954_v6 = vld [vmem:[%s8171_s0 + $0x394] sm:$0xf] }
 0x376   :  { %v1918_v20 = vpop.f32.mrf.mxu0 }
 0x377   :  { %v1919_v22 = vadd.f32 %v7525_v61, %v1918_v20  ;;  %v2567_v23 = vpop.f32.mrf.mxu1  ;;  %v2886_v38 = vadd.f32 %v2885_v19, %v2237_v24 }
 0x379   :  { %v2568_v25 = vadd.f32 %v2567_v23, %v1919_v22  ;;  %v3198_v48 = vmax.f32 %v2886_v38, 0.0 }
 0x37b   :  { %v3071_v33 = vmax.f32 %v2568_v25, 0.0 }
 0x37c   :  { %v2238_v36 = vpop.f32.mrf.mxu2 }
 0x37d   :  { %v5340_v39 = vpack.c.bf16 %v3071_v33, %v3070_v32  ;;  %v2239_v40 = vadd.f32 %v7525_v61, %v2238_v36  ;;  %v2887_v41 = vpop.f32.mrf.mxu3  ;;  %v4953_v32 = vld [vmem:[%s8171_s0 + $0x384] sm:$0xf0]  ;;  %v4714_v33 = vld [vmem:[%s8171_s0 + $0x780] sm:$0xf]  ;;  %v4204_v36 = vld [vmem:[%s8171_s0 + $0x388] sm:$0xf0] }
 0x37e   :  { %v1921_v43 = vpop.f32.mrf.mxu0 }
 0x37f   :  { %5796 = vst [vmem:[%s8172_s3 + $0x168] sm:$0xff] %v5340_v39   ;;  %v2888_v46 = vadd.f32 %v2887_v41, %v2239_v40  ;;  %v2570_v47 = vpop.f32.mrf.mxu1  ;;  %v1922_v51 = vadd.f32 %v7525_v61, %v1921_v43  ;;  %v5080_v39 = vld [vmem:[%s8171_s0 + $0x784] sm:$0xf]  ;;  %v4716_v40 = vld [vmem:[%s8171_s0 + $0x788] sm:$0xf0] }
 0x381   :  { %v3199_v49 = vmax.f32 %v2888_v46, 0.0  ;;  %1960 = vmatmul.bf16.gmra.mxu0 %v4187_v37  ;;  %2280 = vmatmul.bf16.gmra.mxu2 %v4699_v42  ;;  %v2571_v55 = vadd.f32 %v2570_v47, %v1922_v51  ;;  %v4203_v42 = vor.u32 %v4953_v32, %v4202_v31  ;;  %v4715_v47 = vor.u32 %v5081_v34, %v4714_v33 }
 0x382   :  { %2609 = vmatmul.bf16.gmra.mxu1 %v4191_v44  ;;  %2929 = vmatmul.bf16.gmra.mxu3 %v4703_v45 }
 0x383   :  { %v5660_v50 = vpack.c.bf16 %v3199_v49, %v3198_v48  ;;  %v3072_v3 = vmax.f32 %v2571_v55, 0.0  ;;  %v4207_v49 = vor.u32 %v4952_v35, %v4204_v36  ;;  %v4218_v36 = vld [vmem:[%s8171_s0 + $0x3a0] sm:$0xf] }
 0x384   :  { %v2241_v52 = vpop.f32.mrf.mxu2 }
 0x385   :  { %5860 = vst [vmem:[%s8172_s3 + $0x368] sm:$0xff] %v5660_v50   ;;  %v2890_v53 = vpop.f32.mrf.mxu3  ;;  %v2242_v58 = vadd.f32 %v7525_v61, %v2241_v52  ;;  %v4719_v50 = vor.u32 %v5080_v39, %v4716_v40  ;;  %v5085_v39 = vld [vmem:[%s8171_s0 + $0x7a4] sm:$0xf0]  ;;  %v4956_v40 = vld [vmem:[%s8171_s0 + $0x3a4] sm:$0xf] }
 0x386   :  { %v1923_v54 = vpop.f32.mrf.mxu0 }
 0x387   :  { %v1924_v56 = vadd.f32 %v7525_v61, %v1923_v54  ;;  %v2572_v57 = vpop.f32.mrf.mxu1  ;;  %v2891_v9 = vadd.f32 %v2890_v53, %v2242_v58 }
 0x389   :  { %v2573_v59 = vadd.f32 %v2572_v57, %v1924_v56  ;;  %v3200_v19 = vmax.f32 %v2891_v9, 0.0 }
 0x38b   :  { %v3073_v4 = vmax.f32 %v2573_v59, 0.0 }
 0x38c   :  { %v2243_v7 = vpop.f32.mrf.mxu2 }
 0x38d   :  { %v5345_v10 = vpack.c.bf16 %v3073_v4, %v3072_v3  ;;  %v2244_v11 = vadd.f32 %v7525_v61, %v2243_v7  ;;  %v2892_v12 = vpop.f32.mrf.mxu3  ;;  %v4955_v3 = vld [vmem:[%s8171_s0 + $0x394] sm:$0xf0]  ;;  %v4722_v4 = vld [vmem:[%s8171_s0 + $0x790] sm:$0xf]  ;;  %v4212_v7 = vld [vmem:[%s8171_s0 + $0x398] sm:$0xf0] }
 0x38e   :  { %v1926_v14 = vpop.f32.mrf.mxu0 }
 0x38f   :  { %5797 = vst [vmem:[%s8172_s3 + $0x170] sm:$0xff] %v5345_v10   ;;  %v2893_v17 = vadd.f32 %v2892_v12, %v2244_v11  ;;  %v2575_v18 = vpop.f32.mrf.mxu1  ;;  %v1927_v22 = vadd.f32 %v7525_v61, %v1926_v14  ;;  %v5082_v10 = vld [vmem:[%s8171_s0 + $0x794] sm:$0xf]  ;;  %v4724_v11 = vld [vmem:[%s8171_s0 + $0x798] sm:$0xf0] }
 0x391   :  { %v3201_v20 = vmax.f32 %v2893_v17, 0.0  ;;  %1965 = vmatmul.bf16.gmra.mxu0 %v4195_v8  ;;  %2285 = vmatmul.bf16.gmra.mxu2 %v4707_v13  ;;  %v2576_v26 = vadd.f32 %v2575_v18, %v1927_v22  ;;  %v4211_v13 = vor.u32 %v4955_v3, %v4210_v2  ;;  %v4723_v18 = vor.u32 %v5083_v5, %v4722_v4 }
 0x392   :  { %2614 = vmatmul.bf16.gmra.mxu1 %v4199_v15  ;;  %2934 = vmatmul.bf16.gmra.mxu3 %v4711_v16 }
 0x393   :  { %v5665_v21 = vpack.c.bf16 %v3201_v20, %v3200_v19  ;;  %v3074_v37 = vmax.f32 %v2576_v26, 0.0  ;;  %v4215_v20 = vor.u32 %v4954_v6, %v4212_v7  ;;  %v4226_v7 = vld [vmem:[%s8171_s0 + $0x3b0] sm:$0xf] }
 0x394   :  { %v2246_v23 = vpop.f32.mrf.mxu2 }
 0x395   :  { %5861 = vst [vmem:[%s8172_s3 + $0x370] sm:$0xff] %v5665_v21   ;;  %v2895_v24 = vpop.f32.mrf.mxu3  ;;  %v2247_v29 = vadd.f32 %v7525_v61, %v2246_v23  ;;  %v4727_v21 = vor.u32 %v5082_v10, %v4724_v11  ;;  %v5087_v10 = vld [vmem:[%s8171_s0 + $0x7b4] sm:$0xf0]  ;;  %v4958_v11 = vld [vmem:[%s8171_s0 + $0x3b4] sm:$0xf] }
 0x396   :  { %v1928_v25 = vpop.f32.mrf.mxu0 }
 0x397   :  { %v1929_v27 = vadd.f32 %v7525_v61, %v1928_v25  ;;  %v2577_v28 = vpop.f32.mrf.mxu1  ;;  %v2896_v43 = vadd.f32 %v2895_v24, %v2247_v29 }
 0x399   :  { %v2578_v30 = vadd.f32 %v2577_v28, %v1929_v27  ;;  %v3202_v53 = vmax.f32 %v2896_v43, 0.0 }
 0x39b   :  { %v3075_v38 = vmax.f32 %v2578_v30, 0.0 }
 0x39c   :  { %v2248_v41 = vpop.f32.mrf.mxu2 }
 0x39d   :  { %v5350_v44 = vpack.c.bf16 %v3075_v38, %v3074_v37  ;;  %v2249_v45 = vadd.f32 %v7525_v61, %v2248_v41  ;;  %v2897_v46 = vpop.f32.mrf.mxu3  ;;  %v4957_v37 = vld [vmem:[%s8171_s0 + $0x3a4] sm:$0xf0]  ;;  %v4730_v38 = vld [vmem:[%s8171_s0 + $0x7a0] sm:$0xf]  ;;  %v4220_v41 = vld [vmem:[%s8171_s0 + $0x3a8] sm:$0xf0] }
 0x39e   :  { %v1931_v48 = vpop.f32.mrf.mxu0 }
 0x39f   :  { %5798 = vst [vmem:[%s8172_s3 + $0x178] sm:$0xff] %v5350_v44   ;;  %v2898_v51 = vadd.f32 %v2897_v46, %v2249_v45  ;;  %v2580_v52 = vpop.f32.mrf.mxu1  ;;  %v1932_v56 = vadd.f32 %v7525_v61, %v1931_v48  ;;  %v5084_v44 = vld [vmem:[%s8171_s0 + $0x7a4] sm:$0xf]  ;;  %v4732_v45 = vld [vmem:[%s8171_s0 + $0x7a8] sm:$0xf0] }
 0x3a1   :  { %v3203_v54 = vmax.f32 %v2898_v51, 0.0  ;;  %1970 = vmatmul.bf16.gmra.mxu0 %v4203_v42  ;;  %2290 = vmatmul.bf16.gmra.mxu2 %v4715_v47  ;;  %v2581_v60 = vadd.f32 %v2580_v52, %v1932_v56  ;;  %v4219_v47 = vor.u32 %v4957_v37, %v4218_v36  ;;  %v4731_v52 = vor.u32 %v5085_v39, %v4730_v38 }
 0x3a2   :  { %2619 = vmatmul.bf16.gmra.mxu1 %v4207_v49  ;;  %2939 = vmatmul.bf16.gmra.mxu3 %v4719_v50 }
 0x3a3   :  { %v5670_v55 = vpack.c.bf16 %v3203_v54, %v3202_v53  ;;  %v3076_v8 = vmax.f32 %v2581_v60, 0.0  ;;  %v4223_v54 = vor.u32 %v4956_v40, %v4220_v41  ;;  %v4234_v41 = vld [vmem:[%s8171_s0 + $0x3c0] sm:$0xf] }
 0x3a4   :  { %v2251_v57 = vpop.f32.mrf.mxu2 }
 0x3a5   :  { %5862 = vst [vmem:[%s8172_s3 + $0x378] sm:$0xff] %v5670_v55   ;;  %v2900_v58 = vpop.f32.mrf.mxu3  ;;  %v2252_v0 = vadd.f32 %v7525_v61, %v2251_v57  ;;  %v4735_v55 = vor.u32 %v5084_v44, %v4732_v45  ;;  %v5089_v44 = vld [vmem:[%s8171_s0 + $0x7c4] sm:$0xf0]  ;;  %v4960_v45 = vld [vmem:[%s8171_s0 + $0x3c4] sm:$0xf] }
 0x3a6   :  { %v1933_v59 = vpop.f32.mrf.mxu0 }
 0x3a7   :  { %v1934_v62 = vadd.f32 %v7525_v61, %v1933_v59  ;;  %v2582_v63 = vpop.f32.mrf.mxu1  ;;  %v2901_v14 = vadd.f32 %v2900_v58, %v2252_v0 }
 0x3a9   :  { %v2583_v1 = vadd.f32 %v2582_v63, %v1934_v62  ;;  %v3204_v24 = vmax.f32 %v2901_v14, 0.0 }
 0x3ab   :  { %v3077_v9 = vmax.f32 %v2583_v1, 0.0 }
 0x3ac   :  { %v2253_v12 = vpop.f32.mrf.mxu2 }
 0x3ad   :  { %v5355_v15 = vpack.c.bf16 %v3077_v9, %v3076_v8  ;;  %v2254_v16 = vadd.f32 %v7525_v61, %v2253_v12  ;;  %v2902_v17 = vpop.f32.mrf.mxu3  ;;  %v4959_v8 = vld [vmem:[%s8171_s0 + $0x3b4] sm:$0xf0]  ;;  %v4738_v9 = vld [vmem:[%s8171_s0 + $0x7b0] sm:$0xf]  ;;  %v4228_v12 = vld [vmem:[%s8171_s0 + $0x3b8] sm:$0xf0] }
 0x3ae   :  { %v1936_v19 = vpop.f32.mrf.mxu0 }
 0x3af   :  { %5799 = vst [vmem:[%s8172_s3 + $0x180] sm:$0xff] %v5355_v15   ;;  %v2903_v22 = vadd.f32 %v2902_v17, %v2254_v16  ;;  %v2585_v23 = vpop.f32.mrf.mxu1  ;;  %v1937_v27 = vadd.f32 %v7525_v61, %v1936_v19  ;;  %v5086_v15 = vld [vmem:[%s8171_s0 + $0x7b4] sm:$0xf]  ;;  %v4740_v16 = vld [vmem:[%s8171_s0 + $0x7b8] sm:$0xf0] }
 0x3b1   :  { %v3205_v25 = vmax.f32 %v2903_v22, 0.0  ;;  %1975 = vmatmul.bf16.gmra.mxu0 %v4211_v13  ;;  %2295 = vmatmul.bf16.gmra.mxu2 %v4723_v18  ;;  %v2586_v31 = vadd.f32 %v2585_v23, %v1937_v27  ;;  %v4227_v18 = vor.u32 %v4959_v8, %v4226_v7  ;;  %v4739_v23 = vor.u32 %v5087_v10, %v4738_v9 }
 0x3b2   :  { %2624 = vmatmul.bf16.gmra.mxu1 %v4215_v20  ;;  %2944 = vmatmul.bf16.gmra.mxu3 %v4727_v21 }
 0x3b3   :  { %v5675_v26 = vpack.c.bf16 %v3205_v25, %v3204_v24  ;;  %v3078_v42 = vmax.f32 %v2586_v31, 0.0  ;;  %v4231_v25 = vor.u32 %v4958_v11, %v4228_v12  ;;  %v4242_v12 = vld [vmem:[%s8171_s0 + $0x3d0] sm:$0xf] }
 0x3b4   :  { %v2256_v28 = vpop.f32.mrf.mxu2 }
 0x3b5   :  { %5863 = vst [vmem:[%s8172_s3 + $0x380] sm:$0xff] %v5675_v26   ;;  %v2905_v29 = vpop.f32.mrf.mxu3  ;;  %v2257_v34 = vadd.f32 %v7525_v61, %v2256_v28  ;;  %v4743_v26 = vor.u32 %v5086_v15, %v4740_v16  ;;  %v5091_v15 = vld [vmem:[%s8171_s0 + $0x7d4] sm:$0xf0]  ;;  %v4962_v16 = vld [vmem:[%s8171_s0 + $0x3d4] sm:$0xf] }
 0x3b6   :  { %v1938_v30 = vpop.f32.mrf.mxu0 }
 0x3b7   :  { %v1939_v32 = vadd.f32 %v7525_v61, %v1938_v30  ;;  %v2587_v33 = vpop.f32.mrf.mxu1  ;;  %v2906_v48 = vadd.f32 %v2905_v29, %v2257_v34 }
 0x3b9   :  { %v2588_v35 = vadd.f32 %v2587_v33, %v1939_v32  ;;  %v3206_v58 = vmax.f32 %v2906_v48, 0.0 }
 0x3bb   :  { %v3079_v43 = vmax.f32 %v2588_v35, 0.0 }
 0x3bc   :  { %v2258_v46 = vpop.f32.mrf.mxu2 }
 0x3bd   :  { %v5360_v49 = vpack.c.bf16 %v3079_v43, %v3078_v42  ;;  %v2259_v50 = vadd.f32 %v7525_v61, %v2258_v46  ;;  %v2907_v51 = vpop.f32.mrf.mxu3  ;;  %v4961_v42 = vld [vmem:[%s8171_s0 + $0x3c4] sm:$0xf0]  ;;  %v4746_v43 = vld [vmem:[%s8171_s0 + $0x7c0] sm:$0xf]  ;;  %v4236_v46 = vld [vmem:[%s8171_s0 + $0x3c8] sm:$0xf0] }
 0x3be   :  { %v1941_v53 = vpop.f32.mrf.mxu0 }
 0x3bf   :  { %5800 = vst [vmem:[%s8172_s3 + $0x188] sm:$0xff] %v5360_v49   ;;  %v2908_v56 = vadd.f32 %v2907_v51, %v2259_v50  ;;  %v2590_v57 = vpop.f32.mrf.mxu1  ;;  %v1942_v62 = vadd.f32 %v7525_v61, %v1941_v53  ;;  %v5088_v49 = vld [vmem:[%s8171_s0 + $0x7c4] sm:$0xf]  ;;  %v4748_v50 = vld [vmem:[%s8171_s0 + $0x7c8] sm:$0xf0] }
 0x3c1   :  { %v3207_v59 = vmax.f32 %v2908_v56, 0.0  ;;  %1980 = vmatmul.bf16.gmra.mxu0 %v4219_v47  ;;  %2300 = vmatmul.bf16.gmra.mxu2 %v4731_v52  ;;  %v2591_v2 = vadd.f32 %v2590_v57, %v1942_v62  ;;  %v4235_v52 = vor.u32 %v4961_v42, %v4234_v41  ;;  %v4747_v57 = vor.u32 %v5089_v44, %v4746_v43 }
 0x3c2   :  { %2629 = vmatmul.bf16.gmra.mxu1 %v4223_v54  ;;  %2949 = vmatmul.bf16.gmra.mxu3 %v4735_v55 }
 0x3c3   :  { %v5680_v60 = vpack.c.bf16 %v3207_v59, %v3206_v58  ;;  %v3080_v13 = vmax.f32 %v2591_v2, 0.0  ;;  %v4239_v59 = vor.u32 %v4960_v45, %v4236_v46  ;;  %v4250_v46 = vld [vmem:[%s8171_s0 + $0x3e0] sm:$0xf] }
 0x3c4   :  { %v2261_v63 = vpop.f32.mrf.mxu2 }
 0x3c5   :  { %5864 = vst [vmem:[%s8172_s3 + $0x388] sm:$0xff] %v5680_v60   ;;  %v2910_v0 = vpop.f32.mrf.mxu3  ;;  %v2262_v5 = vadd.f32 %v7525_v61, %v2261_v63  ;;  %v4751_v60 = vor.u32 %v5088_v49, %v4748_v50  ;;  %v5093_v49 = vld [vmem:[%s8171_s0 + $0x7e4] sm:$0xf0]  ;;  %v4964_v50 = vld [vmem:[%s8171_s0 + $0x3e4] sm:$0xf] }
 0x3c6   :  { %v1943_v1 = vpop.f32.mrf.mxu0 }
 0x3c7   :  { %v1944_v3 = vadd.f32 %v7525_v61, %v1943_v1  ;;  %v2592_v4 = vpop.f32.mrf.mxu1  ;;  %v2911_v19 = vadd.f32 %v2910_v0, %v2262_v5 }
 0x3c9   :  { %v2593_v6 = vadd.f32 %v2592_v4, %v1944_v3  ;;  %v3208_v29 = vmax.f32 %v2911_v19, 0.0 }
 0x3cb   :  { %v3081_v14 = vmax.f32 %v2593_v6, 0.0 }
 0x3cc   :  { %v2263_v17 = vpop.f32.mrf.mxu2 }
 0x3cd   :  { %v5365_v20 = vpack.c.bf16 %v3081_v14, %v3080_v13  ;;  %v2264_v21 = vadd.f32 %v7525_v61, %v2263_v17  ;;  %v2912_v22 = vpop.f32.mrf.mxu3  ;;  %v4963_v13 = vld [vmem:[%s8171_s0 + $0x3d4] sm:$0xf0]  ;;  %v4754_v14 = vld [vmem:[%s8171_s0 + $0x7d0] sm:$0xf]  ;;  %v4244_v17 = vld [vmem:[%s8171_s0 + $0x3d8] sm:$0xf0] }
 0x3ce   :  { %v1946_v24 = vpop.f32.mrf.mxu0 }
 0x3cf   :  { %5801 = vst [vmem:[%s8172_s3 + $0x190] sm:$0xff] %v5365_v20   ;;  %v2913_v27 = vadd.f32 %v2912_v22, %v2264_v21  ;;  %v2595_v28 = vpop.f32.mrf.mxu1  ;;  %v1947_v32 = vadd.f32 %v7525_v61, %v1946_v24  ;;  %v5090_v20 = vld [vmem:[%s8171_s0 + $0x7d4] sm:$0xf]  ;;  %v4756_v21 = vld [vmem:[%s8171_s0 + $0x7d8] sm:$0xf0] }
 0x3d1   :  { %v3209_v30 = vmax.f32 %v2913_v27, 0.0  ;;  %1985 = vmatmul.bf16.gmra.mxu0 %v4227_v18  ;;  %2305 = vmatmul.bf16.gmra.mxu2 %v4739_v23  ;;  %v2596_v36 = vadd.f32 %v2595_v28, %v1947_v32  ;;  %v4243_v23 = vor.u32 %v4963_v13, %v4242_v12  ;;  %v4755_v28 = vor.u32 %v5091_v15, %v4754_v14 }
 0x3d2   :  { %2634 = vmatmul.bf16.gmra.mxu1 %v4231_v25  ;;  %2954 = vmatmul.bf16.gmra.mxu3 %v4743_v26 }
 0x3d3   :  { %v5685_v31 = vpack.c.bf16 %v3209_v30, %v3208_v29  ;;  %v3082_v47 = vmax.f32 %v2596_v36, 0.0  ;;  %v4247_v30 = vor.u32 %v4962_v16, %v4244_v17  ;;  %v4258_v17 = vld [vmem:[%s8171_s0 + $0x3f0] sm:$0xf] }
 0x3d4   :  { %v2266_v33 = vpop.f32.mrf.mxu2 }
 0x3d5   :  { %5865 = vst [vmem:[%s8172_s3 + $0x390] sm:$0xff] %v5685_v31   ;;  %v2915_v34 = vpop.f32.mrf.mxu3  ;;  %v2267_v39 = vadd.f32 %v7525_v61, %v2266_v33  ;;  %v4759_v31 = vor.u32 %v5090_v20, %v4756_v21  ;;  %v5095_v20 = vld [vmem:[%s8171_s0 + $0x7f4] sm:$0xf0]  ;;  %v4966_v21 = vld [vmem:[%s8171_s0 + $0x3f4] sm:$0xf] }
 0x3d6   :  { %v1948_v35 = vpop.f32.mrf.mxu0 }
 0x3d7   :  { %v1949_v37 = vadd.f32 %v7525_v61, %v1948_v35  ;;  %v2597_v38 = vpop.f32.mrf.mxu1  ;;  %v2916_v53 = vadd.f32 %v2915_v34, %v2267_v39 }
 0x3d9   :  { %v2598_v40 = vadd.f32 %v2597_v38, %v1949_v37  ;;  %v3210_v0 = vmax.f32 %v2916_v53, 0.0 }
 0x3db   :  { %v3083_v48 = vmax.f32 %v2598_v40, 0.0 }
 0x3dc   :  { %v2268_v51 = vpop.f32.mrf.mxu2 }
 0x3dd   :  { %v5370_v54 = vpack.c.bf16 %v3083_v48, %v3082_v47  ;;  %v2269_v55 = vadd.f32 %v7525_v61, %v2268_v51  ;;  %v2917_v56 = vpop.f32.mrf.mxu3  ;;  %v7972_v61 = vld [vmem:[%s8170_s2] ss:$0 sm:$0xff]  ;;  %v4965_v47 = vld [vmem:[%s8171_s0 + $0x3e4] sm:$0xf0]  ;;  %v4252_v51 = vld [vmem:[%s8171_s0 + $0x3e8] sm:$0xf0] }
 0x3de   :  { %v1951_v58 = vpop.f32.mrf.mxu0  ;;  %v4762_v48 = vld [vmem:[%s8171_s0 + $0x7e0] sm:$0xf] }
 0x3df   :  { %5802 = vst [vmem:[%s8172_s3 + $0x198] sm:$0xff] %v5370_v54   ;;  %v2918_v62 = vadd.f32 %v2917_v56, %v2269_v55  ;;  %v2600_v63 = vpop.f32.mrf.mxu1  ;;  %v1952_v3 = vadd.f32 %v7972_v61, %v1951_v58  ;;  %v5092_v54 = vld [vmem:[%s8171_s0 + $0x7e4] sm:$0xf]  ;;  %v4764_v55 = vld [vmem:[%s8171_s0 + $0x7e8] sm:$0xf0] }
 0x3e1   :  { %v3211_v1 = vmax.f32 %v2918_v62, 0.0  ;;  %1990 = vmatmul.bf16.gmra.mxu0 %v4235_v52  ;;  %2310 = vmatmul.bf16.gmra.mxu2 %v4747_v57  ;;  %v2601_v7 = vadd.f32 %v2600_v63, %v1952_v3  ;;  %v4251_v57 = vor.u32 %v4965_v47, %v4250_v46  ;;  %v4763_v63 = vor.u32 %v5093_v49, %v4762_v48 }
 0x3e2   :  { %2639 = vmatmul.bf16.gmra.mxu1 %v4239_v59  ;;  %2959 = vmatmul.bf16.gmra.mxu3 %v4751_v60 }
 0x3e3   :  { %v5690_v2 = vpack.c.bf16 %v3211_v1, %v3210_v0  ;;  %v3084_v18 = vmax.f32 %v2601_v7, 0.0  ;;  %v4255_v1 = vor.u32 %v4964_v50, %v4252_v51 }
 0x3e4   :  { %v2271_v4 = vpop.f32.mrf.mxu2 }
 0x3e5   :  { %5866 = vst [vmem:[%s8172_s3 + $0x398] sm:$0xff] %v5690_v2   ;;  %v2920_v5 = vpop.f32.mrf.mxu3  ;;  %v2272_v10 = vadd.f32 %v7972_v61, %v2271_v4  ;;  %v4767_v2 = vor.u32 %v5092_v54, %v4764_v55 }
 0x3e6   :  { %v1953_v6 = vpop.f32.mrf.mxu0 }
 0x3e7   :  { %v1954_v8 = vadd.f32 %v7972_v61, %v1953_v6  ;;  %v2602_v9 = vpop.f32.mrf.mxu1  ;;  %v2921_v24 = vadd.f32 %v2920_v5, %v2272_v10 }
 0x3e9   :  { %v2603_v11 = vadd.f32 %v2602_v9, %v1954_v8  ;;  %v3212_v34 = vmax.f32 %v2921_v24, 0.0 }
 0x3eb   :  { %v3085_v19 = vmax.f32 %v2603_v11, 0.0 }
 0x3ec   :  { %v2273_v22 = vpop.f32.mrf.mxu2 }
 0x3ed   :  { %v5375_v25 = vpack.c.bf16 %v3085_v19, %v3084_v18  ;;  %v2274_v26 = vadd.f32 %v7972_v61, %v2273_v22  ;;  %v2922_v27 = vpop.f32.mrf.mxu3  ;;  %v4967_v18 = vld [vmem:[%s8171_s0 + $0x3f4] sm:$0xf0]  ;;  %v4770_v19 = vld [vmem:[%s8171_s0 + $0x7f0] sm:$0xf]  ;;  %v4260_v22 = vld [vmem:[%s8171_s0 + $0x3f8] sm:$0xf0] }
 0x3ee   :  { %v1956_v29 = vpop.f32.mrf.mxu0 }
 0x3ef   :  { %5803 = vst [vmem:[%s8172_s3 + $0x1a0] sm:$0xff] %v5375_v25   ;;  %v2923_v32 = vadd.f32 %v2922_v27, %v2274_v26  ;;  %v2605_v33 = vpop.f32.mrf.mxu1  ;;  %v1957_v37 = vadd.f32 %v7972_v61, %v1956_v29  ;;  %v5094_v25 = vld [vmem:[%s8171_s0 + $0x7f4] sm:$0xf]  ;;  %v4772_v26 = vld [vmem:[%s8171_s0 + $0x7f8] sm:$0xf0] }
 0x3f1   :  { %v3213_v35 = vmax.f32 %v2923_v32, 0.0  ;;  %1995 = vmatmul.bf16.gmra.mxu0 %v4243_v23  ;;  %2315 = vmatmul.bf16.gmra.mxu2 %v4755_v28  ;;  %v2606_v41 = vadd.f32 %v2605_v33, %v1957_v37  ;;  %v4259_v28 = vor.u32 %v4967_v18, %v4258_v17  ;;  %v4771_v33 = vor.u32 %v5095_v20, %v4770_v19 }
 0x3f2   :  { %2644 = vmatmul.bf16.gmra.mxu1 %v4247_v30  ;;  %2964 = vmatmul.bf16.gmra.mxu3 %v4759_v31 }
 0x3f3   :  { %v5695_v36 = vpack.c.bf16 %v3213_v35, %v3212_v34  ;;  %v3086_v52 = vmax.f32 %v2606_v41, 0.0  ;;  %v4263_v35 = vor.u32 %v4966_v21, %v4260_v22 }
 0x3f4   :  { %v2276_v38 = vpop.f32.mrf.mxu2 }
 0x3f5   :  { %5867 = vst [vmem:[%s8172_s3 + $0x3a0] sm:$0xff] %v5695_v36   ;;  %v2925_v39 = vpop.f32.mrf.mxu3  ;;  %v2277_v44 = vadd.f32 %v7972_v61, %v2276_v38  ;;  %v4775_v36 = vor.u32 %v5094_v25, %v4772_v26 }
 0x3f6   :  { %v1958_v40 = vpop.f32.mrf.mxu0 }
 0x3f7   :  { %v1959_v42 = vadd.f32 %v7972_v61, %v1958_v40  ;;  %v2607_v43 = vpop.f32.mrf.mxu1  ;;  %v2926_v58 = vadd.f32 %v2925_v39, %v2277_v44 }
 0x3f9   :  { %v2608_v45 = vadd.f32 %v2607_v43, %v1959_v42  ;;  %v3214_v5 = vmax.f32 %v2926_v58, 0.0 }
 0x3fb   :  { %v3087_v53 = vmax.f32 %v2608_v45, 0.0 }
 0x3fc   :  { %v2278_v56 = vpop.f32.mrf.mxu2 }
 0x3fd   :  { %v5380_v59 = vpack.c.bf16 %v3087_v53, %v3086_v52  ;;  %v2279_v60 = vadd.f32 %v7972_v61, %v2278_v56  ;;  %v2927_v62 = vpop.f32.mrf.mxu3 }
 0x3fe   :  { %v1961_v0 = vpop.f32.mrf.mxu0 }
 0x3ff   :  { %5804 = vst [vmem:[%s8172_s3 + $0x1a8] sm:$0xff] %v5380_v59   ;;  %v2928_v3 = vadd.f32 %v2927_v62, %v2279_v60  ;;  %v2610_v4 = vpop.f32.mrf.mxu1  ;;  %v1962_v8 = vadd.f32 %v7972_v61, %v1961_v0 }
 0x401   :  { %v3215_v6 = vmax.f32 %v2928_v3, 0.0  ;;  %2000 = vmatmul.bf16.gmra.mxu0 %v4251_v57  ;;  %2320 = vmatmul.bf16.gmra.mxu2 %v4763_v63  ;;  %v2611_v12 = vadd.f32 %v2610_v4, %v1962_v8 }
 0x402   :  { %2649 = vmatmul.bf16.gmra.mxu1 %v4255_v1  ;;  %2969 = vmatmul.bf16.gmra.mxu3 %v4767_v2 }
 0x403   :  { %v5700_v7 = vpack.c.bf16 %v3215_v6, %v3214_v5  ;;  %v3088_v23 = vmax.f32 %v2611_v12, 0.0 }
 0x404   :  { %v2281_v9 = vpop.f32.mrf.mxu2 }
 0x405   :  { %5868 = vst [vmem:[%s8172_s3 + $0x3a8] sm:$0xff] %v5700_v7   ;;  %v2930_v10 = vpop.f32.mrf.mxu3  ;;  %v2282_v15 = vadd.f32 %v7972_v61, %v2281_v9 }
 0x406   :  { %v1963_v11 = vpop.f32.mrf.mxu0 }
 0x407   :  { %v1964_v13 = vadd.f32 %v7972_v61, %v1963_v11  ;;  %v2612_v14 = vpop.f32.mrf.mxu1  ;;  %v2931_v29 = vadd.f32 %v2930_v10, %v2282_v15 }
 0x409   :  { %v2613_v16 = vadd.f32 %v2612_v14, %v1964_v13  ;;  %v3216_v39 = vmax.f32 %v2931_v29, 0.0 }
 0x40b   :  { %v3089_v24 = vmax.f32 %v2613_v16, 0.0 }
 0x40c   :  { %v2283_v27 = vpop.f32.mrf.mxu2 }
 0x40d   :  { %v5385_v30 = vpack.c.bf16 %v3089_v24, %v3088_v23  ;;  %v2284_v31 = vadd.f32 %v7972_v61, %v2283_v27  ;;  %v2932_v32 = vpop.f32.mrf.mxu3 }
 0x40e   :  { %v1966_v34 = vpop.f32.mrf.mxu0 }
 0x40f   :  { %5805 = vst [vmem:[%s8172_s3 + $0x1b0] sm:$0xff] %v5385_v30   ;;  %v2933_v37 = vadd.f32 %v2932_v32, %v2284_v31  ;;  %v2615_v38 = vpop.f32.mrf.mxu1  ;;  %v1967_v42 = vadd.f32 %v7972_v61, %v1966_v34 }
 0x411   :  { %v3217_v40 = vmax.f32 %v2933_v37, 0.0  ;;  %2005 = vmatmul.bf16.gmra.mxu0 %v4259_v28  ;;  %2325 = vmatmul.bf16.gmra.mxu2 %v4771_v33  ;;  %v2616_v46 = vadd.f32 %v2615_v38, %v1967_v42 }
 0x412   :  { %2654 = vmatmul.bf16.gmra.mxu1 %v4263_v35  ;;  %2974 = vmatmul.bf16.gmra.mxu3 %v4775_v36 }
 0x413   :  { %v5705_v41 = vpack.c.bf16 %v3217_v40, %v3216_v39  ;;  %v3090_v51 = vmax.f32 %v2616_v46, 0.0 }
 0x414   :  { %v2286_v43 = vpop.f32.mrf.mxu2 }
 0x415   :  { %5869 = vst [vmem:[%s8172_s3 + $0x3b0] sm:$0xff] %v5705_v41   ;;  %v2935_v44 = vpop.f32.mrf.mxu3  ;;  %v2287_v49 = vadd.f32 %v7972_v61, %v2286_v43 }
 0x416   :  { %v1968_v45 = vpop.f32.mrf.mxu0 }
 0x417   :  { %v1969_v47 = vadd.f32 %v7972_v61, %v1968_v45  ;;  %v2617_v48 = vpop.f32.mrf.mxu1  ;;  %v2936_v54 = vadd.f32 %v2935_v44, %v2287_v49 }
 0x419   :  { %v2618_v50 = vadd.f32 %v2617_v48, %v1969_v47  ;;  %v3218_v62 = vmax.f32 %v2936_v54, 0.0 }
 0x41b   :  { %v3091_v52 = vmax.f32 %v2618_v50, 0.0 }
 0x41c   :  { %v2288_v53 = vpop.f32.mrf.mxu2 }
 0x41d   :  { %v5390_v55 = vpack.c.bf16 %v3091_v52, %v3090_v51  ;;  %v2289_v56 = vadd.f32 %v7972_v61, %v2288_v53  ;;  %v2937_v57 = vpop.f32.mrf.mxu3 }
 0x41e   :  { %v1971_v58 = vpop.f32.mrf.mxu0 }
 0x41f   :  { %5806 = vst [vmem:[%s8172_s3 + $0x1b8] sm:$0xff] %v5390_v55   ;;  %v2938_v59 = vadd.f32 %v2937_v57, %v2289_v56  ;;  %v2620_v60 = vpop.f32.mrf.mxu1  ;;  %v1972_v1 = vadd.f32 %v7972_v61, %v1971_v58 }
 0x421   :  { %v3219_v63 = vmax.f32 %v2938_v59, 0.0  ;;  %v2621_v5 = vadd.f32 %v2620_v60, %v1972_v1 }
 0x423   :  { %v5710_v0 = vpack.c.bf16 %v3219_v63, %v3218_v62  ;;  %v3092_v10 = vmax.f32 %v2621_v5, 0.0 }
 0x424   :  { %v2291_v2 = vpop.f32.mrf.mxu2 }
 0x425   :  { %5870 = vst [vmem:[%s8172_s3 + $0x3b8] sm:$0xff] %v5710_v0   ;;  %v2940_v3 = vpop.f32.mrf.mxu3  ;;  %v2292_v8 = vadd.f32 %v7972_v61, %v2291_v2 }
 0x426   :  { %v1973_v4 = vpop.f32.mrf.mxu0 }
 0x427   :  { %v1974_v6 = vadd.f32 %v7972_v61, %v1973_v4  ;;  %v2622_v7 = vpop.f32.mrf.mxu1  ;;  %v2941_v13 = vadd.f32 %v2940_v3, %v2292_v8 }
 0x429   :  { %v2623_v9 = vadd.f32 %v2622_v7, %v1974_v6  ;;  %v3220_v20 = vmax.f32 %v2941_v13, 0.0 }
 0x42b   :  { %v3093_v11 = vmax.f32 %v2623_v9, 0.0 }
 0x42c   :  { %v2293_v12 = vpop.f32.mrf.mxu2 }
 0x42d   :  { %v5395_v14 = vpack.c.bf16 %v3093_v11, %v3092_v10  ;;  %v2294_v15 = vadd.f32 %v7972_v61, %v2293_v12  ;;  %v2942_v16 = vpop.f32.mrf.mxu3 }
 0x42e   :  { %v1976_v17 = vpop.f32.mrf.mxu0 }
 0x42f   :  { %5807 = vst [vmem:[%s8172_s3 + $0x1c0] sm:$0xff] %v5395_v14   ;;  %v2943_v18 = vadd.f32 %v2942_v16, %v2294_v15  ;;  %v2625_v19 = vpop.f32.mrf.mxu1  ;;  %v1977_v23 = vadd.f32 %v7972_v61, %v1976_v17 }
 0x431   :  { %v3221_v21 = vmax.f32 %v2943_v18, 0.0  ;;  %v2626_v27 = vadd.f32 %v2625_v19, %v1977_v23 }
 0x433   :  { %v5715_v22 = vpack.c.bf16 %v3221_v21, %v3220_v20  ;;  %v3094_v32 = vmax.f32 %v2626_v27, 0.0 }
 0x434   :  { %v2296_v24 = vpop.f32.mrf.mxu2 }
 0x435   :  { %5871 = vst [vmem:[%s8172_s3 + $0x3c0] sm:$0xff] %v5715_v22   ;;  %v2945_v25 = vpop.f32.mrf.mxu3  ;;  %v2297_v30 = vadd.f32 %v7972_v61, %v2296_v24 }
 0x436   :  { %v1978_v26 = vpop.f32.mrf.mxu0 }
 0x437   :  { %v1979_v28 = vadd.f32 %v7972_v61, %v1978_v26  ;;  %v2627_v29 = vpop.f32.mrf.mxu1  ;;  %v2946_v35 = vadd.f32 %v2945_v25, %v2297_v30 }
 0x439   :  { %v2628_v31 = vadd.f32 %v2627_v29, %v1979_v28  ;;  %v3222_v42 = vmax.f32 %v2946_v35, 0.0 }
 0x43b   :  { %v3095_v33 = vmax.f32 %v2628_v31, 0.0 }
 0x43c   :  { %v2298_v34 = vpop.f32.mrf.mxu2 }
 0x43d   :  { %v5400_v36 = vpack.c.bf16 %v3095_v33, %v3094_v32  ;;  %v2299_v37 = vadd.f32 %v7972_v61, %v2298_v34  ;;  %v2947_v38 = vpop.f32.mrf.mxu3 }
 0x43e   :  { %v1981_v39 = vpop.f32.mrf.mxu0 }
 0x43f   :  { %5808 = vst [vmem:[%s8172_s3 + $0x1c8] sm:$0xff] %v5400_v36   ;;  %v2948_v40 = vadd.f32 %v2947_v38, %v2299_v37  ;;  %v2630_v41 = vpop.f32.mrf.mxu1  ;;  %v1982_v45 = vadd.f32 %v7972_v61, %v1981_v39 }
 0x441   :  { %v3223_v43 = vmax.f32 %v2948_v40, 0.0  ;;  %v2631_v49 = vadd.f32 %v2630_v41, %v1982_v45 }
 0x443   :  { %v5720_v44 = vpack.c.bf16 %v3223_v43, %v3222_v42  ;;  %v3096_v54 = vmax.f32 %v2631_v49, 0.0 }
 0x444   :  { %v2301_v46 = vpop.f32.mrf.mxu2 }
 0x445   :  { %5872 = vst [vmem:[%s8172_s3 + $0x3c8] sm:$0xff] %v5720_v44   ;;  %v2950_v47 = vpop.f32.mrf.mxu3  ;;  %v2302_v52 = vadd.f32 %v7972_v61, %v2301_v46 }
 0x446   :  { %v1983_v48 = vpop.f32.mrf.mxu0 }
 0x447   :  { %v1984_v50 = vadd.f32 %v7972_v61, %v1983_v48  ;;  %v2632_v51 = vpop.f32.mrf.mxu1  ;;  %v2951_v57 = vadd.f32 %v2950_v47, %v2302_v52 }
 0x449   :  { %v2633_v53 = vadd.f32 %v2632_v51, %v1984_v50  ;;  %v3224_v1 = vmax.f32 %v2951_v57, 0.0 }
 0x44b   :  { %v3097_v55 = vmax.f32 %v2633_v53, 0.0 }
 0x44c   :  { %v2303_v56 = vpop.f32.mrf.mxu2 }
 0x44d   :  { %v5405_v58 = vpack.c.bf16 %v3097_v55, %v3096_v54  ;;  %v2304_v59 = vadd.f32 %v7972_v61, %v2303_v56  ;;  %v2952_v60 = vpop.f32.mrf.mxu3 }
 0x44e   :  { %v1986_v62 = vpop.f32.mrf.mxu0 }
 0x44f   :  { %5809 = vst [vmem:[%s8172_s3 + $0x1d0] sm:$0xff] %v5405_v58   ;;  %v2953_v63 = vadd.f32 %v2952_v60, %v2304_v59  ;;  %v2635_v0 = vpop.f32.mrf.mxu1  ;;  %v1987_v4 = vadd.f32 %v7972_v61, %v1986_v62 }
 0x451   :  { %v3225_v2 = vmax.f32 %v2953_v63, 0.0  ;;  %v2636_v8 = vadd.f32 %v2635_v0, %v1987_v4 }
 0x453   :  { %v5725_v3 = vpack.c.bf16 %v3225_v2, %v3224_v1  ;;  %v3098_v13 = vmax.f32 %v2636_v8, 0.0 }
 0x454   :  { %v2306_v5 = vpop.f32.mrf.mxu2 }
 0x455   :  { %5873 = vst [vmem:[%s8172_s3 + $0x3d0] sm:$0xff] %v5725_v3   ;;  %v2955_v6 = vpop.f32.mrf.mxu3  ;;  %v2307_v11 = vadd.f32 %v7972_v61, %v2306_v5 }
 0x456   :  { %v1988_v7 = vpop.f32.mrf.mxu0 }
 0x457   :  { %v1989_v9 = vadd.f32 %v7972_v61, %v1988_v7  ;;  %v2637_v10 = vpop.f32.mrf.mxu1  ;;  %v2956_v16 = vadd.f32 %v2955_v6, %v2307_v11 }
 0x459   :  { %v2638_v12 = vadd.f32 %v2637_v10, %v1989_v9  ;;  %v3226_v23 = vmax.f32 %v2956_v16, 0.0 }
 0x45b   :  { %v3099_v14 = vmax.f32 %v2638_v12, 0.0 }
 0x45c   :  { %v2308_v15 = vpop.f32.mrf.mxu2 }
 0x45d   :  { %v5410_v17 = vpack.c.bf16 %v3099_v14, %v3098_v13  ;;  %v2309_v18 = vadd.f32 %v7972_v61, %v2308_v15  ;;  %v2957_v19 = vpop.f32.mrf.mxu3 }
 0x45e   :  { %v1991_v20 = vpop.f32.mrf.mxu0 }
 0x45f   :  { %5810 = vst [vmem:[%s8172_s3 + $0x1d8] sm:$0xff] %v5410_v17   ;;  %v2958_v21 = vadd.f32 %v2957_v19, %v2309_v18  ;;  %v2640_v22 = vpop.f32.mrf.mxu1  ;;  %v1992_v26 = vadd.f32 %v7972_v61, %v1991_v20 }
 0x461   :  { %v3227_v24 = vmax.f32 %v2958_v21, 0.0  ;;  %v2641_v30 = vadd.f32 %v2640_v22, %v1992_v26 }
 0x463   :  { %v5730_v25 = vpack.c.bf16 %v3227_v24, %v3226_v23  ;;  %v3100_v35 = vmax.f32 %v2641_v30, 0.0 }
 0x464   :  { %v2311_v27 = vpop.f32.mrf.mxu2 }
 0x465   :  { %5874 = vst [vmem:[%s8172_s3 + $0x3d8] sm:$0xff] %v5730_v25   ;;  %v2960_v28 = vpop.f32.mrf.mxu3  ;;  %v2312_v33 = vadd.f32 %v7972_v61, %v2311_v27 }
 0x466   :  { %v1993_v29 = vpop.f32.mrf.mxu0 }
 0x467   :  { %v1994_v31 = vadd.f32 %v7972_v61, %v1993_v29  ;;  %v2642_v32 = vpop.f32.mrf.mxu1  ;;  %v2961_v38 = vadd.f32 %v2960_v28, %v2312_v33 }
 0x469   :  { %v2643_v34 = vadd.f32 %v2642_v32, %v1994_v31  ;;  %v3228_v45 = vmax.f32 %v2961_v38, 0.0 }
 0x46b   :  { %v3101_v36 = vmax.f32 %v2643_v34, 0.0 }
 0x46c   :  { %v2313_v37 = vpop.f32.mrf.mxu2 }
 0x46d   :  { %v5415_v39 = vpack.c.bf16 %v3101_v36, %v3100_v35  ;;  %v2314_v40 = vadd.f32 %v7972_v61, %v2313_v37  ;;  %v2962_v41 = vpop.f32.mrf.mxu3 }
 0x46e   :  { %v1996_v42 = vpop.f32.mrf.mxu0 }
 0x46f   :  { %5811 = vst [vmem:[%s8172_s3 + $0x1e0] sm:$0xff] %v5415_v39   ;;  %v2963_v43 = vadd.f32 %v2962_v41, %v2314_v40  ;;  %v2645_v44 = vpop.f32.mrf.mxu1  ;;  %v1997_v48 = vadd.f32 %v7972_v61, %v1996_v42 }
 0x471   :  { %v3229_v46 = vmax.f32 %v2963_v43, 0.0  ;;  %v2646_v52 = vadd.f32 %v2645_v44, %v1997_v48 }
 0x473   :  { %v5735_v47 = vpack.c.bf16 %v3229_v46, %v3228_v45  ;;  %v3102_v57 = vmax.f32 %v2646_v52, 0.0 }
 0x474   :  { %v2316_v49 = vpop.f32.mrf.mxu2 }
 0x475   :  { %5875 = vst [vmem:[%s8172_s3 + $0x3e0] sm:$0xff] %v5735_v47   ;;  %v2965_v50 = vpop.f32.mrf.mxu3  ;;  %v2317_v55 = vadd.f32 %v7972_v61, %v2316_v49 }
 0x476   :  { %v1998_v51 = vpop.f32.mrf.mxu0 }
 0x477   :  { %v1999_v53 = vadd.f32 %v7972_v61, %v1998_v51  ;;  %v2647_v54 = vpop.f32.mrf.mxu1  ;;  %v2966_v60 = vadd.f32 %v2965_v50, %v2317_v55 }
 0x479   :  { %v2648_v56 = vadd.f32 %v2647_v54, %v1999_v53  ;;  %v3230_v4 = vmax.f32 %v2966_v60, 0.0 }
 0x47b   :  { %v3103_v58 = vmax.f32 %v2648_v56, 0.0 }
 0x47c   :  { %v2318_v59 = vpop.f32.mrf.mxu2 }
 0x47d   :  { %v5420_v62 = vpack.c.bf16 %v3103_v58, %v3102_v57  ;;  %v2319_v63 = vadd.f32 %v7972_v61, %v2318_v59  ;;  %v2967_v0 = vpop.f32.mrf.mxu3 }
 0x47e   :  { %v2001_v1 = vpop.f32.mrf.mxu0 }
 0x47f   :  { %5812 = vst [vmem:[%s8172_s3 + $0x1e8] sm:$0xff] %v5420_v62   ;;  %v2968_v2 = vadd.f32 %v2967_v0, %v2319_v63  ;;  %v2650_v3 = vpop.f32.mrf.mxu1  ;;  %v2002_v7 = vadd.f32 %v7972_v61, %v2001_v1 }
 0x481   :  { %v3231_v5 = vmax.f32 %v2968_v2, 0.0  ;;  %v2651_v11 = vadd.f32 %v2650_v3, %v2002_v7 }
 0x483   :  { %v5740_v6 = vpack.c.bf16 %v3231_v5, %v3230_v4  ;;  %v3104_v16 = vmax.f32 %v2651_v11, 0.0 }
 0x484   :  { %v2321_v8 = vpop.f32.mrf.mxu2 }
 0x485   :  { %5876 = vst [vmem:[%s8172_s3 + $0x3e8] sm:$0xff] %v5740_v6   ;;  %v2970_v9 = vpop.f32.mrf.mxu3  ;;  %v2322_v14 = vadd.f32 %v7972_v61, %v2321_v8 }
 0x486   :  { %v2003_v10 = vpop.f32.mrf.mxu0 }
 0x487   :  { %v2004_v12 = vadd.f32 %v7972_v61, %v2003_v10  ;;  %v2652_v13 = vpop.f32.mrf.mxu1  ;;  %v2971_v19 = vadd.f32 %v2970_v9, %v2322_v14 }
 0x489   :  { %v2653_v15 = vadd.f32 %v2652_v13, %v2004_v12  ;;  %v3232_v26 = vmax.f32 %v2971_v19, 0.0 }
 0x48b   :  { %v3105_v17 = vmax.f32 %v2653_v15, 0.0 }
 0x48c   :  { %v2323_v18 = vpop.f32.mrf.mxu2 }
 0x48d   :  { %v5425_v20 = vpack.c.bf16 %v3105_v17, %v3104_v16  ;;  %v2324_v21 = vadd.f32 %v7972_v61, %v2323_v18  ;;  %v2972_v22 = vpop.f32.mrf.mxu3 }
 0x48e   :  { %v2006_v23 = vpop.f32.mrf.mxu0 }
 0x48f   :  { %5813 = vst [vmem:[%s8172_s3 + $0x1f0] sm:$0xff] %v5425_v20   ;;  %v2973_v24 = vadd.f32 %v2972_v22, %v2324_v21  ;;  %v2655_v25 = vpop.f32.mrf.mxu1  ;;  %v2007_v29 = vadd.f32 %v7972_v61, %v2006_v23 }
 0x491   :  { %v3233_v27 = vmax.f32 %v2973_v24, 0.0  ;;  %v2656_v33 = vadd.f32 %v2655_v25, %v2007_v29 }
 0x493   :  { %v5745_v28 = vpack.c.bf16 %v3233_v27, %v3232_v26  ;;  %v3106_v38 = vmax.f32 %v2656_v33, 0.0 }
 0x494   :  { %v2326_v30 = vpop.f32.mrf.mxu2 }
 0x495   :  { %5877 = vst [vmem:[%s8172_s3 + $0x3f0] sm:$0xff] %v5745_v28   ;;  %v2975_v31 = vpop.f32.mrf.mxu3  ;;  %v2327_v36 = vadd.f32 %v7972_v61, %v2326_v30 }
 0x496   :  { %v2008_v32 = vpop.f32.mrf.mxu0 }
 0x497   :  { %v2009_v34 = vadd.f32 %v7972_v61, %v2008_v32  ;;  %v2657_v35 = vpop.f32.mrf.mxu1  ;;  %v2976_v41 = vadd.f32 %v2975_v31, %v2327_v36 }
 0x499   :  { %v2658_v37 = vadd.f32 %v2657_v35, %v2009_v34  ;;  %v3234_v46 = vmax.f32 %v2976_v41, 0.0 }
 0x49b   :  { %v3107_v39 = vmax.f32 %v2658_v37, 0.0 }
 0x49c   :  { %v2328_v40 = vpop.f32.mrf.mxu2 }
 0x49d   :  { %v5430_v42 = vpack.c.bf16 %v3107_v39, %v3106_v38  ;;  %v2329_v43 = vadd.f32 %v7972_v61, %v2328_v40  ;;  %v2977_v44 = vpop.f32.mrf.mxu3 }
 0x49f   :  { %5814 = vst [vmem:[%s8172_s3 + $0x1f8] sm:$0xff] %v5430_v42   ;;  %v2978_v45 = vadd.f32 %v2977_v44, %v2329_v43 }
 0x4a1   :  { %v3235_v47 = vmax.f32 %v2978_v45, 0.0 }
 0x4a3   :  { %v5750_v48 = vpack.c.bf16 %v3235_v47, %v3234_v46 }
 0x4a5   :  { %5878 = vst [vmem:[%s8172_s3 + $0x3f8] sm:$0xff] %v5750_v48  }

// kernel: encoder_forward.8
= control target key start
LH: loop header
LB: loop body
LE: loop exit
PB: predicated region body
PF: predicated region fallthrough
CT: control target
= control target key end

     0   :  { %s3961_s1 = inlined_call_operand.vmem [shape: bf16[512,128], index: 1, kind: input, shape index: {}]   ;;  %s3962_s2 = inlined_call_operand.vmem [shape: f32[1,128], index: 2, kind: input, shape index: {}]   ;;  %s3963_s0 = inlined_call_operand.vmem [shape: bf16[512,512], index: 0, kind: input, shape index: {}]   ;;  %s3964_s3 = inlined_call_operand.vmem [shape: bf16[512,128], index: 3, kind: output, shape index: {}]  }
   0x1   :  { %v2689_v0 = vld [vmem:[%s3961_s1 + $0x38] sm:$0xff]  ;;  %v2688_v4 = vld [vmem:[%s3961_s1 + $0x30] sm:$0xff]  ;;  %v2687_v8 = vld [vmem:[%s3961_s1 + $0x28] sm:$0xff] }
   0x2   :  { %v2697_v1 = vld [vmem:[%s3961_s1 + $0x78] sm:$0xff]  ;;  %1042 = vmatpush.bf16.msra.mxu0 %v2689_v0  ;;  %v2696_v5 = vld [vmem:[%s3961_s1 + $0x70] sm:$0xff]  ;;  %v2695_v9 = vld [vmem:[%s3961_s1 + $0x68] sm:$0xff] }
   0x3   :  { %v2705_v2 = vld [vmem:[%s3961_s1 + $0xb8] sm:$0xff]  ;;  %1211 = vmatpush.bf16.msra.mxu1 %v2697_v1  ;;  %v2704_v6 = vld [vmem:[%s3961_s1 + $0xb0] sm:$0xff]  ;;  %v2703_v10 = vld [vmem:[%s3961_s1 + $0xa8] sm:$0xff] }
   0x4   :  { %v2713_v3 = vld [vmem:[%s3961_s1 + $0xf8] sm:$0xff]  ;;  %1380 = vmatpush.bf16.msra.mxu2 %v2705_v2  ;;  %v2712_v7 = vld [vmem:[%s3961_s1 + $0xf0] sm:$0xff]  ;;  %v2711_v11 = vld [vmem:[%s3961_s1 + $0xe8] sm:$0xff] }
   0x5   :  { %1549 = vmatpush.bf16.msra.mxu3 %v2713_v3  ;;  %v2686_v12 = vld [vmem:[%s3961_s1 + $0x20] sm:$0xff]  ;;  %v2685_v16 = vld [vmem:[%s3961_s1 + $0x18] sm:$0xff]  ;;  %v2684_v20 = vld [vmem:[%s3961_s1 + $0x10] sm:$0xff] }
   0x6   :  { %1043 = vmatpush.bf16.msra.mxu0 %v2688_v4  ;;  %v2694_v13 = vld [vmem:[%s3961_s1 + $0x60] sm:$0xff]  ;;  %v2693_v17 = vld [vmem:[%s3961_s1 + $0x58] sm:$0xff]  ;;  %v2692_v21 = vld [vmem:[%s3961_s1 + $0x50] sm:$0xff] }
   0x7   :  { %1212 = vmatpush.bf16.msra.mxu1 %v2696_v5  ;;  %v2702_v14 = vld [vmem:[%s3961_s1 + $0xa0] sm:$0xff]  ;;  %v2701_v18 = vld [vmem:[%s3961_s1 + $0x98] sm:$0xff]  ;;  %v2700_v22 = vld [vmem:[%s3961_s1 + $0x90] sm:$0xff] }
   0x8   :  { %1381 = vmatpush.bf16.msra.mxu2 %v2704_v6  ;;  %v2710_v15 = vld [vmem:[%s3961_s1 + $0xe0] sm:$0xff]  ;;  %v2709_v19 = vld [vmem:[%s3961_s1 + $0xd8] sm:$0xff]  ;;  %v2708_v23 = vld [vmem:[%s3961_s1 + $0xd0] sm:$0xff] }
   0x9   :  { %1550 = vmatpush.bf16.msra.mxu3 %v2712_v7  ;;  %v2683_v24 = vld [vmem:[%s3961_s1 + $0x8] sm:$0xff]  ;;  %v2682_v28 = vld [vmem:[%s3961_s1] sm:$0xff]  ;;  %v2556_v33 = vld [vmem:[%s3963_s0 + $0xc] sm:$0xf0] }
   0xa   :  { %1044 = vmatpush.bf16.msra.mxu0 %v2687_v8  ;;  %v2691_v25 = vld [vmem:[%s3961_s1 + $0x48] sm:$0xff]  ;;  %v2690_v29 = vld [vmem:[%s3961_s1 + $0x40] sm:$0xff]  ;;  %v1918_v35 = vld [vmem:[%s3963_s0 + $0x10] sm:$0xf0] }
   0xb   :  { %1213 = vmatpush.bf16.msra.mxu1 %v2695_v9  ;;  %v2699_v26 = vld [vmem:[%s3961_s1 + $0x88] sm:$0xff]  ;;  %v2698_v30 = vld [vmem:[%s3961_s1 + $0x80] sm:$0xff]  ;;  %v2557_v37 = vld [vmem:[%s3963_s0 + $0x14] sm:$0xf0] }
   0xc   :  { %1382 = vmatpush.bf16.msra.mxu2 %v2703_v10  ;;  %v2707_v27 = vld [vmem:[%s3961_s1 + $0xc8] sm:$0xff]  ;;  %v2706_v31 = vld [vmem:[%s3961_s1 + $0xc0] sm:$0xff]  ;;  %v1926_v39 = vld [vmem:[%s3963_s0 + $0x18] sm:$0xf0] }
   0xd   :  { %1551 = vmatpush.bf16.msra.mxu3 %v2711_v11  ;;  %v1916_v32 = vld [vmem:[%s3963_s0] sm:$0xf]  ;;  %v2554_v34 = vld [vmem:[%s3963_s0 + $0x4] sm:$0xf]  ;;  %v1924_v36 = vld [vmem:[%s3963_s0 + $0x8] sm:$0xf] }
   0xe   :  { %1045 = vmatpush.bf16.msra.mxu0 %v2686_v12  ;;  %v2555_v38 = vld [vmem:[%s3963_s0 + $0xc] sm:$0xf]  ;;  %v1917_v40 = vor.u32 %v2556_v33, %v1916_v32  ;;  %v1921_v41 = vor.u32 %v2554_v34, %v1918_v35  ;;  %v1925_v42 = vor.u32 %v2557_v37, %v1924_v36  ;;  %v1932_v44 = vld [vmem:[%s3963_s0 + $0x20] sm:$0xf]  ;;  %v2560_v45 = vld [vmem:[%s3963_s0 + $0x2c] sm:$0xf0] }
   0xf   :  { %1214 = vmatpush.bf16.msra.mxu1 %v2694_v13  ;;  %v1929_v43 = vor.u32 %v2555_v38, %v1926_v39  ;;  %v2558_v46 = vld [vmem:[%s3963_s0 + $0x24] sm:$0xf]  ;;  %v1934_v47 = vld [vmem:[%s3963_s0 + $0x30] sm:$0xf0]  ;;  %v1940_v48 = vld [vmem:[%s3963_s0 + $0x28] sm:$0xf]  ;;  %v1933_v52 = vor.u32 %v2560_v45, %v1932_v44 }
  0x10   :  { %1383 = vmatpush.bf16.msra.mxu2 %v2702_v14  ;;  %v2561_v49 = vld [vmem:[%s3963_s0 + $0x34] sm:$0xf0]  ;;  %v2559_v50 = vld [vmem:[%s3963_s0 + $0x2c] sm:$0xf]  ;;  %v1942_v51 = vld [vmem:[%s3963_s0 + $0x38] sm:$0xf0]  ;;  %v1937_v53 = vor.u32 %v2558_v46, %v1934_v47 }
  0x11   :  { %1552 = vmatpush.bf16.msra.mxu3 %v2710_v15  ;;  %v1941_v54 = vor.u32 %v2561_v49, %v1940_v48  ;;  %v1945_v55 = vor.u32 %v2559_v50, %v1942_v51  ;;  %v1948_v56 = vld [vmem:[%s3963_s0 + $0x40] sm:$0xf]  ;;  %v2564_v57 = vld [vmem:[%s3963_s0 + $0x4c] sm:$0xf0]  ;;  %v2562_v58 = vld [vmem:[%s3963_s0 + $0x44] sm:$0xf] }
  0x12   :  { %1046 = vmatpush.bf16.msra.mxu0 %v2685_v16  ;;  %v1950_v59 = vld [vmem:[%s3963_s0 + $0x50] sm:$0xf0]  ;;  %v1956_v60 = vld [vmem:[%s3963_s0 + $0x48] sm:$0xf]  ;;  %v2565_v61 = vld [vmem:[%s3963_s0 + $0x54] sm:$0xf0]  ;;  %v1949_v0 = vor.u32 %v2564_v57, %v1948_v56 }
  0x13   :  { %1215 = vmatpush.bf16.msra.mxu1 %v2693_v17  ;;  %v2563_v62 = vld [vmem:[%s3963_s0 + $0x4c] sm:$0xf]  ;;  %v1958_v63 = vld [vmem:[%s3963_s0 + $0x58] sm:$0xf0]  ;;  %v1953_v1 = vor.u32 %v2562_v58, %v1950_v59  ;;  %v1957_v2 = vor.u32 %v2565_v61, %v1956_v60  ;;  %v1964_v4 = vld [vmem:[%s3963_s0 + $0x60] sm:$0xf] }
  0x14   :  { %1384 = vmatpush.bf16.msra.mxu2 %v2701_v18  ;;  %v1961_v3 = vor.u32 %v2563_v62, %v1958_v63  ;;  %v2568_v5 = vld [vmem:[%s3963_s0 + $0x6c] sm:$0xf0]  ;;  %v2566_v6 = vld [vmem:[%s3963_s0 + $0x64] sm:$0xf]  ;;  %v1966_v7 = vld [vmem:[%s3963_s0 + $0x70] sm:$0xf0] }
  0x15   :  { %1553 = vmatpush.bf16.msra.mxu3 %v2709_v19  ;;  %v1972_v8 = vld [vmem:[%s3963_s0 + $0x68] sm:$0xf]  ;;  %v2569_v9 = vld [vmem:[%s3963_s0 + $0x74] sm:$0xf0]  ;;  %v2567_v10 = vld [vmem:[%s3963_s0 + $0x6c] sm:$0xf]  ;;  %v1965_v12 = vor.u32 %v2568_v5, %v1964_v4  ;;  %v1969_v13 = vor.u32 %v2566_v6, %v1966_v7 }
  0x16   :  { %1047 = vmatpush.bf16.msra.mxu0 %v2684_v20  ;;  %v1974_v11 = vld [vmem:[%s3963_s0 + $0x78] sm:$0xf0]  ;;  %v1973_v14 = vor.u32 %v2569_v9, %v1972_v8  ;;  %v1980_v16 = vld [vmem:[%s3963_s0 + $0x80] sm:$0xf]  ;;  %v2572_v17 = vld [vmem:[%s3963_s0 + $0x8c] sm:$0xf0] }
  0x17   :  { %1216 = vmatpush.bf16.msra.mxu1 %v2692_v21  ;;  %v1977_v15 = vor.u32 %v2567_v10, %v1974_v11  ;;  %v2570_v18 = vld [vmem:[%s3963_s0 + $0x84] sm:$0xf]  ;;  %v1982_v19 = vld [vmem:[%s3963_s0 + $0x90] sm:$0xf0]  ;;  %v1988_v20 = vld [vmem:[%s3963_s0 + $0x88] sm:$0xf] }
  0x18   :  { %1385 = vmatpush.bf16.msra.mxu2 %v2700_v22  ;;  %v2573_v21 = vld [vmem:[%s3963_s0 + $0x94] sm:$0xf0]  ;;  %v2571_v22 = vld [vmem:[%s3963_s0 + $0x8c] sm:$0xf]  ;;  %v2004_v32 = vld [vmem:[%s3963_s0 + $0xa8] sm:$0xf] }
  0x19   :  { %1554 = vmatpush.bf16.msra.mxu3 %v2708_v23  ;;  %v1990_v23 = vld [vmem:[%s3963_s0 + $0x98] sm:$0xf0]  ;;  %v2577_v33 = vld [vmem:[%s3963_s0 + $0xb4] sm:$0xf0]  ;;  %v2575_v34 = vld [vmem:[%s3963_s0 + $0xac] sm:$0xf] }
  0x1a   :  { %1048 = vmatpush.bf16.msra.mxu0 %v2683_v24  ;;  %v1981_v24 = vor.u32 %v2572_v17, %v1980_v16  ;;  %v2006_v35 = vld [vmem:[%s3963_s0 + $0xb8] sm:$0xf0]  ;;  %v2005_v38 = vor.u32 %v2577_v33, %v2004_v32  ;;  %v2020_v44 = vld [vmem:[%s3963_s0 + $0xc8] sm:$0xf]  ;;  %v2581_v45 = vld [vmem:[%s3963_s0 + $0xd4] sm:$0xf0] }
  0x1b   :  { %1217 = vmatpush.bf16.msra.mxu1 %v2691_v25  ;;  %v1985_v25 = vor.u32 %v2570_v18, %v1982_v19  ;;  %v2009_v39 = vor.u32 %v2575_v34, %v2006_v35  ;;  %v2579_v46 = vld [vmem:[%s3963_s0 + $0xcc] sm:$0xf]  ;;  %v2022_v47 = vld [vmem:[%s3963_s0 + $0xd8] sm:$0xf0]  ;;  %v2021_v50 = vor.u32 %v2581_v45, %v2020_v44  ;;  %v2036_v56 = vld [vmem:[%s3963_s0 + $0xe8] sm:$0xf] }
  0x1c   :  { %1386 = vmatpush.bf16.msra.mxu2 %v2699_v26  ;;  %v1989_v26 = vor.u32 %v2573_v21, %v1988_v20  ;;  %v2025_v51 = vor.u32 %v2579_v46, %v2022_v47  ;;  %v2585_v57 = vld [vmem:[%s3963_s0 + $0xf4] sm:$0xf0]  ;;  %v2583_v58 = vld [vmem:[%s3963_s0 + $0xec] sm:$0xf]  ;;  %v2038_v59 = vld [vmem:[%s3963_s0 + $0xf8] sm:$0xf0] }
  0x1d   :  { %1555 = vmatpush.bf16.msra.mxu3 %v2707_v27  ;;  %v1993_v27 = vor.u32 %v2571_v22, %v1990_v23  ;;  %v2037_v62 = vor.u32 %v2585_v57, %v2036_v56  ;;  %v2041_v63 = vor.u32 %v2583_v58, %v2038_v59  ;;  %v2052_v4 = vld [vmem:[%s3963_s0 + $0x108] sm:$0xf]  ;;  %v2589_v5 = vld [vmem:[%s3963_s0 + $0x114] sm:$0xf0]  ;;  %v2587_v6 = vld [vmem:[%s3963_s0 + $0x10c] sm:$0xf] }
  0x1e   :  { %1049 = vmatpush.bf16.msra.mxu0 %v2682_v28  ;;  %v1996_v28 = vld [vmem:[%s3963_s0 + $0xa0] sm:$0xf]  ;;  %v2054_v7 = vld [vmem:[%s3963_s0 + $0x118] sm:$0xf0]  ;;  %v2592_v23 = vld [vmem:[%s3963_s0 + $0x12c] sm:$0xf0] }
  0x1f   :  { %1218 = vmatpush.bf16.msra.mxu1 %v2690_v29  ;;  %v2576_v29 = vld [vmem:[%s3963_s0 + $0xac] sm:$0xf0]  ;;  %v3242_v10 = vld [vmem:[%s3962_s2] ss:$0 sm:$0xff]  ;;  %v2594_v56 = vld [vmem:[%s3963_s0 + $0x144] sm:$0xf] }
  0x20   :  { %1387 = vmatpush.bf16.msra.mxu2 %v2698_v30  ;;  %v2574_v30 = vld [vmem:[%s3963_s0 + $0xa4] sm:$0xf]  ;;  %v1997_v36 = vor.u32 %v2576_v29, %v1996_v28  ;;  %v2060_v22 = vld [vmem:[%s3963_s0 + $0x120] sm:$0xf]  ;;  %v2593_v28 = vld [vmem:[%s3963_s0 + $0x134] sm:$0xf0] }
  0x21   :  { %1556 = vmatpush.bf16.msra.mxu3 %v2706_v31  ;;  %1050 = vmatmul.bf16.vlgmr.msra.gmra.mxu0 %v1917_v40  ;;  %v1998_v31 = vld [vmem:[%s3963_s0 + $0xb0] sm:$0xf0]  ;;  %v2012_v40 = vld [vmem:[%s3963_s0 + $0xc0] sm:$0xf]  ;;  %v2591_v29 = vld [vmem:[%s3963_s0 + $0x12c] sm:$0xf]  ;;  %v2061_v34 = vor.u32 %v2592_v23, %v2060_v22 }
  0x22   :  { %1219 = vmatmul.bf16.vlgmr.msra.gmra.mxu1 %v1921_v41  ;;  %v2001_v37 = vor.u32 %v2574_v30, %v1998_v31  ;;  %v2580_v41 = vld [vmem:[%s3963_s0 + $0xcc] sm:$0xf0]  ;;  %v2070_v30 = vld [vmem:[%s3963_s0 + $0x138] sm:$0xf0]  ;;  %v2078_v57 = vld [vmem:[%s3963_s0 + $0x150] sm:$0xf0] }
  0x23   :  { %1388 = vmatmul.bf16.vlgmr.msra.gmra.mxu2 %v1925_v42  ;;  %v2578_v42 = vld [vmem:[%s3963_s0 + $0xc4] sm:$0xf]  ;;  %v2013_v48 = vor.u32 %v2580_v41, %v2012_v40  ;;  %v2073_v41 = vor.u32 %v2591_v29, %v2070_v30  ;;  %v2084_v58 = vld [vmem:[%s3963_s0 + $0x148] sm:$0xf]  ;;  %v2597_v59 = vld [vmem:[%s3963_s0 + $0x154] sm:$0xf0] }
  0x24   :  { %1557 = vmatmul.bf16.vlgmr.msra.gmra.mxu3 %v1929_v43  ;;  %v2014_v43 = vld [vmem:[%s3963_s0 + $0xd0] sm:$0xf0]  ;;  %v2600_v22 = vld [vmem:[%s3963_s0 + $0x16c] sm:$0xf0]  ;;  %v2102_v29 = vld [vmem:[%s3963_s0 + $0x178] sm:$0xf0] }
  0x25   :  { %v2017_v49 = vor.u32 %v2578_v42, %v2014_v43 }
  0x31   :  { %1055 = vmatmul.bf16.gmra.mxu0 %v1933_v52  ;;  %v2028_v52 = vld [vmem:[%s3963_s0 + $0xe0] sm:$0xf] }
  0x32   :  { %1224 = vmatmul.bf16.gmra.mxu1 %v1937_v53  ;;  %v2584_v53 = vld [vmem:[%s3963_s0 + $0xec] sm:$0xf0] }
  0x33   :  { %1393 = vmatmul.bf16.gmra.mxu2 %v1941_v54  ;;  %v2582_v54 = vld [vmem:[%s3963_s0 + $0xe4] sm:$0xf]  ;;  %v2029_v60 = vor.u32 %v2584_v53, %v2028_v52  ;;  %v2076_v53 = vld [vmem:[%s3963_s0 + $0x140] sm:$0xf] }
  0x34   :  { %1562 = vmatmul.bf16.gmra.mxu3 %v1945_v55  ;;  %v2030_v55 = vld [vmem:[%s3963_s0 + $0xf0] sm:$0xf0] }
  0x35   :  { %v2033_v61 = vor.u32 %v2582_v54, %v2030_v55  ;;  %v2596_v54 = vld [vmem:[%s3963_s0 + $0x14c] sm:$0xf0] }
  0x41   :  { %1060 = vmatmul.bf16.gmra.mxu0 %v1949_v0  ;;  %v2044_v0 = vld [vmem:[%s3963_s0 + $0x100] sm:$0xf] }
  0x42   :  { %1229 = vmatmul.bf16.gmra.mxu1 %v1953_v1  ;;  %v2588_v1 = vld [vmem:[%s3963_s0 + $0x10c] sm:$0xf0] }
  0x43   :  { %1398 = vmatmul.bf16.gmra.mxu2 %v1957_v2  ;;  %v2586_v2 = vld [vmem:[%s3963_s0 + $0x104] sm:$0xf]  ;;  %v2045_v8 = vor.u32 %v2588_v1, %v2044_v0  ;;  %v2077_v1 = vor.u32 %v2596_v54, %v2076_v53  ;;  %v2604_v53 = vld [vmem:[%s3963_s0 + $0x18c] sm:$0xf0] }
  0x44   :  { %1567 = vmatmul.bf16.gmra.mxu3 %v1961_v3  ;;  %v2046_v3 = vld [vmem:[%s3963_s0 + $0x110] sm:$0xf0] }
  0x45   :  { %v2049_v9 = vor.u32 %v2586_v2, %v2046_v3  ;;  %v2081_v2 = vor.u32 %v2594_v56, %v2078_v57  ;;  %v2110_v56 = vld [vmem:[%s3963_s0 + $0x190] sm:$0xf0]  ;;  %v2116_v57 = vld [vmem:[%s3963_s0 + $0x188] sm:$0xf] }
  0x51   :  { %1065 = vmatmul.bf16.gmra.mxu0 %v1965_v12 }
  0x52   :  { %1234 = vmatmul.bf16.gmra.mxu1 %v1969_v13  ;;  %v2053_v13 = vor.u32 %v2589_v5, %v2052_v4 }
  0x53   :  { %1403 = vmatmul.bf16.gmra.mxu2 %v1973_v14  ;;  %v2057_v14 = vor.u32 %v2587_v6, %v2054_v7  ;;  %v2085_v7 = vor.u32 %v2597_v59, %v2084_v58  ;;  %v2605_v58 = vld [vmem:[%s3963_s0 + $0x194] sm:$0xf0]  ;;  %v2603_v59 = vld [vmem:[%s3963_s0 + $0x18c] sm:$0xf] }
  0x54   :  { %1572 = vmatmul.bf16.gmra.mxu3 %v1977_v15 }
  0x61   :  { %1070 = vmatmul.bf16.gmra.mxu0 %v1981_v24 }
  0x62   :  { %1239 = vmatmul.bf16.gmra.mxu1 %v1985_v25  ;;  %v2590_v25 = vld [vmem:[%s3963_s0 + $0x124] sm:$0xf] }
  0x63   :  { %1408 = vmatmul.bf16.gmra.mxu2 %v1989_v26  ;;  %v2062_v26 = vld [vmem:[%s3963_s0 + $0x130] sm:$0xf0] }
  0x64   :  { %1577 = vmatmul.bf16.gmra.mxu3 %v1993_v27  ;;  %v2068_v27 = vld [vmem:[%s3963_s0 + $0x128] sm:$0xf]  ;;  %v2065_v35 = vor.u32 %v2590_v25, %v2062_v26  ;;  %v2094_v25 = vld [vmem:[%s3963_s0 + $0x170] sm:$0xf0] }
  0x65   :  { %v2069_v40 = vor.u32 %v2593_v28, %v2068_v27  ;;  %v2100_v26 = vld [vmem:[%s3963_s0 + $0x168] sm:$0xf]  ;;  %v2601_v27 = vld [vmem:[%s3963_s0 + $0x174] sm:$0xf0]  ;;  %v2599_v28 = vld [vmem:[%s3963_s0 + $0x16c] sm:$0xf] }
  0x71   :  { %1075 = vmatmul.bf16.gmra.mxu0 %v1997_v36 }
  0x72   :  { %1244 = vmatmul.bf16.gmra.mxu1 %v2001_v37 }
  0x73   :  { %1413 = vmatmul.bf16.gmra.mxu2 %v2005_v38 }
  0x74   :  { %1582 = vmatmul.bf16.gmra.mxu3 %v2009_v39 }
  0x81   :  { %1080 = vmatmul.bf16.gmra.mxu0 %v2013_v48 }
  0x82   :  { %1249 = vmatmul.bf16.gmra.mxu1 %v2017_v49 }
  0x83   :  { %1418 = vmatmul.bf16.gmra.mxu2 %v2021_v50 }
  0x84   :  { %1587 = vmatmul.bf16.gmra.mxu3 %v2025_v51 }
  0x91   :  { %1085 = vmatmul.bf16.gmra.mxu0 %v2029_v60  ;;  %v2595_v60 = vld [vmem:[%s3963_s0 + $0x14c] sm:$0xf] }
  0x92   :  { %1254 = vmatmul.bf16.gmra.mxu1 %v2033_v61  ;;  %v2086_v61 = vld [vmem:[%s3963_s0 + $0x158] sm:$0xf0] }
  0x93   :  { %1423 = vmatmul.bf16.gmra.mxu2 %v2037_v62 }
  0x94   :  { %1592 = vmatmul.bf16.gmra.mxu3 %v2041_v63 }
  0x9e   :  { %v1051_v11 = vpop.f32.mrf.mxu0 }
  0x9f   :  { %v1220_v12 = vpop.f32.mrf.mxu1  ;;  %v1052_v15 = vadd.f32 %v3242_v10, %v1051_v11 }
  0xa1   :  { %1090 = vmatmul.bf16.gmra.mxu0 %v2045_v8  ;;  %v1221_v18 = vadd.f32 %v1220_v12, %v1052_v15  ;;  %v2089_v8 = vor.u32 %v2595_v60, %v2086_v61  ;;  %v2118_v60 = vld [vmem:[%s3963_s0 + $0x198] sm:$0xf0] }
  0xa2   :  { %1259 = vmatmul.bf16.gmra.mxu1 %v2049_v9 }
  0xa3   :  { %1428 = vmatmul.bf16.gmra.mxu2 %v2053_v13 }
  0xa4   :  { %1597 = vmatmul.bf16.gmra.mxu3 %v2057_v14 }
  0xa6   :  { %v1389_v16 = vpop.f32.mrf.mxu2  ;;  %v1053_v19 = vpop.f32.mrf.mxu0 }
  0xa7   :  { %v1558_v17 = vpop.f32.mrf.mxu3  ;;  %v1222_v20 = vpop.f32.mrf.mxu1  ;;  %v1054_v21 = vadd.f32 %v3242_v10, %v1053_v19  ;;  %v1390_v24 = vadd.f32 %v1389_v16, %v1221_v18 }
  0xa9   :  { %v1223_v31 = vadd.f32 %v1222_v20, %v1054_v21  ;;  %v1559_v36 = vadd.f32 %v1558_v17, %v1390_v24  ;;  %v2092_v21 = vld [vmem:[%s3963_s0 + $0x160] sm:$0xf]  ;;  %v2598_v24 = vld [vmem:[%s3963_s0 + $0x164] sm:$0xf] }
  0xab   :  { %v1718_v43 = vmax.f32 %v1559_v36, 0.0 }
  0xae   :  { %v1391_v32 = vpop.f32.mrf.mxu2  ;;  %v1056_v38 = vpop.f32.mrf.mxu0 }
  0xaf   :  { %v1560_v33 = vpop.f32.mrf.mxu3  ;;  %v1392_v37 = vadd.f32 %v1391_v32, %v1223_v31  ;;  %v1225_v39 = vpop.f32.mrf.mxu1  ;;  %v1057_v45 = vadd.f32 %v3242_v10, %v1056_v38 }
  0xb1   :  { %v1561_v42 = vadd.f32 %v1560_v33, %v1392_v37  ;;  %1095 = vmatmul.bf16.gmra.mxu0 %v2061_v34  ;;  %v1226_v49 = vadd.f32 %v1225_v39, %v1057_v45  ;;  %v2093_v33 = vor.u32 %v2600_v22, %v2092_v21  ;;  %v2097_v34 = vor.u32 %v2598_v24, %v2094_v25  ;;  %v2608_v21 = vld [vmem:[%s3963_s0 + $0x1ac] sm:$0xf0]  ;;  %v2126_v24 = vld [vmem:[%s3963_s0 + $0x1b0] sm:$0xf0]  ;;  %v2132_v25 = vld [vmem:[%s3963_s0 + $0x1a8] sm:$0xf] }
  0xb2   :  { %1264 = vmatmul.bf16.gmra.mxu1 %v2065_v35  ;;  %v2101_v39 = vor.u32 %v2601_v27, %v2100_v26  ;;  %v2609_v26 = vld [vmem:[%s3963_s0 + $0x1b4] sm:$0xf0]  ;;  %v2607_v27 = vld [vmem:[%s3963_s0 + $0x1ac] sm:$0xf] }
  0xb3   :  { %v1719_v44 = vmax.f32 %v1561_v42, 0.0  ;;  %1433 = vmatmul.bf16.gmra.mxu2 %v2069_v40  ;;  %v2105_v40 = vor.u32 %v2599_v28, %v2102_v29  ;;  %v2134_v28 = vld [vmem:[%s3963_s0 + $0x1b8] sm:$0xf0] }
  0xb4   :  { %1602 = vmatmul.bf16.gmra.mxu3 %v2073_v41 }
  0xb5   :  { %v2717_v46 = vpack.c.bf16 %v1719_v44, %v1718_v43 }
  0xb6   :  { %v1394_v47 = vpop.f32.mrf.mxu2  ;;  %v1058_v50 = vpop.f32.mrf.mxu0 }
  0xb7   :  { %v1563_v48 = vpop.f32.mrf.mxu3  ;;  %2718 = vst [vmem:[%s3964_s3] sm:$0xff] %v2717_v46   ;;  %v1227_v51 = vpop.f32.mrf.mxu1  ;;  %v1059_v52 = vadd.f32 %v3242_v10, %v1058_v50  ;;  %v1395_v55 = vadd.f32 %v1394_v47, %v1226_v49 }
  0xb9   :  { %v1228_v62 = vadd.f32 %v1227_v51, %v1059_v52  ;;  %v1564_v3 = vadd.f32 %v1563_v48, %v1395_v55  ;;  %v2108_v52 = vld [vmem:[%s3963_s0 + $0x180] sm:$0xf]  ;;  %v2602_v55 = vld [vmem:[%s3963_s0 + $0x184] sm:$0xf] }
  0xbb   :  { %v1720_v11 = vmax.f32 %v1564_v3, 0.0 }
  0xbe   :  { %v1396_v63 = vpop.f32.mrf.mxu2  ;;  %v1061_v5 = vpop.f32.mrf.mxu0 }
  0xbf   :  { %v1565_v0 = vpop.f32.mrf.mxu3  ;;  %v1397_v4 = vadd.f32 %v1396_v63, %v1228_v62  ;;  %v1230_v6 = vpop.f32.mrf.mxu1  ;;  %v1062_v13 = vadd.f32 %v3242_v10, %v1061_v5 }
  0xc1   :  { %v1566_v9 = vadd.f32 %v1565_v0, %v1397_v4  ;;  %1100 = vmatmul.bf16.gmra.mxu0 %v2077_v1  ;;  %v1231_v17 = vadd.f32 %v1230_v6, %v1062_v13  ;;  %v2109_v0 = vor.u32 %v2604_v53, %v2108_v52  ;;  %v2113_v1 = vor.u32 %v2602_v55, %v2110_v56  ;;  %v2612_v52 = vld [vmem:[%s3963_s0 + $0x1cc] sm:$0xf0]  ;;  %v2142_v55 = vld [vmem:[%s3963_s0 + $0x1d0] sm:$0xf0]  ;;  %v2148_v56 = vld [vmem:[%s3963_s0 + $0x1c8] sm:$0xf] }
  0xc2   :  { %1269 = vmatmul.bf16.gmra.mxu1 %v2081_v2  ;;  %v2117_v6 = vor.u32 %v2605_v58, %v2116_v57  ;;  %v2613_v57 = vld [vmem:[%s3963_s0 + $0x1d4] sm:$0xf0]  ;;  %v2611_v58 = vld [vmem:[%s3963_s0 + $0x1cc] sm:$0xf] }
  0xc3   :  { %v1721_v12 = vmax.f32 %v1566_v9, 0.0  ;;  %1438 = vmatmul.bf16.gmra.mxu2 %v2085_v7  ;;  %v2121_v7 = vor.u32 %v2603_v59, %v2118_v60  ;;  %v2150_v59 = vld [vmem:[%s3963_s0 + $0x1d8] sm:$0xf0] }
  0xc4   :  { %1607 = vmatmul.bf16.gmra.mxu3 %v2089_v8 }
  0xc5   :  { %v2722_v14 = vpack.c.bf16 %v1721_v12, %v1720_v11 }
  0xc6   :  { %v1399_v15 = vpop.f32.mrf.mxu2  ;;  %v1063_v18 = vpop.f32.mrf.mxu0 }
  0xc7   :  { %v1568_v16 = vpop.f32.mrf.mxu3  ;;  %2874 = vst [vmem:[%s3964_s3 + $0x8] sm:$0xff] %v2722_v14   ;;  %v1232_v19 = vpop.f32.mrf.mxu1  ;;  %v1064_v20 = vadd.f32 %v3242_v10, %v1063_v18  ;;  %v1400_v23 = vadd.f32 %v1399_v15, %v1231_v17 }
  0xc9   :  { %v1233_v30 = vadd.f32 %v1232_v19, %v1064_v20  ;;  %v1569_v35 = vadd.f32 %v1568_v16, %v1400_v23  ;;  %v2124_v20 = vld [vmem:[%s3963_s0 + $0x1a0] sm:$0xf]  ;;  %v2606_v23 = vld [vmem:[%s3963_s0 + $0x1a4] sm:$0xf] }
  0xcb   :  { %v1722_v42 = vmax.f32 %v1569_v35, 0.0 }
  0xce   :  { %v1401_v31 = vpop.f32.mrf.mxu2  ;;  %v1066_v37 = vpop.f32.mrf.mxu0 }
  0xcf   :  { %v1570_v32 = vpop.f32.mrf.mxu3  ;;  %v1402_v36 = vadd.f32 %v1401_v31, %v1233_v30  ;;  %v1235_v38 = vpop.f32.mrf.mxu1  ;;  %v1067_v44 = vadd.f32 %v3242_v10, %v1066_v37 }
  0xd1   :  { %v1571_v41 = vadd.f32 %v1570_v32, %v1402_v36  ;;  %1105 = vmatmul.bf16.gmra.mxu0 %v2093_v33  ;;  %v1236_v48 = vadd.f32 %v1235_v38, %v1067_v44  ;;  %v2125_v32 = vor.u32 %v2608_v21, %v2124_v20  ;;  %v2129_v33 = vor.u32 %v2606_v23, %v2126_v24  ;;  %v2616_v20 = vld [vmem:[%s3963_s0 + $0x1ec] sm:$0xf0]  ;;  %v2158_v23 = vld [vmem:[%s3963_s0 + $0x1f0] sm:$0xf0]  ;;  %v2164_v24 = vld [vmem:[%s3963_s0 + $0x1e8] sm:$0xf] }
  0xd2   :  { %1274 = vmatmul.bf16.gmra.mxu1 %v2097_v34  ;;  %v2133_v38 = vor.u32 %v2609_v26, %v2132_v25  ;;  %v2617_v25 = vld [vmem:[%s3963_s0 + $0x1f4] sm:$0xf0]  ;;  %v2615_v26 = vld [vmem:[%s3963_s0 + $0x1ec] sm:$0xf] }
  0xd3   :  { %v1723_v43 = vmax.f32 %v1571_v41, 0.0  ;;  %1443 = vmatmul.bf16.gmra.mxu2 %v2101_v39  ;;  %v2137_v39 = vor.u32 %v2607_v27, %v2134_v28  ;;  %v2166_v27 = vld [vmem:[%s3963_s0 + $0x1f8] sm:$0xf0] }
  0xd4   :  { %1612 = vmatmul.bf16.gmra.mxu3 %v2105_v40 }
  0xd5   :  { %v2727_v45 = vpack.c.bf16 %v1723_v43, %v1722_v42 }
  0xd6   :  { %v1404_v46 = vpop.f32.mrf.mxu2  ;;  %v1068_v49 = vpop.f32.mrf.mxu0 }
  0xd7   :  { %v1573_v47 = vpop.f32.mrf.mxu3  ;;  %2875 = vst [vmem:[%s3964_s3 + $0x10] sm:$0xff] %v2727_v45   ;;  %v1237_v50 = vpop.f32.mrf.mxu1  ;;  %v1069_v51 = vadd.f32 %v3242_v10, %v1068_v49  ;;  %v1405_v54 = vadd.f32 %v1404_v46, %v1236_v48 }
  0xd9   :  { %v1238_v61 = vadd.f32 %v1237_v50, %v1069_v51  ;;  %v1574_v2 = vadd.f32 %v1573_v47, %v1405_v54  ;;  %v2140_v51 = vld [vmem:[%s3963_s0 + $0x1c0] sm:$0xf]  ;;  %v2610_v54 = vld [vmem:[%s3963_s0 + $0x1c4] sm:$0xf] }
  0xdb   :  { %v1724_v9 = vmax.f32 %v1574_v2, 0.0 }
  0xde   :  { %v1406_v62 = vpop.f32.mrf.mxu2  ;;  %v1071_v4 = vpop.f32.mrf.mxu0 }
  0xdf   :  { %v1575_v63 = vpop.f32.mrf.mxu3  ;;  %v1407_v3 = vadd.f32 %v1406_v62, %v1238_v61  ;;  %v1240_v5 = vpop.f32.mrf.mxu1  ;;  %v1072_v12 = vadd.f32 %v3242_v10, %v1071_v4 }
  0xe1   :  { %v1576_v8 = vadd.f32 %v1575_v63, %v1407_v3  ;;  %1110 = vmatmul.bf16.gmra.mxu0 %v2109_v0  ;;  %v1241_v16 = vadd.f32 %v1240_v5, %v1072_v12  ;;  %v2141_v63 = vor.u32 %v2612_v52, %v2140_v51  ;;  %v2145_v0 = vor.u32 %v2610_v54, %v2142_v55  ;;  %v2620_v51 = vld [vmem:[%s3963_s0 + $0x20c] sm:$0xf0]  ;;  %v2174_v54 = vld [vmem:[%s3963_s0 + $0x210] sm:$0xf0]  ;;  %v2180_v55 = vld [vmem:[%s3963_s0 + $0x208] sm:$0xf] }
  0xe2   :  { %1279 = vmatmul.bf16.gmra.mxu1 %v2113_v1  ;;  %v2149_v5 = vor.u32 %v2613_v57, %v2148_v56  ;;  %v2621_v56 = vld [vmem:[%s3963_s0 + $0x214] sm:$0xf0]  ;;  %v2619_v57 = vld [vmem:[%s3963_s0 + $0x20c] sm:$0xf] }
  0xe3   :  { %v1725_v11 = vmax.f32 %v1576_v8, 0.0  ;;  %1448 = vmatmul.bf16.gmra.mxu2 %v2117_v6  ;;  %v2153_v6 = vor.u32 %v2611_v58, %v2150_v59  ;;  %v2182_v58 = vld [vmem:[%s3963_s0 + $0x218] sm:$0xf0] }
  0xe4   :  { %1617 = vmatmul.bf16.gmra.mxu3 %v2121_v7 }
  0xe5   :  { %v2732_v13 = vpack.c.bf16 %v1725_v11, %v1724_v9 }
  0xe6   :  { %v1409_v14 = vpop.f32.mrf.mxu2  ;;  %v1073_v17 = vpop.f32.mrf.mxu0 }
  0xe7   :  { %v1578_v15 = vpop.f32.mrf.mxu3  ;;  %2876 = vst [vmem:[%s3964_s3 + $0x18] sm:$0xff] %v2732_v13   ;;  %v1242_v18 = vpop.f32.mrf.mxu1  ;;  %v1074_v19 = vadd.f32 %v3242_v10, %v1073_v17  ;;  %v1410_v22 = vadd.f32 %v1409_v14, %v1241_v16 }
  0xe9   :  { %v1243_v29 = vadd.f32 %v1242_v18, %v1074_v19  ;;  %v1579_v34 = vadd.f32 %v1578_v15, %v1410_v22  ;;  %v2156_v19 = vld [vmem:[%s3963_s0 + $0x1e0] sm:$0xf]  ;;  %v2614_v22 = vld [vmem:[%s3963_s0 + $0x1e4] sm:$0xf] }
  0xeb   :  { %v1726_v41 = vmax.f32 %v1579_v34, 0.0 }
  0xee   :  { %v1411_v30 = vpop.f32.mrf.mxu2  ;;  %v1076_v36 = vpop.f32.mrf.mxu0 }
  0xef   :  { %v1580_v31 = vpop.f32.mrf.mxu3  ;;  %v1412_v35 = vadd.f32 %v1411_v30, %v1243_v29  ;;  %v1245_v37 = vpop.f32.mrf.mxu1  ;;  %v1077_v43 = vadd.f32 %v3242_v10, %v1076_v36 }
  0xf1   :  { %v1581_v40 = vadd.f32 %v1580_v31, %v1412_v35  ;;  %1115 = vmatmul.bf16.gmra.mxu0 %v2125_v32  ;;  %v1246_v47 = vadd.f32 %v1245_v37, %v1077_v43  ;;  %v2157_v31 = vor.u32 %v2616_v20, %v2156_v19  ;;  %v2161_v32 = vor.u32 %v2614_v22, %v2158_v23  ;;  %v2624_v19 = vld [vmem:[%s3963_s0 + $0x22c] sm:$0xf0]  ;;  %v2190_v22 = vld [vmem:[%s3963_s0 + $0x230] sm:$0xf0]  ;;  %v2196_v23 = vld [vmem:[%s3963_s0 + $0x228] sm:$0xf] }
  0xf2   :  { %1284 = vmatmul.bf16.gmra.mxu1 %v2129_v33  ;;  %v2165_v37 = vor.u32 %v2617_v25, %v2164_v24  ;;  %v2625_v24 = vld [vmem:[%s3963_s0 + $0x234] sm:$0xf0]  ;;  %v2623_v25 = vld [vmem:[%s3963_s0 + $0x22c] sm:$0xf] }
  0xf3   :  { %v1727_v42 = vmax.f32 %v1581_v40, 0.0  ;;  %1453 = vmatmul.bf16.gmra.mxu2 %v2133_v38  ;;  %v2169_v38 = vor.u32 %v2615_v26, %v2166_v27  ;;  %v2198_v26 = vld [vmem:[%s3963_s0 + $0x238] sm:$0xf0] }
  0xf4   :  { %1622 = vmatmul.bf16.gmra.mxu3 %v2137_v39 }
  0xf5   :  { %v2737_v44 = vpack.c.bf16 %v1727_v42, %v1726_v41 }
  0xf6   :  { %v1414_v45 = vpop.f32.mrf.mxu2  ;;  %v1078_v48 = vpop.f32.mrf.mxu0 }
  0xf7   :  { %v1583_v46 = vpop.f32.mrf.mxu3  ;;  %2877 = vst [vmem:[%s3964_s3 + $0x20] sm:$0xff] %v2737_v44   ;;  %v1247_v49 = vpop.f32.mrf.mxu1  ;;  %v1079_v50 = vadd.f32 %v3242_v10, %v1078_v48  ;;  %v1415_v53 = vadd.f32 %v1414_v45, %v1246_v47 }
  0xf9   :  { %v1248_v60 = vadd.f32 %v1247_v49, %v1079_v50  ;;  %v1584_v1 = vadd.f32 %v1583_v46, %v1415_v53  ;;  %v2172_v50 = vld [vmem:[%s3963_s0 + $0x200] sm:$0xf]  ;;  %v2618_v53 = vld [vmem:[%s3963_s0 + $0x204] sm:$0xf] }
  0xfb   :  { %v1728_v8 = vmax.f32 %v1584_v1, 0.0 }
  0xfe   :  { %v1416_v61 = vpop.f32.mrf.mxu2  ;;  %v1081_v3 = vpop.f32.mrf.mxu0 }
  0xff   :  { %v1585_v62 = vpop.f32.mrf.mxu3  ;;  %v1417_v2 = vadd.f32 %v1416_v61, %v1248_v60  ;;  %v1250_v4 = vpop.f32.mrf.mxu1  ;;  %v1082_v11 = vadd.f32 %v3242_v10, %v1081_v3 }
 0x101   :  { %v1586_v7 = vadd.f32 %v1585_v62, %v1417_v2  ;;  %1120 = vmatmul.bf16.gmra.mxu0 %v2141_v63  ;;  %v1251_v15 = vadd.f32 %v1250_v4, %v1082_v11  ;;  %v2173_v62 = vor.u32 %v2620_v51, %v2172_v50  ;;  %v2177_v63 = vor.u32 %v2618_v53, %v2174_v54  ;;  %v2628_v50 = vld [vmem:[%s3963_s0 + $0x24c] sm:$0xf0]  ;;  %v2206_v53 = vld [vmem:[%s3963_s0 + $0x250] sm:$0xf0]  ;;  %v2212_v54 = vld [vmem:[%s3963_s0 + $0x248] sm:$0xf] }
 0x102   :  { %1289 = vmatmul.bf16.gmra.mxu1 %v2145_v0  ;;  %v2181_v4 = vor.u32 %v2621_v56, %v2180_v55  ;;  %v2629_v55 = vld [vmem:[%s3963_s0 + $0x254] sm:$0xf0]  ;;  %v2627_v56 = vld [vmem:[%s3963_s0 + $0x24c] sm:$0xf] }
 0x103   :  { %v1729_v9 = vmax.f32 %v1586_v7, 0.0  ;;  %1458 = vmatmul.bf16.gmra.mxu2 %v2149_v5  ;;  %v2185_v5 = vor.u32 %v2619_v57, %v2182_v58  ;;  %v2214_v57 = vld [vmem:[%s3963_s0 + $0x258] sm:$0xf0] }
 0x104   :  { %1627 = vmatmul.bf16.gmra.mxu3 %v2153_v6 }
 0x105   :  { %v2742_v12 = vpack.c.bf16 %v1729_v9, %v1728_v8 }
 0x106   :  { %v1419_v13 = vpop.f32.mrf.mxu2  ;;  %v1083_v16 = vpop.f32.mrf.mxu0 }
 0x107   :  { %v1588_v14 = vpop.f32.mrf.mxu3  ;;  %2878 = vst [vmem:[%s3964_s3 + $0x28] sm:$0xff] %v2742_v12   ;;  %v1252_v17 = vpop.f32.mrf.mxu1  ;;  %v1084_v18 = vadd.f32 %v3242_v10, %v1083_v16  ;;  %v1420_v21 = vadd.f32 %v1419_v13, %v1251_v15 }
 0x109   :  { %v1253_v28 = vadd.f32 %v1252_v17, %v1084_v18  ;;  %v1589_v33 = vadd.f32 %v1588_v14, %v1420_v21  ;;  %v2188_v18 = vld [vmem:[%s3963_s0 + $0x220] sm:$0xf]  ;;  %v2622_v21 = vld [vmem:[%s3963_s0 + $0x224] sm:$0xf] }
 0x10b   :  { %v1730_v40 = vmax.f32 %v1589_v33, 0.0 }
 0x10e   :  { %v1421_v29 = vpop.f32.mrf.mxu2  ;;  %v1086_v35 = vpop.f32.mrf.mxu0 }
 0x10f   :  { %v1590_v30 = vpop.f32.mrf.mxu3  ;;  %v1422_v34 = vadd.f32 %v1421_v29, %v1253_v28  ;;  %v1255_v36 = vpop.f32.mrf.mxu1  ;;  %v1087_v42 = vadd.f32 %v3242_v10, %v1086_v35 }
 0x111   :  { %v1591_v39 = vadd.f32 %v1590_v30, %v1422_v34  ;;  %1125 = vmatmul.bf16.gmra.mxu0 %v2157_v31  ;;  %v1256_v46 = vadd.f32 %v1255_v36, %v1087_v42  ;;  %v2189_v30 = vor.u32 %v2624_v19, %v2188_v18  ;;  %v2193_v31 = vor.u32 %v2622_v21, %v2190_v22  ;;  %v2632_v18 = vld [vmem:[%s3963_s0 + $0x26c] sm:$0xf0]  ;;  %v2222_v21 = vld [vmem:[%s3963_s0 + $0x270] sm:$0xf0]  ;;  %v2228_v22 = vld [vmem:[%s3963_s0 + $0x268] sm:$0xf] }
 0x112   :  { %1294 = vmatmul.bf16.gmra.mxu1 %v2161_v32  ;;  %v2197_v36 = vor.u32 %v2625_v24, %v2196_v23  ;;  %v2633_v23 = vld [vmem:[%s3963_s0 + $0x274] sm:$0xf0]  ;;  %v2631_v24 = vld [vmem:[%s3963_s0 + $0x26c] sm:$0xf] }
 0x113   :  { %v1731_v41 = vmax.f32 %v1591_v39, 0.0  ;;  %1463 = vmatmul.bf16.gmra.mxu2 %v2165_v37  ;;  %v2201_v37 = vor.u32 %v2623_v25, %v2198_v26  ;;  %v2230_v25 = vld [vmem:[%s3963_s0 + $0x278] sm:$0xf0] }
 0x114   :  { %1632 = vmatmul.bf16.gmra.mxu3 %v2169_v38 }
 0x115   :  { %v2747_v43 = vpack.c.bf16 %v1731_v41, %v1730_v40 }
 0x116   :  { %v1424_v44 = vpop.f32.mrf.mxu2  ;;  %v1088_v47 = vpop.f32.mrf.mxu0 }
 0x117   :  { %v1593_v45 = vpop.f32.mrf.mxu3  ;;  %2879 = vst [vmem:[%s3964_s3 + $0x30] sm:$0xff] %v2747_v43   ;;  %v1257_v48 = vpop.f32.mrf.mxu1  ;;  %v1089_v49 = vadd.f32 %v3242_v10, %v1088_v47  ;;  %v1425_v52 = vadd.f32 %v1424_v44, %v1256_v46 }
 0x119   :  { %v1258_v59 = vadd.f32 %v1257_v48, %v1089_v49  ;;  %v1594_v0 = vadd.f32 %v1593_v45, %v1425_v52  ;;  %v2204_v49 = vld [vmem:[%s3963_s0 + $0x240] sm:$0xf]  ;;  %v2626_v52 = vld [vmem:[%s3963_s0 + $0x244] sm:$0xf] }
 0x11b   :  { %v1732_v7 = vmax.f32 %v1594_v0, 0.0 }
 0x11e   :  { %v1426_v60 = vpop.f32.mrf.mxu2  ;;  %v1091_v2 = vpop.f32.mrf.mxu0 }
 0x11f   :  { %v1595_v61 = vpop.f32.mrf.mxu3  ;;  %v1427_v1 = vadd.f32 %v1426_v60, %v1258_v59  ;;  %v1260_v3 = vpop.f32.mrf.mxu1  ;;  %v1092_v9 = vadd.f32 %v3242_v10, %v1091_v2 }
 0x121   :  { %v1596_v6 = vadd.f32 %v1595_v61, %v1427_v1  ;;  %1130 = vmatmul.bf16.gmra.mxu0 %v2173_v62  ;;  %v1261_v14 = vadd.f32 %v1260_v3, %v1092_v9  ;;  %v2205_v61 = vor.u32 %v2628_v50, %v2204_v49  ;;  %v2209_v62 = vor.u32 %v2626_v52, %v2206_v53  ;;  %v2636_v49 = vld [vmem:[%s3963_s0 + $0x28c] sm:$0xf0]  ;;  %v2238_v52 = vld [vmem:[%s3963_s0 + $0x290] sm:$0xf0]  ;;  %v2244_v53 = vld [vmem:[%s3963_s0 + $0x288] sm:$0xf] }
 0x122   :  { %1299 = vmatmul.bf16.gmra.mxu1 %v2177_v63  ;;  %v2213_v3 = vor.u32 %v2629_v55, %v2212_v54  ;;  %v2637_v54 = vld [vmem:[%s3963_s0 + $0x294] sm:$0xf0]  ;;  %v2635_v55 = vld [vmem:[%s3963_s0 + $0x28c] sm:$0xf] }
 0x123   :  { %v1733_v8 = vmax.f32 %v1596_v6, 0.0  ;;  %1468 = vmatmul.bf16.gmra.mxu2 %v2181_v4  ;;  %v2217_v4 = vor.u32 %v2627_v56, %v2214_v57  ;;  %v2246_v56 = vld [vmem:[%s3963_s0 + $0x298] sm:$0xf0] }
 0x124   :  { %1637 = vmatmul.bf16.gmra.mxu3 %v2185_v5 }
 0x125   :  { %v2752_v11 = vpack.c.bf16 %v1733_v8, %v1732_v7 }
 0x126   :  { %v1429_v12 = vpop.f32.mrf.mxu2  ;;  %v1093_v15 = vpop.f32.mrf.mxu0 }
 0x127   :  { %v1598_v13 = vpop.f32.mrf.mxu3  ;;  %2880 = vst [vmem:[%s3964_s3 + $0x38] sm:$0xff] %v2752_v11   ;;  %v1262_v16 = vpop.f32.mrf.mxu1  ;;  %v1094_v17 = vadd.f32 %v3242_v10, %v1093_v15  ;;  %v1430_v20 = vadd.f32 %v1429_v12, %v1261_v14 }
 0x129   :  { %v1263_v27 = vadd.f32 %v1262_v16, %v1094_v17  ;;  %v1599_v32 = vadd.f32 %v1598_v13, %v1430_v20  ;;  %v2220_v17 = vld [vmem:[%s3963_s0 + $0x260] sm:$0xf]  ;;  %v2630_v20 = vld [vmem:[%s3963_s0 + $0x264] sm:$0xf] }
 0x12b   :  { %v1734_v39 = vmax.f32 %v1599_v32, 0.0 }
 0x12e   :  { %v1431_v28 = vpop.f32.mrf.mxu2  ;;  %v1096_v34 = vpop.f32.mrf.mxu0 }
 0x12f   :  { %v1600_v29 = vpop.f32.mrf.mxu3  ;;  %v1432_v33 = vadd.f32 %v1431_v28, %v1263_v27  ;;  %v1265_v35 = vpop.f32.mrf.mxu1  ;;  %v1097_v41 = vadd.f32 %v3242_v10, %v1096_v34 }
 0x131   :  { %v1601_v38 = vadd.f32 %v1600_v29, %v1432_v33  ;;  %1135 = vmatmul.bf16.gmra.mxu0 %v2189_v30  ;;  %v1266_v45 = vadd.f32 %v1265_v35, %v1097_v41  ;;  %v2221_v29 = vor.u32 %v2632_v18, %v2220_v17  ;;  %v2225_v30 = vor.u32 %v2630_v20, %v2222_v21  ;;  %v2640_v17 = vld [vmem:[%s3963_s0 + $0x2ac] sm:$0xf0]  ;;  %v2254_v20 = vld [vmem:[%s3963_s0 + $0x2b0] sm:$0xf0]  ;;  %v2260_v21 = vld [vmem:[%s3963_s0 + $0x2a8] sm:$0xf] }
 0x132   :  { %1304 = vmatmul.bf16.gmra.mxu1 %v2193_v31  ;;  %v2229_v35 = vor.u32 %v2633_v23, %v2228_v22  ;;  %v2641_v22 = vld [vmem:[%s3963_s0 + $0x2b4] sm:$0xf0]  ;;  %v2639_v23 = vld [vmem:[%s3963_s0 + $0x2ac] sm:$0xf] }
 0x133   :  { %v1735_v40 = vmax.f32 %v1601_v38, 0.0  ;;  %1473 = vmatmul.bf16.gmra.mxu2 %v2197_v36  ;;  %v2233_v36 = vor.u32 %v2631_v24, %v2230_v25  ;;  %v2262_v24 = vld [vmem:[%s3963_s0 + $0x2b8] sm:$0xf0] }
 0x134   :  { %1642 = vmatmul.bf16.gmra.mxu3 %v2201_v37 }
 0x135   :  { %v2757_v42 = vpack.c.bf16 %v1735_v40, %v1734_v39 }
 0x136   :  { %v1434_v43 = vpop.f32.mrf.mxu2  ;;  %v1098_v46 = vpop.f32.mrf.mxu0 }
 0x137   :  { %v1603_v44 = vpop.f32.mrf.mxu3  ;;  %2881 = vst [vmem:[%s3964_s3 + $0x40] sm:$0xff] %v2757_v42   ;;  %v1267_v47 = vpop.f32.mrf.mxu1  ;;  %v1099_v48 = vadd.f32 %v3242_v10, %v1098_v46  ;;  %v1435_v51 = vadd.f32 %v1434_v43, %v1266_v45 }
 0x139   :  { %v1268_v58 = vadd.f32 %v1267_v47, %v1099_v48  ;;  %v1604_v63 = vadd.f32 %v1603_v44, %v1435_v51  ;;  %v2236_v48 = vld [vmem:[%s3963_s0 + $0x280] sm:$0xf]  ;;  %v2634_v51 = vld [vmem:[%s3963_s0 + $0x284] sm:$0xf] }
 0x13b   :  { %v1736_v6 = vmax.f32 %v1604_v63, 0.0 }
 0x13e   :  { %v1436_v59 = vpop.f32.mrf.mxu2  ;;  %v1101_v1 = vpop.f32.mrf.mxu0 }
 0x13f   :  { %v1605_v60 = vpop.f32.mrf.mxu3  ;;  %v1437_v0 = vadd.f32 %v1436_v59, %v1268_v58  ;;  %v1270_v2 = vpop.f32.mrf.mxu1  ;;  %v1102_v8 = vadd.f32 %v3242_v10, %v1101_v1 }
 0x141   :  { %v1606_v5 = vadd.f32 %v1605_v60, %v1437_v0  ;;  %1140 = vmatmul.bf16.gmra.mxu0 %v2205_v61  ;;  %v1271_v13 = vadd.f32 %v1270_v2, %v1102_v8  ;;  %v2237_v60 = vor.u32 %v2636_v49, %v2236_v48  ;;  %v2241_v61 = vor.u32 %v2634_v51, %v2238_v52  ;;  %v2644_v48 = vld [vmem:[%s3963_s0 + $0x2cc] sm:$0xf0]  ;;  %v2270_v51 = vld [vmem:[%s3963_s0 + $0x2d0] sm:$0xf0]  ;;  %v2276_v52 = vld [vmem:[%s3963_s0 + $0x2c8] sm:$0xf] }
 0x142   :  { %1309 = vmatmul.bf16.gmra.mxu1 %v2209_v62  ;;  %v2245_v2 = vor.u32 %v2637_v54, %v2244_v53  ;;  %v2645_v53 = vld [vmem:[%s3963_s0 + $0x2d4] sm:$0xf0]  ;;  %v2643_v54 = vld [vmem:[%s3963_s0 + $0x2cc] sm:$0xf] }
 0x143   :  { %v1737_v7 = vmax.f32 %v1606_v5, 0.0  ;;  %1478 = vmatmul.bf16.gmra.mxu2 %v2213_v3  ;;  %v2249_v3 = vor.u32 %v2635_v55, %v2246_v56  ;;  %v2278_v55 = vld [vmem:[%s3963_s0 + $0x2d8] sm:$0xf0] }
 0x144   :  { %1647 = vmatmul.bf16.gmra.mxu3 %v2217_v4 }
 0x145   :  { %v2762_v9 = vpack.c.bf16 %v1737_v7, %v1736_v6 }
 0x146   :  { %v1439_v11 = vpop.f32.mrf.mxu2  ;;  %v1103_v14 = vpop.f32.mrf.mxu0 }
 0x147   :  { %v1608_v12 = vpop.f32.mrf.mxu3  ;;  %2882 = vst [vmem:[%s3964_s3 + $0x48] sm:$0xff] %v2762_v9   ;;  %v1272_v15 = vpop.f32.mrf.mxu1  ;;  %v1104_v16 = vadd.f32 %v3242_v10, %v1103_v14  ;;  %v1440_v19 = vadd.f32 %v1439_v11, %v1271_v13 }
 0x149   :  { %v1273_v26 = vadd.f32 %v1272_v15, %v1104_v16  ;;  %v1609_v31 = vadd.f32 %v1608_v12, %v1440_v19  ;;  %v2252_v16 = vld [vmem:[%s3963_s0 + $0x2a0] sm:$0xf]  ;;  %v2638_v19 = vld [vmem:[%s3963_s0 + $0x2a4] sm:$0xf] }
 0x14b   :  { %v1738_v38 = vmax.f32 %v1609_v31, 0.0 }
 0x14e   :  { %v1441_v27 = vpop.f32.mrf.mxu2  ;;  %v1106_v33 = vpop.f32.mrf.mxu0 }
 0x14f   :  { %v1610_v28 = vpop.f32.mrf.mxu3  ;;  %v1442_v32 = vadd.f32 %v1441_v27, %v1273_v26  ;;  %v1275_v34 = vpop.f32.mrf.mxu1  ;;  %v1107_v40 = vadd.f32 %v3242_v10, %v1106_v33 }
 0x151   :  { %v1611_v37 = vadd.f32 %v1610_v28, %v1442_v32  ;;  %1145 = vmatmul.bf16.gmra.mxu0 %v2221_v29  ;;  %v1276_v44 = vadd.f32 %v1275_v34, %v1107_v40  ;;  %v2253_v28 = vor.u32 %v2640_v17, %v2252_v16  ;;  %v2257_v29 = vor.u32 %v2638_v19, %v2254_v20  ;;  %v2648_v16 = vld [vmem:[%s3963_s0 + $0x2ec] sm:$0xf0]  ;;  %v2286_v19 = vld [vmem:[%s3963_s0 + $0x2f0] sm:$0xf0]  ;;  %v2292_v20 = vld [vmem:[%s3963_s0 + $0x2e8] sm:$0xf] }
 0x152   :  { %1314 = vmatmul.bf16.gmra.mxu1 %v2225_v30  ;;  %v2261_v34 = vor.u32 %v2641_v22, %v2260_v21  ;;  %v2649_v21 = vld [vmem:[%s3963_s0 + $0x2f4] sm:$0xf0]  ;;  %v2647_v22 = vld [vmem:[%s3963_s0 + $0x2ec] sm:$0xf] }
 0x153   :  { %v1739_v39 = vmax.f32 %v1611_v37, 0.0  ;;  %1483 = vmatmul.bf16.gmra.mxu2 %v2229_v35  ;;  %v2265_v35 = vor.u32 %v2639_v23, %v2262_v24  ;;  %v2294_v23 = vld [vmem:[%s3963_s0 + $0x2f8] sm:$0xf0] }
 0x154   :  { %1652 = vmatmul.bf16.gmra.mxu3 %v2233_v36 }
 0x155   :  { %v2767_v41 = vpack.c.bf16 %v1739_v39, %v1738_v38 }
 0x156   :  { %v1444_v42 = vpop.f32.mrf.mxu2  ;;  %v1108_v45 = vpop.f32.mrf.mxu0 }
 0x157   :  { %v1613_v43 = vpop.f32.mrf.mxu3  ;;  %2883 = vst [vmem:[%s3964_s3 + $0x50] sm:$0xff] %v2767_v41   ;;  %v1277_v46 = vpop.f32.mrf.mxu1  ;;  %v1109_v47 = vadd.f32 %v3242_v10, %v1108_v45  ;;  %v1445_v50 = vadd.f32 %v1444_v42, %v1276_v44 }
 0x159   :  { %v1278_v57 = vadd.f32 %v1277_v46, %v1109_v47  ;;  %v1614_v62 = vadd.f32 %v1613_v43, %v1445_v50  ;;  %v2268_v47 = vld [vmem:[%s3963_s0 + $0x2c0] sm:$0xf]  ;;  %v2642_v50 = vld [vmem:[%s3963_s0 + $0x2c4] sm:$0xf] }
 0x15b   :  { %v1740_v5 = vmax.f32 %v1614_v62, 0.0 }
 0x15e   :  { %v1446_v58 = vpop.f32.mrf.mxu2  ;;  %v1111_v0 = vpop.f32.mrf.mxu0 }
 0x15f   :  { %v1615_v59 = vpop.f32.mrf.mxu3  ;;  %v1447_v63 = vadd.f32 %v1446_v58, %v1278_v57  ;;  %v1280_v1 = vpop.f32.mrf.mxu1  ;;  %v1112_v7 = vadd.f32 %v3242_v10, %v1111_v0 }
 0x161   :  { %v1616_v4 = vadd.f32 %v1615_v59, %v1447_v63  ;;  %1150 = vmatmul.bf16.gmra.mxu0 %v2237_v60  ;;  %v1281_v12 = vadd.f32 %v1280_v1, %v1112_v7  ;;  %v2269_v59 = vor.u32 %v2644_v48, %v2268_v47  ;;  %v2273_v60 = vor.u32 %v2642_v50, %v2270_v51  ;;  %v2652_v47 = vld [vmem:[%s3963_s0 + $0x30c] sm:$0xf0]  ;;  %v2302_v50 = vld [vmem:[%s3963_s0 + $0x310] sm:$0xf0]  ;;  %v2308_v51 = vld [vmem:[%s3963_s0 + $0x308] sm:$0xf] }
 0x162   :  { %1319 = vmatmul.bf16.gmra.mxu1 %v2241_v61  ;;  %v2277_v1 = vor.u32 %v2645_v53, %v2276_v52  ;;  %v2653_v52 = vld [vmem:[%s3963_s0 + $0x314] sm:$0xf0]  ;;  %v2651_v53 = vld [vmem:[%s3963_s0 + $0x30c] sm:$0xf] }
 0x163   :  { %v1741_v6 = vmax.f32 %v1616_v4, 0.0  ;;  %1488 = vmatmul.bf16.gmra.mxu2 %v2245_v2  ;;  %v2281_v2 = vor.u32 %v2643_v54, %v2278_v55  ;;  %v2310_v54 = vld [vmem:[%s3963_s0 + $0x318] sm:$0xf0] }
 0x164   :  { %1657 = vmatmul.bf16.gmra.mxu3 %v2249_v3 }
 0x165   :  { %v2772_v8 = vpack.c.bf16 %v1741_v6, %v1740_v5 }
 0x166   :  { %v1449_v9 = vpop.f32.mrf.mxu2  ;;  %v1113_v13 = vpop.f32.mrf.mxu0 }
 0x167   :  { %v1618_v11 = vpop.f32.mrf.mxu3  ;;  %2884 = vst [vmem:[%s3964_s3 + $0x58] sm:$0xff] %v2772_v8   ;;  %v1282_v14 = vpop.f32.mrf.mxu1  ;;  %v1114_v15 = vadd.f32 %v3242_v10, %v1113_v13  ;;  %v1450_v18 = vadd.f32 %v1449_v9, %v1281_v12 }
 0x169   :  { %v1283_v25 = vadd.f32 %v1282_v14, %v1114_v15  ;;  %v1619_v30 = vadd.f32 %v1618_v11, %v1450_v18  ;;  %v3654_v14 = vld [vmem:[%s3962_s2] ss:$0 sm:$0xff]  ;;  %v2646_v18 = vld [vmem:[%s3963_s0 + $0x2e4] sm:$0xf] }
 0x16b   :  { %v1742_v37 = vmax.f32 %v1619_v30, 0.0 }
 0x16e   :  { %v1451_v26 = vpop.f32.mrf.mxu2  ;;  %v1116_v32 = vpop.f32.mrf.mxu0 }
 0x16f   :  { %v1620_v27 = vpop.f32.mrf.mxu3  ;;  %v1452_v31 = vadd.f32 %v1451_v26, %v1283_v25  ;;  %v1285_v33 = vpop.f32.mrf.mxu1  ;;  %v1117_v39 = vadd.f32 %v3242_v10, %v1116_v32 }
 0x171   :  { %v1621_v36 = vadd.f32 %v1620_v27, %v1452_v31  ;;  %1155 = vmatmul.bf16.gmra.mxu0 %v2253_v28  ;;  %v1286_v43 = vadd.f32 %v1285_v33, %v1117_v39  ;;  %v2289_v28 = vor.u32 %v2646_v18, %v2286_v19  ;;  %v2293_v33 = vor.u32 %v2649_v21, %v2292_v20  ;;  %v2318_v18 = vld [vmem:[%s3963_s0 + $0x330] sm:$0xf0]  ;;  %v2324_v19 = vld [vmem:[%s3963_s0 + $0x328] sm:$0xf]  ;;  %v2657_v20 = vld [vmem:[%s3963_s0 + $0x334] sm:$0xf0] }
 0x172   :  { %1324 = vmatmul.bf16.gmra.mxu1 %v2257_v29  ;;  %v2655_v21 = vld [vmem:[%s3963_s0 + $0x32c] sm:$0xf] }
 0x173   :  { %v1743_v38 = vmax.f32 %v1621_v36, 0.0  ;;  %1493 = vmatmul.bf16.gmra.mxu2 %v2261_v34  ;;  %v2297_v34 = vor.u32 %v2647_v22, %v2294_v23  ;;  %v2326_v22 = vld [vmem:[%s3963_s0 + $0x338] sm:$0xf0] }
 0x174   :  { %1662 = vmatmul.bf16.gmra.mxu3 %v2265_v35 }
 0x175   :  { %v2777_v40 = vpack.c.bf16 %v1743_v38, %v1742_v37 }
 0x176   :  { %v1454_v41 = vpop.f32.mrf.mxu2  ;;  %v1118_v44 = vpop.f32.mrf.mxu0 }
 0x177   :  { %v1623_v42 = vpop.f32.mrf.mxu3  ;;  %2885 = vst [vmem:[%s3964_s3 + $0x60] sm:$0xff] %v2777_v40   ;;  %v1287_v45 = vpop.f32.mrf.mxu1  ;;  %v1119_v46 = vadd.f32 %v3242_v10, %v1118_v44  ;;  %v1455_v49 = vadd.f32 %v1454_v41, %v1286_v43 }
 0x179   :  { %v1288_v56 = vadd.f32 %v1287_v45, %v1119_v46  ;;  %v1624_v61 = vadd.f32 %v1623_v42, %v1455_v49  ;;  %v2300_v46 = vld [vmem:[%s3963_s0 + $0x300] sm:$0xf]  ;;  %v2650_v49 = vld [vmem:[%s3963_s0 + $0x304] sm:$0xf] }
 0x17b   :  { %v1744_v4 = vmax.f32 %v1624_v61, 0.0 }
 0x17e   :  { %v1456_v57 = vpop.f32.mrf.mxu2  ;;  %v1121_v63 = vpop.f32.mrf.mxu0 }
 0x17f   :  { %v1625_v58 = vpop.f32.mrf.mxu3  ;;  %v1457_v62 = vadd.f32 %v1456_v57, %v1288_v56  ;;  %v1290_v0 = vpop.f32.mrf.mxu1  ;;  %v1122_v6 = vadd.f32 %v3242_v10, %v1121_v63  ;;  %v2284_v10 = vld [vmem:[%s3963_s0 + $0x2e0] sm:$0xf] }
 0x180   :  { %v2285_v27 = vor.u32 %v2648_v16, %v2284_v10  ;;  %v2656_v10 = vld [vmem:[%s3963_s0 + $0x32c] sm:$0xf0] }
 0x181   :  { %v1626_v3 = vadd.f32 %v1625_v58, %v1457_v62  ;;  %1160 = vmatmul.bf16.gmra.mxu0 %v2269_v59  ;;  %v1291_v11 = vadd.f32 %v1290_v0, %v1122_v6  ;;  %v2301_v58 = vor.u32 %v2652_v47, %v2300_v46  ;;  %v2305_v59 = vor.u32 %v2650_v49, %v2302_v50  ;;  %v2660_v46 = vld [vmem:[%s3963_s0 + $0x34c] sm:$0xf0]  ;;  %v2334_v49 = vld [vmem:[%s3963_s0 + $0x350] sm:$0xf0]  ;;  %v2340_v50 = vld [vmem:[%s3963_s0 + $0x348] sm:$0xf] }
 0x182   :  { %1329 = vmatmul.bf16.gmra.mxu1 %v2273_v60  ;;  %v2309_v0 = vor.u32 %v2653_v52, %v2308_v51  ;;  %v2661_v51 = vld [vmem:[%s3963_s0 + $0x354] sm:$0xf0]  ;;  %v2659_v52 = vld [vmem:[%s3963_s0 + $0x34c] sm:$0xf] }
 0x183   :  { %v1745_v5 = vmax.f32 %v1626_v3, 0.0  ;;  %1498 = vmatmul.bf16.gmra.mxu2 %v2277_v1  ;;  %v2313_v1 = vor.u32 %v2651_v53, %v2310_v54  ;;  %v2342_v53 = vld [vmem:[%s3963_s0 + $0x358] sm:$0xf0] }
 0x184   :  { %1667 = vmatmul.bf16.gmra.mxu3 %v2281_v2 }
 0x185   :  { %v2782_v7 = vpack.c.bf16 %v1745_v5, %v1744_v4 }
 0x186   :  { %v1459_v8 = vpop.f32.mrf.mxu2  ;;  %v1123_v12 = vpop.f32.mrf.mxu0 }
 0x187   :  { %v1628_v9 = vpop.f32.mrf.mxu3  ;;  %2886 = vst [vmem:[%s3964_s3 + $0x68] sm:$0xff] %v2782_v7   ;;  %v1292_v13 = vpop.f32.mrf.mxu1  ;;  %v1124_v15 = vadd.f32 %v3654_v14, %v1123_v12  ;;  %v1460_v17 = vadd.f32 %v1459_v8, %v1291_v11 }
 0x189   :  { %v1293_v24 = vadd.f32 %v1292_v13, %v1124_v15  ;;  %v1629_v29 = vadd.f32 %v1628_v9, %v1460_v17  ;;  %v2316_v15 = vld [vmem:[%s3963_s0 + $0x320] sm:$0xf]  ;;  %v2654_v17 = vld [vmem:[%s3963_s0 + $0x324] sm:$0xf] }
 0x18b   :  { %v1746_v36 = vmax.f32 %v1629_v29, 0.0 }
 0x18e   :  { %v1461_v25 = vpop.f32.mrf.mxu2  ;;  %v1126_v31 = vpop.f32.mrf.mxu0 }
 0x18f   :  { %v1630_v26 = vpop.f32.mrf.mxu3  ;;  %v1462_v30 = vadd.f32 %v1461_v25, %v1293_v24  ;;  %v1295_v32 = vpop.f32.mrf.mxu1  ;;  %v1127_v38 = vadd.f32 %v3654_v14, %v1126_v31 }
 0x191   :  { %v1631_v35 = vadd.f32 %v1630_v26, %v1462_v30  ;;  %1165 = vmatmul.bf16.gmra.mxu0 %v2285_v27  ;;  %v1296_v42 = vadd.f32 %v1295_v32, %v1127_v38  ;;  %v2317_v26 = vor.u32 %v2656_v10, %v2316_v15  ;;  %v2321_v27 = vor.u32 %v2654_v17, %v2318_v18  ;;  %v2664_v15 = vld [vmem:[%s3963_s0 + $0x36c] sm:$0xf0]  ;;  %v2350_v17 = vld [vmem:[%s3963_s0 + $0x370] sm:$0xf0]  ;;  %v2356_v18 = vld [vmem:[%s3963_s0 + $0x368] sm:$0xf] }
 0x192   :  { %1334 = vmatmul.bf16.gmra.mxu1 %v2289_v28  ;;  %v2325_v32 = vor.u32 %v2657_v20, %v2324_v19  ;;  %v2665_v19 = vld [vmem:[%s3963_s0 + $0x374] sm:$0xf0]  ;;  %v2663_v20 = vld [vmem:[%s3963_s0 + $0x36c] sm:$0xf] }
 0x193   :  { %v1747_v37 = vmax.f32 %v1631_v35, 0.0  ;;  %1503 = vmatmul.bf16.gmra.mxu2 %v2293_v33  ;;  %v2329_v33 = vor.u32 %v2655_v21, %v2326_v22  ;;  %v2358_v21 = vld [vmem:[%s3963_s0 + $0x378] sm:$0xf0] }
 0x194   :  { %1672 = vmatmul.bf16.gmra.mxu3 %v2297_v34 }
 0x195   :  { %v2787_v39 = vpack.c.bf16 %v1747_v37, %v1746_v36 }
 0x196   :  { %v1464_v40 = vpop.f32.mrf.mxu2  ;;  %v1128_v43 = vpop.f32.mrf.mxu0 }
 0x197   :  { %v1633_v41 = vpop.f32.mrf.mxu3  ;;  %2887 = vst [vmem:[%s3964_s3 + $0x70] sm:$0xff] %v2787_v39   ;;  %v1297_v44 = vpop.f32.mrf.mxu1  ;;  %v1129_v45 = vadd.f32 %v3654_v14, %v1128_v43  ;;  %v1465_v48 = vadd.f32 %v1464_v40, %v1296_v42 }
 0x199   :  { %v1298_v55 = vadd.f32 %v1297_v44, %v1129_v45  ;;  %v1634_v60 = vadd.f32 %v1633_v41, %v1465_v48  ;;  %v2332_v45 = vld [vmem:[%s3963_s0 + $0x340] sm:$0xf]  ;;  %v2658_v48 = vld [vmem:[%s3963_s0 + $0x344] sm:$0xf] }
 0x19b   :  { %v1748_v3 = vmax.f32 %v1634_v60, 0.0 }
 0x19e   :  { %v1466_v56 = vpop.f32.mrf.mxu2  ;;  %v1131_v62 = vpop.f32.mrf.mxu0 }
 0x19f   :  { %v1635_v57 = vpop.f32.mrf.mxu3  ;;  %v1467_v61 = vadd.f32 %v1466_v56, %v1298_v55  ;;  %v1300_v63 = vpop.f32.mrf.mxu1  ;;  %v1132_v5 = vadd.f32 %v3654_v14, %v1131_v62 }
 0x1a1   :  { %v1636_v2 = vadd.f32 %v1635_v57, %v1467_v61  ;;  %1170 = vmatmul.bf16.gmra.mxu0 %v2301_v58  ;;  %v1301_v9 = vadd.f32 %v1300_v63, %v1132_v5  ;;  %v2333_v57 = vor.u32 %v2660_v46, %v2332_v45  ;;  %v2337_v58 = vor.u32 %v2658_v48, %v2334_v49  ;;  %v2668_v45 = vld [vmem:[%s3963_s0 + $0x38c] sm:$0xf0]  ;;  %v2366_v48 = vld [vmem:[%s3963_s0 + $0x390] sm:$0xf0]  ;;  %v2372_v49 = vld [vmem:[%s3963_s0 + $0x388] sm:$0xf] }
 0x1a2   :  { %1339 = vmatmul.bf16.gmra.mxu1 %v2305_v59  ;;  %v2341_v63 = vor.u32 %v2661_v51, %v2340_v50  ;;  %v2669_v50 = vld [vmem:[%s3963_s0 + $0x394] sm:$0xf0]  ;;  %v2667_v51 = vld [vmem:[%s3963_s0 + $0x38c] sm:$0xf] }
 0x1a3   :  { %v1749_v4 = vmax.f32 %v1636_v2, 0.0  ;;  %1508 = vmatmul.bf16.gmra.mxu2 %v2309_v0  ;;  %v2345_v0 = vor.u32 %v2659_v52, %v2342_v53  ;;  %v2374_v52 = vld [vmem:[%s3963_s0 + $0x398] sm:$0xf0] }
 0x1a4   :  { %1677 = vmatmul.bf16.gmra.mxu3 %v2313_v1 }
 0x1a5   :  { %v2792_v6 = vpack.c.bf16 %v1749_v4, %v1748_v3 }
 0x1a6   :  { %v1469_v7 = vpop.f32.mrf.mxu2  ;;  %v1133_v11 = vpop.f32.mrf.mxu0 }
 0x1a7   :  { %v1638_v8 = vpop.f32.mrf.mxu3  ;;  %2888 = vst [vmem:[%s3964_s3 + $0x78] sm:$0xff] %v2792_v6   ;;  %v1302_v12 = vpop.f32.mrf.mxu1  ;;  %v1134_v13 = vadd.f32 %v3654_v14, %v1133_v11  ;;  %v1470_v16 = vadd.f32 %v1469_v7, %v1301_v9 }
 0x1a9   :  { %v1303_v23 = vadd.f32 %v1302_v12, %v1134_v13  ;;  %v1639_v28 = vadd.f32 %v1638_v8, %v1470_v16  ;;  %v2348_v13 = vld [vmem:[%s3963_s0 + $0x360] sm:$0xf]  ;;  %v2662_v16 = vld [vmem:[%s3963_s0 + $0x364] sm:$0xf] }
 0x1ab   :  { %v1750_v35 = vmax.f32 %v1639_v28, 0.0 }
 0x1ae   :  { %v1471_v24 = vpop.f32.mrf.mxu2  ;;  %v1136_v30 = vpop.f32.mrf.mxu0 }
 0x1af   :  { %v1640_v25 = vpop.f32.mrf.mxu3  ;;  %v1472_v29 = vadd.f32 %v1471_v24, %v1303_v23  ;;  %v1305_v31 = vpop.f32.mrf.mxu1  ;;  %v1137_v37 = vadd.f32 %v3654_v14, %v1136_v30 }
 0x1b1   :  { %v1641_v34 = vadd.f32 %v1640_v25, %v1472_v29  ;;  %1175 = vmatmul.bf16.gmra.mxu0 %v2317_v26  ;;  %v1306_v41 = vadd.f32 %v1305_v31, %v1137_v37  ;;  %v2349_v25 = vor.u32 %v2664_v15, %v2348_v13  ;;  %v2353_v26 = vor.u32 %v2662_v16, %v2350_v17  ;;  %v2672_v13 = vld [vmem:[%s3963_s0 + $0x3ac] sm:$0xf0]  ;;  %v2382_v16 = vld [vmem:[%s3963_s0 + $0x3b0] sm:$0xf0]  ;;  %v2388_v17 = vld [vmem:[%s3963_s0 + $0x3a8] sm:$0xf] }
 0x1b2   :  { %1344 = vmatmul.bf16.gmra.mxu1 %v2321_v27  ;;  %v2357_v31 = vor.u32 %v2665_v19, %v2356_v18  ;;  %v2673_v18 = vld [vmem:[%s3963_s0 + $0x3b4] sm:$0xf0]  ;;  %v2671_v19 = vld [vmem:[%s3963_s0 + $0x3ac] sm:$0xf] }
 0x1b3   :  { %v1751_v36 = vmax.f32 %v1641_v34, 0.0  ;;  %1513 = vmatmul.bf16.gmra.mxu2 %v2325_v32  ;;  %v2361_v32 = vor.u32 %v2663_v20, %v2358_v21  ;;  %v2390_v20 = vld [vmem:[%s3963_s0 + $0x3b8] sm:$0xf0] }
 0x1b4   :  { %1682 = vmatmul.bf16.gmra.mxu3 %v2329_v33 }
 0x1b5   :  { %v2797_v38 = vpack.c.bf16 %v1751_v36, %v1750_v35 }
 0x1b6   :  { %v1474_v39 = vpop.f32.mrf.mxu2  ;;  %v1138_v42 = vpop.f32.mrf.mxu0 }
 0x1b7   :  { %v1643_v40 = vpop.f32.mrf.mxu3  ;;  %2889 = vst [vmem:[%s3964_s3 + $0x80] sm:$0xff] %v2797_v38   ;;  %v1307_v43 = vpop.f32.mrf.mxu1  ;;  %v1139_v44 = vadd.f32 %v3654_v14, %v1138_v42  ;;  %v1475_v47 = vadd.f32 %v1474_v39, %v1306_v41 }
 0x1b9   :  { %v1308_v54 = vadd.f32 %v1307_v43, %v1139_v44  ;;  %v1644_v59 = vadd.f32 %v1643_v40, %v1475_v47  ;;  %v2364_v44 = vld [vmem:[%s3963_s0 + $0x380] sm:$0xf]  ;;  %v2666_v47 = vld [vmem:[%s3963_s0 + $0x384] sm:$0xf] }
 0x1bb   :  { %v1752_v2 = vmax.f32 %v1644_v59, 0.0 }
 0x1be   :  { %v1476_v55 = vpop.f32.mrf.mxu2  ;;  %v1141_v61 = vpop.f32.mrf.mxu0 }
 0x1bf   :  { %v1645_v56 = vpop.f32.mrf.mxu3  ;;  %v1477_v60 = vadd.f32 %v1476_v55, %v1308_v54  ;;  %v1310_v62 = vpop.f32.mrf.mxu1  ;;  %v1142_v4 = vadd.f32 %v3654_v14, %v1141_v61 }
 0x1c1   :  { %v1646_v1 = vadd.f32 %v1645_v56, %v1477_v60  ;;  %1180 = vmatmul.bf16.gmra.mxu0 %v2333_v57  ;;  %v1311_v8 = vadd.f32 %v1310_v62, %v1142_v4  ;;  %v2365_v56 = vor.u32 %v2668_v45, %v2364_v44  ;;  %v2369_v57 = vor.u32 %v2666_v47, %v2366_v48  ;;  %v2676_v44 = vld [vmem:[%s3963_s0 + $0x3cc] sm:$0xf0]  ;;  %v2398_v47 = vld [vmem:[%s3963_s0 + $0x3d0] sm:$0xf0]  ;;  %v2404_v48 = vld [vmem:[%s3963_s0 + $0x3c8] sm:$0xf] }
 0x1c2   :  { %1349 = vmatmul.bf16.gmra.mxu1 %v2337_v58  ;;  %v2373_v62 = vor.u32 %v2669_v50, %v2372_v49  ;;  %v2677_v49 = vld [vmem:[%s3963_s0 + $0x3d4] sm:$0xf0]  ;;  %v2675_v50 = vld [vmem:[%s3963_s0 + $0x3cc] sm:$0xf] }
 0x1c3   :  { %v1753_v3 = vmax.f32 %v1646_v1, 0.0  ;;  %1518 = vmatmul.bf16.gmra.mxu2 %v2341_v63  ;;  %v2377_v63 = vor.u32 %v2667_v51, %v2374_v52  ;;  %v2406_v51 = vld [vmem:[%s3963_s0 + $0x3d8] sm:$0xf0] }
 0x1c4   :  { %1687 = vmatmul.bf16.gmra.mxu3 %v2345_v0 }
 0x1c5   :  { %v2802_v5 = vpack.c.bf16 %v1753_v3, %v1752_v2 }
 0x1c6   :  { %v1479_v6 = vpop.f32.mrf.mxu2  ;;  %v1143_v9 = vpop.f32.mrf.mxu0 }
 0x1c7   :  { %v1648_v7 = vpop.f32.mrf.mxu3  ;;  %2890 = vst [vmem:[%s3964_s3 + $0x88] sm:$0xff] %v2802_v5   ;;  %v1312_v11 = vpop.f32.mrf.mxu1  ;;  %v1144_v12 = vadd.f32 %v3654_v14, %v1143_v9  ;;  %v1480_v10 = vadd.f32 %v1479_v6, %v1311_v8 }
 0x1c9   :  { %v1313_v22 = vadd.f32 %v1312_v11, %v1144_v12  ;;  %v1649_v27 = vadd.f32 %v1648_v7, %v1480_v10  ;;  %v2380_v12 = vld [vmem:[%s3963_s0 + $0x3a0] sm:$0xf]  ;;  %v2670_v10 = vld [vmem:[%s3963_s0 + $0x3a4] sm:$0xf] }
 0x1cb   :  { %v1754_v34 = vmax.f32 %v1649_v27, 0.0 }
 0x1ce   :  { %v1481_v23 = vpop.f32.mrf.mxu2  ;;  %v1146_v29 = vpop.f32.mrf.mxu0 }
 0x1cf   :  { %v1650_v24 = vpop.f32.mrf.mxu3  ;;  %v1482_v28 = vadd.f32 %v1481_v23, %v1313_v22  ;;  %v1315_v30 = vpop.f32.mrf.mxu1  ;;  %v1147_v36 = vadd.f32 %v3654_v14, %v1146_v29 }
 0x1d1   :  { %v1651_v33 = vadd.f32 %v1650_v24, %v1482_v28  ;;  %1185 = vmatmul.bf16.gmra.mxu0 %v2349_v25  ;;  %v1316_v40 = vadd.f32 %v1315_v30, %v1147_v36  ;;  %v2381_v24 = vor.u32 %v2672_v13, %v2380_v12  ;;  %v2385_v25 = vor.u32 %v2670_v10, %v2382_v16  ;;  %v2680_v12 = vld [vmem:[%s3963_s0 + $0x3ec] sm:$0xf0]  ;;  %v2414_v10 = vld [vmem:[%s3963_s0 + $0x3f0] sm:$0xf0]  ;;  %v2420_v16 = vld [vmem:[%s3963_s0 + $0x3e8] sm:$0xf] }
 0x1d2   :  { %1354 = vmatmul.bf16.gmra.mxu1 %v2353_v26  ;;  %v2389_v30 = vor.u32 %v2673_v18, %v2388_v17  ;;  %v2681_v17 = vld [vmem:[%s3963_s0 + $0x3f4] sm:$0xf0]  ;;  %v2679_v18 = vld [vmem:[%s3963_s0 + $0x3ec] sm:$0xf] }
 0x1d3   :  { %v1755_v35 = vmax.f32 %v1651_v33, 0.0  ;;  %1523 = vmatmul.bf16.gmra.mxu2 %v2357_v31  ;;  %v2393_v31 = vor.u32 %v2671_v19, %v2390_v20  ;;  %v2422_v19 = vld [vmem:[%s3963_s0 + $0x3f8] sm:$0xf0] }
 0x1d4   :  { %1692 = vmatmul.bf16.gmra.mxu3 %v2361_v32 }
 0x1d5   :  { %v2807_v37 = vpack.c.bf16 %v1755_v35, %v1754_v34 }
 0x1d6   :  { %v1484_v38 = vpop.f32.mrf.mxu2  ;;  %v1148_v41 = vpop.f32.mrf.mxu0 }
 0x1d7   :  { %v1653_v39 = vpop.f32.mrf.mxu3  ;;  %2891 = vst [vmem:[%s3964_s3 + $0x90] sm:$0xff] %v2807_v37   ;;  %v1317_v42 = vpop.f32.mrf.mxu1  ;;  %v1149_v43 = vadd.f32 %v3654_v14, %v1148_v41  ;;  %v1485_v46 = vadd.f32 %v1484_v38, %v1316_v40 }
 0x1d9   :  { %v1318_v53 = vadd.f32 %v1317_v42, %v1149_v43  ;;  %v1654_v58 = vadd.f32 %v1653_v39, %v1485_v46  ;;  %v2396_v43 = vld [vmem:[%s3963_s0 + $0x3c0] sm:$0xf]  ;;  %v2674_v46 = vld [vmem:[%s3963_s0 + $0x3c4] sm:$0xf] }
 0x1db   :  { %v1756_v1 = vmax.f32 %v1654_v58, 0.0 }
 0x1de   :  { %v1486_v54 = vpop.f32.mrf.mxu2  ;;  %v1151_v60 = vpop.f32.mrf.mxu0 }
 0x1df   :  { %v1655_v55 = vpop.f32.mrf.mxu3  ;;  %v1487_v59 = vadd.f32 %v1486_v54, %v1318_v53  ;;  %v1320_v61 = vpop.f32.mrf.mxu1  ;;  %v1152_v3 = vadd.f32 %v3654_v14, %v1151_v60 }
 0x1e1   :  { %v1656_v0 = vadd.f32 %v1655_v55, %v1487_v59  ;;  %1190 = vmatmul.bf16.gmra.mxu0 %v2365_v56  ;;  %v1321_v7 = vadd.f32 %v1320_v61, %v1152_v3  ;;  %v2397_v55 = vor.u32 %v2676_v44, %v2396_v43  ;;  %v2401_v56 = vor.u32 %v2674_v46, %v2398_v47 }
 0x1e2   :  { %1359 = vmatmul.bf16.gmra.mxu1 %v2369_v57  ;;  %v2405_v61 = vor.u32 %v2677_v49, %v2404_v48 }
 0x1e3   :  { %v1757_v2 = vmax.f32 %v1656_v0, 0.0  ;;  %1528 = vmatmul.bf16.gmra.mxu2 %v2373_v62  ;;  %v2409_v62 = vor.u32 %v2675_v50, %v2406_v51 }
 0x1e4   :  { %1697 = vmatmul.bf16.gmra.mxu3 %v2377_v63 }
 0x1e5   :  { %v2812_v4 = vpack.c.bf16 %v1757_v2, %v1756_v1 }
 0x1e6   :  { %v1489_v5 = vpop.f32.mrf.mxu2  ;;  %v1153_v8 = vpop.f32.mrf.mxu0 }
 0x1e7   :  { %v1658_v6 = vpop.f32.mrf.mxu3  ;;  %2892 = vst [vmem:[%s3964_s3 + $0x98] sm:$0xff] %v2812_v4   ;;  %v1322_v9 = vpop.f32.mrf.mxu1  ;;  %v1154_v11 = vadd.f32 %v3654_v14, %v1153_v8  ;;  %v1490_v15 = vadd.f32 %v1489_v5, %v1321_v7 }
 0x1e9   :  { %v1323_v21 = vadd.f32 %v1322_v9, %v1154_v11  ;;  %v1659_v26 = vadd.f32 %v1658_v6, %v1490_v15  ;;  %v2412_v11 = vld [vmem:[%s3963_s0 + $0x3e0] sm:$0xf]  ;;  %v2678_v15 = vld [vmem:[%s3963_s0 + $0x3e4] sm:$0xf] }
 0x1eb   :  { %v1758_v33 = vmax.f32 %v1659_v26, 0.0 }
 0x1ee   :  { %v1491_v22 = vpop.f32.mrf.mxu2  ;;  %v1156_v28 = vpop.f32.mrf.mxu0 }
 0x1ef   :  { %v1660_v23 = vpop.f32.mrf.mxu3  ;;  %v1492_v27 = vadd.f32 %v1491_v22, %v1323_v21  ;;  %v1325_v29 = vpop.f32.mrf.mxu1  ;;  %v1157_v35 = vadd.f32 %v3654_v14, %v1156_v28 }
 0x1f1   :  { %v1661_v32 = vadd.f32 %v1660_v23, %v1492_v27  ;;  %1195 = vmatmul.bf16.gmra.mxu0 %v2381_v24  ;;  %v1326_v39 = vadd.f32 %v1325_v29, %v1157_v35  ;;  %v2413_v23 = vor.u32 %v2680_v12, %v2412_v11  ;;  %v2417_v24 = vor.u32 %v2678_v15, %v2414_v10 }
 0x1f2   :  { %1364 = vmatmul.bf16.gmra.mxu1 %v2385_v25  ;;  %v2421_v29 = vor.u32 %v2681_v17, %v2420_v16 }
 0x1f3   :  { %v1759_v34 = vmax.f32 %v1661_v32, 0.0  ;;  %1533 = vmatmul.bf16.gmra.mxu2 %v2389_v30  ;;  %v2425_v30 = vor.u32 %v2679_v18, %v2422_v19 }
 0x1f4   :  { %1702 = vmatmul.bf16.gmra.mxu3 %v2393_v31 }
 0x1f5   :  { %v2817_v36 = vpack.c.bf16 %v1759_v34, %v1758_v33 }
 0x1f6   :  { %v1494_v37 = vpop.f32.mrf.mxu2  ;;  %v1158_v40 = vpop.f32.mrf.mxu0 }
 0x1f7   :  { %v1663_v38 = vpop.f32.mrf.mxu3  ;;  %2893 = vst [vmem:[%s3964_s3 + $0xa0] sm:$0xff] %v2817_v36   ;;  %v1327_v41 = vpop.f32.mrf.mxu1  ;;  %v1159_v42 = vadd.f32 %v3654_v14, %v1158_v40  ;;  %v1495_v45 = vadd.f32 %v1494_v37, %v1326_v39 }
 0x1f9   :  { %v1328_v52 = vadd.f32 %v1327_v41, %v1159_v42  ;;  %v1664_v57 = vadd.f32 %v1663_v38, %v1495_v45 }
 0x1fb   :  { %v1760_v0 = vmax.f32 %v1664_v57, 0.0 }
 0x1fe   :  { %v1496_v53 = vpop.f32.mrf.mxu2  ;;  %v1161_v59 = vpop.f32.mrf.mxu0 }
 0x1ff   :  { %v1665_v54 = vpop.f32.mrf.mxu3  ;;  %v1497_v58 = vadd.f32 %v1496_v53, %v1328_v52  ;;  %v1330_v60 = vpop.f32.mrf.mxu1  ;;  %v1162_v2 = vadd.f32 %v3654_v14, %v1161_v59 }
 0x201   :  { %v1666_v63 = vadd.f32 %v1665_v54, %v1497_v58  ;;  %1200 = vmatmul.bf16.gmra.mxu0 %v2397_v55  ;;  %v1331_v6 = vadd.f32 %v1330_v60, %v1162_v2 }
 0x202   :  { %1369 = vmatmul.bf16.gmra.mxu1 %v2401_v56 }
 0x203   :  { %v1761_v1 = vmax.f32 %v1666_v63, 0.0  ;;  %1538 = vmatmul.bf16.gmra.mxu2 %v2405_v61 }
 0x204   :  { %1707 = vmatmul.bf16.gmra.mxu3 %v2409_v62 }
 0x205   :  { %v2822_v3 = vpack.c.bf16 %v1761_v1, %v1760_v0 }
 0x206   :  { %v1499_v4 = vpop.f32.mrf.mxu2  ;;  %v1163_v7 = vpop.f32.mrf.mxu0 }
 0x207   :  { %v1668_v5 = vpop.f32.mrf.mxu3  ;;  %2894 = vst [vmem:[%s3964_s3 + $0xa8] sm:$0xff] %v2822_v3   ;;  %v1332_v8 = vpop.f32.mrf.mxu1  ;;  %v1164_v9 = vadd.f32 %v3654_v14, %v1163_v7  ;;  %v1500_v13 = vadd.f32 %v1499_v4, %v1331_v6 }
 0x209   :  { %v1333_v20 = vadd.f32 %v1332_v8, %v1164_v9  ;;  %v1669_v25 = vadd.f32 %v1668_v5, %v1500_v13 }
 0x20b   :  { %v1762_v32 = vmax.f32 %v1669_v25, 0.0 }
 0x20e   :  { %v1501_v21 = vpop.f32.mrf.mxu2  ;;  %v1166_v27 = vpop.f32.mrf.mxu0 }
 0x20f   :  { %v1670_v22 = vpop.f32.mrf.mxu3  ;;  %v1502_v26 = vadd.f32 %v1501_v21, %v1333_v20  ;;  %v1335_v28 = vpop.f32.mrf.mxu1  ;;  %v1167_v34 = vadd.f32 %v3654_v14, %v1166_v27 }
 0x211   :  { %v1671_v31 = vadd.f32 %v1670_v22, %v1502_v26  ;;  %1205 = vmatmul.bf16.gmra.mxu0 %v2413_v23  ;;  %v1336_v38 = vadd.f32 %v1335_v28, %v1167_v34 }
 0x212   :  { %1374 = vmatmul.bf16.gmra.mxu1 %v2417_v24 }
 0x213   :  { %v1763_v33 = vmax.f32 %v1671_v31, 0.0  ;;  %1543 = vmatmul.bf16.gmra.mxu2 %v2421_v29 }
 0x214   :  { %1712 = vmatmul.bf16.gmra.mxu3 %v2425_v30 }
 0x215   :  { %v2827_v35 = vpack.c.bf16 %v1763_v33, %v1762_v32 }
 0x216   :  { %v1504_v36 = vpop.f32.mrf.mxu2  ;;  %v1168_v39 = vpop.f32.mrf.mxu0 }
 0x217   :  { %v1673_v37 = vpop.f32.mrf.mxu3  ;;  %2895 = vst [vmem:[%s3964_s3 + $0xb0] sm:$0xff] %v2827_v35   ;;  %v1337_v40 = vpop.f32.mrf.mxu1  ;;  %v1169_v41 = vadd.f32 %v3654_v14, %v1168_v39  ;;  %v1505_v42 = vadd.f32 %v1504_v36, %v1336_v38 }
 0x219   :  { %v1338_v43 = vadd.f32 %v1337_v40, %v1169_v41  ;;  %v1674_v46 = vadd.f32 %v1673_v37, %v1505_v42 }
 0x21b   :  { %v1764_v51 = vmax.f32 %v1674_v46, 0.0 }
 0x21e   :  { %v1506_v44 = vpop.f32.mrf.mxu2  ;;  %v1171_v48 = vpop.f32.mrf.mxu0 }
 0x21f   :  { %v1675_v45 = vpop.f32.mrf.mxu3  ;;  %v1507_v47 = vadd.f32 %v1506_v44, %v1338_v43  ;;  %v1340_v49 = vpop.f32.mrf.mxu1  ;;  %v1172_v53 = vadd.f32 %v3654_v14, %v1171_v48 }
 0x221   :  { %v1676_v50 = vadd.f32 %v1675_v45, %v1507_v47  ;;  %v1341_v57 = vadd.f32 %v1340_v49, %v1172_v53 }
 0x223   :  { %v1765_v52 = vmax.f32 %v1676_v50, 0.0 }
 0x225   :  { %v2832_v54 = vpack.c.bf16 %v1765_v52, %v1764_v51 }
 0x226   :  { %v1509_v55 = vpop.f32.mrf.mxu2  ;;  %v1173_v58 = vpop.f32.mrf.mxu0 }
 0x227   :  { %v1678_v56 = vpop.f32.mrf.mxu3  ;;  %2896 = vst [vmem:[%s3964_s3 + $0xb8] sm:$0xff] %v2832_v54   ;;  %v1342_v59 = vpop.f32.mrf.mxu1  ;;  %v1174_v60 = vadd.f32 %v3654_v14, %v1173_v58  ;;  %v1510_v61 = vadd.f32 %v1509_v55, %v1341_v57 }
 0x229   :  { %v1343_v62 = vadd.f32 %v1342_v59, %v1174_v60  ;;  %v1679_v1 = vadd.f32 %v1678_v56, %v1510_v61 }
 0x22b   :  { %v1766_v6 = vmax.f32 %v1679_v1, 0.0 }
 0x22e   :  { %v1511_v63 = vpop.f32.mrf.mxu2  ;;  %v1176_v3 = vpop.f32.mrf.mxu0 }
 0x22f   :  { %v1680_v0 = vpop.f32.mrf.mxu3  ;;  %v1512_v2 = vadd.f32 %v1511_v63, %v1343_v62  ;;  %v1345_v4 = vpop.f32.mrf.mxu1  ;;  %v1177_v8 = vadd.f32 %v3654_v14, %v1176_v3 }
 0x231   :  { %v1681_v5 = vadd.f32 %v1680_v0, %v1512_v2  ;;  %v1346_v13 = vadd.f32 %v1345_v4, %v1177_v8 }
 0x233   :  { %v1767_v7 = vmax.f32 %v1681_v5, 0.0 }
 0x235   :  { %v2837_v9 = vpack.c.bf16 %v1767_v7, %v1766_v6 }
 0x236   :  { %v1514_v11 = vpop.f32.mrf.mxu2  ;;  %v1178_v15 = vpop.f32.mrf.mxu0 }
 0x237   :  { %v1683_v12 = vpop.f32.mrf.mxu3  ;;  %2897 = vst [vmem:[%s3964_s3 + $0xc0] sm:$0xff] %v2837_v9   ;;  %v1347_v10 = vpop.f32.mrf.mxu1  ;;  %v1179_v16 = vadd.f32 %v3654_v14, %v1178_v15  ;;  %v1515_v17 = vadd.f32 %v1514_v11, %v1346_v13 }
 0x239   :  { %v1348_v18 = vadd.f32 %v1347_v10, %v1179_v16  ;;  %v1684_v21 = vadd.f32 %v1683_v12, %v1515_v17 }
 0x23b   :  { %v1768_v26 = vmax.f32 %v1684_v21, 0.0 }
 0x23e   :  { %v1516_v19 = vpop.f32.mrf.mxu2  ;;  %v1181_v23 = vpop.f32.mrf.mxu0 }
 0x23f   :  { %v1685_v20 = vpop.f32.mrf.mxu3  ;;  %v1517_v22 = vadd.f32 %v1516_v19, %v1348_v18  ;;  %v1350_v24 = vpop.f32.mrf.mxu1  ;;  %v1182_v28 = vadd.f32 %v3654_v14, %v1181_v23 }
 0x241   :  { %v1686_v25 = vadd.f32 %v1685_v20, %v1517_v22  ;;  %v1351_v32 = vadd.f32 %v1350_v24, %v1182_v28 }
 0x243   :  { %v1769_v27 = vmax.f32 %v1686_v25, 0.0 }
 0x245   :  { %v2842_v29 = vpack.c.bf16 %v1769_v27, %v1768_v26 }
 0x246   :  { %v1519_v30 = vpop.f32.mrf.mxu2  ;;  %v1183_v33 = vpop.f32.mrf.mxu0 }
 0x247   :  { %v1688_v31 = vpop.f32.mrf.mxu3  ;;  %2898 = vst [vmem:[%s3964_s3 + $0xc8] sm:$0xff] %v2842_v29   ;;  %v1352_v34 = vpop.f32.mrf.mxu1  ;;  %v1184_v35 = vadd.f32 %v3654_v14, %v1183_v33  ;;  %v1520_v36 = vadd.f32 %v1519_v30, %v1351_v32 }
 0x249   :  { %v1353_v37 = vadd.f32 %v1352_v34, %v1184_v35  ;;  %v1689_v40 = vadd.f32 %v1688_v31, %v1520_v36 }
 0x24b   :  { %v1770_v45 = vmax.f32 %v1689_v40, 0.0 }
 0x24e   :  { %v1521_v38 = vpop.f32.mrf.mxu2  ;;  %v1186_v42 = vpop.f32.mrf.mxu0 }
 0x24f   :  { %v1690_v39 = vpop.f32.mrf.mxu3  ;;  %v1522_v41 = vadd.f32 %v1521_v38, %v1353_v37  ;;  %v1355_v43 = vpop.f32.mrf.mxu1  ;;  %v1187_v47 = vadd.f32 %v3654_v14, %v1186_v42 }
 0x251   :  { %v1691_v44 = vadd.f32 %v1690_v39, %v1522_v41  ;;  %v1356_v51 = vadd.f32 %v1355_v43, %v1187_v47 }
 0x253   :  { %v1771_v46 = vmax.f32 %v1691_v44, 0.0 }
 0x255   :  { %v2847_v48 = vpack.c.bf16 %v1771_v46, %v1770_v45 }
 0x256   :  { %v1524_v49 = vpop.f32.mrf.mxu2  ;;  %v1188_v52 = vpop.f32.mrf.mxu0 }
 0x257   :  { %v1693_v50 = vpop.f32.mrf.mxu3  ;;  %2899 = vst [vmem:[%s3964_s3 + $0xd0] sm:$0xff] %v2847_v48   ;;  %v1357_v53 = vpop.f32.mrf.mxu1  ;;  %v1189_v54 = vadd.f32 %v3654_v14, %v1188_v52  ;;  %v1525_v55 = vadd.f32 %v1524_v49, %v1356_v51 }
 0x259   :  { %v1358_v56 = vadd.f32 %v1357_v53, %v1189_v54  ;;  %v1694_v59 = vadd.f32 %v1693_v50, %v1525_v55 }
 0x25b   :  { %v1772_v0 = vmax.f32 %v1694_v59, 0.0 }
 0x25e   :  { %v1526_v57 = vpop.f32.mrf.mxu2  ;;  %v1191_v61 = vpop.f32.mrf.mxu0 }
 0x25f   :  { %v1695_v58 = vpop.f32.mrf.mxu3  ;;  %v1527_v60 = vadd.f32 %v1526_v57, %v1358_v56  ;;  %v1360_v62 = vpop.f32.mrf.mxu1  ;;  %v1192_v2 = vadd.f32 %v3654_v14, %v1191_v61 }
 0x261   :  { %v1696_v63 = vadd.f32 %v1695_v58, %v1527_v60  ;;  %v1361_v6 = vadd.f32 %v1360_v62, %v1192_v2 }
 0x263   :  { %v1773_v1 = vmax.f32 %v1696_v63, 0.0 }
 0x265   :  { %v2852_v3 = vpack.c.bf16 %v1773_v1, %v1772_v0 }
 0x266   :  { %v1529_v4 = vpop.f32.mrf.mxu2  ;;  %v1193_v7 = vpop.f32.mrf.mxu0 }
 0x267   :  { %v1698_v5 = vpop.f32.mrf.mxu3  ;;  %2900 = vst [vmem:[%s3964_s3 + $0xd8] sm:$0xff] %v2852_v3   ;;  %v1362_v8 = vpop.f32.mrf.mxu1  ;;  %v1194_v9 = vadd.f32 %v3654_v14, %v1193_v7  ;;  %v1530_v11 = vadd.f32 %v1529_v4, %v1361_v6 }
 0x269   :  { %v1363_v12 = vadd.f32 %v1362_v8, %v1194_v9  ;;  %v1699_v10 = vadd.f32 %v1698_v5, %v1530_v11 }
 0x26b   :  { %v1774_v20 = vmax.f32 %v1699_v10, 0.0 }
 0x26e   :  { %v1531_v13 = vpop.f32.mrf.mxu2  ;;  %v1196_v17 = vpop.f32.mrf.mxu0 }
 0x26f   :  { %v1700_v15 = vpop.f32.mrf.mxu3  ;;  %v1532_v16 = vadd.f32 %v1531_v13, %v1363_v12  ;;  %v1365_v18 = vpop.f32.mrf.mxu1  ;;  %v1197_v22 = vadd.f32 %v3654_v14, %v1196_v17 }
 0x271   :  { %v1701_v19 = vadd.f32 %v1700_v15, %v1532_v16  ;;  %v1366_v26 = vadd.f32 %v1365_v18, %v1197_v22 }
 0x273   :  { %v1775_v21 = vmax.f32 %v1701_v19, 0.0 }
 0x275   :  { %v2857_v23 = vpack.c.bf16 %v1775_v21, %v1774_v20 }
 0x276   :  { %v1534_v24 = vpop.f32.mrf.mxu2  ;;  %v1198_v27 = vpop.f32.mrf.mxu0 }
 0x277   :  { %v1703_v25 = vpop.f32.mrf.mxu3  ;;  %2901 = vst [vmem:[%s3964_s3 + $0xe0] sm:$0xff] %v2857_v23   ;;  %v1367_v28 = vpop.f32.mrf.mxu1  ;;  %v1199_v29 = vadd.f32 %v3654_v14, %v1198_v27  ;;  %v1535_v30 = vadd.f32 %v1534_v24, %v1366_v26 }
 0x279   :  { %v1368_v31 = vadd.f32 %v1367_v28, %v1199_v29  ;;  %v1704_v34 = vadd.f32 %v1703_v25, %v1535_v30 }
 0x27b   :  { %v1776_v39 = vmax.f32 %v1704_v34, 0.0 }
 0x27e   :  { %v1536_v32 = vpop.f32.mrf.mxu2  ;;  %v1201_v36 = vpop.f32.mrf.mxu0 }
 0x27f   :  { %v1705_v33 = vpop.f32.mrf.mxu3  ;;  %v1537_v35 = vadd.f32 %v1536_v32, %v1368_v31  ;;  %v1370_v37 = vpop.f32.mrf.mxu1  ;;  %v1202_v41 = vadd.f32 %v3654_v14, %v1201_v36 }
 0x281   :  { %v1706_v38 = vadd.f32 %v1705_v33, %v1537_v35  ;;  %v1371_v45 = vadd.f32 %v1370_v37, %v1202_v41 }
 0x283   :  { %v1777_v40 = vmax.f32 %v1706_v38, 0.0 }
 0x285   :  { %v2862_v42 = vpack.c.bf16 %v1777_v40, %v1776_v39 }
 0x286   :  { %v1539_v43 = vpop.f32.mrf.mxu2  ;;  %v1203_v46 = vpop.f32.mrf.mxu0 }
 0x287   :  { %v1708_v44 = vpop.f32.mrf.mxu3  ;;  %2902 = vst [vmem:[%s3964_s3 + $0xe8] sm:$0xff] %v2862_v42   ;;  %v1372_v47 = vpop.f32.mrf.mxu1  ;;  %v1204_v48 = vadd.f32 %v3654_v14, %v1203_v46  ;;  %v1540_v49 = vadd.f32 %v1539_v43, %v1371_v45 }
 0x289   :  { %v1373_v50 = vadd.f32 %v1372_v47, %v1204_v48  ;;  %v1709_v53 = vadd.f32 %v1708_v44, %v1540_v49 }
 0x28b   :  { %v1778_v58 = vmax.f32 %v1709_v53, 0.0 }
 0x28e   :  { %v1541_v51 = vpop.f32.mrf.mxu2  ;;  %v1206_v55 = vpop.f32.mrf.mxu0 }
 0x28f   :  { %v1710_v52 = vpop.f32.mrf.mxu3  ;;  %v1542_v54 = vadd.f32 %v1541_v51, %v1373_v50  ;;  %v1375_v57 = vpop.f32.mrf.mxu1  ;;  %v1207_v60 = vadd.f32 %v3654_v14, %v1206_v55 }
 0x291   :  { %v1711_v56 = vadd.f32 %v1710_v52, %v1542_v54  ;;  %v1376_v0 = vadd.f32 %v1375_v57, %v1207_v60 }
 0x293   :  { %v1779_v59 = vmax.f32 %v1711_v56, 0.0 }
 0x295   :  { %v2867_v61 = vpack.c.bf16 %v1779_v59, %v1778_v58 }
 0x296   :  { %v1544_v62 = vpop.f32.mrf.mxu2  ;;  %v1208_v1 = vpop.f32.mrf.mxu0 }
 0x297   :  { %v1713_v63 = vpop.f32.mrf.mxu3  ;;  %2903 = vst [vmem:[%s3964_s3 + $0xf0] sm:$0xff] %v2867_v61   ;;  %v1209_v2 = vadd.f32 %v3654_v14, %v1208_v1  ;;  %v1545_v3 = vadd.f32 %v1544_v62, %v1376_v0  ;;  %v1377_v4 = vpop.f32.mrf.mxu1 }
 0x299   :  { %v1378_v5 = vadd.f32 %v1377_v4, %v1209_v2  ;;  %v1714_v7 = vadd.f32 %v1713_v63, %v1545_v3 }
 0x29b   :  { %v1780_v12 = vmax.f32 %v1714_v7, 0.0 }
 0x29e   :  { %v1546_v6 = vpop.f32.mrf.mxu2 }
 0x29f   :  { %v1547_v8 = vadd.f32 %v1546_v6, %v1378_v5  ;;  %v1715_v9 = vpop.f32.mrf.mxu3 }
 0x2a1   :  { %v1716_v11 = vadd.f32 %v1715_v9, %v1547_v8 }
 0x2a3   :  { %v1781_v13 = vmax.f32 %v1716_v11, 0.0 }
 0x2a5   :  { %v2872_v15 = vpack.c.bf16 %v1781_v13, %v1780_v12 }
 0x2a7   :  { %2904 = vst [vmem:[%s3964_s3 + $0xf8] sm:$0xff] %v2872_v15  }

// kernel: encoder_forward.9
= control target key start
LH: loop header
LB: loop body
LE: loop exit
PB: predicated region body
PF: predicated region fallthrough
CT: control target
= control target key end

     0   :  { %s1435_s1 = inlined_call_operand.vmem [shape: bf16[512,128], index: 1, kind: input, shape index: {}]   ;;  %s1436_s2 = inlined_call_operand.vmem [shape: f32[1,128], index: 2, kind: input, shape index: {}]   ;;  %s1437_s0 = inlined_call_operand.vmem [shape: bf16[128,512], index: 0, kind: input, shape index: {}]   ;;  %s1438_s3 = inlined_call_operand.vmem [shape: bf16[128,128], index: 3, kind: output, shape index: {}]  }
   0x1   :  { %v1009_v0 = vld [vmem:[%s1435_s1 + $0x38] sm:$0xff]  ;;  %v1008_v4 = vld [vmem:[%s1435_s1 + $0x30] sm:$0xff]  ;;  %v1007_v8 = vld [vmem:[%s1435_s1 + $0x28] sm:$0xff] }
   0x2   :  { %v1017_v1 = vld [vmem:[%s1435_s1 + $0x78] sm:$0xff]  ;;  %466 = vmatpush.bf16.msra.mxu0 %v1009_v0  ;;  %v1016_v5 = vld [vmem:[%s1435_s1 + $0x70] sm:$0xff]  ;;  %v1015_v9 = vld [vmem:[%s1435_s1 + $0x68] sm:$0xff] }
   0x3   :  { %v1025_v2 = vld [vmem:[%s1435_s1 + $0xb8] sm:$0xff]  ;;  %515 = vmatpush.bf16.msra.mxu1 %v1017_v1  ;;  %v1024_v6 = vld [vmem:[%s1435_s1 + $0xb0] sm:$0xff]  ;;  %v1023_v10 = vld [vmem:[%s1435_s1 + $0xa8] sm:$0xff] }
   0x4   :  { %v1033_v3 = vld [vmem:[%s1435_s1 + $0xf8] sm:$0xff]  ;;  %564 = vmatpush.bf16.msra.mxu2 %v1025_v2  ;;  %v1032_v7 = vld [vmem:[%s1435_s1 + $0xf0] sm:$0xff]  ;;  %v1031_v11 = vld [vmem:[%s1435_s1 + $0xe8] sm:$0xff] }
   0x5   :  { %613 = vmatpush.bf16.msra.mxu3 %v1033_v3  ;;  %v1006_v12 = vld [vmem:[%s1435_s1 + $0x20] sm:$0xff]  ;;  %v1005_v16 = vld [vmem:[%s1435_s1 + $0x18] sm:$0xff]  ;;  %v1004_v20 = vld [vmem:[%s1435_s1 + $0x10] sm:$0xff] }
   0x6   :  { %467 = vmatpush.bf16.msra.mxu0 %v1008_v4  ;;  %v1014_v13 = vld [vmem:[%s1435_s1 + $0x60] sm:$0xff]  ;;  %v1013_v17 = vld [vmem:[%s1435_s1 + $0x58] sm:$0xff]  ;;  %v1012_v21 = vld [vmem:[%s1435_s1 + $0x50] sm:$0xff] }
   0x7   :  { %516 = vmatpush.bf16.msra.mxu1 %v1016_v5  ;;  %v1022_v14 = vld [vmem:[%s1435_s1 + $0xa0] sm:$0xff]  ;;  %v1021_v18 = vld [vmem:[%s1435_s1 + $0x98] sm:$0xff]  ;;  %v1020_v22 = vld [vmem:[%s1435_s1 + $0x90] sm:$0xff] }
   0x8   :  { %565 = vmatpush.bf16.msra.mxu2 %v1024_v6  ;;  %v1030_v15 = vld [vmem:[%s1435_s1 + $0xe0] sm:$0xff]  ;;  %v1029_v19 = vld [vmem:[%s1435_s1 + $0xd8] sm:$0xff]  ;;  %v1028_v23 = vld [vmem:[%s1435_s1 + $0xd0] sm:$0xff] }
   0x9   :  { %614 = vmatpush.bf16.msra.mxu3 %v1032_v7  ;;  %v1003_v24 = vld [vmem:[%s1435_s1 + $0x8] sm:$0xff]  ;;  %v1002_v28 = vld [vmem:[%s1435_s1] sm:$0xff]  ;;  %v972_v33 = vld [vmem:[%s1437_s0 + $0xc] sm:$0xf0] }
   0xa   :  { %468 = vmatpush.bf16.msra.mxu0 %v1007_v8  ;;  %v1011_v25 = vld [vmem:[%s1435_s1 + $0x48] sm:$0xff]  ;;  %v1010_v29 = vld [vmem:[%s1435_s1 + $0x40] sm:$0xff]  ;;  %v718_v35 = vld [vmem:[%s1437_s0 + $0x10] sm:$0xf0] }
   0xb   :  { %517 = vmatpush.bf16.msra.mxu1 %v1015_v9  ;;  %v1019_v26 = vld [vmem:[%s1435_s1 + $0x88] sm:$0xff]  ;;  %v1018_v30 = vld [vmem:[%s1435_s1 + $0x80] sm:$0xff]  ;;  %v973_v37 = vld [vmem:[%s1437_s0 + $0x14] sm:$0xf0] }
   0xc   :  { %566 = vmatpush.bf16.msra.mxu2 %v1023_v10  ;;  %v1027_v27 = vld [vmem:[%s1435_s1 + $0xc8] sm:$0xff]  ;;  %v1026_v31 = vld [vmem:[%s1435_s1 + $0xc0] sm:$0xff]  ;;  %v726_v39 = vld [vmem:[%s1437_s0 + $0x18] sm:$0xf0] }
   0xd   :  { %615 = vmatpush.bf16.msra.mxu3 %v1031_v11  ;;  %v716_v32 = vld [vmem:[%s1437_s0] sm:$0xf]  ;;  %v970_v34 = vld [vmem:[%s1437_s0 + $0x4] sm:$0xf]  ;;  %v724_v36 = vld [vmem:[%s1437_s0 + $0x8] sm:$0xf] }
   0xe   :  { %469 = vmatpush.bf16.msra.mxu0 %v1006_v12  ;;  %v971_v38 = vld [vmem:[%s1437_s0 + $0xc] sm:$0xf]  ;;  %v717_v40 = vor.u32 %v972_v33, %v716_v32  ;;  %v721_v41 = vor.u32 %v970_v34, %v718_v35  ;;  %v725_v42 = vor.u32 %v973_v37, %v724_v36  ;;  %v732_v44 = vld [vmem:[%s1437_s0 + $0x20] sm:$0xf]  ;;  %v976_v45 = vld [vmem:[%s1437_s0 + $0x2c] sm:$0xf0] }
   0xf   :  { %518 = vmatpush.bf16.msra.mxu1 %v1014_v13  ;;  %v729_v43 = vor.u32 %v971_v38, %v726_v39  ;;  %v974_v46 = vld [vmem:[%s1437_s0 + $0x24] sm:$0xf]  ;;  %v734_v47 = vld [vmem:[%s1437_s0 + $0x30] sm:$0xf0]  ;;  %v740_v48 = vld [vmem:[%s1437_s0 + $0x28] sm:$0xf]  ;;  %v733_v52 = vor.u32 %v976_v45, %v732_v44 }
  0x10   :  { %567 = vmatpush.bf16.msra.mxu2 %v1022_v14  ;;  %v977_v49 = vld [vmem:[%s1437_s0 + $0x34] sm:$0xf0]  ;;  %v975_v50 = vld [vmem:[%s1437_s0 + $0x2c] sm:$0xf]  ;;  %v742_v51 = vld [vmem:[%s1437_s0 + $0x38] sm:$0xf0]  ;;  %v737_v53 = vor.u32 %v974_v46, %v734_v47 }
  0x11   :  { %616 = vmatpush.bf16.msra.mxu3 %v1030_v15  ;;  %v741_v54 = vor.u32 %v977_v49, %v740_v48  ;;  %v745_v55 = vor.u32 %v975_v50, %v742_v51  ;;  %v748_v56 = vld [vmem:[%s1437_s0 + $0x40] sm:$0xf]  ;;  %v980_v57 = vld [vmem:[%s1437_s0 + $0x4c] sm:$0xf0]  ;;  %v978_v58 = vld [vmem:[%s1437_s0 + $0x44] sm:$0xf] }
  0x12   :  { %470 = vmatpush.bf16.msra.mxu0 %v1005_v16  ;;  %v750_v59 = vld [vmem:[%s1437_s0 + $0x50] sm:$0xf0]  ;;  %v756_v60 = vld [vmem:[%s1437_s0 + $0x48] sm:$0xf]  ;;  %v981_v61 = vld [vmem:[%s1437_s0 + $0x54] sm:$0xf0]  ;;  %v749_v0 = vor.u32 %v980_v57, %v748_v56 }
  0x13   :  { %519 = vmatpush.bf16.msra.mxu1 %v1013_v17  ;;  %v979_v62 = vld [vmem:[%s1437_s0 + $0x4c] sm:$0xf]  ;;  %v758_v63 = vld [vmem:[%s1437_s0 + $0x58] sm:$0xf0]  ;;  %v753_v1 = vor.u32 %v978_v58, %v750_v59  ;;  %v757_v2 = vor.u32 %v981_v61, %v756_v60  ;;  %v764_v4 = vld [vmem:[%s1437_s0 + $0x60] sm:$0xf] }
  0x14   :  { %568 = vmatpush.bf16.msra.mxu2 %v1021_v18  ;;  %v761_v3 = vor.u32 %v979_v62, %v758_v63  ;;  %v984_v5 = vld [vmem:[%s1437_s0 + $0x6c] sm:$0xf0]  ;;  %v982_v6 = vld [vmem:[%s1437_s0 + $0x64] sm:$0xf]  ;;  %v766_v7 = vld [vmem:[%s1437_s0 + $0x70] sm:$0xf0] }
  0x15   :  { %617 = vmatpush.bf16.msra.mxu3 %v1029_v19  ;;  %v772_v8 = vld [vmem:[%s1437_s0 + $0x68] sm:$0xf]  ;;  %v985_v9 = vld [vmem:[%s1437_s0 + $0x74] sm:$0xf0]  ;;  %v983_v10 = vld [vmem:[%s1437_s0 + $0x6c] sm:$0xf]  ;;  %v765_v12 = vor.u32 %v984_v5, %v764_v4  ;;  %v769_v13 = vor.u32 %v982_v6, %v766_v7 }
  0x16   :  { %471 = vmatpush.bf16.msra.mxu0 %v1004_v20  ;;  %v774_v11 = vld [vmem:[%s1437_s0 + $0x78] sm:$0xf0]  ;;  %v773_v14 = vor.u32 %v985_v9, %v772_v8  ;;  %v780_v16 = vld [vmem:[%s1437_s0 + $0x80] sm:$0xf]  ;;  %v988_v17 = vld [vmem:[%s1437_s0 + $0x8c] sm:$0xf0] }
  0x17   :  { %520 = vmatpush.bf16.msra.mxu1 %v1012_v21  ;;  %v777_v15 = vor.u32 %v983_v10, %v774_v11  ;;  %v986_v18 = vld [vmem:[%s1437_s0 + $0x84] sm:$0xf]  ;;  %v782_v19 = vld [vmem:[%s1437_s0 + $0x90] sm:$0xf0]  ;;  %v788_v20 = vld [vmem:[%s1437_s0 + $0x88] sm:$0xf] }
  0x18   :  { %569 = vmatpush.bf16.msra.mxu2 %v1020_v22  ;;  %v989_v21 = vld [vmem:[%s1437_s0 + $0x94] sm:$0xf0]  ;;  %v987_v22 = vld [vmem:[%s1437_s0 + $0x8c] sm:$0xf]  ;;  %v804_v32 = vld [vmem:[%s1437_s0 + $0xa8] sm:$0xf] }
  0x19   :  { %618 = vmatpush.bf16.msra.mxu3 %v1028_v23  ;;  %v790_v23 = vld [vmem:[%s1437_s0 + $0x98] sm:$0xf0]  ;;  %v993_v33 = vld [vmem:[%s1437_s0 + $0xb4] sm:$0xf0]  ;;  %v991_v34 = vld [vmem:[%s1437_s0 + $0xac] sm:$0xf] }
  0x1a   :  { %472 = vmatpush.bf16.msra.mxu0 %v1003_v24  ;;  %v781_v24 = vor.u32 %v988_v17, %v780_v16  ;;  %v806_v35 = vld [vmem:[%s1437_s0 + $0xb8] sm:$0xf0]  ;;  %v805_v38 = vor.u32 %v993_v33, %v804_v32  ;;  %v820_v44 = vld [vmem:[%s1437_s0 + $0xc8] sm:$0xf]  ;;  %v997_v45 = vld [vmem:[%s1437_s0 + $0xd4] sm:$0xf0] }
  0x1b   :  { %521 = vmatpush.bf16.msra.mxu1 %v1011_v25  ;;  %v785_v25 = vor.u32 %v986_v18, %v782_v19  ;;  %v809_v39 = vor.u32 %v991_v34, %v806_v35  ;;  %v995_v46 = vld [vmem:[%s1437_s0 + $0xcc] sm:$0xf]  ;;  %v822_v47 = vld [vmem:[%s1437_s0 + $0xd8] sm:$0xf0]  ;;  %v821_v50 = vor.u32 %v997_v45, %v820_v44  ;;  %v836_v56 = vld [vmem:[%s1437_s0 + $0xe8] sm:$0xf] }
  0x1c   :  { %570 = vmatpush.bf16.msra.mxu2 %v1019_v26  ;;  %v789_v26 = vor.u32 %v989_v21, %v788_v20  ;;  %v825_v51 = vor.u32 %v995_v46, %v822_v47  ;;  %v1001_v57 = vld [vmem:[%s1437_s0 + $0xf4] sm:$0xf0]  ;;  %v999_v58 = vld [vmem:[%s1437_s0 + $0xec] sm:$0xf]  ;;  %v838_v59 = vld [vmem:[%s1437_s0 + $0xf8] sm:$0xf0] }
  0x1d   :  { %619 = vmatpush.bf16.msra.mxu3 %v1027_v27  ;;  %v793_v27 = vor.u32 %v987_v22, %v790_v23  ;;  %v837_v62 = vor.u32 %v1001_v57, %v836_v56  ;;  %v841_v63 = vor.u32 %v999_v58, %v838_v59 }
  0x1e   :  { %473 = vmatpush.bf16.msra.mxu0 %v1002_v28  ;;  %v796_v28 = vld [vmem:[%s1437_s0 + $0xa0] sm:$0xf] }
  0x1f   :  { %522 = vmatpush.bf16.msra.mxu1 %v1010_v29  ;;  %v992_v29 = vld [vmem:[%s1437_s0 + $0xac] sm:$0xf0] }
  0x20   :  { %571 = vmatpush.bf16.msra.mxu2 %v1018_v30  ;;  %v990_v30 = vld [vmem:[%s1437_s0 + $0xa4] sm:$0xf]  ;;  %v797_v36 = vor.u32 %v992_v29, %v796_v28 }
  0x21   :  { %620 = vmatpush.bf16.msra.mxu3 %v1026_v31  ;;  %474 = vmatmul.bf16.vlgmr.msra.gmra.mxu0 %v717_v40  ;;  %v798_v31 = vld [vmem:[%s1437_s0 + $0xb0] sm:$0xf0]  ;;  %v812_v40 = vld [vmem:[%s1437_s0 + $0xc0] sm:$0xf] }
  0x22   :  { %523 = vmatmul.bf16.vlgmr.msra.gmra.mxu1 %v721_v41  ;;  %v801_v37 = vor.u32 %v990_v30, %v798_v31  ;;  %v996_v41 = vld [vmem:[%s1437_s0 + $0xcc] sm:$0xf0] }
  0x23   :  { %572 = vmatmul.bf16.vlgmr.msra.gmra.mxu2 %v725_v42  ;;  %v994_v42 = vld [vmem:[%s1437_s0 + $0xc4] sm:$0xf]  ;;  %v813_v48 = vor.u32 %v996_v41, %v812_v40 }
  0x24   :  { %621 = vmatmul.bf16.vlgmr.msra.gmra.mxu3 %v729_v43  ;;  %v814_v43 = vld [vmem:[%s1437_s0 + $0xd0] sm:$0xf0] }
  0x25   :  { %v817_v49 = vor.u32 %v994_v42, %v814_v43 }
  0x31   :  { %479 = vmatmul.bf16.gmra.mxu0 %v733_v52  ;;  %v828_v52 = vld [vmem:[%s1437_s0 + $0xe0] sm:$0xf] }
  0x32   :  { %528 = vmatmul.bf16.gmra.mxu1 %v737_v53  ;;  %v1000_v53 = vld [vmem:[%s1437_s0 + $0xec] sm:$0xf0] }
  0x33   :  { %577 = vmatmul.bf16.gmra.mxu2 %v741_v54  ;;  %v998_v54 = vld [vmem:[%s1437_s0 + $0xe4] sm:$0xf]  ;;  %v829_v60 = vor.u32 %v1000_v53, %v828_v52 }
  0x34   :  { %626 = vmatmul.bf16.gmra.mxu3 %v745_v55  ;;  %v830_v55 = vld [vmem:[%s1437_s0 + $0xf0] sm:$0xf0] }
  0x35   :  { %v833_v61 = vor.u32 %v998_v54, %v830_v55 }
  0x41   :  { %484 = vmatmul.bf16.gmra.mxu0 %v749_v0  ;;  %v1393_v0 = vld [vmem:[%s1436_s2] ss:$0 sm:$0xff] }
  0x42   :  { %533 = vmatmul.bf16.gmra.mxu1 %v753_v1 }
  0x43   :  { %582 = vmatmul.bf16.gmra.mxu2 %v757_v2 }
  0x44   :  { %631 = vmatmul.bf16.gmra.mxu3 %v761_v3 }
  0x51   :  { %489 = vmatmul.bf16.gmra.mxu0 %v765_v12 }
  0x52   :  { %538 = vmatmul.bf16.gmra.mxu1 %v769_v13 }
  0x53   :  { %587 = vmatmul.bf16.gmra.mxu2 %v773_v14 }
  0x54   :  { %636 = vmatmul.bf16.gmra.mxu3 %v777_v15 }
  0x61   :  { %494 = vmatmul.bf16.gmra.mxu0 %v781_v24 }
  0x62   :  { %543 = vmatmul.bf16.gmra.mxu1 %v785_v25 }
  0x63   :  { %592 = vmatmul.bf16.gmra.mxu2 %v789_v26 }
  0x64   :  { %641 = vmatmul.bf16.gmra.mxu3 %v793_v27 }
  0x71   :  { %499 = vmatmul.bf16.gmra.mxu0 %v797_v36 }
  0x72   :  { %548 = vmatmul.bf16.gmra.mxu1 %v801_v37 }
  0x73   :  { %597 = vmatmul.bf16.gmra.mxu2 %v805_v38 }
  0x74   :  { %646 = vmatmul.bf16.gmra.mxu3 %v809_v39 }
  0x81   :  { %504 = vmatmul.bf16.gmra.mxu0 %v813_v48 }
  0x82   :  { %553 = vmatmul.bf16.gmra.mxu1 %v817_v49 }
  0x83   :  { %602 = vmatmul.bf16.gmra.mxu2 %v821_v50 }
  0x84   :  { %651 = vmatmul.bf16.gmra.mxu3 %v825_v51 }
  0x91   :  { %509 = vmatmul.bf16.gmra.mxu0 %v829_v60 }
  0x92   :  { %558 = vmatmul.bf16.gmra.mxu1 %v833_v61 }
  0x93   :  { %607 = vmatmul.bf16.gmra.mxu2 %v837_v62 }
  0x94   :  { %656 = vmatmul.bf16.gmra.mxu3 %v841_v63 }
  0x9e   :  { %v475_v1 = vpop.f32.mrf.mxu0 }
  0x9f   :  { %v524_v2 = vpop.f32.mrf.mxu1  ;;  %v476_v3 = vadd.f32 %v1393_v0, %v475_v1 }
  0xa1   :  { %v525_v6 = vadd.f32 %v524_v2, %v476_v3 }
  0xa6   :  { %v573_v4 = vpop.f32.mrf.mxu2  ;;  %v477_v7 = vpop.f32.mrf.mxu0 }
  0xa7   :  { %v622_v5 = vpop.f32.mrf.mxu3  ;;  %v526_v8 = vpop.f32.mrf.mxu1  ;;  %v478_v9 = vadd.f32 %v1393_v0, %v477_v7  ;;  %v574_v10 = vadd.f32 %v573_v4, %v525_v6 }
  0xa9   :  { %v527_v11 = vadd.f32 %v526_v8, %v478_v9  ;;  %v623_v14 = vadd.f32 %v622_v5, %v574_v10 }
  0xab   :  { %v662_v19 = vmax.f32 %v623_v14, 0.0 }
  0xae   :  { %v575_v12 = vpop.f32.mrf.mxu2  ;;  %v480_v16 = vpop.f32.mrf.mxu0 }
  0xaf   :  { %v624_v13 = vpop.f32.mrf.mxu3  ;;  %v576_v15 = vadd.f32 %v575_v12, %v527_v11  ;;  %v529_v17 = vpop.f32.mrf.mxu1  ;;  %v481_v21 = vadd.f32 %v1393_v0, %v480_v16 }
  0xb1   :  { %v625_v18 = vadd.f32 %v624_v13, %v576_v15  ;;  %v530_v25 = vadd.f32 %v529_v17, %v481_v21 }
  0xb3   :  { %v663_v20 = vmax.f32 %v625_v18, 0.0 }
  0xb5   :  { %v1037_v22 = vpack.c.bf16 %v663_v20, %v662_v19 }
  0xb6   :  { %v578_v23 = vpop.f32.mrf.mxu2  ;;  %v482_v26 = vpop.f32.mrf.mxu0 }
  0xb7   :  { %v627_v24 = vpop.f32.mrf.mxu3  ;;  %1038 = vst [vmem:[%s1438_s3] sm:$0xff] %v1037_v22   ;;  %v531_v27 = vpop.f32.mrf.mxu1  ;;  %v483_v28 = vadd.f32 %v1393_v0, %v482_v26  ;;  %v579_v29 = vadd.f32 %v578_v23, %v530_v25 }
  0xb9   :  { %v532_v30 = vadd.f32 %v531_v27, %v483_v28  ;;  %v628_v33 = vadd.f32 %v627_v24, %v579_v29 }
  0xbb   :  { %v664_v38 = vmax.f32 %v628_v33, 0.0 }
  0xbe   :  { %v580_v31 = vpop.f32.mrf.mxu2  ;;  %v485_v35 = vpop.f32.mrf.mxu0 }
  0xbf   :  { %v629_v32 = vpop.f32.mrf.mxu3  ;;  %v581_v34 = vadd.f32 %v580_v31, %v532_v30  ;;  %v534_v36 = vpop.f32.mrf.mxu1  ;;  %v486_v40 = vadd.f32 %v1393_v0, %v485_v35 }
  0xc1   :  { %v630_v37 = vadd.f32 %v629_v32, %v581_v34  ;;  %v535_v44 = vadd.f32 %v534_v36, %v486_v40 }
  0xc3   :  { %v665_v39 = vmax.f32 %v630_v37, 0.0 }
  0xc5   :  { %v1042_v41 = vpack.c.bf16 %v665_v39, %v664_v38 }
  0xc6   :  { %v583_v42 = vpop.f32.mrf.mxu2  ;;  %v487_v45 = vpop.f32.mrf.mxu0 }
  0xc7   :  { %v632_v43 = vpop.f32.mrf.mxu3  ;;  %1074 = vst [vmem:[%s1438_s3 + $0x8] sm:$0xff] %v1042_v41   ;;  %v536_v46 = vpop.f32.mrf.mxu1  ;;  %v488_v47 = vadd.f32 %v1393_v0, %v487_v45  ;;  %v584_v48 = vadd.f32 %v583_v42, %v535_v44 }
  0xc9   :  { %v537_v49 = vadd.f32 %v536_v46, %v488_v47  ;;  %v633_v52 = vadd.f32 %v632_v43, %v584_v48 }
  0xcb   :  { %v666_v57 = vmax.f32 %v633_v52, 0.0 }
  0xce   :  { %v585_v50 = vpop.f32.mrf.mxu2  ;;  %v490_v54 = vpop.f32.mrf.mxu0 }
  0xcf   :  { %v634_v51 = vpop.f32.mrf.mxu3  ;;  %v586_v53 = vadd.f32 %v585_v50, %v537_v49  ;;  %v539_v55 = vpop.f32.mrf.mxu1  ;;  %v491_v59 = vadd.f32 %v1393_v0, %v490_v54 }
  0xd1   :  { %v635_v56 = vadd.f32 %v634_v51, %v586_v53  ;;  %v540_v63 = vadd.f32 %v539_v55, %v491_v59 }
  0xd3   :  { %v667_v58 = vmax.f32 %v635_v56, 0.0 }
  0xd5   :  { %v1047_v60 = vpack.c.bf16 %v667_v58, %v666_v57 }
  0xd6   :  { %v588_v61 = vpop.f32.mrf.mxu2  ;;  %v492_v1 = vpop.f32.mrf.mxu0 }
  0xd7   :  { %v637_v62 = vpop.f32.mrf.mxu3  ;;  %1075 = vst [vmem:[%s1438_s3 + $0x10] sm:$0xff] %v1047_v60   ;;  %v541_v2 = vpop.f32.mrf.mxu1  ;;  %v493_v3 = vadd.f32 %v1393_v0, %v492_v1  ;;  %v589_v4 = vadd.f32 %v588_v61, %v540_v63 }
  0xd9   :  { %v542_v5 = vadd.f32 %v541_v2, %v493_v3  ;;  %v638_v8 = vadd.f32 %v637_v62, %v589_v4 }
  0xdb   :  { %v668_v13 = vmax.f32 %v638_v8, 0.0 }
  0xde   :  { %v590_v6 = vpop.f32.mrf.mxu2  ;;  %v495_v10 = vpop.f32.mrf.mxu0 }
  0xdf   :  { %v639_v7 = vpop.f32.mrf.mxu3  ;;  %v591_v9 = vadd.f32 %v590_v6, %v542_v5  ;;  %v544_v11 = vpop.f32.mrf.mxu1  ;;  %v496_v15 = vadd.f32 %v1393_v0, %v495_v10 }
  0xe1   :  { %v640_v12 = vadd.f32 %v639_v7, %v591_v9  ;;  %v545_v19 = vadd.f32 %v544_v11, %v496_v15 }
  0xe3   :  { %v669_v14 = vmax.f32 %v640_v12, 0.0 }
  0xe5   :  { %v1052_v16 = vpack.c.bf16 %v669_v14, %v668_v13 }
  0xe6   :  { %v593_v17 = vpop.f32.mrf.mxu2  ;;  %v497_v20 = vpop.f32.mrf.mxu0 }
  0xe7   :  { %v642_v18 = vpop.f32.mrf.mxu3  ;;  %1076 = vst [vmem:[%s1438_s3 + $0x18] sm:$0xff] %v1052_v16   ;;  %v546_v21 = vpop.f32.mrf.mxu1  ;;  %v498_v22 = vadd.f32 %v1393_v0, %v497_v20  ;;  %v594_v23 = vadd.f32 %v593_v17, %v545_v19 }
  0xe9   :  { %v547_v24 = vadd.f32 %v546_v21, %v498_v22  ;;  %v643_v27 = vadd.f32 %v642_v18, %v594_v23 }
  0xeb   :  { %v670_v32 = vmax.f32 %v643_v27, 0.0 }
  0xee   :  { %v595_v25 = vpop.f32.mrf.mxu2  ;;  %v500_v29 = vpop.f32.mrf.mxu0 }
  0xef   :  { %v644_v26 = vpop.f32.mrf.mxu3  ;;  %v596_v28 = vadd.f32 %v595_v25, %v547_v24  ;;  %v549_v30 = vpop.f32.mrf.mxu1  ;;  %v501_v34 = vadd.f32 %v1393_v0, %v500_v29 }
  0xf1   :  { %v645_v31 = vadd.f32 %v644_v26, %v596_v28  ;;  %v550_v38 = vadd.f32 %v549_v30, %v501_v34 }
  0xf3   :  { %v671_v33 = vmax.f32 %v645_v31, 0.0 }
  0xf5   :  { %v1057_v35 = vpack.c.bf16 %v671_v33, %v670_v32 }
  0xf6   :  { %v598_v36 = vpop.f32.mrf.mxu2  ;;  %v502_v39 = vpop.f32.mrf.mxu0 }
  0xf7   :  { %v647_v37 = vpop.f32.mrf.mxu3  ;;  %1077 = vst [vmem:[%s1438_s3 + $0x20] sm:$0xff] %v1057_v35   ;;  %v551_v40 = vpop.f32.mrf.mxu1  ;;  %v503_v41 = vadd.f32 %v1393_v0, %v502_v39  ;;  %v599_v42 = vadd.f32 %v598_v36, %v550_v38 }
  0xf9   :  { %v552_v43 = vadd.f32 %v551_v40, %v503_v41  ;;  %v648_v46 = vadd.f32 %v647_v37, %v599_v42 }
  0xfb   :  { %v672_v51 = vmax.f32 %v648_v46, 0.0 }
  0xfe   :  { %v600_v44 = vpop.f32.mrf.mxu2  ;;  %v505_v48 = vpop.f32.mrf.mxu0 }
  0xff   :  { %v649_v45 = vpop.f32.mrf.mxu3  ;;  %v601_v47 = vadd.f32 %v600_v44, %v552_v43  ;;  %v554_v49 = vpop.f32.mrf.mxu1  ;;  %v506_v53 = vadd.f32 %v1393_v0, %v505_v48 }
 0x101   :  { %v650_v50 = vadd.f32 %v649_v45, %v601_v47  ;;  %v555_v57 = vadd.f32 %v554_v49, %v506_v53 }
 0x103   :  { %v673_v52 = vmax.f32 %v650_v50, 0.0 }
 0x105   :  { %v1062_v54 = vpack.c.bf16 %v673_v52, %v672_v51 }
 0x106   :  { %v603_v55 = vpop.f32.mrf.mxu2  ;;  %v507_v58 = vpop.f32.mrf.mxu0 }
 0x107   :  { %v652_v56 = vpop.f32.mrf.mxu3  ;;  %1078 = vst [vmem:[%s1438_s3 + $0x28] sm:$0xff] %v1062_v54   ;;  %v556_v59 = vpop.f32.mrf.mxu1  ;;  %v508_v60 = vadd.f32 %v1393_v0, %v507_v58  ;;  %v604_v61 = vadd.f32 %v603_v55, %v555_v57 }
 0x109   :  { %v557_v62 = vadd.f32 %v556_v59, %v508_v60  ;;  %v653_v2 = vadd.f32 %v652_v56, %v604_v61 }
 0x10b   :  { %v674_v7 = vmax.f32 %v653_v2, 0.0 }
 0x10e   :  { %v605_v63 = vpop.f32.mrf.mxu2  ;;  %v510_v4 = vpop.f32.mrf.mxu0 }
 0x10f   :  { %v654_v1 = vpop.f32.mrf.mxu3  ;;  %v606_v3 = vadd.f32 %v605_v63, %v557_v62  ;;  %v559_v6 = vpop.f32.mrf.mxu1  ;;  %v511_v9 = vadd.f32 %v1393_v0, %v510_v4 }
 0x111   :  { %v655_v5 = vadd.f32 %v654_v1, %v606_v3  ;;  %v560_v13 = vadd.f32 %v559_v6, %v511_v9 }
 0x113   :  { %v675_v8 = vmax.f32 %v655_v5, 0.0 }
 0x115   :  { %v1067_v10 = vpack.c.bf16 %v675_v8, %v674_v7 }
 0x116   :  { %v608_v11 = vpop.f32.mrf.mxu2  ;;  %v512_v14 = vpop.f32.mrf.mxu0 }
 0x117   :  { %v657_v12 = vpop.f32.mrf.mxu3  ;;  %1079 = vst [vmem:[%s1438_s3 + $0x30] sm:$0xff] %v1067_v10   ;;  %v513_v15 = vadd.f32 %v1393_v0, %v512_v14  ;;  %v609_v16 = vadd.f32 %v608_v11, %v560_v13  ;;  %v561_v17 = vpop.f32.mrf.mxu1 }
 0x119   :  { %v562_v18 = vadd.f32 %v561_v17, %v513_v15  ;;  %v658_v20 = vadd.f32 %v657_v12, %v609_v16 }
 0x11b   :  { %v676_v24 = vmax.f32 %v658_v20, 0.0 }
 0x11e   :  { %v610_v19 = vpop.f32.mrf.mxu2 }
 0x11f   :  { %v611_v21 = vadd.f32 %v610_v19, %v562_v18  ;;  %v659_v22 = vpop.f32.mrf.mxu3 }
 0x121   :  { %v660_v23 = vadd.f32 %v659_v22, %v611_v21 }
 0x123   :  { %v677_v25 = vmax.f32 %v660_v23, 0.0 }
 0x125   :  { %v1072_v26 = vpack.c.bf16 %v677_v25, %v676_v24 }
 0x127   :  { %1080 = vst [vmem:[%s1438_s3 + $0x38] sm:$0xff] %v1072_v26  }

// kernel: encoder_forward.10
= control target key start
LH: loop header
LB: loop body
LE: loop exit
PB: predicated region body
PF: predicated region fallthrough
CT: control target
= control target key end

     0   :  { %s1523_s1 = inlined_call_operand.vmem [shape: bf16[1024,128], index: 1, kind: input, shape index: {}]   ;;  %s1524_s0 = inlined_call_operand.vmem [shape: bf16[32,1024], index: 0, kind: input, shape index: {}]   ;;  %s1525_s2 = inlined_call_operand.vmem [shape: f32[1,128], index: 2, kind: input, shape index: {}]   ;;  %s1526_s3 = inlined_call_operand.vmem [shape: bf16[32,128], index: 3, kind: output, shape index: {}]  }
   0x1   :  { %v1137_v0 = vld [vmem:[%s1523_s1 + $0x38] sm:$0xff]  ;;  %v1136_v4 = vld [vmem:[%s1523_s1 + $0x30] sm:$0xff]  ;;  %v1135_v8 = vld [vmem:[%s1523_s1 + $0x28] sm:$0xff] }
   0x2   :  { %v1145_v1 = vld [vmem:[%s1523_s1 + $0x78] sm:$0xff]  ;;  %626 = vmatpush.bf16.msra.mxu0 %v1137_v0  ;;  %v1144_v5 = vld [vmem:[%s1523_s1 + $0x70] sm:$0xff]  ;;  %v1143_v9 = vld [vmem:[%s1523_s1 + $0x68] sm:$0xff] }
   0x3   :  { %v1153_v2 = vld [vmem:[%s1523_s1 + $0xb8] sm:$0xff]  ;;  %645 = vmatpush.bf16.msra.mxu1 %v1145_v1  ;;  %v1152_v6 = vld [vmem:[%s1523_s1 + $0xb0] sm:$0xff]  ;;  %v1151_v10 = vld [vmem:[%s1523_s1 + $0xa8] sm:$0xff] }
   0x4   :  { %v1161_v3 = vld [vmem:[%s1523_s1 + $0xf8] sm:$0xff]  ;;  %664 = vmatpush.bf16.msra.mxu2 %v1153_v2  ;;  %v1160_v7 = vld [vmem:[%s1523_s1 + $0xf0] sm:$0xff]  ;;  %v1159_v11 = vld [vmem:[%s1523_s1 + $0xe8] sm:$0xff] }
   0x5   :  { %683 = vmatpush.bf16.msra.mxu3 %v1161_v3  ;;  %v1134_v12 = vld [vmem:[%s1523_s1 + $0x20] sm:$0xff]  ;;  %v1133_v16 = vld [vmem:[%s1523_s1 + $0x18] sm:$0xff]  ;;  %v1132_v20 = vld [vmem:[%s1523_s1 + $0x10] sm:$0xff] }
   0x6   :  { %627 = vmatpush.bf16.msra.mxu0 %v1136_v4  ;;  %v1142_v13 = vld [vmem:[%s1523_s1 + $0x60] sm:$0xff]  ;;  %v1141_v17 = vld [vmem:[%s1523_s1 + $0x58] sm:$0xff]  ;;  %v1140_v21 = vld [vmem:[%s1523_s1 + $0x50] sm:$0xff] }
   0x7   :  { %646 = vmatpush.bf16.msra.mxu1 %v1144_v5  ;;  %v1150_v14 = vld [vmem:[%s1523_s1 + $0xa0] sm:$0xff]  ;;  %v1149_v18 = vld [vmem:[%s1523_s1 + $0x98] sm:$0xff]  ;;  %v1148_v22 = vld [vmem:[%s1523_s1 + $0x90] sm:$0xff] }
   0x8   :  { %665 = vmatpush.bf16.msra.mxu2 %v1152_v6  ;;  %v1158_v15 = vld [vmem:[%s1523_s1 + $0xe0] sm:$0xff]  ;;  %v1157_v19 = vld [vmem:[%s1523_s1 + $0xd8] sm:$0xff]  ;;  %v1156_v23 = vld [vmem:[%s1523_s1 + $0xd0] sm:$0xff] }
   0x9   :  { %684 = vmatpush.bf16.msra.mxu3 %v1160_v7  ;;  %v1131_v24 = vld [vmem:[%s1523_s1 + $0x8] sm:$0xff]  ;;  %v1130_v28 = vld [vmem:[%s1523_s1] sm:$0xff]  ;;  %v1185_v40 = vld [vmem:[%s1523_s1 + $0x1b8] sm:$0xff] }
   0xa   :  { %628 = vmatpush.bf16.msra.mxu0 %v1135_v8  ;;  %v1139_v25 = vld [vmem:[%s1523_s1 + $0x48] sm:$0xff]  ;;  %v1138_v29 = vld [vmem:[%s1523_s1 + $0x40] sm:$0xff]  ;;  %v1169_v41 = vld [vmem:[%s1523_s1 + $0x138] sm:$0xff] }
   0xb   :  { %647 = vmatpush.bf16.msra.mxu1 %v1143_v9  ;;  %v1147_v26 = vld [vmem:[%s1523_s1 + $0x88] sm:$0xff]  ;;  %v1146_v30 = vld [vmem:[%s1523_s1 + $0x80] sm:$0xff]  ;;  %v1177_v46 = vld [vmem:[%s1523_s1 + $0x178] sm:$0xff] }
   0xc   :  { %666 = vmatpush.bf16.msra.mxu2 %v1151_v10  ;;  %v1155_v27 = vld [vmem:[%s1523_s1 + $0xc8] sm:$0xff]  ;;  %v1154_v31 = vld [vmem:[%s1523_s1 + $0xc0] sm:$0xff]  ;;  %v1193_v47 = vld [vmem:[%s1523_s1 + $0x1f8] sm:$0xff] }
   0xd   :  { %685 = vmatpush.bf16.msra.mxu3 %v1159_v11  ;;  %v796_v32 = vld [vmem:[%s1524_s0] sm:$0xf]  ;;  %v1114_v34 = vld [vmem:[%s1524_s0 + $0x4] sm:$0xf]  ;;  %v804_v36 = vld [vmem:[%s1524_s0 + $0x8] sm:$0xf] }
   0xe   :  { %629 = vmatpush.bf16.msra.mxu0 %v1134_v12  ;;  %v1118_v33 = vld [vmem:[%s1524_s0 + $0x1c] sm:$0xf0]  ;;  %v798_v35 = vld [vmem:[%s1524_s0 + $0x20] sm:$0xf0]  ;;  %v1119_v37 = vld [vmem:[%s1524_s0 + $0x24] sm:$0xf0] }
   0xf   :  { %648 = vmatpush.bf16.msra.mxu1 %v1142_v13  ;;  %v1115_v38 = vld [vmem:[%s1524_s0 + $0xc] sm:$0xf]  ;;  %v797_v42 = vor.u32 %v1118_v33, %v796_v32  ;;  %v801_v43 = vor.u32 %v1114_v34, %v798_v35  ;;  %v805_v44 = vor.u32 %v1119_v37, %v804_v36  ;;  %v1184_v48 = vld [vmem:[%s1523_s1 + $0x1b0] sm:$0xff]  ;;  %v1182_v56 = vld [vmem:[%s1523_s1 + $0x1a0] sm:$0xff] }
  0x10   :  { %667 = vmatpush.bf16.msra.mxu2 %v1150_v14  ;;  %v806_v39 = vld [vmem:[%s1524_s0 + $0x28] sm:$0xf0]  ;;  %v1168_v49 = vld [vmem:[%s1523_s1 + $0x130] sm:$0xff]  ;;  %v1166_v57 = vld [vmem:[%s1523_s1 + $0x120] sm:$0xff] }
  0x11   :  { %686 = vmatpush.bf16.msra.mxu3 %v1158_v15  ;;  %v809_v45 = vor.u32 %v1115_v38, %v806_v39  ;;  %v1176_v50 = vld [vmem:[%s1523_s1 + $0x170] sm:$0xff]  ;;  %v1183_v52 = vld [vmem:[%s1523_s1 + $0x1a8] sm:$0xff]  ;;  %v1174_v58 = vld [vmem:[%s1523_s1 + $0x160] sm:$0xff] }
  0x12   :  { %630 = vmatpush.bf16.msra.mxu0 %v1133_v16  ;;  %v1192_v51 = vld [vmem:[%s1523_s1 + $0x1f0] sm:$0xff]  ;;  %v1167_v53 = vld [vmem:[%s1523_s1 + $0x128] sm:$0xff]  ;;  %v1190_v59 = vld [vmem:[%s1523_s1 + $0x1e0] sm:$0xff] }
  0x13   :  { %649 = vmatpush.bf16.msra.mxu1 %v1141_v17  ;;  %v1175_v54 = vld [vmem:[%s1523_s1 + $0x168] sm:$0xff]  ;;  %v828_v60 = vld [vmem:[%s1524_s0 + $0x40] sm:$0xf]  ;;  %v1122_v62 = vld [vmem:[%s1524_s0 + $0x44] sm:$0xf] }
  0x14   :  { %668 = vmatpush.bf16.msra.mxu2 %v1149_v18  ;;  %v1191_v55 = vld [vmem:[%s1523_s1 + $0x1e8] sm:$0xff]  ;;  %v1126_v61 = vld [vmem:[%s1524_s0 + $0x5c] sm:$0xf0]  ;;  %v830_v63 = vld [vmem:[%s1524_s0 + $0x60] sm:$0xf0] }
  0x15   :  { %687 = vmatpush.bf16.msra.mxu3 %v1157_v19  ;;  %v836_v0 = vld [vmem:[%s1524_s0 + $0x48] sm:$0xf]  ;;  %v1123_v2 = vld [vmem:[%s1524_s0 + $0x4c] sm:$0xf]  ;;  %v1181_v4 = vld [vmem:[%s1523_s1 + $0x198] sm:$0xff]  ;;  %v829_v6 = vor.u32 %v1126_v61, %v828_v60  ;;  %v833_v7 = vor.u32 %v1122_v62, %v830_v63 }
  0x16   :  { %631 = vmatpush.bf16.msra.mxu0 %v1132_v20  ;;  %v1127_v1 = vld [vmem:[%s1524_s0 + $0x64] sm:$0xf0]  ;;  %v838_v3 = vld [vmem:[%s1524_s0 + $0x68] sm:$0xf0]  ;;  %v1165_v5 = vld [vmem:[%s1523_s1 + $0x118] sm:$0xff] }
  0x17   :  { %650 = vmatpush.bf16.msra.mxu1 %v1140_v21  ;;  %v837_v8 = vor.u32 %v1127_v1, %v836_v0  ;;  %v841_v9 = vor.u32 %v1123_v2, %v838_v3  ;;  %v1173_v10 = vld [vmem:[%s1523_s1 + $0x158] sm:$0xff]  ;;  %v1180_v12 = vld [vmem:[%s1523_s1 + $0x190] sm:$0xff]  ;;  %v1179_v16 = vld [vmem:[%s1523_s1 + $0x188] sm:$0xff] }
  0x18   :  { %669 = vmatpush.bf16.msra.mxu2 %v1148_v22  ;;  %v1189_v11 = vld [vmem:[%s1523_s1 + $0x1d8] sm:$0xff]  ;;  %v1164_v13 = vld [vmem:[%s1523_s1 + $0x110] sm:$0xff]  ;;  %v1163_v17 = vld [vmem:[%s1523_s1 + $0x108] sm:$0xff] }
  0x19   :  { %688 = vmatpush.bf16.msra.mxu3 %v1156_v23  ;;  %v1172_v14 = vld [vmem:[%s1523_s1 + $0x150] sm:$0xff]  ;;  %v1171_v18 = vld [vmem:[%s1523_s1 + $0x148] sm:$0xff]  ;;  %v1178_v20 = vld [vmem:[%s1523_s1 + $0x180] sm:$0xff] }
  0x1a   :  { %632 = vmatpush.bf16.msra.mxu0 %v1131_v24  ;;  %v1188_v15 = vld [vmem:[%s1523_s1 + $0x1d0] sm:$0xff]  ;;  %v1187_v19 = vld [vmem:[%s1523_s1 + $0x1c8] sm:$0xff]  ;;  %v1162_v21 = vld [vmem:[%s1523_s1 + $0x100] sm:$0xff] }
  0x1b   :  { %651 = vmatpush.bf16.msra.mxu1 %v1139_v25  ;;  %v1170_v22 = vld [vmem:[%s1523_s1 + $0x140] sm:$0xff]  ;;  %v812_v24 = vld [vmem:[%s1524_s0 + $0x10] sm:$0xf]  ;;  %v1124_v38 = vld [vmem:[%s1524_s0 + $0x54] sm:$0xf] }
  0x1c   :  { %670 = vmatpush.bf16.msra.mxu2 %v1147_v26  ;;  %v1186_v23 = vld [vmem:[%s1523_s1 + $0x1c0] sm:$0xff]  ;;  %v1120_v25 = vld [vmem:[%s1524_s0 + $0x2c] sm:$0xf0]  ;;  %v1116_v26 = vld [vmem:[%s1524_s0 + $0x14] sm:$0xf] }
  0x1d   :  { %689 = vmatpush.bf16.msra.mxu3 %v1155_v27  ;;  %v814_v27 = vld [vmem:[%s1524_s0 + $0x30] sm:$0xf0]  ;;  %v813_v32 = vor.u32 %v1120_v25, %v812_v24  ;;  %v844_v36 = vld [vmem:[%s1524_s0 + $0x50] sm:$0xf] }
  0x1e   :  { %633 = vmatpush.bf16.msra.mxu0 %v1130_v28  ;;  %v820_v28 = vld [vmem:[%s1524_s0 + $0x18] sm:$0xf]  ;;  %v817_v33 = vor.u32 %v1116_v26, %v814_v27  ;;  %v1128_v37 = vld [vmem:[%s1524_s0 + $0x6c] sm:$0xf0]  ;;  %v846_v39 = vld [vmem:[%s1524_s0 + $0x70] sm:$0xf0] }
  0x1f   :  { %652 = vmatpush.bf16.msra.mxu1 %v1138_v29  ;;  %v1121_v29 = vld [vmem:[%s1524_s0 + $0x34] sm:$0xf0] }
  0x20   :  { %671 = vmatpush.bf16.msra.mxu2 %v1146_v30  ;;  %v1117_v30 = vld [vmem:[%s1524_s0 + $0x1c] sm:$0xf]  ;;  %v821_v34 = vor.u32 %v1121_v29, %v820_v28 }
  0x21   :  { %690 = vmatpush.bf16.msra.mxu3 %v1154_v31  ;;  %634 = vmatmul.bf16.vlgmr.msra.gmra.mxu0 %v797_v42  ;;  %v822_v31 = vld [vmem:[%s1524_s0 + $0x38] sm:$0xf0] }
  0x22   :  { %702 = vmatpush.bf16.msrb.mxu0 %v1169_v41  ;;  %653 = vmatmul.bf16.vlgmr.msra.gmra.mxu1 %v801_v43  ;;  %v825_v35 = vor.u32 %v1117_v30, %v822_v31  ;;  %v1129_v41 = vld [vmem:[%s1524_s0 + $0x74] sm:$0xf0]  ;;  %v1125_v42 = vld [vmem:[%s1524_s0 + $0x5c] sm:$0xf] }
  0x23   :  { %672 = vmatmul.bf16.vlgmr.msra.gmra.mxu2 %v805_v44  ;;  %721 = vmatpush.bf16.msrb.mxu1 %v1177_v46  ;;  %v854_v43 = vld [vmem:[%s1524_s0 + $0x78] sm:$0xf0]  ;;  %v845_v44 = vor.u32 %v1128_v37, %v844_v36 }
  0x24   :  { %740 = vmatpush.bf16.msrb.mxu2 %v1185_v40  ;;  %691 = vmatmul.bf16.vlgmr.msra.gmra.mxu3 %v809_v45  ;;  %v852_v40 = vld [vmem:[%s1524_s0 + $0x58] sm:$0xf]  ;;  %v849_v45 = vor.u32 %v1124_v38, %v846_v39 }
  0x25   :  { %759 = vmatpush.bf16.msrb.mxu3 %v1193_v47  ;;  %v853_v46 = vor.u32 %v1129_v41, %v852_v40  ;;  %v857_v47 = vor.u32 %v1125_v42, %v854_v43 }
  0x26   :  { %703 = vmatpush.bf16.msrb.mxu0 %v1168_v49 }
  0x27   :  { %722 = vmatpush.bf16.msrb.mxu1 %v1176_v50 }
  0x28   :  { %741 = vmatpush.bf16.msrb.mxu2 %v1184_v48 }
  0x29   :  { %760 = vmatpush.bf16.msrb.mxu3 %v1192_v51 }
  0x2a   :  { %704 = vmatpush.bf16.msrb.mxu0 %v1167_v53 }
  0x2b   :  { %723 = vmatpush.bf16.msrb.mxu1 %v1175_v54 }
  0x2c   :  { %742 = vmatpush.bf16.msrb.mxu2 %v1183_v52 }
  0x2d   :  { %761 = vmatpush.bf16.msrb.mxu3 %v1191_v55 }
  0x2e   :  { %705 = vmatpush.bf16.msrb.mxu0 %v1166_v57 }
  0x2f   :  { %724 = vmatpush.bf16.msrb.mxu1 %v1174_v58  ;;  %v1205_v58 = vld [vmem:[%s1525_s2] ss:$0 sm:$0xff] }
  0x30   :  { %743 = vmatpush.bf16.msrb.mxu2 %v1182_v56 }
  0x31   :  { %762 = vmatpush.bf16.msrb.mxu3 %v1190_v59  ;;  %639 = vmatmul.bf16.gmra.mxu0 %v829_v6 }
  0x32   :  { %706 = vmatpush.bf16.msrb.mxu0 %v1165_v5  ;;  %658 = vmatmul.bf16.gmra.mxu1 %v833_v7 }
  0x33   :  { %677 = vmatmul.bf16.gmra.mxu2 %v837_v8  ;;  %725 = vmatpush.bf16.msrb.mxu1 %v1173_v10 }
  0x34   :  { %744 = vmatpush.bf16.msrb.mxu2 %v1181_v4  ;;  %696 = vmatmul.bf16.gmra.mxu3 %v841_v9 }
  0x35   :  { %763 = vmatpush.bf16.msrb.mxu3 %v1189_v11 }
  0x36   :  { %707 = vmatpush.bf16.msrb.mxu0 %v1164_v13 }
  0x37   :  { %726 = vmatpush.bf16.msrb.mxu1 %v1172_v14 }
  0x38   :  { %745 = vmatpush.bf16.msrb.mxu2 %v1180_v12 }
  0x39   :  { %764 = vmatpush.bf16.msrb.mxu3 %v1188_v15 }
  0x3a   :  { %708 = vmatpush.bf16.msrb.mxu0 %v1163_v17 }
  0x3b   :  { %727 = vmatpush.bf16.msrb.mxu1 %v1171_v18 }
  0x3c   :  { %746 = vmatpush.bf16.msrb.mxu2 %v1179_v16 }
  0x3d   :  { %765 = vmatpush.bf16.msrb.mxu3 %v1187_v19 }
  0x3e   :  { %709 = vmatpush.bf16.msrb.mxu0 %v1162_v21 }
  0x3f   :  { %728 = vmatpush.bf16.msrb.mxu1 %v1170_v22 }
  0x40   :  { %747 = vmatpush.bf16.msrb.mxu2 %v1178_v20 }
  0x41   :  { %766 = vmatpush.bf16.msrb.mxu3 %v1186_v23  ;;  %710 = vmatmul.bf16.vlgmr.msrb.gmra.mxu0 %v813_v32 }
  0x42   :  { %729 = vmatmul.bf16.vlgmr.msrb.gmra.mxu1 %v817_v33 }
  0x43   :  { %748 = vmatmul.bf16.vlgmr.msrb.gmra.mxu2 %v821_v34 }
  0x44   :  { %767 = vmatmul.bf16.vlgmr.msrb.gmra.mxu3 %v825_v35 }
  0x51   :  { %715 = vmatmul.bf16.gmra.mxu0 %v845_v44 }
  0x52   :  { %734 = vmatmul.bf16.gmra.mxu1 %v849_v45 }
  0x53   :  { %753 = vmatmul.bf16.gmra.mxu2 %v853_v46 }
  0x54   :  { %772 = vmatmul.bf16.gmra.mxu3 %v857_v47 }
  0x9e   :  { %v635_v48 = vpop.f32.mrf.mxu0 }
  0x9f   :  { %v654_v49 = vpop.f32.mrf.mxu1  ;;  %v636_v61 = vadd.f32 %v1205_v58, %v635_v48 }
  0xa1   :  { %v655_v0 = vadd.f32 %v654_v49, %v636_v61 }
  0xa6   :  { %v673_v50 = vpop.f32.mrf.mxu2  ;;  %v637_v52 = vpop.f32.mrf.mxu0 }
  0xa7   :  { %v692_v51 = vpop.f32.mrf.mxu3  ;;  %v656_v53 = vpop.f32.mrf.mxu1  ;;  %v638_v1 = vadd.f32 %v1205_v58, %v637_v52  ;;  %v674_v4 = vadd.f32 %v673_v50, %v655_v0 }
  0xa9   :  { %v657_v7 = vadd.f32 %v656_v53, %v638_v1  ;;  %v693_v8 = vadd.f32 %v692_v51, %v674_v4 }
  0xae   :  { %v675_v54 = vpop.f32.mrf.mxu2  ;;  %v640_v56 = vpop.f32.mrf.mxu0 }
  0xaf   :  { %v694_v55 = vpop.f32.mrf.mxu3  ;;  %v659_v57 = vpop.f32.mrf.mxu1  ;;  %v676_v9 = vadd.f32 %v675_v54, %v657_v7  ;;  %v641_v13 = vadd.f32 %v1205_v58, %v640_v56 }
  0xb1   :  { %v695_v12 = vadd.f32 %v694_v55, %v676_v9  ;;  %v660_v19 = vadd.f32 %v659_v57, %v641_v13 }
  0xb6   :  { %v678_v59 = vpop.f32.mrf.mxu2  ;;  %v642_v62 = vpop.f32.mrf.mxu0 }
  0xb7   :  { %v697_v60 = vpop.f32.mrf.mxu3  ;;  %v661_v63 = vpop.f32.mrf.mxu1  ;;  %v643_v21 = vadd.f32 %v1205_v58, %v642_v62  ;;  %v679_v24 = vadd.f32 %v678_v59, %v660_v19 }
  0xb9   :  { %v662_v29 = vadd.f32 %v661_v63, %v643_v21  ;;  %v698_v32 = vadd.f32 %v697_v60, %v679_v24 }
  0xbe   :  { %v680_v2 = vpop.f32.mrf.mxu2  ;;  %v711_v5 = vpop.f32.mrf.mxu0 }
  0xbf   :  { %v699_v3 = vpop.f32.mrf.mxu3  ;;  %v730_v6 = vpop.f32.mrf.mxu1  ;;  %v712_v10 = vadd.f32 %v711_v5, %v693_v8  ;;  %v681_v33 = vadd.f32 %v680_v2, %v662_v29 }
  0xc1   :  { %v731_v17 = vadd.f32 %v730_v6, %v712_v10  ;;  %v700_v39 = vadd.f32 %v699_v3, %v681_v33 }
  0xc6   :  { %v749_v11 = vpop.f32.mrf.mxu2  ;;  %v713_v15 = vpop.f32.mrf.mxu0 }
  0xc7   :  { %v768_v14 = vpop.f32.mrf.mxu3  ;;  %v732_v16 = vpop.f32.mrf.mxu1  ;;  %v714_v18 = vadd.f32 %v713_v15, %v695_v12  ;;  %v750_v20 = vadd.f32 %v749_v11, %v731_v17 }
  0xc9   :  { %v733_v22 = vadd.f32 %v732_v16, %v714_v18  ;;  %v769_v25 = vadd.f32 %v768_v14, %v750_v20 }
  0xcb   :  { %v778_v34 = vmax.f32 %v769_v25, 0.0 }
  0xce   :  { %v751_v23 = vpop.f32.mrf.mxu2  ;;  %v716_v28 = vpop.f32.mrf.mxu0 }
  0xcf   :  { %v752_v26 = vadd.f32 %v751_v23, %v733_v22  ;;  %v770_v27 = vpop.f32.mrf.mxu3  ;;  %v735_v31 = vpop.f32.mrf.mxu1  ;;  %v717_v37 = vadd.f32 %v716_v28, %v698_v32 }
  0xd1   :  { %v771_v30 = vadd.f32 %v770_v27, %v752_v26  ;;  %v736_v42 = vadd.f32 %v735_v31, %v717_v37 }
  0xd3   :  { %v779_v35 = vmax.f32 %v771_v30, 0.0 }
  0xd5   :  { %v1197_v36 = vpack.c.bf16 %v779_v35, %v778_v34 }
  0xd6   :  { %v754_v38 = vpop.f32.mrf.mxu2  ;;  %v718_v41 = vpop.f32.mrf.mxu0 }
  0xd7   :  { %1198 = vst [vmem:[%s1526_s3] sm:$0xff] %v1197_v36   ;;  %v773_v40 = vpop.f32.mrf.mxu3  ;;  %v719_v43 = vadd.f32 %v718_v41, %v700_v39  ;;  %v755_v44 = vadd.f32 %v754_v38, %v736_v42  ;;  %v737_v45 = vpop.f32.mrf.mxu1 }
  0xd9   :  { %v738_v46 = vadd.f32 %v737_v45, %v719_v43  ;;  %v774_v48 = vadd.f32 %v773_v40, %v755_v44 }
  0xdb   :  { %v780_v52 = vmax.f32 %v774_v48, 0.0 }
  0xde   :  { %v756_v47 = vpop.f32.mrf.mxu2 }
  0xdf   :  { %v757_v49 = vadd.f32 %v756_v47, %v738_v46  ;;  %v775_v50 = vpop.f32.mrf.mxu3 }
  0xe1   :  { %v776_v51 = vadd.f32 %v775_v50, %v757_v49 }
  0xe3   :  { %v781_v53 = vmax.f32 %v776_v51, 0.0 }
  0xe5   :  { %v1202_v54 = vpack.c.bf16 %v781_v53, %v780_v52 }
  0xe7   :  { %1204 = vst [vmem:[%s1526_s3 + $0x8] sm:$0xff] %v1202_v54  }

// kernel: encoder_forward.11
= control target key start
LH: loop header
LB: loop body
LE: loop exit
PB: predicated region body
PF: predicated region fallthrough
CT: control target
= control target key end

     0   :  { %vm2204_vm0 = vcmask 162816   ;;  %s5313_s1 = inlined_call_operand.vmem [shape: bf16[2048,256], index: 1, kind: input, shape index: {}]   ;;  %s5314_s0 = inlined_call_operand.vmem [shape: bf16[8,2048], index: 0, kind: input, shape index: {}]   ;;  %s5315_s2 = inlined_call_operand.vmem [shape: f32[1,256], index: 2, kind: input, shape index: {}]   ;;  %s5316_s3 = inlined_call_operand.vmem [shape: bf16[256,20], index: 3, kind: input, shape index: {}]   ;;  %s5317_s4 = inlined_call_operand.vmem [shape: f32[1,20], index: 4, kind: input, shape index: {}]   ;;  %s5318_s5 = inlined_call_operand.vmem [shape: f32[8,20], index: 5, kind: output, shape index: {}]  }
   0x1   :  { %v2268_v0 = vld [vmem:[%s5313_s1 + $0x70] sm:$0xf]  ;;  %v3313_v1 = vld [vmem:[%s5313_s1 + $0x74] sm:$0xf0]  ;;  %v2260_v11 = vld [vmem:[%s5313_s1 + $0x60] sm:$0xf] }
   0x2   :  { %v2332_v2 = vld [vmem:[%s5313_s1 + $0xf0] sm:$0xf]  ;;  %v2269_v3 = vor.u32 %v3313_v1, %v2268_v0  ;;  %v3329_v4 = vld [vmem:[%s5313_s1 + $0xf4] sm:$0xf0]  ;;  %v3311_v13 = vld [vmem:[%s5313_s1 + $0x64] sm:$0xf0] }
   0x3   :  { %v2396_v5 = vld [vmem:[%s5313_s1 + $0x170] sm:$0xf]  ;;  %v3345_v6 = vld [vmem:[%s5313_s1 + $0x174] sm:$0xf0]  ;;  %v2333_v7 = vor.u32 %v3329_v4, %v2332_v2  ;;  %v2324_v14 = vld [vmem:[%s5313_s1 + $0xe0] sm:$0xf]  ;;  %v2261_v16 = vor.u32 %v3311_v13, %v2260_v11 }
   0x4   :  { %v2397_v8 = vor.u32 %v3345_v6, %v2396_v5  ;;  %v2460_v9 = vld [vmem:[%s5313_s1 + $0x1f0] sm:$0xf]  ;;  %v3361_v10 = vld [vmem:[%s5313_s1 + $0x1f4] sm:$0xf0]  ;;  %1626 = vmatpush.bf16.msra.mxu0 %v2269_v3  ;;  %v3327_v15 = vld [vmem:[%s5313_s1 + $0xe4] sm:$0xf0] }
   0x5   :  { %v2461_v12 = vor.u32 %v3361_v10, %v2460_v9  ;;  %1639 = vmatpush.bf16.msra.mxu1 %v2333_v7  ;;  %v2325_v17 = vor.u32 %v3327_v15, %v2324_v14  ;;  %v2388_v18 = vld [vmem:[%s5313_s1 + $0x160] sm:$0xf]  ;;  %v3343_v19 = vld [vmem:[%s5313_s1 + $0x164] sm:$0xf0]  ;;  %v2252_v23 = vld [vmem:[%s5313_s1 + $0x50] sm:$0xf] }
   0x6   :  { %1652 = vmatpush.bf16.msra.mxu2 %v2397_v8  ;;  %v2452_v20 = vld [vmem:[%s5313_s1 + $0x1e0] sm:$0xf]  ;;  %v2389_v21 = vor.u32 %v3343_v19, %v2388_v18  ;;  %v3359_v22 = vld [vmem:[%s5313_s1 + $0x1e4] sm:$0xf0]  ;;  %v3309_v24 = vld [vmem:[%s5313_s1 + $0x54] sm:$0xf0] }
   0x7   :  { %1665 = vmatpush.bf16.msra.mxu3 %v2461_v12  ;;  %v2453_v25 = vor.u32 %v3359_v22, %v2452_v20  ;;  %v2316_v26 = vld [vmem:[%s5313_s1 + $0xd0] sm:$0xf]  ;;  %v3325_v27 = vld [vmem:[%s5313_s1 + $0xd4] sm:$0xf0]  ;;  %v2253_v29 = vor.u32 %v3309_v24, %v2252_v23  ;;  %v2244_v35 = vld [vmem:[%s5313_s1 + $0x40] sm:$0xf] }
   0x8   :  { %v2380_v28 = vld [vmem:[%s5313_s1 + $0x150] sm:$0xf]  ;;  %1627 = vmatpush.bf16.msra.mxu0 %v2261_v16  ;;  %v3341_v30 = vld [vmem:[%s5313_s1 + $0x154] sm:$0xf0]  ;;  %v2317_v33 = vor.u32 %v3325_v27, %v2316_v26  ;;  %v3307_v36 = vld [vmem:[%s5313_s1 + $0x44] sm:$0xf0] }
   0x9   :  { %v2444_v31 = vld [vmem:[%s5313_s1 + $0x1d0] sm:$0xf]  ;;  %v3357_v32 = vld [vmem:[%s5313_s1 + $0x1d4] sm:$0xf0]  ;;  %1640 = vmatpush.bf16.msra.mxu1 %v2325_v17  ;;  %v2381_v34 = vor.u32 %v3341_v30, %v2380_v28  ;;  %v2308_v37 = vld [vmem:[%s5313_s1 + $0xc0] sm:$0xf]  ;;  %v2245_v44 = vor.u32 %v3307_v36, %v2244_v35 }
   0xa   :  { %1653 = vmatpush.bf16.msra.mxu2 %v2389_v21  ;;  %v2445_v38 = vor.u32 %v3357_v32, %v2444_v31  ;;  %v3323_v39 = vld [vmem:[%s5313_s1 + $0xc4] sm:$0xf0]  ;;  %v2372_v40 = vld [vmem:[%s5313_s1 + $0x140] sm:$0xf]  ;;  %v2236_v47 = vld [vmem:[%s5313_s1 + $0x30] sm:$0xf] }
   0xb   :  { %1666 = vmatpush.bf16.msra.mxu3 %v2453_v25  ;;  %v3339_v41 = vld [vmem:[%s5313_s1 + $0x144] sm:$0xf0]  ;;  %v2436_v42 = vld [vmem:[%s5313_s1 + $0x1c0] sm:$0xf]  ;;  %v2309_v45 = vor.u32 %v3323_v39, %v2308_v37  ;;  %v3305_v48 = vld [vmem:[%s5313_s1 + $0x34] sm:$0xf0] }
   0xc   :  { %v3355_v43 = vld [vmem:[%s5313_s1 + $0x1c4] sm:$0xf0]  ;;  %1628 = vmatpush.bf16.msra.mxu0 %v2253_v29  ;;  %v2373_v46 = vor.u32 %v3339_v41, %v2372_v40  ;;  %v2300_v49 = vld [vmem:[%s5313_s1 + $0xb0] sm:$0xf]  ;;  %v3321_v51 = vld [vmem:[%s5313_s1 + $0xb4] sm:$0xf0]  ;;  %v2237_v56 = vor.u32 %v3305_v48, %v2236_v47 }
   0xd   :  { %1641 = vmatpush.bf16.msra.mxu1 %v2317_v33  ;;  %v2437_v50 = vor.u32 %v3355_v43, %v2436_v42  ;;  %v2364_v52 = vld [vmem:[%s5313_s1 + $0x130] sm:$0xf]  ;;  %v3337_v53 = vld [vmem:[%s5313_s1 + $0x134] sm:$0xf0]  ;;  %v2301_v57 = vor.u32 %v3321_v51, %v2300_v49  ;;  %v2228_v59 = vld [vmem:[%s5313_s1 + $0x20] sm:$0xf] }
   0xe   :  { %1654 = vmatpush.bf16.msra.mxu2 %v2381_v34  ;;  %v2428_v54 = vld [vmem:[%s5313_s1 + $0x1b0] sm:$0xf]  ;;  %v3353_v55 = vld [vmem:[%s5313_s1 + $0x1b4] sm:$0xf0]  ;;  %v2365_v58 = vor.u32 %v3337_v53, %v2364_v52  ;;  %v3303_v60 = vld [vmem:[%s5313_s1 + $0x24] sm:$0xf0] }
   0xf   :  { %1667 = vmatpush.bf16.msra.mxu3 %v2445_v38  ;;  %v2292_v61 = vld [vmem:[%s5313_s1 + $0xa0] sm:$0xf]  ;;  %v2429_v62 = vor.u32 %v3353_v55, %v2428_v54  ;;  %v3319_v63 = vld [vmem:[%s5313_s1 + $0xa4] sm:$0xf0]  ;;  %v2229_v4 = vor.u32 %v3303_v60, %v2228_v59  ;;  %v2220_v7 = vld [vmem:[%s5313_s1 + $0x10] sm:$0xf] }
  0x10   :  { %1629 = vmatpush.bf16.msra.mxu0 %v2245_v44  ;;  %v2356_v0 = vld [vmem:[%s5313_s1 + $0x120] sm:$0xf]  ;;  %v3335_v1 = vld [vmem:[%s5313_s1 + $0x124] sm:$0xf0]  ;;  %v2293_v5 = vor.u32 %v3319_v63, %v2292_v61  ;;  %v3301_v8 = vld [vmem:[%s5313_s1 + $0x14] sm:$0xf0] }
  0x11   :  { %1642 = vmatpush.bf16.msra.mxu1 %v2309_v45  ;;  %v2420_v2 = vld [vmem:[%s5313_s1 + $0x1a0] sm:$0xf]  ;;  %v3351_v3 = vld [vmem:[%s5313_s1 + $0x1a4] sm:$0xf0]  ;;  %v2357_v6 = vor.u32 %v3335_v1, %v2356_v0  ;;  %v2284_v9 = vld [vmem:[%s5313_s1 + $0x90] sm:$0xf]  ;;  %v2221_v16 = vor.u32 %v3301_v8, %v2220_v7 }
  0x12   :  { %1655 = vmatpush.bf16.msra.mxu2 %v2373_v46  ;;  %v2421_v10 = vor.u32 %v3351_v3, %v2420_v2  ;;  %v3317_v11 = vld [vmem:[%s5313_s1 + $0x94] sm:$0xf0]  ;;  %v2348_v12 = vld [vmem:[%s5313_s1 + $0x110] sm:$0xf]  ;;  %v2212_v17 = vld [vmem:[%s5313_s1] sm:$0xf] }
  0x13   :  { %1668 = vmatpush.bf16.msra.mxu3 %v2437_v50  ;;  %v3333_v13 = vld [vmem:[%s5313_s1 + $0x114] sm:$0xf0]  ;;  %v2412_v14 = vld [vmem:[%s5313_s1 + $0x190] sm:$0xf]  ;;  %v3299_v18 = vld [vmem:[%s5313_s1 + $0x4] sm:$0xf0]  ;;  %v2285_v19 = vor.u32 %v3317_v11, %v2284_v9 }
  0x14   :  { %1630 = vmatpush.bf16.msra.mxu0 %v2237_v56  ;;  %v3349_v15 = vld [vmem:[%s5313_s1 + $0x194] sm:$0xf0]  ;;  %v2349_v20 = vor.u32 %v3333_v13, %v2348_v12  ;;  %v2276_v21 = vld [vmem:[%s5313_s1 + $0x80] sm:$0xf]  ;;  %v3315_v22 = vld [vmem:[%s5313_s1 + $0x84] sm:$0xf0]  ;;  %v2213_v31 = vor.u32 %v3299_v18, %v2212_v17 }
  0x15   :  { %1643 = vmatpush.bf16.msra.mxu1 %v2301_v57  ;;  %v2340_v23 = vld [vmem:[%s5313_s1 + $0x100] sm:$0xf]  ;;  %v2413_v24 = vor.u32 %v3349_v15, %v2412_v14  ;;  %v3331_v25 = vld [vmem:[%s5313_s1 + $0x104] sm:$0xf0]  ;;  %v2524_v28 = vld [vmem:[%s5313_s1 + $0x270] sm:$0xf]  ;;  %v2277_v35 = vor.u32 %v3315_v22, %v2276_v21 }
  0x16   :  { %1656 = vmatpush.bf16.msra.mxu2 %v2365_v58  ;;  %v2404_v26 = vld [vmem:[%s5313_s1 + $0x180] sm:$0xf]  ;;  %v3347_v27 = vld [vmem:[%s5313_s1 + $0x184] sm:$0xf0]  ;;  %v3377_v29 = vld [vmem:[%s5313_s1 + $0x274] sm:$0xf0]  ;;  %v2341_v36 = vor.u32 %v3331_v25, %v2340_v23 }
  0x17   :  { %1669 = vmatpush.bf16.msra.mxu3 %v2429_v62  ;;  %v2588_v30 = vld [vmem:[%s5313_s1 + $0x2f0] sm:$0xf]  ;;  %v3393_v32 = vld [vmem:[%s5313_s1 + $0x2f4] sm:$0xf0]  ;;  %v2405_v39 = vor.u32 %v3347_v27, %v2404_v26  ;;  %v2525_v40 = vor.u32 %v3377_v29, %v2524_v28  ;;  %v2516_v43 = vld [vmem:[%s5313_s1 + $0x260] sm:$0xf] }
  0x18   :  { %1631 = vmatpush.bf16.msra.mxu0 %v2229_v4  ;;  %v2652_v33 = vld [vmem:[%s5313_s1 + $0x370] sm:$0xf]  ;;  %v3409_v34 = vld [vmem:[%s5313_s1 + $0x374] sm:$0xf0]  ;;  %v2589_v41 = vor.u32 %v3393_v32, %v2588_v30  ;;  %v3375_v44 = vld [vmem:[%s5313_s1 + $0x264] sm:$0xf0] }
  0x19   :  { %1644 = vmatpush.bf16.msra.mxu1 %v2293_v5  ;;  %v2716_v37 = vld [vmem:[%s5313_s1 + $0x3f0] sm:$0xf]  ;;  %v3425_v38 = vld [vmem:[%s5313_s1 + $0x3f4] sm:$0xf0]  ;;  %v2653_v42 = vor.u32 %v3409_v34, %v2652_v33  ;;  %v2580_v45 = vld [vmem:[%s5313_s1 + $0x2e0] sm:$0xf]  ;;  %v2517_v52 = vor.u32 %v3375_v44, %v2516_v43 }
  0x1a   :  { %1657 = vmatpush.bf16.msra.mxu2 %v2357_v6  ;;  %v2717_v46 = vor.u32 %v3425_v38, %v2716_v37  ;;  %v3391_v47 = vld [vmem:[%s5313_s1 + $0x2e4] sm:$0xf0]  ;;  %v2644_v48 = vld [vmem:[%s5313_s1 + $0x360] sm:$0xf]  ;;  %v2508_v53 = vld [vmem:[%s5313_s1 + $0x250] sm:$0xf] }
  0x1b   :  { %1670 = vmatpush.bf16.msra.mxu3 %v2421_v10  ;;  %v3407_v49 = vld [vmem:[%s5313_s1 + $0x364] sm:$0xf0]  ;;  %v2708_v50 = vld [vmem:[%s5313_s1 + $0x3e0] sm:$0xf]  ;;  %v2581_v54 = vor.u32 %v3391_v47, %v2580_v45  ;;  %v3373_v56 = vld [vmem:[%s5313_s1 + $0x254] sm:$0xf0] }
  0x1c   :  { %1632 = vmatpush.bf16.msra.mxu0 %v2221_v16  ;;  %v3423_v51 = vld [vmem:[%s5313_s1 + $0x3e4] sm:$0xf0]  ;;  %v2645_v55 = vor.u32 %v3407_v49, %v2644_v48  ;;  %v2572_v57 = vld [vmem:[%s5313_s1 + $0x2d0] sm:$0xf]  ;;  %v3389_v58 = vld [vmem:[%s5313_s1 + $0x2d4] sm:$0xf0]  ;;  %v2509_v0 = vor.u32 %v3373_v56, %v2508_v53 }
  0x1d   :  { %1645 = vmatpush.bf16.msra.mxu1 %v2285_v19  ;;  %v2709_v59 = vor.u32 %v3423_v51, %v2708_v50  ;;  %v2636_v60 = vld [vmem:[%s5313_s1 + $0x350] sm:$0xf]  ;;  %v3405_v61 = vld [vmem:[%s5313_s1 + $0x354] sm:$0xf0]  ;;  %v2573_v1 = vor.u32 %v3389_v58, %v2572_v57  ;;  %v21_v2 = vld [vmem:[%s5314_s0 + $0x8] sm:$0xff] }
  0x1e   :  { %1658 = vmatpush.bf16.msra.mxu2 %v2349_v20  ;;  %v2700_v62 = vld [vmem:[%s5313_s1 + $0x3d0] sm:$0xf]  ;;  %v3421_v63 = vld [vmem:[%s5313_s1 + $0x3d4] sm:$0xf0]  ;;  %v20_v3 = vld [vmem:[%s5314_s0] sm:$0xff]  ;;  %v2637_v4 = vor.u32 %v3405_v61, %v2636_v60  ;;  %v300_v8 = vunpack.c.l.b16 %v21_v2  ;;  %v301_v10 = vunpack.c.h.b16 %v21_v2 }
  0x1f   :  { %1671 = vmatpush.bf16.msra.mxu3 %v2413_v24  ;;  %v2500_v5 = vld [vmem:[%s5313_s1 + $0x240] sm:$0xf]  ;;  %v3371_v6 = vld [vmem:[%s5313_s1 + $0x244] sm:$0xf0]  ;;  %v298_v9 = vunpack.c.l.b16 %v20_v3  ;;  %v2701_v11 = vor.u32 %v3421_v63, %v2700_v62  ;;  %v299_v15 = vunpack.c.h.b16 %v20_v3  ;;  %v2492_v25 = vld [vmem:[%s5313_s1 + $0x230] sm:$0xf] }
  0x20   :  { %1633 = vmatpush.bf16.msra.mxu0 %v2213_v31  ;;  %v2564_v7 = vld [vmem:[%s5313_s1 + $0x2c0] sm:$0xf]  ;;  %v3387_v12 = vld [vmem:[%s5313_s1 + $0x2c4] sm:$0xf0]  ;;  %v3895_v18 = vpack.c.b16 %v300_v8, %v300_v8  ;;  %v3899_v20 = vpack.c.b16 %v301_v10, %v301_v10  ;;  %v2501_v21 = vor.u32 %v3371_v6, %v2500_v5  ;;  %v3369_v26 = vld [vmem:[%s5313_s1 + $0x234] sm:$0xf0] }
  0x21   :  { %1646 = vmatpush.bf16.msra.mxu1 %v2277_v35  ;;  %v2628_v13 = vld [vmem:[%s5313_s1 + $0x340] sm:$0xf]  ;;  %v3403_v14 = vld [vmem:[%s5313_s1 + $0x344] sm:$0xf0]  ;;  %v3897_v19 = vpack.c.b16 %v298_v9, %v298_v9  ;;  %v3901_v22 = vpack.c.b16 %v299_v15, %v299_v15  ;;  %v2565_v23 = vor.u32 %v3387_v12, %v2564_v7  ;;  %v2556_v27 = vld [vmem:[%s5313_s1 + $0x2b0] sm:$0xf]  ;;  %v2493_v34 = vor.u32 %v3369_v26, %v2492_v25 }
  0x22   :  { %1659 = vmatpush.bf16.msra.mxu2 %v2341_v36  ;;  %v2692_v16 = vld [vmem:[%s5313_s1 + $0x3c0] sm:$0xf]  ;;  %v3419_v17 = vld [vmem:[%s5313_s1 + $0x3c4] sm:$0xf0]  ;;  %v2629_v24 = vor.u32 %v3403_v14, %v2628_v13  ;;  %v3385_v29 = vld [vmem:[%s5313_s1 + $0x2b4] sm:$0xf0] }
  0x23   :  { %1672 = vmatpush.bf16.msra.mxu3 %v2405_v39  ;;  %v2693_v28 = vor.u32 %v3419_v17, %v2692_v16  ;;  %v2620_v30 = vld [vmem:[%s5313_s1 + $0x330] sm:$0xf]  ;;  %v3401_v31 = vld [vmem:[%s5313_s1 + $0x334] sm:$0xf0]  ;;  %1634 = vmatmul.bf16.vlgmr.msra.gmra.mxu0 %v3897_v19  ;;  %v2557_v35 = vor.u32 %v3385_v29, %v2556_v27  ;;  %v2484_v37 = vld [vmem:[%s5313_s1 + $0x220] sm:$0xf] }
  0x24   :  { %1678 = vmatpush.bf16.msrb.mxu0 %v2525_v40  ;;  %v2684_v32 = vld [vmem:[%s5313_s1 + $0x3b0] sm:$0xf]  ;;  %v3417_v33 = vld [vmem:[%s5313_s1 + $0x3b4] sm:$0xf0]  ;;  %1647 = vmatmul.bf16.vlgmr.msra.gmra.mxu1 %v3901_v22  ;;  %v2621_v36 = vor.u32 %v3401_v31, %v2620_v30  ;;  %v3367_v38 = vld [vmem:[%s5313_s1 + $0x224] sm:$0xf0] }
  0x25   :  { %1691 = vmatpush.bf16.msrb.mxu1 %v2589_v41  ;;  %1660 = vmatmul.bf16.vlgmr.msra.gmra.mxu2 %v3895_v18  ;;  %v2548_v39 = vld [vmem:[%s5313_s1 + $0x2a0] sm:$0xf]  ;;  %v2685_v40 = vor.u32 %v3417_v33, %v2684_v32  ;;  %v3383_v41 = vld [vmem:[%s5313_s1 + $0x2a4] sm:$0xf0]  ;;  %v2476_v49 = vld [vmem:[%s5313_s1 + $0x210] sm:$0xf] }
  0x26   :  { %1704 = vmatpush.bf16.msrb.mxu2 %v2653_v42  ;;  %1673 = vmatmul.bf16.vlgmr.msra.gmra.mxu3 %v3899_v20  ;;  %v2612_v42 = vld [vmem:[%s5313_s1 + $0x320] sm:$0xf]  ;;  %v3399_v43 = vld [vmem:[%s5313_s1 + $0x324] sm:$0xf0]  ;;  %v2549_v47 = vor.u32 %v3383_v41, %v2548_v39  ;;  %v3365_v50 = vld [vmem:[%s5313_s1 + $0x214] sm:$0xf0] }
  0x27   :  { %1717 = vmatpush.bf16.msrb.mxu3 %v2717_v46  ;;  %v2676_v44 = vld [vmem:[%s5313_s1 + $0x3a0] sm:$0xf]  ;;  %v3415_v45 = vld [vmem:[%s5313_s1 + $0x3a4] sm:$0xf0]  ;;  %v2485_v46 = vor.u32 %v3367_v38, %v2484_v37  ;;  %v2613_v48 = vor.u32 %v3399_v43, %v2612_v42  ;;  %v2540_v51 = vld [vmem:[%s5313_s1 + $0x290] sm:$0xf] }
  0x28   :  { %1679 = vmatpush.bf16.msrb.mxu0 %v2517_v52  ;;  %v2677_v52 = vor.u32 %v3415_v45, %v2676_v44  ;;  %v3381_v53 = vld [vmem:[%s5313_s1 + $0x294] sm:$0xf0]  ;;  %v2668_v56 = vld [vmem:[%s5313_s1 + $0x390] sm:$0xf]  ;;  %v2468_v58 = vld [vmem:[%s5313_s1 + $0x200] sm:$0xf] }
  0x29   :  { %1692 = vmatpush.bf16.msrb.mxu1 %v2581_v54  ;;  %v2604_v54 = vld [vmem:[%s5313_s1 + $0x310] sm:$0xf]  ;;  %v3413_v57 = vld [vmem:[%s5313_s1 + $0x394] sm:$0xf0]  ;;  %v3363_v60 = vld [vmem:[%s5313_s1 + $0x204] sm:$0xf0]  ;;  %v2541_v63 = vor.u32 %v3381_v53, %v2540_v51 }
  0x2a   :  { %1705 = vmatpush.bf16.msrb.mxu2 %v2645_v55  ;;  %v3397_v55 = vld [vmem:[%s5313_s1 + $0x314] sm:$0xf0]  ;;  %v2532_v61 = vld [vmem:[%s5313_s1 + $0x280] sm:$0xf]  ;;  %v3379_v62 = vld [vmem:[%s5313_s1 + $0x284] sm:$0xf0] }
  0x2b   :  { %1718 = vmatpush.bf16.msrb.mxu3 %v2709_v59  ;;  %v2477_v59 = vor.u32 %v3365_v50, %v2476_v49  ;;  %v3395_v2 = vld [vmem:[%s5313_s1 + $0x304] sm:$0xf0]  ;;  %v23_v3 = vld [vmem:[%s5314_s0 + $0x18] sm:$0xff]  ;;  %v2660_v5 = vld [vmem:[%s5313_s1 + $0x380] sm:$0xf]  ;;  %v2533_v16 = vor.u32 %v3379_v62, %v2532_v61 }
  0x2c   :  { %1680 = vmatpush.bf16.msrb.mxu0 %v2509_v0  ;;  %v2605_v0 = vor.u32 %v3397_v55, %v2604_v54  ;;  %v3411_v6 = vld [vmem:[%s5313_s1 + $0x384] sm:$0xf0]  ;;  %v22_v7 = vld [vmem:[%s5314_s0 + $0x10] sm:$0xff]  ;;  %v3441_v9 = vld [vmem:[%s5313_s1 + $0x474] sm:$0xf0]  ;;  %v304_v15 = vunpack.c.l.b16 %v23_v3  ;;  %v305_v25 = vunpack.c.h.b16 %v23_v3 }
  0x2d   :  { %1693 = vmatpush.bf16.msrb.mxu1 %v2573_v1  ;;  %v2596_v1 = vld [vmem:[%s5313_s1 + $0x300] sm:$0xf]  ;;  %v2780_v8 = vld [vmem:[%s5313_s1 + $0x470] sm:$0xf]  ;;  %v3457_v12 = vld [vmem:[%s5313_s1 + $0x4f4] sm:$0xf0]  ;;  %v2661_v26 = vor.u32 %v3411_v6, %v2660_v5 }
  0x2e   :  { %1706 = vmatpush.bf16.msrb.mxu2 %v2637_v4  ;;  %v2669_v4 = vor.u32 %v3413_v57, %v2668_v56  ;;  %v2844_v10 = vld [vmem:[%s5313_s1 + $0x4f0] sm:$0xf]  ;;  %v3473_v14 = vld [vmem:[%s5313_s1 + $0x574] sm:$0xf0]  ;;  %v2597_v17 = vor.u32 %v3395_v2, %v2596_v1  ;;  %v2781_v27 = vor.u32 %v3441_v9, %v2780_v8  ;;  %v2772_v31 = vld [vmem:[%s5313_s1 + $0x460] sm:$0xf]  ;;  %v4051_v38 = vpack.c.b16 %v304_v15, %v304_v15 }
  0x2f   :  { %1719 = vmatpush.bf16.msrb.mxu3 %v2701_v11  ;;  %v2469_v11 = vor.u32 %v3363_v60, %v2468_v58  ;;  %v2908_v13 = vld [vmem:[%s5313_s1 + $0x570] sm:$0xf]  ;;  %v2845_v29 = vor.u32 %v3457_v12, %v2844_v10  ;;  %v3439_v32 = vld [vmem:[%s5313_s1 + $0x464] sm:$0xf0]  ;;  %v2836_v33 = vld [vmem:[%s5313_s1 + $0x4e0] sm:$0xf]  ;;  %v4061_v42 = vpack.c.b16 %v305_v25, %v305_v25 }
  0x30   :  { %1681 = vmatpush.bf16.msrb.mxu0 %v2501_v21  ;;  %v2972_v21 = vld [vmem:[%s5313_s1 + $0x5f0] sm:$0xf]  ;;  %v2909_v30 = vor.u32 %v3473_v14, %v2908_v13  ;;  %v3471_v37 = vld [vmem:[%s5313_s1 + $0x564] sm:$0xf0]  ;;  %v2964_v39 = vld [vmem:[%s5313_s1 + $0x5e0] sm:$0xf]  ;;  %v2773_v43 = vor.u32 %v3439_v32, %v2772_v31 }
  0x31   :  { %1694 = vmatpush.bf16.msrb.mxu1 %v2565_v23  ;;  %v3489_v23 = vld [vmem:[%s5313_s1 + $0x5f4] sm:$0xf0]  ;;  %v2828_v49 = vld [vmem:[%s5313_s1 + $0x4d0] sm:$0xf]  ;;  %v3435_v60 = vld [vmem:[%s5313_s1 + $0x444] sm:$0xf0] }
  0x32   :  { %1707 = vmatpush.bf16.msrb.mxu2 %v2629_v24  ;;  %v302_v24 = vunpack.c.l.b16 %v22_v7  ;;  %v3453_v51 = vld [vmem:[%s5313_s1 + $0x4d4] sm:$0xf0]  ;;  %v2956_v54 = vld [vmem:[%s5313_s1 + $0x5d0] sm:$0xf]  ;;  %v2820_v61 = vld [vmem:[%s5313_s1 + $0x4c0] sm:$0xf] }
  0x33   :  { %1720 = vmatpush.bf16.msrb.mxu3 %v2693_v28  ;;  %v303_v28 = vunpack.c.h.b16 %v22_v7  ;;  %v3469_v53 = vld [vmem:[%s5313_s1 + $0x554] sm:$0xf0]  ;;  %v2829_v57 = vor.u32 %v3453_v51, %v2828_v49  ;;  %v3467_v1 = vld [vmem:[%s5313_s1 + $0x544] sm:$0xf0]  ;;  %v2948_v2 = vld [vmem:[%s5313_s1 + $0x5c0] sm:$0xf] }
  0x34   :  { %1682 = vmatpush.bf16.msrb.mxu0 %v2493_v34  ;;  %v2973_v34 = vor.u32 %v3489_v23, %v2972_v21  ;;  %v4059_v41 = vpack.c.b16 %v302_v24, %v302_v24  ;;  %v3485_v55 = vld [vmem:[%s5313_s1 + $0x5d4] sm:$0xf0]  ;;  %v3483_v3 = vld [vmem:[%s5313_s1 + $0x5c4] sm:$0xf0]  ;;  %v2748_v7 = vld [vmem:[%s5313_s1 + $0x430] sm:$0xf] }
  0x35   :  { %1695 = vmatpush.bf16.msrb.mxu1 %v2557_v35  ;;  %v3455_v35 = vld [vmem:[%s5313_s1 + $0x4e4] sm:$0xf0]  ;;  %v4063_v44 = vpack.c.b16 %v303_v28, %v303_v28  ;;  %v2957_v62 = vor.u32 %v3485_v55, %v2956_v54  ;;  %v3433_v8 = vld [vmem:[%s5313_s1 + $0x434] sm:$0xf0]  ;;  %v2812_v9 = vld [vmem:[%s5313_s1 + $0x4b0] sm:$0xf]  ;;  %v2949_v10 = vor.u32 %v3483_v3, %v2948_v2 }
  0x36   :  { %1708 = vmatpush.bf16.msrb.mxu2 %v2621_v36  ;;  %v2900_v36 = vld [vmem:[%s5313_s1 + $0x560] sm:$0xf]  ;;  %v2837_v45 = vor.u32 %v3455_v35, %v2836_v33  ;;  %v2876_v12 = vld [vmem:[%s5313_s1 + $0x530] sm:$0xf]  ;;  %v3465_v13 = vld [vmem:[%s5313_s1 + $0x534] sm:$0xf0] }
  0x37   :  { %1721 = vmatpush.bf16.msrb.mxu3 %v2685_v40  ;;  %v3487_v40 = vld [vmem:[%s5313_s1 + $0x5e4] sm:$0xf0]  ;;  %v2940_v14 = vld [vmem:[%s5313_s1 + $0x5b0] sm:$0xf]  ;;  %v3481_v15 = vld [vmem:[%s5313_s1 + $0x5b4] sm:$0xf0]  ;;  %v2877_v21 = vor.u32 %v3465_v13, %v2876_v12 }
  0x38   :  { %1683 = vmatpush.bf16.msrb.mxu0 %v2485_v46  ;;  %v2901_v46 = vor.u32 %v3471_v37, %v2900_v36  ;;  %v2965_v50 = vor.u32 %v3487_v40, %v2964_v39  ;;  %v2740_v23 = vld [vmem:[%s5313_s1 + $0x420] sm:$0xf]  ;;  %v3431_v24 = vld [vmem:[%s5313_s1 + $0x424] sm:$0xf0]  ;;  %v2732_v35 = vld [vmem:[%s5313_s1 + $0x410] sm:$0xf] }
  0x39   :  { %1696 = vmatpush.bf16.msrb.mxu1 %v2549_v47  ;;  %v2764_v47 = vld [vmem:[%s5313_s1 + $0x450] sm:$0xf]  ;;  %v2804_v25 = vld [vmem:[%s5313_s1 + $0x4a0] sm:$0xf]  ;;  %v3479_v31 = vld [vmem:[%s5313_s1 + $0x5a4] sm:$0xf0]  ;;  %v2741_v32 = vor.u32 %v3431_v24, %v2740_v23 }
  0x3a   :  { %1709 = vmatpush.bf16.msrb.mxu2 %v2613_v48  ;;  %v3437_v48 = vld [vmem:[%s5313_s1 + $0x454] sm:$0xf0]  ;;  %v2868_v28 = vld [vmem:[%s5313_s1 + $0x520] sm:$0xf]  ;;  %v2796_v37 = vld [vmem:[%s5313_s1 + $0x490] sm:$0xf] }
  0x3b   :  { %1722 = vmatpush.bf16.msrb.mxu3 %v2677_v52  ;;  %v2892_v52 = vld [vmem:[%s5313_s1 + $0x550] sm:$0xf]  ;;  %v2765_v56 = vor.u32 %v3437_v48, %v2764_v47  ;;  %v3429_v36 = vld [vmem:[%s5313_s1 + $0x414] sm:$0xf0]  ;;  %v2724_v48 = vld [vmem:[%s5313_s1 + $0x400] sm:$0xf] }
  0x3c   :  { %1684 = vmatpush.bf16.msrb.mxu0 %v2477_v59  ;;  %v2893_v58 = vor.u32 %v3469_v53, %v2892_v52  ;;  %v2756_v59 = vld [vmem:[%s5313_s1 + $0x440] sm:$0xf]  ;;  %v3445_v40 = vld [vmem:[%s5313_s1 + $0x494] sm:$0xf0]  ;;  %v2733_v49 = vor.u32 %v3429_v36, %v2732_v35  ;;  %v3443_v52 = vld [vmem:[%s5313_s1 + $0x484] sm:$0xf0] }
  0x3d   :  { %1697 = vmatpush.bf16.msrb.mxu1 %v2541_v63  ;;  %v3451_v63 = vld [vmem:[%s5313_s1 + $0x4c4] sm:$0xf0]  ;;  %v3477_v47 = vld [vmem:[%s5313_s1 + $0x594] sm:$0xf0]  ;;  %v2788_v51 = vld [vmem:[%s5313_s1 + $0x480] sm:$0xf]  ;;  %v2797_v53 = vor.u32 %v3445_v40, %v2796_v37 }
  0x3e   :  { %1710 = vmatpush.bf16.msrb.mxu2 %v2605_v0  ;;  %v2884_v0 = vld [vmem:[%s5313_s1 + $0x540] sm:$0xf]  ;;  %v2821_v5 = vor.u32 %v3451_v63, %v2820_v61  ;;  %v25_v61 = vld [vmem:[%s5314_s0 + $0x28] sm:$0xff]  ;;  %v3505_v63 = vld [vmem:[%s5313_s1 + $0x674] sm:$0xf0] }
  0x3f   :  { %1723 = vmatpush.bf16.msrb.mxu3 %v2669_v4  ;;  %v2757_v4 = vor.u32 %v3435_v60, %v2756_v59  ;;  %v2885_v6 = vor.u32 %v3467_v1, %v2884_v0  ;;  %v2852_v55 = vld [vmem:[%s5313_s1 + $0x500] sm:$0xf]  ;;  %v3475_v60 = vld [vmem:[%s5313_s1 + $0x584] sm:$0xf0]  ;;  %v3100_v0 = vld [vmem:[%s5313_s1 + $0x6f0] sm:$0xf] }
  0x40   :  { %1685 = vmatpush.bf16.msrb.mxu0 %v2469_v11  ;;  %v3449_v11 = vld [vmem:[%s5313_s1 + $0x4b4] sm:$0xf0]  ;;  %v2916_v59 = vld [vmem:[%s5313_s1 + $0x580] sm:$0xf]  ;;  %v3164_v3 = vld [vmem:[%s5313_s1 + $0x770] sm:$0xf] }
  0x41   :  { %1698 = vmatpush.bf16.msrb.mxu1 %v2533_v16  ;;  %v2749_v16 = vor.u32 %v3433_v8, %v2748_v7  ;;  %v3521_v2 = vld [vmem:[%s5313_s1 + $0x6f4] sm:$0xf0]  ;;  %v3228_v8 = vld [vmem:[%s5313_s1 + $0x7f0] sm:$0xf]  ;;  %v2917_v12 = vor.u32 %v3475_v60, %v2916_v59  ;;  %v3092_v23 = vld [vmem:[%s5313_s1 + $0x6e0] sm:$0xf] }
  0x42   :  { %1711 = vmatpush.bf16.msrb.mxu2 %v2597_v17  ;;  %v2813_v17 = vor.u32 %v3449_v11, %v2812_v9  ;;  %v3553_v9 = vld [vmem:[%s5313_s1 + $0x7f4] sm:$0xf0]  ;;  %v3020_v37 = vld [vmem:[%s5313_s1 + $0x650] sm:$0xf]  ;;  %v3531_v59 = vld [vmem:[%s5313_s1 + $0x744] sm:$0xf0] }
  0x43   :  { %1724 = vmatpush.bf16.msrb.mxu3 %v2661_v26  ;;  %1686 = vmatmul.bf16.vlgmr.msrb.gmra.mxu0 %v4059_v41  ;;  %v2941_v26 = vor.u32 %v3481_v15, %v2940_v14  ;;  %v309_v14 = vunpack.c.h.b16 %v25_v61  ;;  %v3101_v15 = vor.u32 %v3521_v2, %v3100_v0  ;;  %v3229_v24 = vor.u32 %v3553_v9, %v3228_v8  ;;  %v3084_v40 = vld [vmem:[%s5313_s1 + $0x6d0] sm:$0xf]  ;;  %v3204_v60 = vld [vmem:[%s5313_s1 + $0x7c0] sm:$0xf]  ;;  %v3497_v2 = vld [vmem:[%s5313_s1 + $0x634] sm:$0xf0] }
  0x44   :  { %1730 = vmatpush.bf16.msra.mxu0 %v2781_v27  ;;  %1699 = vmatmul.bf16.vlgmr.msrb.gmra.mxu1 %v4063_v44  ;;  %v3447_v27 = vld [vmem:[%s5313_s1 + $0x4a4] sm:$0xf0]  ;;  %v3196_v8 = vld [vmem:[%s5313_s1 + $0x7b0] sm:$0xf]  ;;  %v3545_v9 = vld [vmem:[%s5313_s1 + $0x7b4] sm:$0xf0] }
  0x45   :  { %1743 = vmatpush.bf16.msra.mxu1 %v2845_v29  ;;  %1712 = vmatmul.bf16.vlgmr.msrb.gmra.mxu2 %v4051_v38  ;;  %v3463_v29 = vld [vmem:[%s5313_s1 + $0x524] sm:$0xf0]  ;;  %v2805_v33 = vor.u32 %v3447_v27, %v2804_v25  ;;  %v3156_v27 = vld [vmem:[%s5313_s1 + $0x760] sm:$0xf] }
  0x46   :  { %1756 = vmatpush.bf16.msra.mxu2 %v2909_v30  ;;  %1725 = vmatmul.bf16.vlgmr.msrb.gmra.mxu3 %v4061_v42  ;;  %v2932_v30 = vld [vmem:[%s5313_s1 + $0x5a0] sm:$0xf] }
  0x47   :  { %1769 = vmatpush.bf16.msra.mxu3 %v2973_v34  ;;  %v2869_v34 = vor.u32 %v3463_v29, %v2868_v28  ;;  %v2933_v39 = vor.u32 %v3479_v31, %v2932_v30  ;;  %v3535_v28 = vld [vmem:[%s5313_s1 + $0x764] sm:$0xf0]  ;;  %v3220_v31 = vld [vmem:[%s5313_s1 + $0x7e0] sm:$0xf] }
  0x48   :  { %1731 = vmatpush.bf16.msra.mxu0 %v2773_v43  ;;  %v2860_v43 = vld [vmem:[%s5313_s1 + $0x510] sm:$0xf]  ;;  %v3157_v36 = vor.u32 %v3535_v28, %v3156_v27 }
  0x49   :  { %1744 = vmatpush.bf16.msra.mxu1 %v2837_v45  ;;  %v3461_v45 = vld [vmem:[%s5313_s1 + $0x514] sm:$0xf0] }
  0x4a   :  { %1757 = vmatpush.bf16.msra.mxu2 %v2901_v46  ;;  %v2924_v46 = vld [vmem:[%s5313_s1 + $0x590] sm:$0xf]  ;;  %v2861_v54 = vor.u32 %v3461_v45, %v2860_v43  ;;  %v3517_v45 = vld [vmem:[%s5313_s1 + $0x6d4] sm:$0xf0] }
  0x4b   :  { %1770 = vmatpush.bf16.msra.mxu3 %v2965_v50  ;;  %v3427_v50 = vld [vmem:[%s5313_s1 + $0x404] sm:$0xf0] }
  0x4c   :  { %1732 = vmatpush.bf16.msra.mxu0 %v2765_v56  ;;  %v3459_v56 = vld [vmem:[%s5313_s1 + $0x504] sm:$0xf0]  ;;  %v2725_v1 = vor.u32 %v3427_v50, %v2724_v48  ;;  %v3212_v48 = vld [vmem:[%s5313_s1 + $0x7d0] sm:$0xf] }
  0x4d   :  { %1745 = vmatpush.bf16.msra.mxu1 %v2829_v57  ;;  %v24_v57 = vld [vmem:[%s5314_s0 + $0x20] sm:$0xff]  ;;  %v2853_v7 = vor.u32 %v3459_v56, %v2852_v55 }
  0x4e   :  { %1758 = vmatpush.bf16.msra.mxu2 %v2893_v58  ;;  %v2925_v58 = vor.u32 %v3477_v47, %v2924_v46  ;;  %v307_v11 = vunpack.c.h.b16 %v24_v57  ;;  %v3148_v46 = vld [vmem:[%s5313_s1 + $0x750] sm:$0xf]  ;;  %v3533_v47 = vld [vmem:[%s5313_s1 + $0x754] sm:$0xf0]  ;;  %v3076_v55 = vld [vmem:[%s5313_s1 + $0x6c0] sm:$0xf] }
  0x4f   :  { %1771 = vmatpush.bf16.msra.mxu3 %v2957_v62  ;;  %v3036_v62 = vld [vmem:[%s5313_s1 + $0x670] sm:$0xf] }
  0x50   :  { %1733 = vmatpush.bf16.msra.mxu0 %v2757_v4  ;;  %v3537_v4 = vld [vmem:[%s5313_s1 + $0x774] sm:$0xf0]  ;;  %v3037_v13 = vor.u32 %v3505_v63, %v3036_v62  ;;  %v4265_v30 = vpack.c.b16 %v307_v11, %v307_v11 }
  0x51   :  { %1746 = vmatpush.bf16.msra.mxu1 %v2821_v5  ;;  %v306_v5 = vunpack.c.l.b16 %v24_v57  ;;  %v3515_v57 = vld [vmem:[%s5313_s1 + $0x6c4] sm:$0xf0] }
  0x52   :  { %1759 = vmatpush.bf16.msra.mxu2 %v2885_v6  ;;  %v2789_v6 = vor.u32 %v3443_v52, %v2788_v51  ;;  %v3085_v51 = vor.u32 %v3517_v45, %v3084_v40  ;;  %v3149_v52 = vor.u32 %v3533_v47, %v3148_v46  ;;  %v3077_v63 = vor.u32 %v3515_v57, %v3076_v55  ;;  %v3525_v40 = vld [vmem:[%s5313_s1 + $0x714] sm:$0xf0]  ;;  %v2980_v46 = vld [vmem:[%s5313_s1 + $0x600] sm:$0xf]  ;;  %v26_v55 = vld [vmem:[%s5314_s0 + $0x30] sm:$0xff] }
  0x53   :  { %1772 = vmatpush.bf16.msra.mxu3 %v2949_v10  ;;  %v308_v10 = vunpack.c.l.b16 %v25_v61  ;;  %v4252_v25 = vpack.c.b16 %v306_v5, %v306_v5  ;;  %v3547_v61 = vld [vmem:[%s5313_s1 + $0x7c4] sm:$0xf0]  ;;  %v3513_v5 = vld [vmem:[%s5313_s1 + $0x6b4] sm:$0xf0]  ;;  %v3172_v57 = vld [vmem:[%s5313_s1 + $0x780] sm:$0xf] }
  0x54   :  { %1734 = vmatpush.bf16.msra.mxu0 %v2749_v16  ;;  %v3165_v16 = vor.u32 %v3537_v4, %v3164_v3  ;;  %v3068_v3 = vld [vmem:[%s5313_s1 + $0x6b0] sm:$0xf]  ;;  %v3205_v4 = vor.u32 %v3547_v61, %v3204_v60  ;;  %v3541_v45 = vld [vmem:[%s5313_s1 + $0x794] sm:$0xf0]  ;;  %v3312_v60 = vld [vmem:[%s5313_s1 + $0x74] sm:$0xf] }
  0x55   :  { %1747 = vmatpush.bf16.msra.mxu1 %v2813_v17  ;;  %v3028_v17 = vld [vmem:[%s5313_s1 + $0x660] sm:$0xf]  ;;  %v4263_v29 = vpack.c.b16 %v308_v10, %v308_v10  ;;  %v3069_v11 = vor.u32 %v3513_v5, %v3068_v3  ;;  %v2270_v61 = vld [vmem:[%s5313_s1 + $0x78] sm:$0xf0]  ;;  %v310_v3 = vunpack.c.l.b16 %v26_v55 }
  0x56   :  { %1760 = vmatpush.bf16.msra.mxu2 %v2877_v21  ;;  %v3503_v21 = vld [vmem:[%s5313_s1 + $0x664] sm:$0xf0] }
  0x57   :  { %1773 = vmatpush.bf16.msra.mxu3 %v2941_v26  ;;  %v3519_v26 = vld [vmem:[%s5313_s1 + $0x6e4] sm:$0xf0] }
  0x58   :  { %1735 = vmatpush.bf16.msra.mxu0 %v2741_v32  ;;  %v3551_v32 = vld [vmem:[%s5313_s1 + $0x7e4] sm:$0xf0]  ;;  %v3093_v35 = vor.u32 %v3519_v26, %v3092_v23 }
  0x59   :  { %1748 = vmatpush.bf16.msra.mxu1 %v2805_v33  ;;  %v4273_v33 = vpack.c.b16 %v309_v14, %v309_v14  ;;  %v3221_v43 = vor.u32 %v3551_v32, %v3220_v31  ;;  %v3495_v14 = vld [vmem:[%s5313_s1 + $0x624] sm:$0xf0]  ;;  %v2988_v32 = vld [vmem:[%s5313_s1 + $0x610] sm:$0xf] }
  0x5a   :  { %1761 = vmatpush.bf16.msra.mxu2 %v2869_v34  ;;  %v3029_v34 = vor.u32 %v3503_v21, %v3028_v17  ;;  %v3511_v17 = vld [vmem:[%s5313_s1 + $0x6a4] sm:$0xf0]  ;;  %v3124_v21 = vld [vmem:[%s5313_s1 + $0x720] sm:$0xf] }
  0x5b   :  { %1774 = vmatpush.bf16.msra.mxu3 %v2933_v39  ;;  %v3501_v39 = vld [vmem:[%s5313_s1 + $0x654] sm:$0xf0]  ;;  %v3527_v23 = vld [vmem:[%s5313_s1 + $0x724] sm:$0xf0] }
  0x5c   :  { %1736 = vmatpush.bf16.msra.mxu0 %v2733_v49  ;;  %v3549_v49 = vld [vmem:[%s5313_s1 + $0x7d4] sm:$0xf0]  ;;  %v3021_v50 = vor.u32 %v3501_v39, %v3020_v37  ;;  %v3543_v26 = vld [vmem:[%s5313_s1 + $0x7a4] sm:$0xf0]  ;;  %v3125_v31 = vor.u32 %v3527_v23, %v3124_v21  ;;  %v3116_v39 = vld [vmem:[%s5313_s1 + $0x710] sm:$0xf]  ;;  %v4462_v23 = vpack.c.b16 %v310_v3, %v310_v3 }
  0x5d   :  { %1749 = vmatpush.bf16.msra.mxu1 %v2797_v53  ;;  %v3012_v53 = vld [vmem:[%s5313_s1 + $0x640] sm:$0xf]  ;;  %v3213_v56 = vor.u32 %v3549_v49, %v3212_v48  ;;  %v3509_v37 = vld [vmem:[%s5313_s1 + $0x694] sm:$0xf0]  ;;  %v3491_v48 = vld [vmem:[%s5313_s1 + $0x604] sm:$0xf0] }
  0x5e   :  { %1762 = vmatpush.bf16.msra.mxu2 %v2861_v54  ;;  %v3499_v54 = vld [vmem:[%s5313_s1 + $0x644] sm:$0xf0]  ;;  %v3044_v49 = vld [vmem:[%s5313_s1 + $0x680] sm:$0xf]  ;;  %v3304_v3 = vld [vmem:[%s5313_s1 + $0x34] sm:$0xf] }
  0x5f   :  { %1775 = vmatpush.bf16.msra.mxu3 %v2925_v58  ;;  %v3140_v58 = vld [vmem:[%s5313_s1 + $0x740] sm:$0xf]  ;;  %v3013_v62 = vor.u32 %v3499_v54, %v3012_v53  ;;  %v3523_v54 = vld [vmem:[%s5313_s1 + $0x704] sm:$0xf0] }
  0x60   :  { %1737 = vmatpush.bf16.msra.mxu0 %v2725_v1  ;;  %v3141_v0 = vor.u32 %v3531_v59, %v3140_v58  ;;  %v3004_v1 = vld [vmem:[%s5313_s1 + $0x630] sm:$0xf]  ;;  %v3108_v53 = vld [vmem:[%s5313_s1 + $0x700] sm:$0xf]  ;;  %v3539_v58 = vld [vmem:[%s5313_s1 + $0x784] sm:$0xf0] }
  0x61   :  { %1750 = vmatpush.bf16.msra.mxu1 %v2789_v6  ;;  %v3132_v6 = vld [vmem:[%s5313_s1 + $0x730] sm:$0xf]  ;;  %v3005_v10 = vor.u32 %v3497_v2, %v3004_v1  ;;  %v27_v59 = vld [vmem:[%s5314_s0 + $0x38] sm:$0xff]  ;;  %v3344_v1 = vld [vmem:[%s5313_s1 + $0x174] sm:$0xf]  ;;  %v3109_v5 = vor.u32 %v3523_v54, %v3108_v53 }
  0x62   :  { %1763 = vmatpush.bf16.msra.mxu2 %v2853_v7  ;;  %v3529_v7 = vld [vmem:[%s5313_s1 + $0x734] sm:$0xf0]  ;;  %v2398_v2 = vld [vmem:[%s5313_s1 + $0x178] sm:$0xf0] }
  0x63   :  { %1776 = vmatpush.bf16.msra.mxu3 %v2917_v12  ;;  %1738 = vmatmul.bf16.vlgmr.msra.gmra.mxu0 %v4252_v25  ;;  %v3133_v12 = vor.u32 %v3529_v7, %v3132_v6  ;;  %v3360_v6 = vld [vmem:[%s5313_s1 + $0x1f4] sm:$0xf]  ;;  %v2462_v7 = vld [vmem:[%s5313_s1 + $0x1f8] sm:$0xf0] }
  0x64   :  { %1782 = vmatpush.bf16.msrb.mxu0 %v3037_v13  ;;  %1751 = vmatmul.bf16.vlgmr.msra.gmra.mxu1 %v4265_v30  ;;  %v2996_v13 = vld [vmem:[%s5313_s1 + $0x620] sm:$0xf]  ;;  %v2465_v21 = vor.u32 %v3360_v6, %v2462_v7  ;;  %v2302_v7 = vld [vmem:[%s5313_s1 + $0xb8] sm:$0xf0] }
  0x65   :  { %1795 = vmatpush.bf16.msrb.mxu1 %v3101_v15  ;;  %1764 = vmatmul.bf16.vlgmr.msra.gmra.mxu2 %v4263_v29  ;;  %v3060_v15 = vld [vmem:[%s5313_s1 + $0x6a0] sm:$0xf]  ;;  %v2997_v27 = vor.u32 %v3495_v14, %v2996_v13  ;;  %v2401_v14 = vor.u32 %v3344_v1, %v2398_v2 }
  0x66   :  { %1808 = vmatpush.bf16.msrb.mxu2 %v3165_v16  ;;  %1777 = vmatmul.bf16.vlgmr.msra.gmra.mxu3 %v4273_v33  ;;  %v3197_v16 = vor.u32 %v3545_v9, %v3196_v8  ;;  %v3061_v28 = vor.u32 %v3511_v17, %v3060_v15  ;;  %v312_v8 = vunpack.c.l.b16 %v27_v59  ;;  %v311_v9 = vunpack.c.h.b16 %v26_v55  ;;  %v3310_v15 = vld [vmem:[%s5313_s1 + $0x64] sm:$0xf] }
  0x67   :  { %1821 = vmatpush.bf16.msrb.mxu3 %v3229_v24  ;;  %v3188_v24 = vld [vmem:[%s5313_s1 + $0x7a0] sm:$0xf]  ;;  %v3326_v17 = vld [vmem:[%s5313_s1 + $0xe4] sm:$0xf] }
  0x68   :  { %1783 = vmatpush.bf16.msrb.mxu0 %v3029_v34  ;;  %v3493_v34 = vld [vmem:[%s5313_s1 + $0x614] sm:$0xf0]  ;;  %v3306_v55 = vld [vmem:[%s5313_s1 + $0x44] sm:$0xf] }
  0x69   :  { %1796 = vmatpush.bf16.msrb.mxu1 %v3093_v35  ;;  %v3052_v35 = vld [vmem:[%s5313_s1 + $0x690] sm:$0xf]  ;;  %v2989_v47 = vor.u32 %v3493_v34, %v2988_v32  ;;  %v3358_v32 = vld [vmem:[%s5313_s1 + $0x1e4] sm:$0xf]  ;;  %v2454_v34 = vld [vmem:[%s5313_s1 + $0x1e8] sm:$0xf0] }
  0x6a   :  { %1809 = vmatpush.bf16.msrb.mxu2 %v3157_v36  ;;  %v3189_v36 = vor.u32 %v3543_v26, %v3188_v24  ;;  %v2326_v24 = vld [vmem:[%s5313_s1 + $0xe8] sm:$0xf0]  ;;  %v3342_v26 = vld [vmem:[%s5313_s1 + $0x164] sm:$0xf] }
  0x6b   :  { %1822 = vmatpush.bf16.msrb.mxu3 %v3221_v43  ;;  %v3180_v43 = vld [vmem:[%s5313_s1 + $0x790] sm:$0xf] }
  0x6c   :  { %1784 = vmatpush.bf16.msrb.mxu0 %v3021_v50  ;;  %v3507_v50 = vld [vmem:[%s5313_s1 + $0x684] sm:$0xf0] }
  0x6d   :  { %1797 = vmatpush.bf16.msrb.mxu1 %v3085_v51  ;;  %v3053_v51 = vor.u32 %v3509_v37, %v3052_v35  ;;  %v2329_v37 = vor.u32 %v3326_v17, %v2326_v24  ;;  %v3318_v17 = vld [vmem:[%s5313_s1 + $0xa4] sm:$0xf]  ;;  %v2294_v24 = vld [vmem:[%s5313_s1 + $0xa8] sm:$0xf0] }
  0x6e   :  { %1810 = vmatpush.bf16.msrb.mxu2 %v3149_v52  ;;  %v3117_v52 = vor.u32 %v3525_v40, %v3116_v39  ;;  %v3308_v40 = vld [vmem:[%s5313_s1 + $0x54] sm:$0xf] }
  0x6f   :  { %1823 = vmatpush.bf16.msrb.mxu3 %v3213_v56  ;;  %v3181_v56 = vor.u32 %v3541_v45, %v3180_v43  ;;  %v2254_v43 = vld [vmem:[%s5313_s1 + $0x58] sm:$0xf0]  ;;  %v3324_v45 = vld [vmem:[%s5313_s1 + $0xd4] sm:$0xf] }
  0x70   :  { %1785 = vmatpush.bf16.msrb.mxu0 %v3013_v62  ;;  %v3328_v62 = vld [vmem:[%s5313_s1 + $0xf4] sm:$0xf] }
  0x71   :  { %1798 = vmatpush.bf16.msrb.mxu1 %v3077_v63  ;;  %v2981_v63 = vor.u32 %v3491_v48, %v2980_v46  ;;  %v2457_v46 = vor.u32 %v3358_v32, %v2454_v34  ;;  %v3340_v48 = vld [vmem:[%s5313_s1 + $0x154] sm:$0xf]  ;;  %v3350_v32 = vld [vmem:[%s5313_s1 + $0x1a4] sm:$0xf]  ;;  %v2422_v34 = vld [vmem:[%s5313_s1 + $0x1a8] sm:$0xf0] }
  0x72   :  { %1811 = vmatpush.bf16.msrb.mxu2 %v3141_v0  ;;  %v2334_v0 = vld [vmem:[%s5313_s1 + $0xf8] sm:$0xf0] }
  0x73   :  { %1824 = vmatpush.bf16.msrb.mxu3 %v3205_v4  ;;  %v3045_v4 = vor.u32 %v3507_v50, %v3044_v49  ;;  %v2337_v13 = vor.u32 %v3328_v62, %v2334_v0  ;;  %v2382_v49 = vld [vmem:[%s5313_s1 + $0x158] sm:$0xf0]  ;;  %v3356_v50 = vld [vmem:[%s5313_s1 + $0x1d4] sm:$0xf]  ;;  %v3354_v62 = vld [vmem:[%s5313_s1 + $0x1c4] sm:$0xf] }
  0x74   :  { %1786 = vmatpush.bf16.msrb.mxu0 %v3005_v10  ;;  %v3173_v10 = vor.u32 %v3539_v58, %v3172_v57  ;;  %v2385_v54 = vor.u32 %v3340_v48, %v2382_v49  ;;  %v3322_v57 = vld [vmem:[%s5313_s1 + $0xc4] sm:$0xf]  ;;  %v3332_v48 = vld [vmem:[%s5313_s1 + $0x114] sm:$0xf]  ;;  %v2350_v49 = vld [vmem:[%s5313_s1 + $0x118] sm:$0xf0] }
  0x75   :  { %1799 = vmatpush.bf16.msrb.mxu1 %v3069_v11  ;;  %v2273_v11 = vor.u32 %v3312_v60, %v2270_v61  ;;  %v3338_v60 = vld [vmem:[%s5313_s1 + $0x144] sm:$0xf]  ;;  %v2374_v61 = vld [vmem:[%s5313_s1 + $0x148] sm:$0xf0] }
  0x76   :  { %1812 = vmatpush.bf16.msrb.mxu2 %v3133_v12  ;;  %v313_v12 = vunpack.c.h.b16 %v27_v59  ;;  %v2310_v59 = vld [vmem:[%s5313_s1 + $0xc8] sm:$0xf0]  ;;  %v2377_v2 = vor.u32 %v3338_v60, %v2374_v61 }
  0x77   :  { %1825 = vmatpush.bf16.msrb.mxu3 %v3197_v16  ;;  %v2262_v16 = vld [vmem:[%s5313_s1 + $0x68] sm:$0xf0]  ;;  %v2313_v1 = vor.u32 %v3322_v57, %v2310_v59  ;;  %v3314_v57 = vld [vmem:[%s5313_s1 + $0x84] sm:$0xf] }
  0x78   :  { %1787 = vmatpush.bf16.msrb.mxu0 %v2997_v27  ;;  %v2390_v27 = vld [vmem:[%s5313_s1 + $0x168] sm:$0xf0]  ;;  %v4483_v35 = vpack.c.b16 %v313_v12, %v313_v12  ;;  %v3330_v59 = vld [vmem:[%s5313_s1 + $0x104] sm:$0xf] }
  0x79   :  { %1800 = vmatpush.bf16.msrb.mxu1 %v3061_v28  ;;  %v4473_v28 = vpack.c.b16 %v312_v8, %v312_v8  ;;  %v2393_v39 = vor.u32 %v3342_v26, %v2390_v27  ;;  %v3336_v8 = vld [vmem:[%s5313_s1 + $0x134] sm:$0xf]  ;;  %v3334_v26 = vld [vmem:[%s5313_s1 + $0x124] sm:$0xf]  ;;  %v2358_v27 = vld [vmem:[%s5313_s1 + $0x128] sm:$0xf0] }
  0x7a   :  { %1813 = vmatpush.bf16.msrb.mxu2 %v3125_v31  ;;  %v4475_v31 = vpack.c.b16 %v311_v9, %v311_v9  ;;  %v2366_v9 = vld [vmem:[%s5313_s1 + $0x138] sm:$0xf0]  ;;  %v2342_v61 = vld [vmem:[%s5313_s1 + $0x108] sm:$0xf0] }
  0x7b   :  { %1826 = vmatpush.bf16.msrb.mxu3 %v3189_v36  ;;  %v2265_v36 = vor.u32 %v3310_v15, %v2262_v16  ;;  %v3302_v15 = vld [vmem:[%s5313_s1 + $0x24] sm:$0xf]  ;;  %v2230_v16 = vld [vmem:[%s5313_s1 + $0x28] sm:$0xf0] }
  0x7c   :  { %1788 = vmatpush.bf16.msrb.mxu0 %v2989_v47  ;;  %v2318_v47 = vld [vmem:[%s5313_s1 + $0xd8] sm:$0xf0] }
  0x7d   :  { %1801 = vmatpush.bf16.msrb.mxu1 %v3053_v51  ;;  %v2446_v51 = vld [vmem:[%s5313_s1 + $0x1d8] sm:$0xf0]  ;;  %v2321_v53 = vor.u32 %v3324_v45, %v2318_v47  ;;  %v3316_v45 = vld [vmem:[%s5313_s1 + $0x94] sm:$0xf] }
  0x7e   :  { %1814 = vmatpush.bf16.msrb.mxu2 %v3117_v52  ;;  %v2257_v52 = vor.u32 %v3308_v40, %v2254_v43  ;;  %v2449_v58 = vor.u32 %v3356_v50, %v2446_v51  ;;  %v3300_v40 = vld [vmem:[%s5313_s1 + $0x14] sm:$0xf]  ;;  %v2222_v43 = vld [vmem:[%s5313_s1 + $0x18] sm:$0xf0] }
  0x7f   :  { %1827 = vmatpush.bf16.msrb.mxu3 %v3181_v56  ;;  %v2246_v56 = vld [vmem:[%s5313_s1 + $0x48] sm:$0xf0]  ;;  %v2286_v47 = vld [vmem:[%s5313_s1 + $0x98] sm:$0xf0]  ;;  %v3348_v50 = vld [vmem:[%s5313_s1 + $0x194] sm:$0xf] }
  0x80   :  { %1789 = vmatpush.bf16.msrb.mxu0 %v2981_v63  ;;  %v2438_v63 = vld [vmem:[%s5313_s1 + $0x1c8] sm:$0xf0]  ;;  %v2249_v0 = vor.u32 %v3306_v55, %v2246_v56  ;;  %v2414_v51 = vld [vmem:[%s5313_s1 + $0x198] sm:$0xf0]  ;;  %v2289_v55 = vor.u32 %v3316_v45, %v2286_v47  ;;  %v2353_v56 = vor.u32 %v3332_v48, %v2350_v49  ;;  %v3388_v45 = vld [vmem:[%s5313_s1 + $0x2d4] sm:$0xf] }
  0x81   :  { %1802 = vmatpush.bf16.msrb.mxu1 %v3045_v4  ;;  %v2238_v4 = vld [vmem:[%s5313_s1 + $0x38] sm:$0xf0]  ;;  %v2441_v6 = vor.u32 %v3354_v62, %v2438_v63  ;;  %v2417_v60 = vor.u32 %v3348_v50, %v2414_v51  ;;  %v3346_v62 = vld [vmem:[%s5313_s1 + $0x184] sm:$0xf]  ;;  %v2406_v63 = vld [vmem:[%s5313_s1 + $0x188] sm:$0xf0] }
  0x82   :  { %1815 = vmatpush.bf16.msrb.mxu2 %v3109_v5  ;;  %v3320_v5 = vld [vmem:[%s5313_s1 + $0xb4] sm:$0xf]  ;;  %v2241_v12 = vor.u32 %v3304_v3, %v2238_v4  ;;  %v2590_v4 = vld [vmem:[%s5313_s1 + $0x2f8] sm:$0xf0] }
  0x83   :  { %1828 = vmatpush.bf16.msrb.mxu3 %v3173_v10  ;;  %1790 = vmatmul.bf16.vlgmr.msrb.gmra.mxu0 %v4462_v23  ;;  %v3352_v10 = vld [vmem:[%s5313_s1 + $0x1b4] sm:$0xf]  ;;  %v2574_v47 = vld [vmem:[%s5313_s1 + $0x2d8] sm:$0xf0] }
  0x84   :  { %1834 = vmatpush.bf16.msra.mxu0 %v2273_v11  ;;  %1803 = vmatmul.bf16.vlgmr.msrb.gmra.mxu1 %v4475_v31  ;;  %v2430_v11 = vld [vmem:[%s5313_s1 + $0x1b8] sm:$0xf0]  ;;  %v3404_v48 = vld [vmem:[%s5313_s1 + $0x354] sm:$0xf] }
  0x85   :  { %1847 = vmatpush.bf16.msra.mxu1 %v2337_v13  ;;  %1816 = vmatmul.bf16.vlgmr.msrb.gmra.mxu2 %v4473_v28  ;;  %v2305_v13 = vor.u32 %v3320_v5, %v2302_v7  ;;  %v3408_v5 = vld [vmem:[%s5313_s1 + $0x374] sm:$0xf]  ;;  %v2638_v49 = vld [vmem:[%s5313_s1 + $0x358] sm:$0xf0] }
  0x86   :  { %1860 = vmatpush.bf16.msra.mxu2 %v2401_v14  ;;  %1829 = vmatmul.bf16.vlgmr.msrb.gmra.mxu3 %v4483_v35  ;;  %v2369_v14 = vor.u32 %v3336_v8, %v2366_v9  ;;  %v2345_v8 = vor.u32 %v3330_v59, %v2342_v61  ;;  %v3424_v9 = vld [vmem:[%s5313_s1 + $0x3f4] sm:$0xf]  ;;  %v2702_v51 = vld [vmem:[%s5313_s1 + $0x3d8] sm:$0xf0]  ;;  %v2694_v59 = vld [vmem:[%s5313_s1 + $0x3c8] sm:$0xf0] }
  0x87   :  { %1873 = vmatpush.bf16.msra.mxu3 %v2465_v21  ;;  %v2433_v21 = vor.u32 %v3352_v10, %v2430_v11  ;;  %v2718_v10 = vld [vmem:[%s5313_s1 + $0x3f8] sm:$0xf0]  ;;  %v2409_v11 = vor.u32 %v3346_v62, %v2406_v63  ;;  %v3420_v50 = vld [vmem:[%s5313_s1 + $0x3d4] sm:$0xf] }
  0x88   :  { %1835 = vmatpush.bf16.msra.mxu0 %v2265_v36  ;;  %v2233_v36 = vor.u32 %v3302_v15, %v2230_v16  ;;  %v3374_v15 = vld [vmem:[%s5313_s1 + $0x264] sm:$0xf]  ;;  %v2518_v16 = vld [vmem:[%s5313_s1 + $0x268] sm:$0xf0]  ;;  %v3368_v61 = vld [vmem:[%s5313_s1 + $0x234] sm:$0xf] }
  0x89   :  { %1848 = vmatpush.bf16.msra.mxu1 %v2329_v37  ;;  %v2297_v37 = vor.u32 %v3318_v17, %v2294_v24  ;;  %v3390_v17 = vld [vmem:[%s5313_s1 + $0x2e4] sm:$0xf]  ;;  %v2582_v24 = vld [vmem:[%s5313_s1 + $0x2e8] sm:$0xf0] }
  0x8a   :  { %1861 = vmatpush.bf16.msra.mxu2 %v2393_v39  ;;  %v2361_v39 = vor.u32 %v3334_v26, %v2358_v27  ;;  %v3406_v26 = vld [vmem:[%s5313_s1 + $0x364] sm:$0xf]  ;;  %v2646_v27 = vld [vmem:[%s5313_s1 + $0x368] sm:$0xf0] }
  0x8b   :  { %1874 = vmatpush.bf16.msra.mxu3 %v2457_v46  ;;  %v2425_v46 = vor.u32 %v3350_v32, %v2422_v34  ;;  %v3422_v32 = vld [vmem:[%s5313_s1 + $0x3e4] sm:$0xf]  ;;  %v2710_v34 = vld [vmem:[%s5313_s1 + $0x3e8] sm:$0xf0] }
  0x8c   :  { %1836 = vmatpush.bf16.msra.mxu0 %v2257_v52  ;;  %v2225_v52 = vor.u32 %v3300_v40, %v2222_v43  ;;  %v3372_v40 = vld [vmem:[%s5313_s1 + $0x254] sm:$0xf]  ;;  %v2510_v43 = vld [vmem:[%s5313_s1 + $0x258] sm:$0xf0] }
  0x8d   :  { %1849 = vmatpush.bf16.msra.mxu1 %v2321_v53  ;;  %v3298_v53 = vld [vmem:[%s5313_s1 + $0x4] sm:$0xf] }
  0x8e   :  { %1862 = vmatpush.bf16.msra.mxu2 %v2385_v54  ;;  %v2214_v54 = vld [vmem:[%s5313_s1 + $0x8] sm:$0xf0] }
  0x8f   :  { %1875 = vmatpush.bf16.msra.mxu3 %v2449_v58  ;;  %v2278_v58 = vld [vmem:[%s5313_s1 + $0x88] sm:$0xf0]  ;;  %v2217_v3 = vor.u32 %v3298_v53, %v2214_v54  ;;  %v2577_v53 = vor.u32 %v3388_v45, %v2574_v47  ;;  %v3370_v54 = vld [vmem:[%s5313_s1 + $0x244] sm:$0xf] }
  0x90   :  { %1837 = vmatpush.bf16.msra.mxu0 %v2249_v0  ;;  %v3376_v0 = vld [vmem:[%s5313_s1 + $0x274] sm:$0xf]  ;;  %v2281_v7 = vor.u32 %v3314_v57, %v2278_v58  ;;  %v2630_v57 = vld [vmem:[%s5313_s1 + $0x348] sm:$0xf0]  ;;  %v3418_v58 = vld [vmem:[%s5313_s1 + $0x3c4] sm:$0xf] }
  0x91   :  { %1850 = vmatpush.bf16.msra.mxu1 %v2313_v1  ;;  %v2526_v1 = vld [vmem:[%s5313_s1 + $0x278] sm:$0xf0] }
  0x92   :  { %1863 = vmatpush.bf16.msra.mxu2 %v2377_v2  ;;  %v3392_v2 = vld [vmem:[%s5313_s1 + $0x2f4] sm:$0xf] }
  0x93   :  { %1876 = vmatpush.bf16.msra.mxu3 %v2441_v6  ;;  %v2654_v6 = vld [vmem:[%s5313_s1 + $0x378] sm:$0xf0] }
  0x94   :  { %1838 = vmatpush.bf16.msra.mxu0 %v2241_v12  ;;  %v2529_v12 = vor.u32 %v3376_v0, %v2526_v1  ;;  %v2494_v0 = vld [vmem:[%s5313_s1 + $0x238] sm:$0xf0]  ;;  %v3384_v1 = vld [vmem:[%s5313_s1 + $0x2b4] sm:$0xf] }
  0x95   :  { %1851 = vmatpush.bf16.msra.mxu1 %v2305_v13  ;;  %v2593_v13 = vor.u32 %v3392_v2, %v2590_v4  ;;  %v2558_v2 = vld [vmem:[%s5313_s1 + $0x2b8] sm:$0xf0]  ;;  %v3400_v4 = vld [vmem:[%s5313_s1 + $0x334] sm:$0xf] }
  0x96   :  { %1864 = vmatpush.bf16.msra.mxu2 %v2369_v14  ;;  %v2657_v14 = vor.u32 %v3408_v5, %v2654_v6  ;;  %v2622_v5 = vld [vmem:[%s5313_s1 + $0x338] sm:$0xf0]  ;;  %v4754_v6 = vld [vmem:[%s5315_s2] sm:$0x3] }
  0x97   :  { %1877 = vmatpush.bf16.msra.mxu3 %v2433_v21  ;;  %v2721_v21 = vor.u32 %v3424_v9, %v2718_v10  ;;  %v2497_v9 = vor.u32 %v3368_v61, %v2494_v0  ;;  %v3366_v10 = vld [vmem:[%s5313_s1 + $0x224] sm:$0xf] }
  0x98   :  { %1839 = vmatpush.bf16.msra.mxu0 %v2233_v36  ;;  %v2521_v36 = vor.u32 %v3374_v15, %v2518_v16  ;;  %v286_v15 = vperm.slane %v4754_v6, 0  ;;  %v3410_v61 = vld [vmem:[%s5313_s1 + $0x384] sm:$0xf] }
  0x99   :  { %1852 = vmatpush.bf16.msra.mxu1 %v2297_v37  ;;  %v2585_v37 = vor.u32 %v3390_v17, %v2582_v24  ;;  %v2550_v17 = vld [vmem:[%s5313_s1 + $0x2a8] sm:$0xf0] }
  0x9a   :  { %1865 = vmatpush.bf16.msra.mxu2 %v2361_v39  ;;  %v2649_v39 = vor.u32 %v3406_v26, %v2646_v27  ;;  %v2614_v24 = vld [vmem:[%s5313_s1 + $0x328] sm:$0xf0]  ;;  %v3414_v26 = vld [vmem:[%s5313_s1 + $0x3a4] sm:$0xf] }
  0x9b   :  { %1878 = vmatpush.bf16.msra.mxu3 %v2425_v46  ;;  %v2713_v46 = vor.u32 %v3422_v32, %v2710_v34  ;;  %v2678_v27 = vld [vmem:[%s5313_s1 + $0x3a8] sm:$0xf0] }
  0x9c   :  { %1840 = vmatpush.bf16.msra.mxu0 %v2225_v52  ;;  %v2513_v52 = vor.u32 %v3372_v40, %v2510_v43  ;;  %v2478_v40 = vld [vmem:[%s5313_s1 + $0x218] sm:$0xf0]  ;;  %v3380_v43 = vld [vmem:[%s5313_s1 + $0x294] sm:$0xf]  ;;  %v2681_v47 = vor.u32 %v3414_v26, %v2678_v27  ;;  %v3438_v26 = vld [vmem:[%s5313_s1 + $0x464] sm:$0xf] }
  0x9d   :  { %1853 = vmatpush.bf16.msra.mxu1 %v2289_v55  ;;  %v2502_v55 = vld [vmem:[%s5313_s1 + $0x248] sm:$0xf0] }
  0x9e   :  { %1866 = vmatpush.bf16.msra.mxu2 %v2353_v56  ;;  %v3402_v56 = vld [vmem:[%s5313_s1 + $0x344] sm:$0xf]  ;;  %v2774_v27 = vld [vmem:[%s5313_s1 + $0x468] sm:$0xf0] }
  0x9f   :  { %1879 = vmatpush.bf16.msra.mxu3 %v2417_v60  ;;  %v2505_v60 = vor.u32 %v3370_v54, %v2502_v55  ;;  %v2633_v63 = vor.u32 %v3402_v56, %v2630_v57  ;;  %v3362_v54 = vld [vmem:[%s5313_s1 + $0x204] sm:$0xf]  ;;  %v2470_v55 = vld [vmem:[%s5313_s1 + $0x208] sm:$0xf0] }
  0xa0   :  { %1841 = vmatpush.bf16.msra.mxu0 %v2217_v3  ;;  %v2697_v3 = vor.u32 %v3418_v58, %v2694_v59  ;;  %v1635_v34 = vpop.f32.mrf.mxu0  ;;  %v2534_v56 = vld [vmem:[%s5313_s1 + $0x288] sm:$0xf0]  ;;  %v3394_v57 = vld [vmem:[%s5313_s1 + $0x304] sm:$0xf] }
  0xa1   :  { %1854 = vmatpush.bf16.msra.mxu1 %v2281_v7  ;;  %v3416_v7 = vld [vmem:[%s5313_s1 + $0x3b4] sm:$0xf]  ;;  %v1636_v45 = vadd.f32 %v1635_v34, %v286_v15 }
  0xa2   :  { %1867 = vmatpush.bf16.msra.mxu2 %v2345_v8  ;;  %v2686_v8 = vld [vmem:[%s5313_s1 + $0x3b8] sm:$0xf0] }
  0xa3   :  { %1880 = vmatpush.bf16.msra.mxu3 %v2409_v11  ;;  %1842 = vmatmul.bf16.vlgmr.msra.gmra.mxu0 %v3897_v19  ;;  %v3386_v19 = vld [vmem:[%s5313_s1 + $0x2c4] sm:$0xf]  ;;  %v2561_v11 = vor.u32 %v3384_v1, %v2558_v2  ;;  %v2689_v16 = vor.u32 %v3416_v7, %v2686_v8  ;;  %v3440_v1 = vld [vmem:[%s5313_s1 + $0x474] sm:$0xf]  ;;  %v2782_v2 = vld [vmem:[%s5313_s1 + $0x478] sm:$0xf0] }
  0xa4   :  { %1886 = vmatpush.bf16.msrb.mxu0 %v2529_v12  ;;  %1855 = vmatmul.bf16.vlgmr.msra.gmra.mxu1 %v3901_v22  ;;  %v2566_v22 = vld [vmem:[%s5313_s1 + $0x2c8] sm:$0xf0]  ;;  %v2625_v12 = vor.u32 %v3400_v4, %v2622_v5  ;;  %v2473_v4 = vor.u32 %v3362_v54, %v2470_v55  ;;  %v2846_v5 = vld [vmem:[%s5313_s1 + $0x4f8] sm:$0xf0]  ;;  %v3472_v7 = vld [vmem:[%s5313_s1 + $0x574] sm:$0xf] }
  0xa5   :  { %1899 = vmatpush.bf16.msrb.mxu1 %v2593_v13  ;;  %1868 = vmatmul.bf16.vlgmr.msra.gmra.mxu2 %v3895_v18  ;;  %v2641_v18 = vor.u32 %v3404_v48, %v2638_v49  ;;  %v2569_v62 = vor.u32 %v3386_v19, %v2566_v22  ;;  %v2486_v13 = vld [vmem:[%s5313_s1 + $0x228] sm:$0xf0]  ;;  %v2542_v48 = vld [vmem:[%s5313_s1 + $0x298] sm:$0xf0]  ;;  %v3396_v49 = vld [vmem:[%s5313_s1 + $0x314] sm:$0xf] }
  0xa6   :  { %1912 = vmatpush.bf16.msrb.mxu2 %v2657_v14  ;;  %1881 = vmatmul.bf16.vlgmr.msra.gmra.mxu3 %v3899_v20  ;;  %v2705_v20 = vor.u32 %v3420_v50, %v2702_v51  ;;  %v3382_v14 = vld [vmem:[%s5313_s1 + $0x2a4] sm:$0xf]  ;;  %v2489_v32 = vor.u32 %v3366_v10, %v2486_v13  ;;  %v2606_v50 = vld [vmem:[%s5313_s1 + $0x318] sm:$0xf0]  ;;  %v3412_v51 = vld [vmem:[%s5313_s1 + $0x394] sm:$0xf]  ;;  %v2545_v19 = vor.u32 %v3380_v43, %v2542_v48 }
  0xa7   :  { %1925 = vmatpush.bf16.msrb.mxu3 %v2721_v21  ;;  %v3398_v21 = vld [vmem:[%s5313_s1 + $0x324] sm:$0xf]  ;;  %v2910_v8 = vld [vmem:[%s5313_s1 + $0x578] sm:$0xf0]  ;;  %v3488_v13 = vld [vmem:[%s5313_s1 + $0x5f4] sm:$0xf] }
  0xa8   :  { %1887 = vmatpush.bf16.msrb.mxu0 %v2521_v36  ;;  %v2553_v36 = vor.u32 %v3382_v14, %v2550_v17  ;;  %v3378_v22 = vld [vmem:[%s5313_s1 + $0x284] sm:$0xf]  ;;  %v1661_v58 = vpop.f32.mrf.mxu2  ;;  %v1637_v10 = vpop.f32.mrf.mxu0  ;;  %v2974_v14 = vld [vmem:[%s5313_s1 + $0x5f8] sm:$0xf0]  ;;  %v2785_v17 = vor.u32 %v3440_v1, %v2782_v2  ;;  %v2966_v43 = vld [vmem:[%s5313_s1 + $0x5e8] sm:$0xf0] }
  0xa9   :  { %1900 = vmatpush.bf16.msrb.mxu1 %v2585_v37  ;;  %v2617_v37 = vor.u32 %v3398_v21, %v2614_v24  ;;  %v1674_v0 = vpop.f32.mrf.mxu3  ;;  %v2913_v24 = vor.u32 %v3472_v7, %v2910_v8  ;;  %v2977_v34 = vor.u32 %v3488_v13, %v2974_v14  ;;  %v3468_v54 = vld [vmem:[%s5313_s1 + $0x554] sm:$0xf]  ;;  %v2894_v55 = vld [vmem:[%s5313_s1 + $0x558] sm:$0xf0] }
  0xaa   :  { %1913 = vmatpush.bf16.msrb.mxu2 %v2649_v39  ;;  %v3364_v39 = vld [vmem:[%s5313_s1 + $0x214] sm:$0xf]  ;;  %v2814_v10 = vld [vmem:[%s5313_s1 + $0x4b8] sm:$0xf0] }
  0xab   :  { %1926 = vmatpush.bf16.msrb.mxu3 %v2713_v46  ;;  %v1648_v46 = vpop.f32.mrf.mxu1  ;;  %v3480_v13 = vld [vmem:[%s5313_s1 + $0x5b4] sm:$0xf]  ;;  %v2942_v14 = vld [vmem:[%s5313_s1 + $0x5b8] sm:$0xf0] }
  0xac   :  { %1888 = vmatpush.bf16.msrb.mxu0 %v2513_v52  ;;  %v2670_v52 = vld [vmem:[%s5313_s1 + $0x398] sm:$0xf0] }
  0xad   :  { %1901 = vmatpush.bf16.msrb.mxu1 %v2577_v53  ;;  %v1649_v53 = vadd.f32 %v1648_v46, %v1636_v45  ;;  %v2673_v59 = vor.u32 %v3412_v51, %v2670_v52  ;;  %v2777_v46 = vor.u32 %v3438_v26, %v2774_v27  ;;  %v2766_v51 = vld [vmem:[%s5313_s1 + $0x458] sm:$0xf0]  ;;  %v3452_v52 = vld [vmem:[%s5313_s1 + $0x4d4] sm:$0xf]  ;;  %v3446_v26 = vld [vmem:[%s5313_s1 + $0x4a4] sm:$0xf] }
  0xae   :  { %1914 = vmatpush.bf16.msrb.mxu2 %v2641_v18  ;;  %v2481_v18 = vor.u32 %v3364_v39, %v2478_v40  ;;  %v2902_v39 = vld [vmem:[%s5313_s1 + $0x568] sm:$0xf0]  ;;  %v3486_v40 = vld [vmem:[%s5313_s1 + $0x5e4] sm:$0xf] }
  0xaf   :  { %1927 = vmatpush.bf16.msrb.mxu3 %v2705_v20  ;;  %v2609_v20 = vor.u32 %v3396_v49, %v2606_v50  ;;  %v3436_v50 = vld [vmem:[%s5313_s1 + $0x454] sm:$0xf] }
  0xb0   :  { %1889 = vmatpush.bf16.msrb.mxu0 %v2505_v60  ;;  %v2598_v60 = vld [vmem:[%s5313_s1 + $0x308] sm:$0xf0]  ;;  %v1663_v45 = vpop.f32.mrf.mxu2 }
  0xb1   :  { %1902 = vmatpush.bf16.msrb.mxu1 %v2569_v62  ;;  %v2662_v62 = vld [vmem:[%s5313_s1 + $0x388] sm:$0xf0] }
  0xb2   :  { %1915 = vmatpush.bf16.msrb.mxu2 %v2633_v63  ;;  %v1662_v63 = vadd.f32 %v1661_v58, %v1649_v53  ;;  %v2969_v53 = vor.u32 %v3486_v40, %v2966_v43  ;;  %v2758_v58 = vld [vmem:[%s5313_s1 + $0x448] sm:$0xf0]  ;;  %v3478_v40 = vld [vmem:[%s5313_s1 + $0x5a4] sm:$0xf] }
  0xb3   :  { %1928 = vmatpush.bf16.msrb.mxu3 %v2697_v3  ;;  %v3456_v3 = vld [vmem:[%s5313_s1 + $0x4f4] sm:$0xf]  ;;  %v1650_v15 = vpop.f32.mrf.mxu1  ;;  %v2934_v43 = vld [vmem:[%s5313_s1 + $0x5a8] sm:$0xf0] }
  0xb4   :  { %1890 = vmatpush.bf16.msrb.mxu0 %v2497_v9  ;;  %v4853_v9 = vadd.f32 %v1674_v0, %v1662_v63  ;;  %v2849_v21 = vor.u32 %v3456_v3, %v2846_v5  ;;  %v3432_v3 = vld [vmem:[%s5313_s1 + $0x434] sm:$0xf] }
  0xb5   :  { %1903 = vmatpush.bf16.msrb.mxu1 %v2561_v11  ;;  %v2537_v11 = vor.u32 %v3378_v22, %v2534_v56  ;;  %v2897_v56 = vor.u32 %v3468_v54, %v2894_v55  ;;  %v3448_v5 = vld [vmem:[%s5313_s1 + $0x4b4] sm:$0xf]  ;;  %v2862_v55 = vld [vmem:[%s5313_s1 + $0x518] sm:$0xf0] }
  0xb6   :  { %1916 = vmatpush.bf16.msrb.mxu2 %v2625_v12  ;;  %v2601_v12 = vor.u32 %v3394_v57, %v2598_v60  ;;  %v3434_v57 = vld [vmem:[%s5313_s1 + $0x444] sm:$0xf]  ;;  %v2886_v60 = vld [vmem:[%s5313_s1 + $0x548] sm:$0xf0]  ;;  %v3460_v54 = vld [vmem:[%s5313_s1 + $0x514] sm:$0xf] }
  0xb7   :  { %1929 = vmatpush.bf16.msrb.mxu3 %v2689_v16  ;;  %v2665_v16 = vor.u32 %v3410_v61, %v2662_v62  ;;  %v3482_v61 = vld [vmem:[%s5313_s1 + $0x5c4] sm:$0xf]  ;;  %v2950_v62 = vld [vmem:[%s5313_s1 + $0x5c8] sm:$0xf0]  ;;  %v2761_v63 = vor.u32 %v3434_v57, %v2758_v58  ;;  %v2865_v58 = vor.u32 %v3460_v54, %v2862_v55  ;;  %v3532_v54 = vld [vmem:[%s5313_s1 + $0x754] sm:$0xf] }
  0xb8   :  { %1891 = vmatpush.bf16.msrb.mxu0 %v2489_v32  ;;  %v3454_v32 = vld [vmem:[%s5313_s1 + $0x4e4] sm:$0xf]  ;;  %v2953_v8 = vor.u32 %v3482_v61, %v2950_v62  ;;  %v2854_v61 = vld [vmem:[%s5313_s1 + $0x508] sm:$0xf0]  ;;  %v3150_v55 = vld [vmem:[%s5313_s1 + $0x758] sm:$0xf0] }
  0xb9   :  { %1904 = vmatpush.bf16.msrb.mxu1 %v2553_v36  ;;  %v2838_v36 = vld [vmem:[%s5313_s1 + $0x4e8] sm:$0xf0]  ;;  %v3474_v62 = vld [vmem:[%s5313_s1 + $0x584] sm:$0xf] }
  0xba   :  { %1917 = vmatpush.bf16.msrb.mxu2 %v2617_v37  ;;  %v3470_v37 = vld [vmem:[%s5313_s1 + $0x564] sm:$0xf]  ;;  %v2841_v48 = vor.u32 %v3454_v32, %v2838_v36  ;;  %v2945_v32 = vor.u32 %v3480_v13, %v2942_v14  ;;  %v3552_v14 = vld [vmem:[%s5313_s1 + $0x7f4] sm:$0xf] }
  0xbb   :  { %1930 = vmatpush.bf16.msrb.mxu3 %v2681_v47  ;;  %v1676_v47 = vpop.f32.mrf.mxu3  ;;  %v2905_v49 = vor.u32 %v3470_v37, %v2902_v39  ;;  %v3462_v36 = vld [vmem:[%s5313_s1 + $0x524] sm:$0xf]  ;;  %v2870_v37 = vld [vmem:[%s5313_s1 + $0x528] sm:$0xf0] }
  0xbc   :  { %1892 = vmatpush.bf16.msrb.mxu0 %v2481_v18  ;;  %v2830_v18 = vld [vmem:[%s5313_s1 + $0x4d8] sm:$0xf0] }
  0xbd   :  { %1905 = vmatpush.bf16.msrb.mxu1 %v2545_v19  ;;  %v3484_v19 = vld [vmem:[%s5313_s1 + $0x5d4] sm:$0xf]  ;;  %v2833_v22 = vor.u32 %v3452_v52, %v2830_v18  ;;  %v2798_v18 = vld [vmem:[%s5313_s1 + $0x498] sm:$0xf0] }
  0xbe   :  { %1918 = vmatpush.bf16.msrb.mxu2 %v2609_v20  ;;  %v2769_v20 = vor.u32 %v3436_v50, %v2766_v51  ;;  %v2734_v50 = vld [vmem:[%s5313_s1 + $0x418] sm:$0xf0]  ;;  %v3444_v51 = vld [vmem:[%s5313_s1 + $0x494] sm:$0xf] }
  0xbf   :  { %1931 = vmatpush.bf16.msrb.mxu3 %v2673_v59  ;;  %v3466_v59 = vld [vmem:[%s5313_s1 + $0x544] sm:$0xf]  ;;  %v2801_v57 = vor.u32 %v3444_v51, %v2798_v18  ;;  %v3022_v51 = vld [vmem:[%s5313_s1 + $0x658] sm:$0xf0] }
  0xc0   :  { %1893 = vmatpush.bf16.msrb.mxu0 %v2473_v4  ;;  %v4937_v0 = vpop.f32.mrf.mxu0  ;;  %v2889_v2 = vor.u32 %v3466_v59, %v2886_v60  ;;  %v2750_v4 = vld [vmem:[%s5313_s1 + $0x438] sm:$0xf0] }
  0xc1   :  { %1906 = vmatpush.bf16.msrb.mxu1 %v2537_v11  ;;  %v4948_v7 = vpop.f32.mrf.mxu1  ;;  %v3464_v11 = vld [vmem:[%s5313_s1 + $0x534] sm:$0xf]  ;;  %v2753_v15 = vor.u32 %v3432_v3, %v2750_v4  ;;  %v3038_v3 = vld [vmem:[%s5313_s1 + $0x678] sm:$0xf0] }
  0xc2   :  { %1919 = vmatpush.bf16.msrb.mxu2 %v2601_v12  ;;  %v2878_v12 = vld [vmem:[%s5313_s1 + $0x538] sm:$0xf0]  ;;  %v3520_v4 = vld [vmem:[%s5313_s1 + $0x6f4] sm:$0xf] }
  0xc3   :  { %1932 = vmatpush.bf16.msrb.mxu3 %v2665_v16  ;;  %1894 = vmatmul.bf16.vlgmr.msrb.gmra.mxu0 %v4059_v41  ;;  %v3450_v41 = vld [vmem:[%s5313_s1 + $0x4c4] sm:$0xf]  ;;  %v2817_v16 = vor.u32 %v3448_v5, %v2814_v10  ;;  %v3536_v10 = vld [vmem:[%s5313_s1 + $0x774] sm:$0xf]  ;;  %v3086_v18 = vld [vmem:[%s5313_s1 + $0x6d8] sm:$0xf0] }
  0xc4   :  { %1938 = vmatpush.bf16.msra.mxu0 %v2785_v17  ;;  %1907 = vmatmul.bf16.vlgmr.msrb.gmra.mxu1 %v4063_v44  ;;  %v2822_v44 = vld [vmem:[%s5313_s1 + $0x4c8] sm:$0xf0]  ;;  %v2881_v17 = vor.u32 %v3464_v11, %v2878_v12  ;;  %v3166_v11 = vld [vmem:[%s5313_s1 + $0x778] sm:$0xf0] }
  0xc5   :  { %1951 = vmatpush.bf16.msra.mxu1 %v2849_v21  ;;  %1920 = vmatmul.bf16.vlgmr.msrb.gmra.mxu2 %v4051_v38  ;;  %v2958_v38 = vld [vmem:[%s5313_s1 + $0x5d8] sm:$0xf0]  ;;  %v2825_v1 = vor.u32 %v3450_v41, %v2822_v44  ;;  %v3430_v21 = vld [vmem:[%s5313_s1 + $0x424] sm:$0xf] }
  0xc6   :  { %1964 = vmatpush.bf16.msra.mxu2 %v2913_v24  ;;  %1933 = vmatmul.bf16.vlgmr.msrb.gmra.mxu3 %v4061_v42  ;;  %v2961_v42 = vor.u32 %v3484_v19, %v2958_v38  ;;  %v2742_v24 = vld [vmem:[%s5313_s1 + $0x428] sm:$0xf0]  ;;  %v3476_v19 = vld [vmem:[%s5313_s1 + $0x594] sm:$0xf]  ;;  %v2926_v38 = vld [vmem:[%s5313_s1 + $0x598] sm:$0xf0] }
  0xc7   :  { %1977 = vmatpush.bf16.msra.mxu3 %v2977_v34  ;;  %v2806_v34 = vld [vmem:[%s5313_s1 + $0x4a8] sm:$0xf0]  ;;  %v2745_v45 = vor.u32 %v3430_v21, %v2742_v24  ;;  %v3442_v41 = vld [vmem:[%s5313_s1 + $0x484] sm:$0xf]  ;;  %v2929_v60 = vor.u32 %v3476_v19, %v2926_v38  ;;  %v3169_v24 = vor.u32 %v3536_v10, %v3166_v11  ;;  %v3214_v19 = vld [vmem:[%s5313_s1 + $0x7d8] sm:$0xf0] }
  0xc8   :  { %1939 = vmatpush.bf16.msra.mxu0 %v2777_v46  ;;  %v4974_v27 = vpop.f32.mrf.mxu2  ;;  %v1689_v46 = vpop.f32.mrf.mxu0  ;;  %v2809_v47 = vor.u32 %v3446_v26, %v2806_v34  ;;  %v3458_v44 = vld [vmem:[%s5313_s1 + $0x504] sm:$0xf]  ;;  %v3134_v10 = vld [vmem:[%s5313_s1 + $0x738] sm:$0xf0]  ;;  %v3544_v11 = vld [vmem:[%s5313_s1 + $0x7b4] sm:$0xf] }
  0xc9   :  { %1952 = vmatpush.bf16.msra.mxu1 %v2841_v48  ;;  %v4985_v39 = vpop.f32.mrf.mxu3  ;;  %v2873_v48 = vor.u32 %v3462_v36, %v2870_v37  ;;  %v1702_v52 = vpop.f32.mrf.mxu1  ;;  %v2857_v13 = vor.u32 %v3458_v44, %v2854_v61  ;;  %v3502_v26 = vld [vmem:[%s5313_s1 + $0x664] sm:$0xf]  ;;  %v3094_v37 = vld [vmem:[%s5313_s1 + $0x6e8] sm:$0xf0] }
  0xca   :  { %1965 = vmatpush.bf16.msra.mxu2 %v2905_v49  ;;  %v3428_v49 = vld [vmem:[%s5313_s1 + $0x414] sm:$0xf]  ;;  %v3518_v34 = vld [vmem:[%s5313_s1 + $0x6e4] sm:$0xf]  ;;  %v3222_v46 = vld [vmem:[%s5313_s1 + $0x7e8] sm:$0xf0] }
  0xcb   :  { %1978 = vmatpush.bf16.msra.mxu3 %v2969_v53  ;;  %v2937_v53 = vor.u32 %v3478_v40, %v2934_v43  ;;  %v3534_v40 = vld [vmem:[%s5313_s1 + $0x764] sm:$0xf]  ;;  %v3158_v43 = vld [vmem:[%s5313_s1 + $0x768] sm:$0xf0]  ;;  %v3516_v52 = vld [vmem:[%s5313_s1 + $0x6d4] sm:$0xf] }
  0xcc   :  { %1940 = vmatpush.bf16.msra.mxu0 %v2769_v20  ;;  %v2737_v20 = vor.u32 %v3428_v49, %v2734_v50  ;;  %v3161_v49 = vor.u32 %v3534_v40, %v3158_v43  ;;  %v3500_v50 = vld [vmem:[%s5313_s1 + $0x654] sm:$0xf]  ;;  %v3546_v44 = vld [vmem:[%s5313_s1 + $0x7c4] sm:$0xf] }
  0xcd   :  { %1953 = vmatpush.bf16.msra.mxu1 %v2833_v22  ;;  %v3426_v22 = vld [vmem:[%s5313_s1 + $0x404] sm:$0xf]  ;;  %v3025_v38 = vor.u32 %v3500_v50, %v3022_v51  ;;  %v3508_v51 = vld [vmem:[%s5313_s1 + $0x694] sm:$0xf] }
  0xce   :  { %1966 = vmatpush.bf16.msra.mxu2 %v2897_v56  ;;  %v2726_v56 = vld [vmem:[%s5313_s1 + $0x408] sm:$0xf0]  ;;  %v3542_v43 = vld [vmem:[%s5313_s1 + $0x7a4] sm:$0xf] }
  0xcf   :  { %1979 = vmatpush.bf16.msra.mxu3 %v2961_v42  ;;  %v2790_v42 = vld [vmem:[%s5313_s1 + $0x488] sm:$0xf0]  ;;  %v2729_v5 = vor.u32 %v3426_v22, %v2726_v56  ;;  %v3153_v22 = vor.u32 %v3532_v54, %v3150_v55  ;;  %v3514_v56 = vld [vmem:[%s5313_s1 + $0x6c4] sm:$0xf]  ;;  %v3118_v54 = vld [vmem:[%s5313_s1 + $0x718] sm:$0xf0] }
  0xd0   :  { %1941 = vmatpush.bf16.msra.mxu0 %v2761_v63  ;;  %v1715_v59 = vpop.f32.mrf.mxu2  ;;  %v2918_v63 = vld [vmem:[%s5313_s1 + $0x588] sm:$0xf0]  ;;  %v2793_v12 = vor.u32 %v3442_v41, %v2790_v42 }
  0xd1   :  { %1954 = vmatpush.bf16.msra.mxu1 %v2825_v1  ;;  %v1728_v1 = vpop.f32.mrf.mxu3  ;;  %v3142_v41 = vld [vmem:[%s5313_s1 + $0x748] sm:$0xf0] }
  0xd2   :  { %1967 = vmatpush.bf16.msra.mxu2 %v2889_v2  ;;  %v3504_v2 = vld [vmem:[%s5313_s1 + $0x674] sm:$0xf]  ;;  %v3206_v59 = vld [vmem:[%s5313_s1 + $0x7c8] sm:$0xf0] }
  0xd3   :  { %1980 = vmatpush.bf16.msra.mxu3 %v2953_v8  ;;  %v3102_v8 = vld [vmem:[%s5313_s1 + $0x6f8] sm:$0xf0]  ;;  %v3496_v1 = vld [vmem:[%s5313_s1 + $0x634] sm:$0xf] }
  0xd4   :  { %1942 = vmatpush.bf16.msra.mxu0 %v2753_v15  ;;  %v3230_v15 = vld [vmem:[%s5313_s1 + $0x7f8] sm:$0xf0]  ;;  %v3105_v21 = vor.u32 %v3520_v4, %v3102_v8  ;;  %v3209_v4 = vor.u32 %v3546_v44, %v3206_v59  ;;  %v3528_v8 = vld [vmem:[%s5313_s1 + $0x734] sm:$0xf]  ;;  %v3538_v59 = vld [vmem:[%s5313_s1 + $0x784] sm:$0xf] }
  0xd5   :  { %1955 = vmatpush.bf16.msra.mxu1 %v2817_v16  ;;  %v2921_v16 = vor.u32 %v3474_v62, %v2918_v63  ;;  %v3233_v36 = vor.u32 %v3552_v14, %v3230_v15  ;;  %v3137_v15 = vor.u32 %v3528_v8, %v3134_v10  ;;  %v3560_v8 = vld [vmem:[%s5316_s3 + $0x30] sm:$0xff] }
  0xd6   :  { %1968 = vmatpush.bf16.msra.mxu2 %v2881_v17  ;;  %v3041_v17 = vor.u32 %v3504_v2, %v3038_v3  ;;  %v3006_v2 = vld [vmem:[%s5313_s1 + $0x638] sm:$0xf0]  ;;  %v3512_v3 = vld [vmem:[%s5313_s1 + $0x6b4] sm:$0xf] }
  0xd7   :  { %1981 = vmatpush.bf16.msra.mxu3 %v2945_v32  ;;  %v3030_v32 = vld [vmem:[%s5313_s1 + $0x668] sm:$0xf0] }
  0xd8   :  { %1943 = vmatpush.bf16.msra.mxu0 %v2745_v45  ;;  %v3550_v45 = vld [vmem:[%s5313_s1 + $0x7e4] sm:$0xf] }
  0xd9   :  { %1956 = vmatpush.bf16.msra.mxu1 %v2809_v47  ;;  %v3033_v47 = vor.u32 %v3502_v26, %v3030_v32  ;;  %v3062_v32 = vld [vmem:[%s5313_s1 + $0x6a8] sm:$0xf0] }
  0xda   :  { %1969 = vmatpush.bf16.msra.mxu2 %v2873_v48  ;;  %v3097_v48 = vor.u32 %v3518_v34, %v3094_v37  ;;  %v3526_v34 = vld [vmem:[%s5313_s1 + $0x724] sm:$0xf]  ;;  %v1688_v37 = vadd.f32 %v4937_v0, %v4853_v9  ;;  %v3492_v9 = vld [vmem:[%s5313_s1 + $0x614] sm:$0xf]  ;;  %v2990_v0 = vld [vmem:[%s5313_s1 + $0x618] sm:$0xf0] }
  0xdb   :  { %1982 = vmatpush.bf16.msra.mxu3 %v2937_v53  ;;  %v3225_v53 = vor.u32 %v3550_v45, %v3222_v46  ;;  %v3190_v45 = vld [vmem:[%s5313_s1 + $0x7a8] sm:$0xf0] }
  0xdc   :  { %1944 = vmatpush.bf16.msra.mxu0 %v2737_v20  ;;  %v3089_v20 = vor.u32 %v3516_v52, %v3086_v18  ;;  %v3193_v52 = vor.u32 %v3542_v43, %v3190_v45  ;;  %v3524_v18 = vld [vmem:[%s5313_s1 + $0x714] sm:$0xf]  ;;  %v1701_v55 = vadd.f32 %v4948_v7, %v1688_v37  ;;  %v2982_v7 = vld [vmem:[%s5313_s1 + $0x608] sm:$0xf0]  ;;  %v287_v43 = vperm.slane %v4754_v6, 1  ;;  %v3569_v6 = vld [vmem:[%s5316_s3 + $0x78] sm:$0xff] }
  0xdd   :  { %1957 = vmatpush.bf16.msra.mxu1 %v2801_v57  ;;  %v3078_v57 = vld [vmem:[%s5313_s1 + $0x6c8] sm:$0xf0] }
  0xde   :  { %1970 = vmatpush.bf16.msra.mxu2 %v2865_v58  ;;  %v3530_v58 = vld [vmem:[%s5313_s1 + $0x744] sm:$0xf]  ;;  %v3081_v62 = vor.u32 %v3514_v56, %v3078_v57  ;;  %v1714_v44 = vadd.f32 %v4974_v27, %v1701_v55  ;;  %v3561_v27 = vld [vmem:[%s5316_s3 + $0x38] sm:$0xff] }
  0xdf   :  { %1983 = vmatpush.bf16.msra.mxu3 %v2929_v60  ;;  %v3145_v63 = vor.u32 %v3530_v58, %v3142_v41  ;;  %v3522_v57 = vld [vmem:[%s5313_s1 + $0x704] sm:$0xf]  ;;  %v3110_v58 = vld [vmem:[%s5313_s1 + $0x708] sm:$0xf0] }
  0xe0   :  { %1945 = vmatpush.bf16.msra.mxu0 %v2729_v5  ;;  %v5135_v42 = vpop.f32.mrf.mxu0  ;;  %v3070_v5 = vld [vmem:[%s5313_s1 + $0x6b8] sm:$0xf0] }
  0xe1   :  { %1958 = vmatpush.bf16.msra.mxu1 %v2793_v12  ;;  %v5143_v61 = vpop.f32.mrf.mxu1  ;;  %v3198_v12 = vld [vmem:[%s5313_s1 + $0x7b8] sm:$0xf0]  ;;  %v3073_v14 = vor.u32 %v3512_v3, %v3070_v5 }
  0xe2   :  { %1971 = vmatpush.bf16.msra.mxu2 %v2857_v13  ;;  %v3009_v13 = vor.u32 %v3496_v1, %v3006_v2  ;;  %v3113_v2 = vor.u32 %v3522_v57, %v3110_v58  ;;  %v3564_v58 = vld [vmem:[%s5316_s3 + $0x50] sm:$0xff] }
  0xe3   :  { %1984 = vmatpush.bf16.msra.mxu3 %v2921_v16  ;;  %1946 = vmatmul.bf16.vlgmr.msra.gmra.mxu0 %v4252_v25  ;;  %v3548_v25 = vld [vmem:[%s5313_s1 + $0x7d4] sm:$0xf]  ;;  %v3494_v16 = vld [vmem:[%s5313_s1 + $0x624] sm:$0xf] }
  0xe4   :  { %1990 = vmatpush.bf16.msrb.mxu0 %v3041_v17  ;;  %1959 = vmatmul.bf16.vlgmr.msra.gmra.mxu1 %v4265_v30  ;;  %v3014_v30 = vld [vmem:[%s5313_s1 + $0x648] sm:$0xf0] }
  0xe5   :  { %2003 = vmatpush.bf16.msrb.mxu1 %v3105_v21  ;;  %1972 = vmatmul.bf16.vlgmr.msra.gmra.mxu2 %v4263_v29  ;;  %v3498_v29 = vld [vmem:[%s5313_s1 + $0x644] sm:$0xf]  ;;  %v2998_v17 = vld [vmem:[%s5313_s1 + $0x628] sm:$0xf0] }
  0xe6   :  { %2016 = vmatpush.bf16.msrb.mxu2 %v3169_v24  ;;  %1985 = vmatmul.bf16.vlgmr.msra.gmra.mxu3 %v4273_v33  ;;  %v3217_v33 = vor.u32 %v3548_v25, %v3214_v19  ;;  %v3017_v60 = vor.u32 %v3498_v29, %v3014_v30  ;;  %v3510_v21 = vld [vmem:[%s5313_s1 + $0x6a4] sm:$0xf]  ;;  %v3201_v24 = vor.u32 %v3544_v11, %v3198_v12  ;;  %v3540_v25 = vld [vmem:[%s5313_s1 + $0x794] sm:$0xf]  ;;  %v3182_v19 = vld [vmem:[%s5313_s1 + $0x798] sm:$0xf0] }
  0xe7   :  { %2029 = vmatpush.bf16.msrb.mxu3 %v3233_v36  ;;  %v3126_v36 = vld [vmem:[%s5313_s1 + $0x728] sm:$0xf0]  ;;  %v3490_v29 = vld [vmem:[%s5313_s1 + $0x604] sm:$0xf]  ;;  %v3185_v56 = vor.u32 %v3540_v25, %v3182_v19 }
  0xe8   :  { %1991 = vmatpush.bf16.msrb.mxu0 %v3033_v47  ;;  %v5178_v26 = vpop.f32.mrf.mxu2  ;;  %v1741_v46 = vpop.f32.mrf.mxu0  ;;  %v3001_v47 = vor.u32 %v3494_v16, %v2998_v17  ;;  %v3129_v50 = vor.u32 %v3526_v34, %v3126_v36  ;;  %v3506_v30 = vld [vmem:[%s5313_s1 + $0x684] sm:$0xf]  ;;  %v3556_v16 = vld [vmem:[%s5316_s3 + $0x10] sm:$0xff] }
  0xe9   :  { %2004 = vmatpush.bf16.msrb.mxu1 %v3097_v48  ;;  %v5191_v40 = vpop.f32.mrf.mxu3  ;;  %v1754_v48 = vpop.f32.mrf.mxu1  ;;  %v3554_v36 = vld [vmem:[%s5316_s3] sm:$0xff] }
  0xea   :  { %2017 = vmatpush.bf16.msrb.mxu2 %v3161_v49  ;;  %v3065_v49 = vor.u32 %v3510_v21, %v3062_v32 }
  0xeb   :  { %2030 = vmatpush.bf16.msrb.mxu3 %v3225_v53  ;;  %v3054_v53 = vld [vmem:[%s5313_s1 + $0x698] sm:$0xf0] }
  0xec   :  { %1992 = vmatpush.bf16.msrb.mxu0 %v3025_v38  ;;  %v2993_v38 = vor.u32 %v3492_v9, %v2990_v0 }
  0xed   :  { %2005 = vmatpush.bf16.msrb.mxu1 %v3089_v20  ;;  %v3057_v20 = vor.u32 %v3508_v51, %v3054_v53 }
  0xee   :  { %2018 = vmatpush.bf16.msrb.mxu2 %v3153_v22  ;;  %v3121_v22 = vor.u32 %v3524_v18, %v3118_v54 }
  0xef   :  { %2031 = vmatpush.bf16.msrb.mxu3 %v3217_v33  ;;  %v3046_v33 = vld [vmem:[%s5313_s1 + $0x688] sm:$0xf0] }
  0xf0   :  { %1993 = vmatpush.bf16.msrb.mxu0 %v3017_v60  ;;  %v1767_v41 = vpop.f32.mrf.mxu2  ;;  %v3174_v60 = vld [vmem:[%s5313_s1 + $0x788] sm:$0xf0]  ;;  %v3049_v1 = vor.u32 %v3506_v30, %v3046_v33  ;;  %v3565_v33 = vld [vmem:[%s5316_s3 + $0x58] sm:$0xff] }
  0xf1   :  { %2006 = vmatpush.bf16.msrb.mxu1 %v3081_v62  ;;  %v1780_v62 = vpop.f32.mrf.mxu3  ;;  %v3177_v3 = vor.u32 %v3538_v59, %v3174_v60  ;;  %v3563_v59 = vld [vmem:[%s5316_s3 + $0x48] sm:$0xff] }
  0xf2   :  { %2019 = vmatpush.bf16.msrb.mxu2 %v3145_v63  ;;  %v2985_v63 = vor.u32 %v3490_v29, %v2982_v7  ;;  %v3567_v7 = vld [vmem:[%s5316_s3 + $0x68] sm:$0xff] }
  0xf3   :  { %2032 = vmatpush.bf16.msrb.mxu3 %v3209_v4  ;;  %v1727_v4 = vadd.f32 %v4985_v39, %v1714_v44  ;;  %v3559_v39 = vld [vmem:[%s5316_s3 + $0x28] sm:$0xff] }
  0xf4   :  { %1994 = vmatpush.bf16.msrb.mxu0 %v3009_v13 }
  0xf5   :  { %2007 = vmatpush.bf16.msrb.mxu1 %v3073_v14  ;;  %v1740_v5 = vadd.f32 %v5135_v42, %v1727_v4 }
  0xf6   :  { %2020 = vmatpush.bf16.msrb.mxu2 %v3137_v15 }
  0xf7   :  { %2033 = vmatpush.bf16.msrb.mxu3 %v3201_v24  ;;  %v1753_v10 = vadd.f32 %v5143_v61, %v1740_v5  ;;  %v3555_v24 = vld [vmem:[%s5316_s3 + $0x8] sm:$0xff] }
  0xf8   :  { %1995 = vmatpush.bf16.msrb.mxu0 %v3001_v47 }
  0xf9   :  { %2008 = vmatpush.bf16.msrb.mxu1 %v3065_v49  ;;  %v1766_v42 = vadd.f32 %v5178_v26, %v1753_v10 }
  0xfa   :  { %2021 = vmatpush.bf16.msrb.mxu2 %v3129_v50 }
  0xfb   :  { %2034 = vmatpush.bf16.msrb.mxu3 %v3193_v52 }
  0xfc   :  { %1996 = vmatpush.bf16.msrb.mxu0 %v2993_v38 }
  0xfd   :  { %2009 = vmatpush.bf16.msrb.mxu1 %v3057_v20 }
  0xfe   :  { %2022 = vmatpush.bf16.msrb.mxu2 %v3121_v22  ;;  %v3568_v22 = vld [vmem:[%s5316_s3 + $0x70] sm:$0xff] }
  0xff   :  { %2035 = vmatpush.bf16.msrb.mxu3 %v3185_v56  ;;  %v3566_v56 = vld [vmem:[%s5316_s3 + $0x60] sm:$0xff] }
 0x100   :  { %1997 = vmatpush.bf16.msrb.mxu0 %v2985_v63  ;;  %v1791_v11 = vpop.f32.mrf.mxu0 }
 0x101   :  { %2010 = vmatpush.bf16.msrb.mxu1 %v3049_v1 }
 0x102   :  { %2023 = vmatpush.bf16.msrb.mxu2 %v3113_v2 }
 0x103   :  { %2036 = vmatpush.bf16.msrb.mxu3 %v3177_v3  ;;  %1998 = vmatmul.bf16.vlgmr.msrb.gmra.mxu0 %v4462_v23  ;;  %v3558_v23 = vld [vmem:[%s5316_s3 + $0x20] sm:$0xff] }
 0x104   :  { %2178 = vmatpush.bf16.msra.mxu0 %v3561_v27  ;;  %2011 = vmatmul.bf16.vlgmr.msrb.gmra.mxu1 %v4475_v31  ;;  %v1804_v31 = vpop.f32.mrf.mxu1  ;;  %v3562_v3 = vld [vmem:[%s5316_s3 + $0x40] sm:$0xff] }
 0x105   :  { %2024 = vmatmul.bf16.vlgmr.msrb.gmra.mxu2 %v4473_v28  ;;  %v1779_v28 = vadd.f32 %v5191_v40, %v1766_v42  ;;  %2191 = vmatpush.bf16.msra.mxu1 %v3569_v6 }
 0x106   :  { %2037 = vmatmul.bf16.vlgmr.msrb.gmra.mxu3 %v4483_v35  ;;  %v3557_v35 = vld [vmem:[%s5316_s3 + $0x18] sm:$0xff] }
 0x107   :  { %v1792_v12 = vadd.f32 %v1791_v11, %v1779_v28 }
 0x108   :  { %2179 = vmatpush.bf16.msra.mxu0 %v3560_v8  ;;  %v1817_v61 = vpop.f32.mrf.mxu2  ;;  %v1793_v15 = vpop.f32.mrf.mxu0 }
 0x109   :  { %v1805_v13 = vadd.f32 %v1804_v31, %v1792_v12  ;;  %v1830_v14 = vpop.f32.mrf.mxu3  ;;  %2192 = vmatpush.bf16.msra.mxu1 %v3568_v22 }
 0x10b   :  { %v1818_v21 = vadd.f32 %v1817_v61, %v1805_v13 }
 0x10c   :  { %2180 = vmatpush.bf16.msra.mxu0 %v3559_v39  ;;  %v1806_v17 = vpop.f32.mrf.mxu1 }
 0x10d   :  { %v1831_v26 = vadd.f32 %v1830_v14, %v1818_v21  ;;  %2193 = vmatpush.bf16.msra.mxu1 %v3567_v7 }
 0x10f   :  { %v2042_v37 = vmax.f32 %v1831_v26, 0.0 }
 0x110   :  { %2181 = vmatpush.bf16.msra.mxu0 %v3558_v23  ;;  %v1819_v32 = vpop.f32.mrf.mxu2 }
 0x111   :  { %v1832_v34 = vpop.f32.mrf.mxu3  ;;  %v2044_v40 = vpack.c.bf16 %v2042_v37, %v2042_v37  ;;  %2194 = vmatpush.bf16.msra.mxu1 %v3566_v56 }
 0x114   :  { %2182 = vmatpush.bf16.msra.mxu0 %v3557_v35 }
 0x115   :  { %2195 = vmatpush.bf16.msra.mxu1 %v3565_v33 }
 0x118   :  { %2183 = vmatpush.bf16.msra.mxu0 %v3556_v16 }
 0x119   :  { %2196 = vmatpush.bf16.msra.mxu1 %v3564_v58 }
 0x11c   :  { %2184 = vmatpush.bf16.msra.mxu0 %v3555_v24 }
 0x11d   :  { %2197 = vmatpush.bf16.msra.mxu1 %v3563_v59 }
 0x120   :  { %2185 = vmatpush.bf16.msra.mxu0 %v3554_v36  ;;  %v1843_v45 = vpop.f32.mrf.mxu0  ;;  %v3570_v36 = vld [vmem:[%s5317_s4] ss:$0 sm:$0xff] }
 0x121   :  { %v1844_v46 = vadd.f32 %v1843_v45, %v287_v43  ;;  %v1856_v47 = vpop.f32.mrf.mxu1  ;;  %2198 = vmatpush.bf16.msra.mxu1 %v3562_v3 }
 0x123   :  { %2186 = vmatmul.bf16.vlgmr.msra.gmra.mxu0 %v2044_v40  ;;  %v1857_v48 = vadd.f32 %v1856_v47, %v1844_v46 }
 0x128   :  { %v1869_v49 = vpop.f32.mrf.mxu2  ;;  %v1845_v51 = vpop.f32.mrf.mxu0 }
 0x129   :  { %v1870_v50 = vadd.f32 %v1869_v49, %v1857_v48  ;;  %v1882_v9 = vpop.f32.mrf.mxu3  ;;  %v1858_v52 = vpop.f32.mrf.mxu1 }
 0x12b   :  { %v1883_v0 = vadd.f32 %v1882_v9, %v1870_v50 }
 0x130   :  { %v1871_v53 = vpop.f32.mrf.mxu2 }
 0x131   :  { %v1884_v18 = vpop.f32.mrf.mxu3 }
 0x140   :  { %v1895_v54 = vpop.f32.mrf.mxu0 }
 0x141   :  { %v1908_v55 = vpop.f32.mrf.mxu1  ;;  %v1896_v44 = vadd.f32 %v1895_v54, %v1883_v0 }
 0x143   :  { %v1909_v1 = vadd.f32 %v1908_v55, %v1896_v44 }
 0x148   :  { %v1921_v25 = vpop.f32.mrf.mxu2  ;;  %v1897_v38 = vpop.f32.mrf.mxu0 }
 0x149   :  { %v1934_v19 = vpop.f32.mrf.mxu3  ;;  %v1910_v20 = vpop.f32.mrf.mxu1  ;;  %v1922_v27 = vadd.f32 %v1921_v25, %v1909_v1 }
 0x14b   :  { %v1935_v8 = vadd.f32 %v1934_v19, %v1922_v27 }
 0x150   :  { %v1923_v29 = vpop.f32.mrf.mxu2 }
 0x151   :  { %v1936_v30 = vpop.f32.mrf.mxu3 }
 0x160   :  { %v1947_v57 = vpop.f32.mrf.mxu0 }
 0x161   :  { %v1960_v41 = vpop.f32.mrf.mxu1  ;;  %v1948_v10 = vadd.f32 %v1947_v57, %v1935_v8 }
 0x163   :  { %v1961_v39 = vadd.f32 %v1960_v41, %v1948_v10 }
 0x168   :  { %v1973_v60 = vpop.f32.mrf.mxu2  ;;  %v1949_v63 = vpop.f32.mrf.mxu0 }
 0x169   :  { %v1986_v62 = vpop.f32.mrf.mxu3  ;;  %v1962_v2 = vpop.f32.mrf.mxu1  ;;  %v1974_v42 = vadd.f32 %v1973_v60, %v1961_v39 }
 0x16b   :  { %v1987_v11 = vadd.f32 %v1986_v62, %v1974_v42 }
 0x170   :  { %v1975_v4 = vpop.f32.mrf.mxu2 }
 0x171   :  { %v1988_v5 = vpop.f32.mrf.mxu3 }
 0x180   :  { %v1999_v23 = vpop.f32.mrf.mxu0 }
 0x181   :  { %v2012_v31 = vpop.f32.mrf.mxu1  ;;  %v2000_v28 = vadd.f32 %v1999_v23, %v1987_v11 }
 0x183   :  { %v2013_v12 = vadd.f32 %v2012_v31, %v2000_v28 }
 0x188   :  { %v2025_v35 = vpop.f32.mrf.mxu2  ;;  %v2001_v14 = vpop.f32.mrf.mxu0 }
 0x189   :  { %v2026_v61 = vadd.f32 %v2025_v35, %v2013_v12  ;;  %v2038_v13 = vpop.f32.mrf.mxu3  ;;  %v2014_v15 = vpop.f32.mrf.mxu1 }
 0x18b   :  { %v2039_v16 = vadd.f32 %v2038_v13, %v2026_v61 }
 0x18d   :  { %v2043_v17 = vmax.f32 %v2039_v16, 0.0 }
 0x18f   :  { %v2045_v21 = vpack.c.bf16 %v2043_v17, %v2043_v17 }
 0x190   :  { %v2027_v24 = vpop.f32.mrf.mxu2 }
 0x191   :  { %v2040_v26 = vpop.f32.mrf.mxu3  ;;  %2199 = vmatmul.bf16.vlgmr.msra.gmra.mxu1 %v2045_v21 }
 0x1a0   :  { %v2187_v32 = vpop.f32.mrf.mxu0 }
 0x1a1   :  { %v2188_v37 = vadd.f32 %v3570_v36, %v2187_v32 }
 0x1a8   :  { %v2189_v34 = vpop.f32.mrf.mxu0 }
 0x20e   :  { %v2200_v40 = vpop.f32.mrf.mxu1 }
 0x20f   :  { %v2201_v43 = vadd.f32 %v2200_v40, %v2188_v37 }
 0x211   :  { %2205 = vst.msk [vmem:[%s5318_s5] sm:$0xff] %vm2204_vm0, %v2201_v43 }
 0x216   :  { %v2202_v45 = vpop.f32.mrf.mxu1 }

</bundles_post_ra>
